<compile_context>
chip_gen: v7x
topology: tpu7x:2x2x1
jax: 0.10.0
libtpu: 0.0.40
codegen_flags: <defaults>
</compile_context>

<pallas_src>
import functools

import jax
import jax.numpy as jnp
from jax.experimental import pallas as pl
from jax.experimental.pallas import tpu as pltpu


_VMEM_LIMIT = 48 * 1024 * 1024  # fits v7x's 64 MiB physical VMEM with headroom


def _pick_tile(dim, target=32):
    """Largest row-tile <= target that divides dim (prefer multiples of 8)."""
    if dim <= target:
        return dim
    for t in range(target, 7, -1):
        if dim % t == 0 and t % 8 == 0:
            return t
    for t in range(target, 0, -1):
        if dim % t == 0:
            return t
    return dim


# ----------------------------------------------------------------------------
# Fused encoder (conv -> d1 -> d2 -> d3, dense concat) + per-pixel L1 norm
# ----------------------------------------------------------------------------
def _encoder_kernel(xp_ref, w0_ref, b0_ref, w1_ref, b1_ref, w2_ref, b2_ref,
                    w3_ref, b3_ref, feat_ref, l1_ref, *, TH, H, W):
    # xp_ref : (1, H+8, W+2, 8) bf16  -- input padded by 4 rows / 1 col, VMEM
    #                                     resident per batch element.
    # w*_ref : (3, 3*Cin, 16) bf16 (taps folded kx-major into K), b*: (1, 16)
    # feat_ref: (1, TH, W, 64) bf16 ; l1_ref: (1, TH, W) f32
    i = pl.program_id(1)
    a = i * TH  # first output image row of this tile

    def conv_block(x, w_ref, b_ref):
        # x: (R+2, W+2, Cin) -> relu(conv3x3) -> (R, W, Cout) f32
        x = x.astype(jnp.bfloat16)
        R = x.shape[0] - 2
        cin = x.shape[2]
        cout = w_ref.shape[-1]
        acc = jnp.zeros((R * W, cout), jnp.float32)
        for ky in range(3):
            rows = x[ky:ky + R]
            patch = jnp.concatenate(
                [rows[:, 0:W, :], rows[:, 1:W + 1, :], rows[:, 2:W + 2, :]],
                axis=-1).reshape(R * W, 3 * cin)
            acc = acc + jnp.dot(patch, w_ref[ky],
                                preferred_element_type=jnp.float32)
        acc = jnp.maximum(acc + b_ref[0], 0.0)
        return acc.reshape(R, W, cout)

    def colpad(x):
        z = jnp.zeros((x.shape[0], 1, x.shape[2]), x.dtype)
        return jnp.concatenate([z, x, z], axis=1)

    def mask_rows(x, start):
        # zero rows whose image-row index falls outside [0, H) so they act as
        # the zero padding the next conv expects.
        r = jax.lax.broadcasted_iota(jnp.int32, (x.shape[0], 1, 1), 0) + start
        return x * ((r >= 0) & (r < H)).astype(x.dtype)

    strip = xp_ref[0, pl.ds(a, TH + 8), :, :]          # image rows [a-4, a+TH+4)
    s0 = mask_rows(conv_block(strip, w0_ref, b0_ref), a - 3)        # [a-3, a+TH+3)
    s1 = mask_rows(conv_block(colpad(s0), w1_ref, b1_ref), a - 2)   # [a-2, a+TH+2)
    x2 = jnp.concatenate([s0[1:TH + 5], s1], axis=-1)
    s2 = mask_rows(conv_block(colpad(x2), w2_ref, b2_ref), a - 1)   # [a-1, a+TH+1)
    x3 = jnp.concatenate([s0[2:TH + 4], s1[1:TH + 3], s2], axis=-1)
    s3 = conv_block(colpad(x3), w3_ref, b3_ref)                     # [a, a+TH)
    feat = jnp.concatenate([s0[3:TH + 3], s1[2:TH + 2], s2[1:TH + 1], s3],
                           axis=-1)                                 # (TH, W, 64)
    feat_ref[0] = feat.astype(feat_ref.dtype)
    l1_ref[0] = jnp.sum(jnp.abs(feat), axis=-1)                     # (TH, W) f32


def _prep_conv(wb, pad_cin_to=None):
    w, b = wb
    _, _, cin, cout = w.shape
    if pad_cin_to is not None and cin < pad_cin_to:
        w = jnp.pad(w, ((0, 0), (0, 0), (0, pad_cin_to - cin), (0, 0)))
        cin = pad_cin_to
    wk = w.reshape(3, 3 * cin, cout).astype(jnp.bfloat16)   # [ky][kx*Cin+ci]
    b2 = b.reshape(1, cout).astype(jnp.float32)
    return wk, b2


def encoder_forward(x, params, prefix):
    # x: (N, H, W, Cin) f32, Cin in {1, 3}
    N, H, W, cin = x.shape
    TH = _pick_tile(H)
    CP = 8
    xp = jnp.pad(x.astype(jnp.bfloat16),
                 ((0, 0), (4, 4), (1, 1), (0, CP - cin)))
    w0, b0 = _prep_conv(params[prefix + '_conv'], pad_cin_to=CP)
    w1, b1 = _prep_conv(params[prefix + '_d1'])
    w2, b2 = _prep_conv(params[prefix + '_d2'])
    w3, b3 = _prep_conv(params[prefix + '_d3'])

    feat, l1 = pl.pallas_call(
        functools.partial(_encoder_kernel, TH=TH, H=H, W=W),
        out_shape=(jax.ShapeDtypeStruct((N, H, W, 64), jnp.bfloat16),
                   jax.ShapeDtypeStruct((N, H, W), jnp.float32)),
        grid=(N, H // TH),
        in_specs=[
            pl.BlockSpec((1, H + 8, W + 2, CP), lambda n, i: (n, 0, 0, 0)),
            pl.BlockSpec(w0.shape, lambda n, i: (0, 0, 0)),
            pl.BlockSpec(b0.shape, lambda n, i: (0, 0)),
            pl.BlockSpec(w1.shape, lambda n, i: (0, 0, 0)),
            pl.BlockSpec(b1.shape, lambda n, i: (0, 0)),
            pl.BlockSpec(w2.shape, lambda n, i: (0, 0, 0)),
            pl.BlockSpec(b2.shape, lambda n, i: (0, 0)),
            pl.BlockSpec(w3.shape, lambda n, i: (0, 0, 0)),
            pl.BlockSpec(b3.shape, lambda n, i: (0, 0)),
        ],
        out_specs=[
            pl.BlockSpec((1, TH, W, 64), lambda n, i: (n, i, 0, 0)),
            pl.BlockSpec((1, TH, W), lambda n, i: (n, i, 0)),
        ],
        compiler_params=pltpu.CompilerParams(
            dimension_semantics=("parallel", "parallel"),
            vmem_limit_bytes=_VMEM_LIMIT),
    )(xp, w0, b0, w1, b1, w2, b2, w3, b3)
    return feat, l1


# ----------------------------------------------------------------------------
# Fused fusion stage: 3x3 box-avg of the L1 maps + weighted blend
# ----------------------------------------------------------------------------
def _fusion_kernel(f1_ref, f2_ref, n1_ref, n2_ref, ab_ref, o_ref, *, TH, H, W):
    # f*_ref: (1, TH, W, 64) bf16 tiles; n*_ref: (1, H, W) f32 resident maps
    i = pl.program_id(1)
    a = i * TH

    def smoothed(n_ref):
        mid = n_ref[0, pl.ds(a, TH), :]                               # (TH, W)
        top = n_ref[0, pl.ds(jnp.maximum(a - 1, 0), 1), :]
        bot = n_ref[0, pl.ds(jnp.minimum(a + TH, H - 1), 1), :]
        top = top * (a > 0).astype(top.dtype)
        bot = bot * (a + TH < H).astype(bot.dtype)
        s = jnp.concatenate([top, mid, bot], axis=0)                  # (TH+2, W)
        z = jnp.zeros((TH + 2, 1), s.dtype)
        sp = jnp.concatenate([z, s, z], axis=1)                       # (TH+2, W+2)
        acc = jnp.zeros((TH, W), jnp.float32)
        for ky in range(3):
            for kx in range(3):
                acc = acc + sp[ky:ky + TH, kx:kx + W]
        return acc * (1.0 / 9.0) + ab_ref[0, 0]

    c1 = smoothed(n1_ref)
    c2 = smoothed(n2_ref)
    # Same 0/0 hazard as the PyTorch reference when both L1 maps vanish.
    inv = pl.reciprocal(c1 + c2, approx=True)
    w1 = (c1 * inv)[:, :, None]
    w2 = (c2 * inv)[:, :, None]
    fused = (f1_ref[0].astype(jnp.float32) * w1 +
             f2_ref[0].astype(jnp.float32) * w2)
    o_ref[0] = fused.astype(o_ref.dtype)


def fusion_forward(f1, n1, f2, n2, avg_bias):
    # TODO(synk): PyTorch Fusion hardcodes a 256x256 reshape; generalized here
    # to the actual (H, W) of the feature maps.
    N, H, W, C = f1.shape
    TH = _pick_tile(H)
    ab = avg_bias.reshape(1, 1).astype(jnp.float32)
    return pl.pallas_call(
        functools.partial(_fusion_kernel, TH=TH, H=H, W=W),
        out_shape=jax.ShapeDtypeStruct((N, H, W, C), jnp.bfloat16),
        grid=(N, H // TH),
        in_specs=[
            pl.BlockSpec((1, TH, W, C), lambda n, i: (n, i, 0, 0)),
            pl.BlockSpec((1, TH, W, C), lambda n, i: (n, i, 0, 0)),
            pl.BlockSpec((1, H, W), lambda n, i: (n, 0, 0)),
            pl.BlockSpec((1, H, W), lambda n, i: (n, 0, 0)),
            pl.BlockSpec((1, 1), lambda n, i: (0, 0)),
        ],
        out_specs=pl.BlockSpec((1, TH, W, C), lambda n, i: (n, i, 0, 0)),
        compiler_params=pltpu.CompilerParams(
            dimension_semantics=("parallel", "parallel"),
            vmem_limit_bytes=_VMEM_LIMIT),
    )(f1, f2, n1, n2, ab)


# ----------------------------------------------------------------------------
# Stride-2 3x3 conv (the two "adapt" layers), stride handled in-kernel,
# taps folded into the MXU contraction (K = 192).
# ----------------------------------------------------------------------------
def _adapt_kernel(xp_ref, w_ref, b_ref, o_ref, *, THo, Wo):
    # xp_ref: (1, Hin, Wo, 128) bf16 -- column pairs pre-merged into lanes
    #         (lane c of pair j:  c<64 -> input col 2j, c>=64 -> col 2j+1)
    # w_ref : (3, 192, 64) bf16 ([ky][kx*64+ci]) ; b_ref: (1, 64) f32
    # o_ref : (1, THo, Wo, 64)
    i = pl.program_id(1)
    a = i * THo
    C = 64
    main = xp_ref[0, pl.ds(2 * a, 2 * THo), :, :]                 # rows [2a, 2a+2THo)
    top = xp_ref[0, pl.ds(jnp.maximum(2 * a - 1, 0), 1), :, :]    # row 2a-1 (or pad)
    top = top * (a > 0).astype(top.dtype)
    dummy = jnp.zeros_like(top)                                   # never read
    strip = jnp.concatenate([top, main, dummy], axis=0)           # (2*THo+2, Wo, 128)
    zpair = jnp.zeros((strip.shape[0], 1, 2 * C), strip.dtype)
    stripz = jnp.concatenate([zpair, strip], axis=1)              # (2*THo+2, Wo+1, 128)
    r4 = stripz.reshape(THo + 1, 2, Wo + 1, 2 * C)                # de-interleave rows

    acc = jnp.zeros((THo * Wo, C), jnp.float32)
    for ky in range(3):
        if ky == 0:
            rows = r4[0:THo, 0]
        elif ky == 1:
            rows = r4[0:THo, 1]
        else:
            rows = r4[1:THo + 1, 0]
        kx0 = rows[:, 0:Wo, C:2 * C]        # input col 2*ox - 1 (left pad at ox=0)
        kx1 = rows[:, 1:Wo + 1, 0:C]        # input col 2*ox
        kx2 = rows[:, 1:Wo + 1, C:2 * C]    # input col 2*ox + 1
        patch = jnp.concatenate([kx0, kx1, kx2], axis=-1).reshape(THo * Wo, 3 * C)
        acc = acc + jnp.dot(patch, w_ref[ky], preferred_element_type=jnp.float32)
    acc = acc + b_ref[0]
    o_ref[0] = acc.reshape(THo, Wo, C).astype(o_ref.dtype)


def adapt_forward(x, w, b, out_dtype):
    # x: (N, Hin, Win, 64) ; Conv2d(64, 64, 3, stride=2, padding=1), no ReLU.
    N, Hin, Win, C = x.shape
    assert Hin % 2 == 0 and Win % 2 == 0, "stride-2 path assumes even H, W"
    Hout, Wout = Hin // 2, Win // 2
    THo = _pick_tile(Hout)
    xp = x.astype(jnp.bfloat16).reshape(N, Hin, Wout, 2 * C)  # free (contiguous)
    wk = w.reshape(3, 3 * C, C).astype(jnp.bfloat16)
    b2 = b.reshape(1, C).astype(jnp.float32)
    return pl.pallas_call(
        functools.partial(_adapt_kernel, THo=THo, Wo=Wout),
        out_shape=jax.ShapeDtypeStruct((N, Hout, Wout, C), out_dtype),
        grid=(N, Hout // THo),
        in_specs=[
            pl.BlockSpec((1, Hin, Wout, 2 * C), lambda n, i: (n, 0, 0, 0)),
            pl.BlockSpec((3, 3 * C, C), lambda n, i: (0, 0, 0)),
            pl.BlockSpec((1, C), lambda n, i: (0, 0)),
        ],
        out_specs=pl.BlockSpec((1, THo, Wout, C), lambda n, i: (n, i, 0, 0)),
        compiler_params=pltpu.CompilerParams(
            dimension_semantics=("parallel", "parallel"),
            vmem_limit_bytes=_VMEM_LIMIT),
    )(xp, wk, b2)


# ----------------------------------------------------------------------------
# Full DenseFuse_bb forward
# ----------------------------------------------------------------------------
@jax.jit
def densefuse_bb(params, x1_nchw, x2_nchw):
    x1 = jnp.transpose(x1_nchw, (0, 2, 3, 1))
    x2 = jnp.transpose(x2_nchw, (0, 2, 3, 1))
    f1, n1 = encoder_forward(x1, params, 'e1')            # (N,H,W,64), (N,H,W)
    f2, n2 = encoder_forward(x2, params, 'e2')
    fused = fusion_forward(f1, n1, f2, n2, params['avg_b'])
    w, b = params['adapt1']
    y = adapt_forward(fused, w, b, jnp.bfloat16)
    w, b = params['adapt2']
    y = adapt_forward(y, w, b, jnp.float32)
    return jnp.transpose(y, (0, 3, 1, 2))                  # back to NCHW


# ----------------------------------------------------------------------------
# Deterministic parameter init (shapes from the module __init__)
# ----------------------------------------------------------------------------
def init_params(key):
    def conv_p(k, cin, cout):
        k1, k2 = jax.random.split(k)
        w = jax.random.normal(k1, (3, 3, cin, cout), jnp.float32) * 0.1
        b = jax.random.normal(k2, (cout,), jnp.float32) * 0.1
        return w, b

    keys = jax.random.split(key, 11)
    return {
        'e1_conv': conv_p(keys[0], 1, 16),
        'e1_d1': conv_p(keys[1], 16, 16),
        'e1_d2': conv_p(keys[2], 32, 16),
        'e1_d3': conv_p(keys[3], 48, 16),
        'e2_conv': conv_p(keys[4], 3, 16),
        'e2_d1': conv_p(keys[5], 16, 16),
        'e2_d2': conv_p(keys[6], 32, 16),
        'e2_d3': conv_p(keys[7], 48, 16),
        # Fusion.avg: weight is fixed ones/9 (baked into the kernel); only its
        # bias is a free parameter.
        'avg_b': jax.random.normal(keys[8], (1,), jnp.float32) * 0.1,
        'adapt1': conv_p(keys[9], 64, 64),
        'adapt2': conv_p(keys[10], 64, 64),
    }


if __name__ == "__main__":
    key = jax.random.PRNGKey(0)
    kp, k1, k2 = jax.random.split(key, 3)
    params = init_params(kp)

    # Small shapes consistent with the module: x1 is 1-channel, x2 is 3-channel.
    x1 = jax.random.normal(k1, (2, 1, 16, 16), jnp.float32)
    x2 = jax.random.normal(k2, (2, 3, 16, 16), jnp.float32)

    out = densefuse_bb(params, x1, x2)
    out = jax.block_until_ready(out)
    assert out.shape == (2, 64, 4, 4), out.shape
    assert out.dtype == jnp.float32
    print("KERNEL_OK")
</pallas_src>

<mosaic_0001>
module attributes {stable_mosaic.version = 11 : i64} {
  func.func @_encoder_kernel(%arg0: i32, %arg1: i32, %arg2: memref<1x24x18x8xbf16, #tpu.memory_space<vmem>>, %arg3: memref<3x24x16xbf16, #tpu.memory_space<vmem>>, %arg4: memref<1x16xf32, #tpu.memory_space<vmem>>, %arg5: memref<3x48x16xbf16, #tpu.memory_space<vmem>>, %arg6: memref<1x16xf32, #tpu.memory_space<vmem>>, %arg7: memref<3x96x16xbf16, #tpu.memory_space<vmem>>, %arg8: memref<1x16xf32, #tpu.memory_space<vmem>>, %arg9: memref<3x144x16xbf16, #tpu.memory_space<vmem>>, %arg10: memref<1x16xf32, #tpu.memory_space<vmem>>, %arg11: memref<1x16x16x64xbf16, #tpu.memory_space<vmem>>, %arg12: memref<1x16x16xf32, #tpu.memory_space<vmem>>) attributes {dimension_semantics = [#tpu.dimension_semantics<parallel>, #tpu.dimension_semantics<parallel>], iteration_bounds = array<i64: 2, 1>, scalar_prefetch = 0 : i64, scratch_operands = 0 : i64, tpu.core_type = #tpu.core_type<tc>, window_params = [{transform_indices = @transform_0, window_bounds = array<i64: 1, 24, 18, 8>}, {pipeline_mode = #tpu.pipeline_mode<synchronous>, transform_indices = @transform_1, window_bounds = array<i64: 3, 24, 16>}, {pipeline_mode = #tpu.pipeline_mode<synchronous>, transform_indices = @transform_2, window_bounds = array<i64: 1, 16>}, {pipeline_mode = #tpu.pipeline_mode<synchronous>, transform_indices = @transform_3, window_bounds = array<i64: 3, 48, 16>}, {pipeline_mode = #tpu.pipeline_mode<synchronous>, transform_indices = @transform_4, window_bounds = array<i64: 1, 16>}, {pipeline_mode = #tpu.pipeline_mode<synchronous>, transform_indices = @transform_5, window_bounds = array<i64: 3, 96, 16>}, {pipeline_mode = #tpu.pipeline_mode<synchronous>, transform_indices = @transform_6, window_bounds = array<i64: 1, 16>}, {pipeline_mode = #tpu.pipeline_mode<synchronous>, transform_indices = @transform_7, window_bounds = array<i64: 3, 144, 16>}, {pipeline_mode = #tpu.pipeline_mode<synchronous>, transform_indices = @transform_8, window_bounds = array<i64: 1, 16>}, {transform_indices = @transform_9, window_bounds = array<i64: 1, 16, 16, 64>}, {transform_indices = @transform_10, window_bounds = array<i64: 1, 16, 16>}]} {
    %c16_i32 = arith.constant 16 : i32
    %0 = arith.muli %arg1, %c16_i32 : i32
    %c0 = arith.constant 0 : index
    %1 = arith.index_cast %0 : i32 to index
    %c0_0 = arith.constant 0 : index
    %c0_1 = arith.constant 0 : index
    %2 = vector.load %arg2[%c0, %1, %c0_0, %c0_1] : memref<1x24x18x8xbf16, #tpu.memory_space<vmem>>, vector<1x24x18x8xbf16>
    %3 = vector.shape_cast %2 : vector<1x24x18x8xbf16> to vector<24x18x8xbf16>
    %cst = arith.constant 0.000000e+00 : f32
    %4 = vector.broadcast %cst : f32 to vector<352x16xf32>
    %5 = vector.extract_strided_slice %3 {offsets = [0, 0, 0], sizes = [22, 18, 8], strides = [1, 1, 1]} : vector<24x18x8xbf16> to vector<22x18x8xbf16>
    %6 = vector.extract_strided_slice %5 {offsets = [0, 0, 0], sizes = [22, 16, 8], strides = [1, 1, 1]} : vector<22x18x8xbf16> to vector<22x16x8xbf16>
    %7 = vector.extract_strided_slice %5 {offsets = [0, 1, 0], sizes = [22, 16, 8], strides = [1, 1, 1]} : vector<22x18x8xbf16> to vector<22x16x8xbf16>
    %8 = vector.extract_strided_slice %5 {offsets = [0, 2, 0], sizes = [22, 16, 8], strides = [1, 1, 1]} : vector<22x18x8xbf16> to vector<22x16x8xbf16>
    %9 = tpu.concatenate %6, %7, %8 in 2 : vector<22x16x8xbf16>, vector<22x16x8xbf16>, vector<22x16x8xbf16> -> vector<22x16x24xbf16>
    %10 = vector.shape_cast %9 : vector<22x16x24xbf16> to vector<352x24xbf16>
    %c0_2 = arith.constant 0 : index
    %c0_3 = arith.constant 0 : index
    %c0_4 = arith.constant 0 : index
    %11 = vector.load %arg3[%c0_2, %c0_3, %c0_4] : memref<3x24x16xbf16, #tpu.memory_space<vmem>>, vector<1x24x16xbf16>
    %12 = vector.shape_cast %11 : vector<1x24x16xbf16> to vector<24x16xbf16>
    %cst_5 = arith.constant dense<0.000000e+00> : vector<352x16xf32>
    %13 = tpu.matmul %10, %12, %cst_5 {dimension_numbers = #tpu.dot_dimension_numbers<[1], [0], [0], [1], [0, 0, 1, 1], [], []>} : vector<352x24xbf16>, vector<24x16xbf16>, vector<352x16xf32> -> vector<352x16xf32>
    %14 = arith.addf %4, %13 : vector<352x16xf32>
    %15 = vector.extract_strided_slice %3 {offsets = [1, 0, 0], sizes = [22, 18, 8], strides = [1, 1, 1]} : vector<24x18x8xbf16> to vector<22x18x8xbf16>
    %16 = vector.extract_strided_slice %15 {offsets = [0, 0, 0], sizes = [22, 16, 8], strides = [1, 1, 1]} : vector<22x18x8xbf16> to vector<22x16x8xbf16>
    %17 = vector.extract_strided_slice %15 {offsets = [0, 1, 0], sizes = [22, 16, 8], strides = [1, 1, 1]} : vector<22x18x8xbf16> to vector<22x16x8xbf16>
    %18 = vector.extract_strided_slice %15 {offsets = [0, 2, 0], sizes = [22, 16, 8], strides = [1, 1, 1]} : vector<22x18x8xbf16> to vector<22x16x8xbf16>
    %19 = tpu.concatenate %16, %17, %18 in 2 : vector<22x16x8xbf16>, vector<22x16x8xbf16>, vector<22x16x8xbf16> -> vector<22x16x24xbf16>
    %20 = vector.shape_cast %19 : vector<22x16x24xbf16> to vector<352x24xbf16>
    %c1 = arith.constant 1 : index
    %c0_6 = arith.constant 0 : index
    %c0_7 = arith.constant 0 : index
    %21 = vector.load %arg3[%c1, %c0_6, %c0_7] : memref<3x24x16xbf16, #tpu.memory_space<vmem>>, vector<1x24x16xbf16>
    %22 = vector.shape_cast %21 : vector<1x24x16xbf16> to vector<24x16xbf16>
    %cst_8 = arith.constant dense<0.000000e+00> : vector<352x16xf32>
    %23 = tpu.matmul %20, %22, %cst_8 {dimension_numbers = #tpu.dot_dimension_numbers<[1], [0], [0], [1], [0, 0, 1, 1], [], []>} : vector<352x24xbf16>, vector<24x16xbf16>, vector<352x16xf32> -> vector<352x16xf32>
    %24 = arith.addf %14, %23 : vector<352x16xf32>
    %25 = vector.extract_strided_slice %3 {offsets = [2, 0, 0], sizes = [22, 18, 8], strides = [1, 1, 1]} : vector<24x18x8xbf16> to vector<22x18x8xbf16>
    %26 = vector.extract_strided_slice %25 {offsets = [0, 0, 0], sizes = [22, 16, 8], strides = [1, 1, 1]} : vector<22x18x8xbf16> to vector<22x16x8xbf16>
    %27 = vector.extract_strided_slice %25 {offsets = [0, 1, 0], sizes = [22, 16, 8], strides = [1, 1, 1]} : vector<22x18x8xbf16> to vector<22x16x8xbf16>
    %28 = vector.extract_strided_slice %25 {offsets = [0, 2, 0], sizes = [22, 16, 8], strides = [1, 1, 1]} : vector<22x18x8xbf16> to vector<22x16x8xbf16>
    %29 = tpu.concatenate %26, %27, %28 in 2 : vector<22x16x8xbf16>, vector<22x16x8xbf16>, vector<22x16x8xbf16> -> vector<22x16x24xbf16>
    %30 = vector.shape_cast %29 : vector<22x16x24xbf16> to vector<352x24xbf16>
    %c2 = arith.constant 2 : index
    %c0_9 = arith.constant 0 : index
    %c0_10 = arith.constant 0 : index
    %31 = vector.load %arg3[%c2, %c0_9, %c0_10] : memref<3x24x16xbf16, #tpu.memory_space<vmem>>, vector<1x24x16xbf16>
    %32 = vector.shape_cast %31 : vector<1x24x16xbf16> to vector<24x16xbf16>
    %cst_11 = arith.constant dense<0.000000e+00> : vector<352x16xf32>
    %33 = tpu.matmul %30, %32, %cst_11 {dimension_numbers = #tpu.dot_dimension_numbers<[1], [0], [0], [1], [0, 0, 1, 1], [], []>} : vector<352x24xbf16>, vector<24x16xbf16>, vector<352x16xf32> -> vector<352x16xf32>
    %34 = arith.addf %24, %33 : vector<352x16xf32>
    %c0_12 = arith.constant 0 : index
    %c0_13 = arith.constant 0 : index
    %35 = vector.load %arg4[%c0_12, %c0_13] : memref<1x16xf32, #tpu.memory_space<vmem>>, vector<1x16xf32>
    %36 = vector.shape_cast %35 : vector<1x16xf32> to vector<16xf32>
    %37 = vector.shape_cast %36 : vector<16xf32> to vector<1x16xf32>
    %38 = vector.broadcast %37 : vector<1x16xf32> to vector<352x16xf32>
    %39 = arith.addf %34, %38 : vector<352x16xf32>
    %cst_14 = arith.constant 0.000000e+00 : f32
    %40 = vector.broadcast %cst_14 : f32 to vector<352x16xf32>
    %41 = arith.maximumf %39, %40 : vector<352x16xf32>
    %42 = vector.shape_cast %41 : vector<352x16xf32> to vector<22x16x16xf32>
    %c3_i32 = arith.constant 3 : i32
    %43 = arith.subi %0, %c3_i32 : i32
    %44 = tpu.iota {dimensions = array<i32: 0>} : vector<22x1x1xi32>
    %45 = vector.broadcast %43 : i32 to vector<22x1x1xi32>
    %46 = arith.addi %44, %45 : vector<22x1x1xi32>
    %c0_i32 = arith.constant 0 : i32
    %47 = vector.broadcast %c0_i32 : i32 to vector<22x1x1xi32>
    %48 = arith.cmpi sge, %46, %47 : vector<22x1x1xi32>
    %c16_i32_15 = arith.constant 16 : i32
    %49 = vector.broadcast %c16_i32_15 : i32 to vector<22x1x1xi32>
    %50 = arith.cmpi slt, %46, %49 : vector<22x1x1xi32>
    %51 = arith.andi %48, %50 : vector<22x1x1xi1>
    %52 = arith.extui %51 : vector<22x1x1xi1> to vector<22x1x1xi32>
    %53 = arith.sitofp %52 : vector<22x1x1xi32> to vector<22x1x1xf32>
    %54 = vector.broadcast %53 : vector<22x1x1xf32> to vector<22x16x16xf32>
    %55 = arith.mulf %42, %54 : vector<22x16x16xf32>
    %cst_16 = arith.constant 0.000000e+00 : f32
    %56 = vector.broadcast %cst_16 : f32 to vector<22x1x16xf32>
    %57 = tpu.concatenate %56, %55, %56 in 1 : vector<22x1x16xf32>, vector<22x16x16xf32>, vector<22x1x16xf32> -> vector<22x18x16xf32>
    %58 = arith.truncf %57 : vector<22x18x16xf32> to vector<22x18x16xbf16>
    %cst_17 = arith.constant 0.000000e+00 : f32
    %59 = vector.broadcast %cst_17 : f32 to vector<320x16xf32>
    %60 = vector.extract_strided_slice %58 {offsets = [0, 0, 0], sizes = [20, 18, 16], strides = [1, 1, 1]} : vector<22x18x16xbf16> to vector<20x18x16xbf16>
    %61 = vector.extract_strided_slice %60 {offsets = [0, 0, 0], sizes = [20, 16, 16], strides = [1, 1, 1]} : vector<20x18x16xbf16> to vector<20x16x16xbf16>
    %62 = vector.extract_strided_slice %60 {offsets = [0, 1, 0], sizes = [20, 16, 16], strides = [1, 1, 1]} : vector<20x18x16xbf16> to vector<20x16x16xbf16>
    %63 = vector.extract_strided_slice %60 {offsets = [0, 2, 0], sizes = [20, 16, 16], strides = [1, 1, 1]} : vector<20x18x16xbf16> to vector<20x16x16xbf16>
    %64 = tpu.concatenate %61, %62, %63 in 2 : vector<20x16x16xbf16>, vector<20x16x16xbf16>, vector<20x16x16xbf16> -> vector<20x16x48xbf16>
    %65 = vector.shape_cast %64 : vector<20x16x48xbf16> to vector<320x48xbf16>
    %c0_18 = arith.constant 0 : index
    %c0_19 = arith.constant 0 : index
    %c0_20 = arith.constant 0 : index
    %66 = vector.load %arg5[%c0_18, %c0_19, %c0_20] : memref<3x48x16xbf16, #tpu.memory_space<vmem>>, vector<1x48x16xbf16>
    %67 = vector.shape_cast %66 : vector<1x48x16xbf16> to vector<48x16xbf16>
    %cst_21 = arith.constant dense<0.000000e+00> : vector<320x16xf32>
    %68 = tpu.matmul %65, %67, %cst_21 {dimension_numbers = #tpu.dot_dimension_numbers<[1], [0], [0], [1], [0, 0, 1, 1], [], []>} : vector<320x48xbf16>, vector<48x16xbf16>, vector<320x16xf32> -> vector<320x16xf32>
    %69 = arith.addf %59, %68 : vector<320x16xf32>
    %70 = vector.extract_strided_slice %58 {offsets = [1, 0, 0], sizes = [20, 18, 16], strides = [1, 1, 1]} : vector<22x18x16xbf16> to vector<20x18x16xbf16>
    %71 = vector.extract_strided_slice %70 {offsets = [0, 0, 0], sizes = [20, 16, 16], strides = [1, 1, 1]} : vector<20x18x16xbf16> to vector<20x16x16xbf16>
    %72 = vector.extract_strided_slice %70 {offsets = [0, 1, 0], sizes = [20, 16, 16], strides = [1, 1, 1]} : vector<20x18x16xbf16> to vector<20x16x16xbf16>
    %73 = vector.extract_strided_slice %70 {offsets = [0, 2, 0], sizes = [20, 16, 16], strides = [1, 1, 1]} : vector<20x18x16xbf16> to vector<20x16x16xbf16>
    %74 = tpu.concatenate %71, %72, %73 in 2 : vector<20x16x16xbf16>, vector<20x16x16xbf16>, vector<20x16x16xbf16> -> vector<20x16x48xbf16>
    %75 = vector.shape_cast %74 : vector<20x16x48xbf16> to vector<320x48xbf16>
    %c1_22 = arith.constant 1 : index
    %c0_23 = arith.constant 0 : index
    %c0_24 = arith.constant 0 : index
    %76 = vector.load %arg5[%c1_22, %c0_23, %c0_24] : memref<3x48x16xbf16, #tpu.memory_space<vmem>>, vector<1x48x16xbf16>
    %77 = vector.shape_cast %76 : vector<1x48x16xbf16> to vector<48x16xbf16>
    %cst_25 = arith.constant dense<0.000000e+00> : vector<320x16xf32>
    %78 = tpu.matmul %75, %77, %cst_25 {dimension_numbers = #tpu.dot_dimension_numbers<[1], [0], [0], [1], [0, 0, 1, 1], [], []>} : vector<320x48xbf16>, vector<48x16xbf16>, vector<320x16xf32> -> vector<320x16xf32>
    %79 = arith.addf %69, %78 : vector<320x16xf32>
    %80 = vector.extract_strided_slice %58 {offsets = [2, 0, 0], sizes = [20, 18, 16], strides = [1, 1, 1]} : vector<22x18x16xbf16> to vector<20x18x16xbf16>
    %81 = vector.extract_strided_slice %80 {offsets = [0, 0, 0], sizes = [20, 16, 16], strides = [1, 1, 1]} : vector<20x18x16xbf16> to vector<20x16x16xbf16>
    %82 = vector.extract_strided_slice %80 {offsets = [0, 1, 0], sizes = [20, 16, 16], strides = [1, 1, 1]} : vector<20x18x16xbf16> to vector<20x16x16xbf16>
    %83 = vector.extract_strided_slice %80 {offsets = [0, 2, 0], sizes = [20, 16, 16], strides = [1, 1, 1]} : vector<20x18x16xbf16> to vector<20x16x16xbf16>
    %84 = tpu.concatenate %81, %82, %83 in 2 : vector<20x16x16xbf16>, vector<20x16x16xbf16>, vector<20x16x16xbf16> -> vector<20x16x48xbf16>
    %85 = vector.shape_cast %84 : vector<20x16x48xbf16> to vector<320x48xbf16>
    %c2_26 = arith.constant 2 : index
    %c0_27 = arith.constant 0 : index
    %c0_28 = arith.constant 0 : index
    %86 = vector.load %arg5[%c2_26, %c0_27, %c0_28] : memref<3x48x16xbf16, #tpu.memory_space<vmem>>, vector<1x48x16xbf16>
    %87 = vector.shape_cast %86 : vector<1x48x16xbf16> to vector<48x16xbf16>
    %cst_29 = arith.constant dense<0.000000e+00> : vector<320x16xf32>
    %88 = tpu.matmul %85, %87, %cst_29 {dimension_numbers = #tpu.dot_dimension_numbers<[1], [0], [0], [1], [0, 0, 1, 1], [], []>} : vector<320x48xbf16>, vector<48x16xbf16>, vector<320x16xf32> -> vector<320x16xf32>
    %89 = arith.addf %79, %88 : vector<320x16xf32>
    %c0_30 = arith.constant 0 : index
    %c0_31 = arith.constant 0 : index
    %90 = vector.load %arg6[%c0_30, %c0_31] : memref<1x16xf32, #tpu.memory_space<vmem>>, vector<1x16xf32>
    %91 = vector.shape_cast %90 : vector<1x16xf32> to vector<16xf32>
    %92 = vector.shape_cast %91 : vector<16xf32> to vector<1x16xf32>
    %93 = vector.broadcast %92 : vector<1x16xf32> to vector<320x16xf32>
    %94 = arith.addf %89, %93 : vector<320x16xf32>
    %cst_32 = arith.constant 0.000000e+00 : f32
    %95 = vector.broadcast %cst_32 : f32 to vector<320x16xf32>
    %96 = arith.maximumf %94, %95 : vector<320x16xf32>
    %97 = vector.shape_cast %96 : vector<320x16xf32> to vector<20x16x16xf32>
    %c2_i32 = arith.constant 2 : i32
    %98 = arith.subi %0, %c2_i32 : i32
    %99 = tpu.iota {dimensions = array<i32: 0>} : vector<20x1x1xi32>
    %100 = vector.broadcast %98 : i32 to vector<20x1x1xi32>
    %101 = arith.addi %99, %100 : vector<20x1x1xi32>
    %c0_i32_33 = arith.constant 0 : i32
    %102 = vector.broadcast %c0_i32_33 : i32 to vector<20x1x1xi32>
    %103 = arith.cmpi sge, %101, %102 : vector<20x1x1xi32>
    %c16_i32_34 = arith.constant 16 : i32
    %104 = vector.broadcast %c16_i32_34 : i32 to vector<20x1x1xi32>
    %105 = arith.cmpi slt, %101, %104 : vector<20x1x1xi32>
    %106 = arith.andi %103, %105 : vector<20x1x1xi1>
    %107 = arith.extui %106 : vector<20x1x1xi1> to vector<20x1x1xi32>
    %108 = arith.sitofp %107 : vector<20x1x1xi32> to vector<20x1x1xf32>
    %109 = vector.broadcast %108 : vector<20x1x1xf32> to vector<20x16x16xf32>
    %110 = arith.mulf %97, %109 : vector<20x16x16xf32>
    %111 = vector.extract_strided_slice %55 {offsets = [1, 0, 0], sizes = [20, 16, 16], strides = [1, 1, 1]} : vector<22x16x16xf32> to vector<20x16x16xf32>
    %112 = tpu.concatenate %111, %110 in 2 : vector<20x16x16xf32>, vector<20x16x16xf32> -> vector<20x16x32xf32>
    %cst_35 = arith.constant 0.000000e+00 : f32
    %113 = vector.broadcast %cst_35 : f32 to vector<20x1x32xf32>
    %114 = tpu.concatenate %113, %112, %113 in 1 : vector<20x1x32xf32>, vector<20x16x32xf32>, vector<20x1x32xf32> -> vector<20x18x32xf32>
    %115 = arith.truncf %114 : vector<20x18x32xf32> to vector<20x18x32xbf16>
    %cst_36 = arith.constant 0.000000e+00 : f32
    %116 = vector.broadcast %cst_36 : f32 to vector<288x16xf32>
    %117 = vector.extract_strided_slice %115 {offsets = [0, 0, 0], sizes = [18, 18, 32], strides = [1, 1, 1]} : vector<20x18x32xbf16> to vector<18x18x32xbf16>
    %118 = vector.extract_strided_slice %117 {offsets = [0, 0, 0], sizes = [18, 16, 32], strides = [1, 1, 1]} : vector<18x18x32xbf16> to vector<18x16x32xbf16>
    %119 = vector.extract_strided_slice %117 {offsets = [0, 1, 0], sizes = [18, 16, 32], strides = [1, 1, 1]} : vector<18x18x32xbf16> to vector<18x16x32xbf16>
    %120 = vector.extract_strided_slice %117 {offsets = [0, 2, 0], sizes = [18, 16, 32], strides = [1, 1, 1]} : vector<18x18x32xbf16> to vector<18x16x32xbf16>
    %121 = tpu.concatenate %118, %119, %120 in 2 : vector<18x16x32xbf16>, vector<18x16x32xbf16>, vector<18x16x32xbf16> -> vector<18x16x96xbf16>
    %122 = vector.shape_cast %121 : vector<18x16x96xbf16> to vector<288x96xbf16>
    %c0_37 = arith.constant 0 : index
    %c0_38 = arith.constant 0 : index
    %c0_39 = arith.constant 0 : index
    %123 = vector.load %arg7[%c0_37, %c0_38, %c0_39] : memref<3x96x16xbf16, #tpu.memory_space<vmem>>, vector<1x96x16xbf16>
    %124 = vector.shape_cast %123 : vector<1x96x16xbf16> to vector<96x16xbf16>
    %cst_40 = arith.constant dense<0.000000e+00> : vector<288x16xf32>
    %125 = tpu.matmul %122, %124, %cst_40 {dimension_numbers = #tpu.dot_dimension_numbers<[1], [0], [0], [1], [0, 0, 1, 1], [], []>} : vector<288x96xbf16>, vector<96x16xbf16>, vector<288x16xf32> -> vector<288x16xf32>
    %126 = arith.addf %116, %125 : vector<288x16xf32>
    %127 = vector.extract_strided_slice %115 {offsets = [1, 0, 0], sizes = [18, 18, 32], strides = [1, 1, 1]} : vector<20x18x32xbf16> to vector<18x18x32xbf16>
    %128 = vector.extract_strided_slice %127 {offsets = [0, 0, 0], sizes = [18, 16, 32], strides = [1, 1, 1]} : vector<18x18x32xbf16> to vector<18x16x32xbf16>
    %129 = vector.extract_strided_slice %127 {offsets = [0, 1, 0], sizes = [18, 16, 32], strides = [1, 1, 1]} : vector<18x18x32xbf16> to vector<18x16x32xbf16>
    %130 = vector.extract_strided_slice %127 {offsets = [0, 2, 0], sizes = [18, 16, 32], strides = [1, 1, 1]} : vector<18x18x32xbf16> to vector<18x16x32xbf16>
    %131 = tpu.concatenate %128, %129, %130 in 2 : vector<18x16x32xbf16>, vector<18x16x32xbf16>, vector<18x16x32xbf16> -> vector<18x16x96xbf16>
    %132 = vector.shape_cast %131 : vector<18x16x96xbf16> to vector<288x96xbf16>
    %c1_41 = arith.constant 1 : index
    %c0_42 = arith.constant 0 : index
    %c0_43 = arith.constant 0 : index
    %133 = vector.load %arg7[%c1_41, %c0_42, %c0_43] : memref<3x96x16xbf16, #tpu.memory_space<vmem>>, vector<1x96x16xbf16>
    %134 = vector.shape_cast %133 : vector<1x96x16xbf16> to vector<96x16xbf16>
    %cst_44 = arith.constant dense<0.000000e+00> : vector<288x16xf32>
    %135 = tpu.matmul %132, %134, %cst_44 {dimension_numbers = #tpu.dot_dimension_numbers<[1], [0], [0], [1], [0, 0, 1, 1], [], []>} : vector<288x96xbf16>, vector<96x16xbf16>, vector<288x16xf32> -> vector<288x16xf32>
    %136 = arith.addf %126, %135 : vector<288x16xf32>
    %137 = vector.extract_strided_slice %115 {offsets = [2, 0, 0], sizes = [18, 18, 32], strides = [1, 1, 1]} : vector<20x18x32xbf16> to vector<18x18x32xbf16>
    %138 = vector.extract_strided_slice %137 {offsets = [0, 0, 0], sizes = [18, 16, 32], strides = [1, 1, 1]} : vector<18x18x32xbf16> to vector<18x16x32xbf16>
    %139 = vector.extract_strided_slice %137 {offsets = [0, 1, 0], sizes = [18, 16, 32], strides = [1, 1, 1]} : vector<18x18x32xbf16> to vector<18x16x32xbf16>
    %140 = vector.extract_strided_slice %137 {offsets = [0, 2, 0], sizes = [18, 16, 32], strides = [1, 1, 1]} : vector<18x18x32xbf16> to vector<18x16x32xbf16>
    %141 = tpu.concatenate %138, %139, %140 in 2 : vector<18x16x32xbf16>, vector<18x16x32xbf16>, vector<18x16x32xbf16> -> vector<18x16x96xbf16>
    %142 = vector.shape_cast %141 : vector<18x16x96xbf16> to vector<288x96xbf16>
    %c2_45 = arith.constant 2 : index
    %c0_46 = arith.constant 0 : index
    %c0_47 = arith.constant 0 : index
    %143 = vector.load %arg7[%c2_45, %c0_46, %c0_47] : memref<3x96x16xbf16, #tpu.memory_space<vmem>>, vector<1x96x16xbf16>
    %144 = vector.shape_cast %143 : vector<1x96x16xbf16> to vector<96x16xbf16>
    %cst_48 = arith.constant dense<0.000000e+00> : vector<288x16xf32>
    %145 = tpu.matmul %142, %144, %cst_48 {dimension_numbers = #tpu.dot_dimension_numbers<[1], [0], [0], [1], [0, 0, 1, 1], [], []>} : vector<288x96xbf16>, vector<96x16xbf16>, vector<288x16xf32> -> vector<288x16xf32>
    %146 = arith.addf %136, %145 : vector<288x16xf32>
    %c0_49 = arith.constant 0 : index
    %c0_50 = arith.constant 0 : index
    %147 = vector.load %arg8[%c0_49, %c0_50] : memref<1x16xf32, #tpu.memory_space<vmem>>, vector<1x16xf32>
    %148 = vector.shape_cast %147 : vector<1x16xf32> to vector<16xf32>
    %149 = vector.shape_cast %148 : vector<16xf32> to vector<1x16xf32>
    %150 = vector.broadcast %149 : vector<1x16xf32> to vector<288x16xf32>
    %151 = arith.addf %146, %150 : vector<288x16xf32>
    %cst_51 = arith.constant 0.000000e+00 : f32
    %152 = vector.broadcast %cst_51 : f32 to vector<288x16xf32>
    %153 = arith.maximumf %151, %152 : vector<288x16xf32>
    %154 = vector.shape_cast %153 : vector<288x16xf32> to vector<18x16x16xf32>
    %c1_i32 = arith.constant 1 : i32
    %155 = arith.subi %0, %c1_i32 : i32
    %156 = tpu.iota {dimensions = array<i32: 0>} : vector<18x1x1xi32>
    %157 = vector.broadcast %155 : i32 to vector<18x1x1xi32>
    %158 = arith.addi %156, %157 : vector<18x1x1xi32>
    %c0_i32_52 = arith.constant 0 : i32
    %159 = vector.broadcast %c0_i32_52 : i32 to vector<18x1x1xi32>
    %160 = arith.cmpi sge, %158, %159 : vector<18x1x1xi32>
    %c16_i32_53 = arith.constant 16 : i32
    %161 = vector.broadcast %c16_i32_53 : i32 to vector<18x1x1xi32>
    %162 = arith.cmpi slt, %158, %161 : vector<18x1x1xi32>
    %163 = arith.andi %160, %162 : vector<18x1x1xi1>
    %164 = arith.extui %163 : vector<18x1x1xi1> to vector<18x1x1xi32>
    %165 = arith.sitofp %164 : vector<18x1x1xi32> to vector<18x1x1xf32>
    %166 = vector.broadcast %165 : vector<18x1x1xf32> to vector<18x16x16xf32>
    %167 = arith.mulf %154, %166 : vector<18x16x16xf32>
    %168 = vector.extract_strided_slice %55 {offsets = [2, 0, 0], sizes = [18, 16, 16], strides = [1, 1, 1]} : vector<22x16x16xf32> to vector<18x16x16xf32>
    %169 = vector.extract_strided_slice %110 {offsets = [1, 0, 0], sizes = [18, 16, 16], strides = [1, 1, 1]} : vector<20x16x16xf32> to vector<18x16x16xf32>
    %170 = tpu.concatenate %168, %169, %167 in 2 : vector<18x16x16xf32>, vector<18x16x16xf32>, vector<18x16x16xf32> -> vector<18x16x48xf32>
    %cst_54 = arith.constant 0.000000e+00 : f32
    %171 = vector.broadcast %cst_54 : f32 to vector<18x1x48xf32>
    %172 = tpu.concatenate %171, %170, %171 in 1 : vector<18x1x48xf32>, vector<18x16x48xf32>, vector<18x1x48xf32> -> vector<18x18x48xf32>
    %173 = arith.truncf %172 : vector<18x18x48xf32> to vector<18x18x48xbf16>
    %cst_55 = arith.constant 0.000000e+00 : f32
    %174 = vector.broadcast %cst_55 : f32 to vector<256x16xf32>
    %175 = vector.extract_strided_slice %173 {offsets = [0, 0, 0], sizes = [16, 18, 48], strides = [1, 1, 1]} : vector<18x18x48xbf16> to vector<16x18x48xbf16>
    %176 = vector.extract_strided_slice %175 {offsets = [0, 0, 0], sizes = [16, 16, 48], strides = [1, 1, 1]} : vector<16x18x48xbf16> to vector<16x16x48xbf16>
    %177 = vector.extract_strided_slice %175 {offsets = [0, 1, 0], sizes = [16, 16, 48], strides = [1, 1, 1]} : vector<16x18x48xbf16> to vector<16x16x48xbf16>
    %178 = vector.extract_strided_slice %175 {offsets = [0, 2, 0], sizes = [16, 16, 48], strides = [1, 1, 1]} : vector<16x18x48xbf16> to vector<16x16x48xbf16>
    %179 = tpu.concatenate %176, %177, %178 in 2 : vector<16x16x48xbf16>, vector<16x16x48xbf16>, vector<16x16x48xbf16> -> vector<16x16x144xbf16>
    %180 = vector.shape_cast %179 : vector<16x16x144xbf16> to vector<256x144xbf16>
    %c0_56 = arith.constant 0 : index
    %c0_57 = arith.constant 0 : index
    %c0_58 = arith.constant 0 : index
    %181 = vector.load %arg9[%c0_56, %c0_57, %c0_58] : memref<3x144x16xbf16, #tpu.memory_space<vmem>>, vector<1x144x16xbf16>
    %182 = vector.shape_cast %181 : vector<1x144x16xbf16> to vector<144x16xbf16>
    %cst_59 = arith.constant dense<0.000000e+00> : vector<256x16xf32>
    %183 = tpu.matmul %180, %182, %cst_59 {dimension_numbers = #tpu.dot_dimension_numbers<[1], [0], [0], [1], [0, 0, 1, 1], [], []>} : vector<256x144xbf16>, vector<144x16xbf16>, vector<256x16xf32> -> vector<256x16xf32>
    %184 = arith.addf %174, %183 : vector<256x16xf32>
    %185 = vector.extract_strided_slice %173 {offsets = [1, 0, 0], sizes = [16, 18, 48], strides = [1, 1, 1]} : vector<18x18x48xbf16> to vector<16x18x48xbf16>
    %186 = vector.extract_strided_slice %185 {offsets = [0, 0, 0], sizes = [16, 16, 48], strides = [1, 1, 1]} : vector<16x18x48xbf16> to vector<16x16x48xbf16>
    %187 = vector.extract_strided_slice %185 {offsets = [0, 1, 0], sizes = [16, 16, 48], strides = [1, 1, 1]} : vector<16x18x48xbf16> to vector<16x16x48xbf16>
    %188 = vector.extract_strided_slice %185 {offsets = [0, 2, 0], sizes = [16, 16, 48], strides = [1, 1, 1]} : vector<16x18x48xbf16> to vector<16x16x48xbf16>
    %189 = tpu.concatenate %186, %187, %188 in 2 : vector<16x16x48xbf16>, vector<16x16x48xbf16>, vector<16x16x48xbf16> -> vector<16x16x144xbf16>
    %190 = vector.shape_cast %189 : vector<16x16x144xbf16> to vector<256x144xbf16>
    %c1_60 = arith.constant 1 : index
    %c0_61 = arith.constant 0 : index
    %c0_62 = arith.constant 0 : index
    %191 = vector.load %arg9[%c1_60, %c0_61, %c0_62] : memref<3x144x16xbf16, #tpu.memory_space<vmem>>, vector<1x144x16xbf16>
    %192 = vector.shape_cast %191 : vector<1x144x16xbf16> to vector<144x16xbf16>
    %cst_63 = arith.constant dense<0.000000e+00> : vector<256x16xf32>
    %193 = tpu.matmul %190, %192, %cst_63 {dimension_numbers = #tpu.dot_dimension_numbers<[1], [0], [0], [1], [0, 0, 1, 1], [], []>} : vector<256x144xbf16>, vector<144x16xbf16>, vector<256x16xf32> -> vector<256x16xf32>
    %194 = arith.addf %184, %193 : vector<256x16xf32>
    %195 = vector.extract_strided_slice %173 {offsets = [2, 0, 0], sizes = [16, 18, 48], strides = [1, 1, 1]} : vector<18x18x48xbf16> to vector<16x18x48xbf16>
    %196 = vector.extract_strided_slice %195 {offsets = [0, 0, 0], sizes = [16, 16, 48], strides = [1, 1, 1]} : vector<16x18x48xbf16> to vector<16x16x48xbf16>
    %197 = vector.extract_strided_slice %195 {offsets = [0, 1, 0], sizes = [16, 16, 48], strides = [1, 1, 1]} : vector<16x18x48xbf16> to vector<16x16x48xbf16>
    %198 = vector.extract_strided_slice %195 {offsets = [0, 2, 0], sizes = [16, 16, 48], strides = [1, 1, 1]} : vector<16x18x48xbf16> to vector<16x16x48xbf16>
    %199 = tpu.concatenate %196, %197, %198 in 2 : vector<16x16x48xbf16>, vector<16x16x48xbf16>, vector<16x16x48xbf16> -> vector<16x16x144xbf16>
    %200 = vector.shape_cast %199 : vector<16x16x144xbf16> to vector<256x144xbf16>
    %c2_64 = arith.constant 2 : index
    %c0_65 = arith.constant 0 : index
    %c0_66 = arith.constant 0 : index
    %201 = vector.load %arg9[%c2_64, %c0_65, %c0_66] : memref<3x144x16xbf16, #tpu.memory_space<vmem>>, vector<1x144x16xbf16>
    %202 = vector.shape_cast %201 : vector<1x144x16xbf16> to vector<144x16xbf16>
    %cst_67 = arith.constant dense<0.000000e+00> : vector<256x16xf32>
    %203 = tpu.matmul %200, %202, %cst_67 {dimension_numbers = #tpu.dot_dimension_numbers<[1], [0], [0], [1], [0, 0, 1, 1], [], []>} : vector<256x144xbf16>, vector<144x16xbf16>, vector<256x16xf32> -> vector<256x16xf32>
    %204 = arith.addf %194, %203 : vector<256x16xf32>
    %c0_68 = arith.constant 0 : index
    %c0_69 = arith.constant 0 : index
    %205 = vector.load %arg10[%c0_68, %c0_69] : memref<1x16xf32, #tpu.memory_space<vmem>>, vector<1x16xf32>
    %206 = vector.shape_cast %205 : vector<1x16xf32> to vector<16xf32>
    %207 = vector.shape_cast %206 : vector<16xf32> to vector<1x16xf32>
    %208 = vector.broadcast %207 : vector<1x16xf32> to vector<256x16xf32>
    %209 = arith.addf %204, %208 : vector<256x16xf32>
    %cst_70 = arith.constant 0.000000e+00 : f32
    %210 = vector.broadcast %cst_70 : f32 to vector<256x16xf32>
    %211 = arith.maximumf %209, %210 : vector<256x16xf32>
    %212 = vector.shape_cast %211 : vector<256x16xf32> to vector<16x16x16xf32>
    %213 = vector.extract_strided_slice %55 {offsets = [3, 0, 0], sizes = [16, 16, 16], strides = [1, 1, 1]} : vector<22x16x16xf32> to vector<16x16x16xf32>
    %214 = vector.extract_strided_slice %110 {offsets = [2, 0, 0], sizes = [16, 16, 16], strides = [1, 1, 1]} : vector<20x16x16xf32> to vector<16x16x16xf32>
    %215 = vector.extract_strided_slice %167 {offsets = [1, 0, 0], sizes = [16, 16, 16], strides = [1, 1, 1]} : vector<18x16x16xf32> to vector<16x16x16xf32>
    %216 = tpu.concatenate %213, %214, %215, %212 in 2 : vector<16x16x16xf32>, vector<16x16x16xf32>, vector<16x16x16xf32>, vector<16x16x16xf32> -> vector<16x16x64xf32>
    %217 = arith.truncf %216 : vector<16x16x64xf32> to vector<16x16x64xbf16>
    %c0_71 = arith.constant 0 : index
    %c0_72 = arith.constant 0 : index
    %c0_73 = arith.constant 0 : index
    %c0_74 = arith.constant 0 : index
    %218 = vector.load %arg11[%c0_71, %c0_72, %c0_73, %c0_74] : memref<1x16x16x64xbf16, #tpu.memory_space<vmem>>, vector<1x16x16x64xbf16>
    %219 = vector.shape_cast %218 : vector<1x16x16x64xbf16> to vector<16x16x64xbf16>
    %220 = vector.shape_cast %217 : vector<16x16x64xbf16> to vector<1x16x16x64xbf16>
    tpu.vector_store %arg11[%c0_71, %c0_72, %c0_73, %c0_74], %220 {strides = array<i32>} : memref<1x16x16x64xbf16, #tpu.memory_space<vmem>>, vector<1x16x16x64xbf16>,
    %221 = math.absf %216 : vector<16x16x64xf32>
    %cst_75 = arith.constant dense<0.000000e+00> : vector<16x16xf32>
    %222 = vector.multi_reduction <add>, %221, %cst_75 [2] : vector<16x16x64xf32> to vector<16x16xf32>
    %c0_76 = arith.constant 0 : index
    %c0_77 = arith.constant 0 : index
    %c0_78 = arith.constant 0 : index
    %223 = vector.load %arg12[%c0_76, %c0_77, %c0_78] : memref<1x16x16xf32, #tpu.memory_space<vmem>>, vector<1x16x16xf32>
    %224 = vector.shape_cast %223 : vector<1x16x16xf32> to vector<16x16xf32>
    %225 = vector.shape_cast %222 : vector<16x16xf32> to vector<1x16x16xf32>
    tpu.vector_store %arg12[%c0_76, %c0_77, %c0_78], %225 {strides = array<i32>} : memref<1x16x16xf32, #tpu.memory_space<vmem>>, vector<1x16x16xf32>,
    return
  }
  func.func @transform_0(%arg0: i32, %arg1: i32) -> (i32, i32, i32, i32) {
    %c0_i32 = arith.constant 0 : i32
    %c0_i32_0 = arith.constant 0 : i32
    %c0_i32_1 = arith.constant 0 : i32
    %c0_i32_2 = arith.constant 0 : i32
    return %arg0, %c0_i32, %c0_i32_0, %c0_i32_1 : i32, i32, i32, i32
  }
  func.func @transform_1(%arg0: i32, %arg1: i32) -> (i32, i32, i32) {
    %c0_i32 = arith.constant 0 : i32
    %c0_i32_0 = arith.constant 0 : i32
    %c0_i32_1 = arith.constant 0 : i32
    %c0_i32_2 = arith.constant 0 : i32
    return %c0_i32, %c0_i32_0, %c0_i32_1 : i32, i32, i32
  }
  func.func @transform_2(%arg0: i32, %arg1: i32) -> (i32, i32) {
    %c0_i32 = arith.constant 0 : i32
    %c0_i32_0 = arith.constant 0 : i32
    %c0_i32_1 = arith.constant 0 : i32
    return %c0_i32, %c0_i32_0 : i32, i32
  }
  func.func @transform_3(%arg0: i32, %arg1: i32) -> (i32, i32, i32) {
    %c0_i32 = arith.constant 0 : i32
    %c0_i32_0 = arith.constant 0 : i32
    %c0_i32_1 = arith.constant 0 : i32
    %c0_i32_2 = arith.constant 0 : i32
    return %c0_i32, %c0_i32_0, %c0_i32_1 : i32, i32, i32
  }
  func.func @transform_4(%arg0: i32, %arg1: i32) -> (i32, i32) {
    %c0_i32 = arith.constant 0 : i32
    %c0_i32_0 = arith.constant 0 : i32
    %c0_i32_1 = arith.constant 0 : i32
    return %c0_i32, %c0_i32_0 : i32, i32
  }
  func.func @transform_5(%arg0: i32, %arg1: i32) -> (i32, i32, i32) {
    %c0_i32 = arith.constant 0 : i32
    %c0_i32_0 = arith.constant 0 : i32
    %c0_i32_1 = arith.constant 0 : i32
    %c0_i32_2 = arith.constant 0 : i32
    return %c0_i32, %c0_i32_0, %c0_i32_1 : i32, i32, i32
  }
  func.func @transform_6(%arg0: i32, %arg1: i32) -> (i32, i32) {
    %c0_i32 = arith.constant 0 : i32
    %c0_i32_0 = arith.constant 0 : i32
    %c0_i32_1 = arith.constant 0 : i32
    return %c0_i32, %c0_i32_0 : i32, i32
  }
  func.func @transform_7(%arg0: i32, %arg1: i32) -> (i32, i32, i32) {
    %c0_i32 = arith.constant 0 : i32
    %c0_i32_0 = arith.constant 0 : i32
    %c0_i32_1 = arith.constant 0 : i32
    %c0_i32_2 = arith.constant 0 : i32
    return %c0_i32, %c0_i32_0, %c0_i32_1 : i32, i32, i32
  }
  func.func @transform_8(%arg0: i32, %arg1: i32) -> (i32, i32) {
    %c0_i32 = arith.constant 0 : i32
    %c0_i32_0 = arith.constant 0 : i32
    %c0_i32_1 = arith.constant 0 : i32
    return %c0_i32, %c0_i32_0 : i32, i32
  }
  func.func @transform_9(%arg0: i32, %arg1: i32) -> (i32, i32, i32, i32) {
    %c0_i32 = arith.constant 0 : i32
    %c0_i32_0 = arith.constant 0 : i32
    %c0_i32_1 = arith.constant 0 : i32
    return %arg0, %arg1, %c0_i32, %c0_i32_0 : i32, i32, i32, i32
  }
  func.func @transform_10(%arg0: i32, %arg1: i32) -> (i32, i32, i32) {
    %c0_i32 = arith.constant 0 : i32
    %c0_i32_0 = arith.constant 0 : i32
    return %arg0, %arg1, %c0_i32 : i32, i32, i32
  }
}

module attributes {stable_mosaic.version = 11 : i64} {
  func.func @_fusion_kernel(%arg0: i32, %arg1: i32, %arg2: memref<1x16x16x64xbf16, #tpu.memory_space<vmem>>, %arg3: memref<1x16x16x64xbf16, #tpu.memory_space<vmem>>, %arg4: memref<1x16x16xf32, #tpu.memory_space<vmem>>, %arg5: memref<1x16x16xf32, #tpu.memory_space<vmem>>, %arg6: memref<1x1xf32, #tpu.memory_space<vmem>>, %arg7: memref<1x16x16x64xbf16, #tpu.memory_space<vmem>>) attributes {dimension_semantics = [#tpu.dimension_semantics<parallel>, #tpu.dimension_semantics<parallel>], iteration_bounds = array<i64: 2, 1>, scalar_prefetch = 0 : i64, scratch_operands = 0 : i64, tpu.core_type = #tpu.core_type<tc>, window_params = [{transform_indices = @transform_0, window_bounds = array<i64: 1, 16, 16, 64>}, {transform_indices = @transform_1, window_bounds = array<i64: 1, 16, 16, 64>}, {transform_indices = @transform_2, window_bounds = array<i64: 1, 16, 16>}, {transform_indices = @transform_3, window_bounds = array<i64: 1, 16, 16>}, {pipeline_mode = #tpu.pipeline_mode<synchronous>, transform_indices = @transform_4, window_bounds = array<i64: 1, 1>}, {transform_indices = @transform_5, window_bounds = array<i64: 1, 16, 16, 64>}]} {
    %c16_i32 = arith.constant 16 : i32
    %0 = arith.muli %arg1, %c16_i32 : i32
    %c0 = arith.constant 0 : index
    %1 = arith.index_cast %0 : i32 to index
    %c0_0 = arith.constant 0 : index
    %2 = vector.load %arg4[%c0, %1, %c0_0] : memref<1x16x16xf32, #tpu.memory_space<vmem>>, vector<1x16x16xf32>
    %3 = vector.shape_cast %2 : vector<1x16x16xf32> to vector<16x16xf32>
    %c1_i32 = arith.constant 1 : i32
    %4 = arith.subi %0, %c1_i32 : i32
    %c0_i32 = arith.constant 0 : i32
    %5 = arith.maxsi %4, %c0_i32 : i32
    %c0_1 = arith.constant 0 : index
    %6 = arith.index_cast %5 : i32 to index
    %c0_2 = arith.constant 0 : index
    %7 = vector.load %arg4[%c0_1, %6, %c0_2] : memref<1x16x16xf32, #tpu.memory_space<vmem>>, vector<1x1x16xf32>
    %8 = vector.shape_cast %7 : vector<1x1x16xf32> to vector<1x16xf32>
    %c16_i32_3 = arith.constant 16 : i32
    %9 = arith.addi %0, %c16_i32_3 : i32
    %c15_i32 = arith.constant 15 : i32
    %10 = arith.minsi %9, %c15_i32 : i32
    %c0_4 = arith.constant 0 : index
    %11 = arith.index_cast %10 : i32 to index
    %c0_5 = arith.constant 0 : index
    %12 = vector.load %arg4[%c0_4, %11, %c0_5] : memref<1x16x16xf32, #tpu.memory_space<vmem>>, vector<1x1x16xf32>
    %13 = vector.shape_cast %12 : vector<1x1x16xf32> to vector<1x16xf32>
    %c0_i32_6 = arith.constant 0 : i32
    %14 = arith.cmpi sgt, %0, %c0_i32_6 : i32
    %15 = arith.extui %14 : i1 to i32
    %16 = arith.sitofp %15 : i32 to f32
    %17 = vector.broadcast %16 : f32 to vector<1x16xf32>
    %18 = arith.mulf %8, %17 : vector<1x16xf32>
    %c16_i32_7 = arith.constant 16 : i32
    %19 = arith.addi %0, %c16_i32_7 : i32
    %c16_i32_8 = arith.constant 16 : i32
    %20 = arith.cmpi slt, %19, %c16_i32_8 : i32
    %21 = arith.extui %20 : i1 to i32
    %22 = arith.sitofp %21 : i32 to f32
    %23 = vector.broadcast %22 : f32 to vector<1x16xf32>
    %24 = arith.mulf %13, %23 : vector<1x16xf32>
    %25 = tpu.concatenate %18, %3, %24 in 0 : vector<1x16xf32>, vector<16x16xf32>, vector<1x16xf32> -> vector<18x16xf32>
    %cst = arith.constant 0.000000e+00 : f32
    %26 = vector.broadcast %cst : f32 to vector<18x1xf32>
    %27 = tpu.concatenate %26, %25, %26 in 1 : vector<18x1xf32>, vector<18x16xf32>, vector<18x1xf32> -> vector<18x18xf32>
    %cst_9 = arith.constant 0.000000e+00 : f32
    %28 = vector.broadcast %cst_9 : f32 to vector<16x16xf32>
    %29 = vector.extract_strided_slice %27 {offsets = [0, 0], sizes = [16, 16], strides = [1, 1]} : vector<18x18xf32> to vector<16x16xf32>
    %30 = arith.addf %28, %29 : vector<16x16xf32>
    %31 = vector.extract_strided_slice %27 {offsets = [0, 1], sizes = [16, 16], strides = [1, 1]} : vector<18x18xf32> to vector<16x16xf32>
    %32 = arith.addf %30, %31 : vector<16x16xf32>
    %33 = vector.extract_strided_slice %27 {offsets = [0, 2], sizes = [16, 16], strides = [1, 1]} : vector<18x18xf32> to vector<16x16xf32>
    %34 = arith.addf %32, %33 : vector<16x16xf32>
    %35 = vector.extract_strided_slice %27 {offsets = [1, 0], sizes = [16, 16], strides = [1, 1]} : vector<18x18xf32> to vector<16x16xf32>
    %36 = arith.addf %34, %35 : vector<16x16xf32>
    %37 = vector.extract_strided_slice %27 {offsets = [1, 1], sizes = [16, 16], strides = [1, 1]} : vector<18x18xf32> to vector<16x16xf32>
    %38 = arith.addf %36, %37 : vector<16x16xf32>
    %39 = vector.extract_strided_slice %27 {offsets = [1, 2], sizes = [16, 16], strides = [1, 1]} : vector<18x18xf32> to vector<16x16xf32>
    %40 = arith.addf %38, %39 : vector<16x16xf32>
    %41 = vector.extract_strided_slice %27 {offsets = [2, 0], sizes = [16, 16], strides = [1, 1]} : vector<18x18xf32> to vector<16x16xf32>
    %42 = arith.addf %40, %41 : vector<16x16xf32>
    %43 = vector.extract_strided_slice %27 {offsets = [2, 1], sizes = [16, 16], strides = [1, 1]} : vector<18x18xf32> to vector<16x16xf32>
    %44 = arith.addf %42, %43 : vector<16x16xf32>
    %45 = vector.extract_strided_slice %27 {offsets = [2, 2], sizes = [16, 16], strides = [1, 1]} : vector<18x18xf32> to vector<16x16xf32>
    %46 = arith.addf %44, %45 : vector<16x16xf32>
    %cst_10 = arith.constant 0.111111112 : f32
    %47 = vector.broadcast %cst_10 : f32 to vector<16x16xf32>
    %48 = arith.mulf %46, %47 : vector<16x16xf32>
    %c0_11 = arith.constant 0 : index
    %c0_12 = arith.constant 0 : index
    %49 = vector.load %arg6[%c0_11, %c0_12] : memref<1x1xf32, #tpu.memory_space<vmem>>, vector<1x1xf32>
    %50 = vector.extract %49[0, 0] : f32 from vector<1x1xf32>
    %51 = vector.broadcast %50 : f32 to vector<16x16xf32>
    %52 = arith.addf %48, %51 : vector<16x16xf32>
    %c0_13 = arith.constant 0 : index
    %53 = arith.index_cast %0 : i32 to index
    %c0_14 = arith.constant 0 : index
    %54 = vector.load %arg5[%c0_13, %53, %c0_14] : memref<1x16x16xf32, #tpu.memory_space<vmem>>, vector<1x16x16xf32>
    %55 = vector.shape_cast %54 : vector<1x16x16xf32> to vector<16x16xf32>
    %c1_i32_15 = arith.constant 1 : i32
    %56 = arith.subi %0, %c1_i32_15 : i32
    %c0_i32_16 = arith.constant 0 : i32
    %57 = arith.maxsi %56, %c0_i32_16 : i32
    %c0_17 = arith.constant 0 : index
    %58 = arith.index_cast %57 : i32 to index
    %c0_18 = arith.constant 0 : index
    %59 = vector.load %arg5[%c0_17, %58, %c0_18] : memref<1x16x16xf32, #tpu.memory_space<vmem>>, vector<1x1x16xf32>
    %60 = vector.shape_cast %59 : vector<1x1x16xf32> to vector<1x16xf32>
    %c16_i32_19 = arith.constant 16 : i32
    %61 = arith.addi %0, %c16_i32_19 : i32
    %c15_i32_20 = arith.constant 15 : i32
    %62 = arith.minsi %61, %c15_i32_20 : i32
    %c0_21 = arith.constant 0 : index
    %63 = arith.index_cast %62 : i32 to index
    %c0_22 = arith.constant 0 : index
    %64 = vector.load %arg5[%c0_21, %63, %c0_22] : memref<1x16x16xf32, #tpu.memory_space<vmem>>, vector<1x1x16xf32>
    %65 = vector.shape_cast %64 : vector<1x1x16xf32> to vector<1x16xf32>
    %c0_i32_23 = arith.constant 0 : i32
    %66 = arith.cmpi sgt, %0, %c0_i32_23 : i32
    %67 = arith.extui %66 : i1 to i32
    %68 = arith.sitofp %67 : i32 to f32
    %69 = vector.broadcast %68 : f32 to vector<1x16xf32>
    %70 = arith.mulf %60, %69 : vector<1x16xf32>
    %c16_i32_24 = arith.constant 16 : i32
    %71 = arith.addi %0, %c16_i32_24 : i32
    %c16_i32_25 = arith.constant 16 : i32
    %72 = arith.cmpi slt, %71, %c16_i32_25 : i32
    %73 = arith.extui %72 : i1 to i32
    %74 = arith.sitofp %73 : i32 to f32
    %75 = vector.broadcast %74 : f32 to vector<1x16xf32>
    %76 = arith.mulf %65, %75 : vector<1x16xf32>
    %77 = tpu.concatenate %70, %55, %76 in 0 : vector<1x16xf32>, vector<16x16xf32>, vector<1x16xf32> -> vector<18x16xf32>
    %cst_26 = arith.constant 0.000000e+00 : f32
    %78 = vector.broadcast %cst_26 : f32 to vector<18x1xf32>
    %79 = tpu.concatenate %78, %77, %78 in 1 : vector<18x1xf32>, vector<18x16xf32>, vector<18x1xf32> -> vector<18x18xf32>
    %cst_27 = arith.constant 0.000000e+00 : f32
    %80 = vector.broadcast %cst_27 : f32 to vector<16x16xf32>
    %81 = vector.extract_strided_slice %79 {offsets = [0, 0], sizes = [16, 16], strides = [1, 1]} : vector<18x18xf32> to vector<16x16xf32>
    %82 = arith.addf %80, %81 : vector<16x16xf32>
    %83 = vector.extract_strided_slice %79 {offsets = [0, 1], sizes = [16, 16], strides = [1, 1]} : vector<18x18xf32> to vector<16x16xf32>
    %84 = arith.addf %82, %83 : vector<16x16xf32>
    %85 = vector.extract_strided_slice %79 {offsets = [0, 2], sizes = [16, 16], strides = [1, 1]} : vector<18x18xf32> to vector<16x16xf32>
    %86 = arith.addf %84, %85 : vector<16x16xf32>
    %87 = vector.extract_strided_slice %79 {offsets = [1, 0], sizes = [16, 16], strides = [1, 1]} : vector<18x18xf32> to vector<16x16xf32>
    %88 = arith.addf %86, %87 : vector<16x16xf32>
    %89 = vector.extract_strided_slice %79 {offsets = [1, 1], sizes = [16, 16], strides = [1, 1]} : vector<18x18xf32> to vector<16x16xf32>
    %90 = arith.addf %88, %89 : vector<16x16xf32>
    %91 = vector.extract_strided_slice %79 {offsets = [1, 2], sizes = [16, 16], strides = [1, 1]} : vector<18x18xf32> to vector<16x16xf32>
    %92 = arith.addf %90, %91 : vector<16x16xf32>
    %93 = vector.extract_strided_slice %79 {offsets = [2, 0], sizes = [16, 16], strides = [1, 1]} : vector<18x18xf32> to vector<16x16xf32>
    %94 = arith.addf %92, %93 : vector<16x16xf32>
    %95 = vector.extract_strided_slice %79 {offsets = [2, 1], sizes = [16, 16], strides = [1, 1]} : vector<18x18xf32> to vector<16x16xf32>
    %96 = arith.addf %94, %95 : vector<16x16xf32>
    %97 = vector.extract_strided_slice %79 {offsets = [2, 2], sizes = [16, 16], strides = [1, 1]} : vector<18x18xf32> to vector<16x16xf32>
    %98 = arith.addf %96, %97 : vector<16x16xf32>
    %cst_28 = arith.constant 0.111111112 : f32
    %99 = vector.broadcast %cst_28 : f32 to vector<16x16xf32>
    %100 = arith.mulf %98, %99 : vector<16x16xf32>
    %c0_29 = arith.constant 0 : index
    %c0_30 = arith.constant 0 : index
    %101 = vector.load %arg6[%c0_29, %c0_30] : memref<1x1xf32, #tpu.memory_space<vmem>>, vector<1x1xf32>
    %102 = vector.extract %101[0, 0] : f32 from vector<1x1xf32>
    %103 = vector.broadcast %102 : f32 to vector<16x16xf32>
    %104 = arith.addf %100, %103 : vector<16x16xf32>
    %105 = arith.addf %52, %104 : vector<16x16xf32>
    %106 = tpu.reciprocal %105 {approx = true} : vector<16x16xf32> -> vector<16x16xf32>
    %107 = arith.mulf %52, %106 : vector<16x16xf32>
    %108 = vector.shape_cast %107 : vector<16x16xf32> to vector<16x16x1xf32>
    %109 = arith.mulf %104, %106 : vector<16x16xf32>
    %110 = vector.shape_cast %109 : vector<16x16xf32> to vector<16x16x1xf32>
    %c0_31 = arith.constant 0 : index
    %c0_32 = arith.constant 0 : index
    %c0_33 = arith.constant 0 : index
    %c0_34 = arith.constant 0 : index
    %111 = vector.load %arg2[%c0_31, %c0_32, %c0_33, %c0_34] : memref<1x16x16x64xbf16, #tpu.memory_space<vmem>>, vector<1x16x16x64xbf16>
    %112 = vector.shape_cast %111 : vector<1x16x16x64xbf16> to vector<16x16x64xbf16>
    %113 = arith.extf %112 : vector<16x16x64xbf16> to vector<16x16x64xf32>
    %114 = vector.broadcast %108 : vector<16x16x1xf32> to vector<16x16x64xf32>
    %115 = arith.mulf %113, %114 : vector<16x16x64xf32>
    %c0_35 = arith.constant 0 : index
    %c0_36 = arith.constant 0 : index
    %c0_37 = arith.constant 0 : index
    %c0_38 = arith.constant 0 : index
    %116 = vector.load %arg3[%c0_35, %c0_36, %c0_37, %c0_38] : memref<1x16x16x64xbf16, #tpu.memory_space<vmem>>, vector<1x16x16x64xbf16>
    %117 = vector.shape_cast %116 : vector<1x16x16x64xbf16> to vector<16x16x64xbf16>
    %118 = arith.extf %117 : vector<16x16x64xbf16> to vector<16x16x64xf32>
    %119 = vector.broadcast %110 : vector<16x16x1xf32> to vector<16x16x64xf32>
    %120 = arith.mulf %118, %119 : vector<16x16x64xf32>
    %121 = arith.addf %115, %120 : vector<16x16x64xf32>
    %122 = arith.truncf %121 : vector<16x16x64xf32> to vector<16x16x64xbf16>
    %c0_39 = arith.constant 0 : index
    %c0_40 = arith.constant 0 : index
    %c0_41 = arith.constant 0 : index
    %c0_42 = arith.constant 0 : index
    %123 = vector.load %arg7[%c0_39, %c0_40, %c0_41, %c0_42] : memref<1x16x16x64xbf16, #tpu.memory_space<vmem>>, vector<1x16x16x64xbf16>
    %124 = vector.shape_cast %123 : vector<1x16x16x64xbf16> to vector<16x16x64xbf16>
    %125 = vector.shape_cast %122 : vector<16x16x64xbf16> to vector<1x16x16x64xbf16>
    tpu.vector_store %arg7[%c0_39, %c0_40, %c0_41, %c0_42], %125 {strides = array<i32>} : memref<1x16x16x64xbf16, #tpu.memory_space<vmem>>, vector<1x16x16x64xbf16>,
    return
  }
  func.func @transform_0(%arg0: i32, %arg1: i32) -> (i32, i32, i32, i32) {
    %c0_i32 = arith.constant 0 : i32
    %c0_i32_0 = arith.constant 0 : i32
    %c0_i32_1 = arith.constant 0 : i32
    return %arg0, %arg1, %c0_i32, %c0_i32_0 : i32, i32, i32, i32
  }
  func.func @transform_1(%arg0: i32, %arg1: i32) -> (i32, i32, i32, i32) {
    %c0_i32 = arith.constant 0 : i32
    %c0_i32_0 = arith.constant 0 : i32
    %c0_i32_1 = arith.constant 0 : i32
    return %arg0, %arg1, %c0_i32, %c0_i32_0 : i32, i32, i32, i32
  }
  func.func @transform_2(%arg0: i32, %arg1: i32) -> (i32, i32, i32) {
    %c0_i32 = arith.constant 0 : i32
    %c0_i32_0 = arith.constant 0 : i32
    %c0_i32_1 = arith.constant 0 : i32
    return %arg0, %c0_i32, %c0_i32_0 : i32, i32, i32
  }
  func.func @transform_3(%arg0: i32, %arg1: i32) -> (i32, i32, i32) {
    %c0_i32 = arith.constant 0 : i32
    %c0_i32_0 = arith.constant 0 : i32
    %c0_i32_1 = arith.constant 0 : i32
    return %arg0, %c0_i32, %c0_i32_0 : i32, i32, i32
  }
  func.func @transform_4(%arg0: i32, %arg1: i32) -> (i32, i32) {
    %c0_i32 = arith.constant 0 : i32
    %c0_i32_0 = arith.constant 0 : i32
    %c0_i32_1 = arith.constant 0 : i32
    return %c0_i32, %c0_i32_0 : i32, i32
  }
  func.func @transform_5(%arg0: i32, %arg1: i32) -> (i32, i32, i32, i32) {
    %c0_i32 = arith.constant 0 : i32
    %c0_i32_0 = arith.constant 0 : i32
    %c0_i32_1 = arith.constant 0 : i32
    return %arg0, %arg1, %c0_i32, %c0_i32_0 : i32, i32, i32, i32
  }
}

module attributes {stable_mosaic.version = 11 : i64} {
  func.func @_adapt_kernel(%arg0: i32, %arg1: i32, %arg2: memref<1x16x8x128xbf16, #tpu.memory_space<vmem>>, %arg3: memref<3x192x64xbf16, #tpu.memory_space<vmem>>, %arg4: memref<1x64xf32, #tpu.memory_space<vmem>>, %arg5: memref<1x8x8x64xbf16, #tpu.memory_space<vmem>>) attributes {dimension_semantics = [#tpu.dimension_semantics<parallel>, #tpu.dimension_semantics<parallel>], iteration_bounds = array<i64: 2, 1>, scalar_prefetch = 0 : i64, scratch_operands = 0 : i64, tpu.core_type = #tpu.core_type<tc>, window_params = [{transform_indices = @transform_0, window_bounds = array<i64: 1, 16, 8, 128>}, {pipeline_mode = #tpu.pipeline_mode<synchronous>, transform_indices = @transform_1, window_bounds = array<i64: 3, 192, 64>}, {pipeline_mode = #tpu.pipeline_mode<synchronous>, transform_indices = @transform_2, window_bounds = array<i64: 1, 64>}, {transform_indices = @transform_3, window_bounds = array<i64: 1, 8, 8, 64>}]} {
    %c8_i32 = arith.constant 8 : i32
    %0 = arith.muli %arg1, %c8_i32 : i32
    %c2_i32 = arith.constant 2 : i32
    %1 = arith.muli %c2_i32, %0 : i32
    %c0 = arith.constant 0 : index
    %2 = arith.index_cast %1 : i32 to index
    %c0_0 = arith.constant 0 : index
    %c0_1 = arith.constant 0 : index
    %3 = vector.load %arg2[%c0, %2, %c0_0, %c0_1] : memref<1x16x8x128xbf16, #tpu.memory_space<vmem>>, vector<1x16x8x128xbf16>
    %4 = vector.shape_cast %3 : vector<1x16x8x128xbf16> to vector<16x8x128xbf16>
    %c2_i32_2 = arith.constant 2 : i32
    %5 = arith.muli %c2_i32_2, %0 : i32
    %c1_i32 = arith.constant 1 : i32
    %6 = arith.subi %5, %c1_i32 : i32
    %c0_i32 = arith.constant 0 : i32
    %7 = arith.maxsi %6, %c0_i32 : i32
    %c0_3 = arith.constant 0 : index
    %8 = arith.index_cast %7 : i32 to index
    %c0_4 = arith.constant 0 : index
    %c0_5 = arith.constant 0 : index
    %9 = vector.load %arg2[%c0_3, %8, %c0_4, %c0_5] : memref<1x16x8x128xbf16, #tpu.memory_space<vmem>>, vector<1x1x8x128xbf16>
    %10 = vector.shape_cast %9 : vector<1x1x8x128xbf16> to vector<1x8x128xbf16>
    %c0_i32_6 = arith.constant 0 : i32
    %11 = arith.cmpi sgt, %0, %c0_i32_6 : i32
    %12 = arith.extui %11 : i1 to i32
    %13 = arith.sitofp %12 : i32 to f32
    %14 = arith.truncf %13 : f32 to bf16
    %15 = vector.broadcast %14 : bf16 to vector<1x8x128xbf16>
    %16 = arith.mulf %10, %15 : vector<1x8x128xbf16>
    %cst = arith.constant 0.000000e+00 : bf16
    %17 = vector.broadcast %cst : bf16 to vector<1x8x128xbf16>
    %18 = tpu.concatenate %16, %4, %17 in 0 : vector<1x8x128xbf16>, vector<16x8x128xbf16>, vector<1x8x128xbf16> -> vector<18x8x128xbf16>
    %cst_7 = arith.constant 0.000000e+00 : bf16
    %19 = vector.broadcast %cst_7 : bf16 to vector<18x1x128xbf16>
    %20 = tpu.concatenate %19, %18 in 1 : vector<18x1x128xbf16>, vector<18x8x128xbf16> -> vector<18x9x128xbf16>
    %21 = vector.shape_cast %20 : vector<18x9x128xbf16> to vector<9x2x9x128xbf16>
    %cst_8 = arith.constant 0.000000e+00 : f32
    %22 = vector.broadcast %cst_8 : f32 to vector<64x64xf32>
    %23 = vector.extract_strided_slice %21 {offsets = [0, 0, 0, 0], sizes = [8, 1, 9, 128], strides = [1, 1, 1, 1]} : vector<9x2x9x128xbf16> to vector<8x1x9x128xbf16>
    %24 = vector.shape_cast %23 : vector<8x1x9x128xbf16> to vector<8x9x128xbf16>
    %25 = vector.extract_strided_slice %24 {offsets = [0, 0, 64], sizes = [8, 8, 64], strides = [1, 1, 1]} : vector<8x9x128xbf16> to vector<8x8x64xbf16>
    %26 = vector.extract_strided_slice %24 {offsets = [0, 1, 0], sizes = [8, 8, 64], strides = [1, 1, 1]} : vector<8x9x128xbf16> to vector<8x8x64xbf16>
    %27 = vector.extract_strided_slice %24 {offsets = [0, 1, 64], sizes = [8, 8, 64], strides = [1, 1, 1]} : vector<8x9x128xbf16> to vector<8x8x64xbf16>
    %28 = tpu.concatenate %25, %26, %27 in 2 : vector<8x8x64xbf16>, vector<8x8x64xbf16>, vector<8x8x64xbf16> -> vector<8x8x192xbf16>
    %29 = vector.shape_cast %28 : vector<8x8x192xbf16> to vector<64x192xbf16>
    %c0_9 = arith.constant 0 : index
    %c0_10 = arith.constant 0 : index
    %c0_11 = arith.constant 0 : index
    %30 = vector.load %arg3[%c0_9, %c0_10, %c0_11] : memref<3x192x64xbf16, #tpu.memory_space<vmem>>, vector<1x192x64xbf16>
    %31 = vector.shape_cast %30 : vector<1x192x64xbf16> to vector<192x64xbf16>
    %cst_12 = arith.constant dense<0.000000e+00> : vector<64x64xf32>
    %32 = tpu.matmul %29, %31, %cst_12 {dimension_numbers = #tpu.dot_dimension_numbers<[1], [0], [0], [1], [0, 0, 1, 1], [], []>} : vector<64x192xbf16>, vector<192x64xbf16>, vector<64x64xf32> -> vector<64x64xf32>
    %33 = arith.addf %22, %32 : vector<64x64xf32>
    %34 = vector.extract_strided_slice %21 {offsets = [0, 1, 0, 0], sizes = [8, 1, 9, 128], strides = [1, 1, 1, 1]} : vector<9x2x9x128xbf16> to vector<8x1x9x128xbf16>
    %35 = vector.shape_cast %34 : vector<8x1x9x128xbf16> to vector<8x9x128xbf16>
    %36 = vector.extract_strided_slice %35 {offsets = [0, 0, 64], sizes = [8, 8, 64], strides = [1, 1, 1]} : vector<8x9x128xbf16> to vector<8x8x64xbf16>
    %37 = vector.extract_strided_slice %35 {offsets = [0, 1, 0], sizes = [8, 8, 64], strides = [1, 1, 1]} : vector<8x9x128xbf16> to vector<8x8x64xbf16>
    %38 = vector.extract_strided_slice %35 {offsets = [0, 1, 64], sizes = [8, 8, 64], strides = [1, 1, 1]} : vector<8x9x128xbf16> to vector<8x8x64xbf16>
    %39 = tpu.concatenate %36, %37, %38 in 2 : vector<8x8x64xbf16>, vector<8x8x64xbf16>, vector<8x8x64xbf16> -> vector<8x8x192xbf16>
    %40 = vector.shape_cast %39 : vector<8x8x192xbf16> to vector<64x192xbf16>
    %c1 = arith.constant 1 : index
    %c0_13 = arith.constant 0 : index
    %c0_14 = arith.constant 0 : index
    %41 = vector.load %arg3[%c1, %c0_13, %c0_14] : memref<3x192x64xbf16, #tpu.memory_space<vmem>>, vector<1x192x64xbf16>
    %42 = vector.shape_cast %41 : vector<1x192x64xbf16> to vector<192x64xbf16>
    %cst_15 = arith.constant dense<0.000000e+00> : vector<64x64xf32>
    %43 = tpu.matmul %40, %42, %cst_15 {dimension_numbers = #tpu.dot_dimension_numbers<[1], [0], [0], [1], [0, 0, 1, 1], [], []>} : vector<64x192xbf16>, vector<192x64xbf16>, vector<64x64xf32> -> vector<64x64xf32>
    %44 = arith.addf %33, %43 : vector<64x64xf32>
    %45 = vector.extract_strided_slice %21 {offsets = [1, 0, 0, 0], sizes = [8, 1, 9, 128], strides = [1, 1, 1, 1]} : vector<9x2x9x128xbf16> to vector<8x1x9x128xbf16>
    %46 = vector.shape_cast %45 : vector<8x1x9x128xbf16> to vector<8x9x128xbf16>
    %47 = vector.extract_strided_slice %46 {offsets = [0, 0, 64], sizes = [8, 8, 64], strides = [1, 1, 1]} : vector<8x9x128xbf16> to vector<8x8x64xbf16>
    %48 = vector.extract_strided_slice %46 {offsets = [0, 1, 0], sizes = [8, 8, 64], strides = [1, 1, 1]} : vector<8x9x128xbf16> to vector<8x8x64xbf16>
    %49 = vector.extract_strided_slice %46 {offsets = [0, 1, 64], sizes = [8, 8, 64], strides = [1, 1, 1]} : vector<8x9x128xbf16> to vector<8x8x64xbf16>
    %50 = tpu.concatenate %47, %48, %49 in 2 : vector<8x8x64xbf16>, vector<8x8x64xbf16>, vector<8x8x64xbf16> -> vector<8x8x192xbf16>
    %51 = vector.shape_cast %50 : vector<8x8x192xbf16> to vector<64x192xbf16>
    %c2 = arith.constant 2 : index
    %c0_16 = arith.constant 0 : index
    %c0_17 = arith.constant 0 : index
    %52 = vector.load %arg3[%c2, %c0_16, %c0_17] : memref<3x192x64xbf16, #tpu.memory_space<vmem>>, vector<1x192x64xbf16>
    %53 = vector.shape_cast %52 : vector<1x192x64xbf16> to vector<192x64xbf16>
    %cst_18 = arith.constant dense<0.000000e+00> : vector<64x64xf32>
    %54 = tpu.matmul %51, %53, %cst_18 {dimension_numbers = #tpu.dot_dimension_numbers<[1], [0], [0], [1], [0, 0, 1, 1], [], []>} : vector<64x192xbf16>, vector<192x64xbf16>, vector<64x64xf32> -> vector<64x64xf32>
    %55 = arith.addf %44, %54 : vector<64x64xf32>
    %c0_19 = arith.constant 0 : index
    %c0_20 = arith.constant 0 : index
    %56 = vector.load %arg4[%c0_19, %c0_20] : memref<1x64xf32, #tpu.memory_space<vmem>>, vector<1x64xf32>
    %57 = vector.shape_cast %56 : vector<1x64xf32> to vector<64xf32>
    %58 = vector.shape_cast %57 : vector<64xf32> to vector<1x64xf32>
    %59 = vector.broadcast %58 : vector<1x64xf32> to vector<64x64xf32>
    %60 = arith.addf %55, %59 : vector<64x64xf32>
    %61 = vector.shape_cast %60 : vector<64x64xf32> to vector<8x8x64xf32>
    %62 = arith.truncf %61 : vector<8x8x64xf32> to vector<8x8x64xbf16>
    %c0_21 = arith.constant 0 : index
    %c0_22 = arith.constant 0 : index
    %c0_23 = arith.constant 0 : index
    %c0_24 = arith.constant 0 : index
    %63 = vector.load %arg5[%c0_21, %c0_22, %c0_23, %c0_24] : memref<1x8x8x64xbf16, #tpu.memory_space<vmem>>, vector<1x8x8x64xbf16>
    %64 = vector.shape_cast %63 : vector<1x8x8x64xbf16> to vector<8x8x64xbf16>
    %65 = vector.shape_cast %62 : vector<8x8x64xbf16> to vector<1x8x8x64xbf16>
    tpu.vector_store %arg5[%c0_21, %c0_22, %c0_23, %c0_24], %65 {strides = array<i32>} : memref<1x8x8x64xbf16, #tpu.memory_space<vmem>>, vector<1x8x8x64xbf16>,
    return
  }
  func.func @transform_0(%arg0: i32, %arg1: i32) -> (i32, i32, i32, i32) {
    %c0_i32 = arith.constant 0 : i32
    %c0_i32_0 = arith.constant 0 : i32
    %c0_i32_1 = arith.constant 0 : i32
    %c0_i32_2 = arith.constant 0 : i32
    return %arg0, %c0_i32, %c0_i32_0, %c0_i32_1 : i32, i32, i32, i32
  }
  func.func @transform_1(%arg0: i32, %arg1: i32) -> (i32, i32, i32) {
    %c0_i32 = arith.constant 0 : i32
    %c0_i32_0 = arith.constant 0 : i32
    %c0_i32_1 = arith.constant 0 : i32
    %c0_i32_2 = arith.constant 0 : i32
    return %c0_i32, %c0_i32_0, %c0_i32_1 : i32, i32, i32
  }
  func.func @transform_2(%arg0: i32, %arg1: i32) -> (i32, i32) {
    %c0_i32 = arith.constant 0 : i32
    %c0_i32_0 = arith.constant 0 : i32
    %c0_i32_1 = arith.constant 0 : i32
    return %c0_i32, %c0_i32_0 : i32, i32
  }
  func.func @transform_3(%arg0: i32, %arg1: i32) -> (i32, i32, i32, i32) {
    %c0_i32 = arith.constant 0 : i32
    %c0_i32_0 = arith.constant 0 : i32
    %c0_i32_1 = arith.constant 0 : i32
    return %arg0, %arg1, %c0_i32, %c0_i32_0 : i32, i32, i32, i32
  }
}

module attributes {stable_mosaic.version = 11 : i64} {
  func.func @_adapt_kernel(%arg0: i32, %arg1: i32, %arg2: memref<1x8x4x128xbf16, #tpu.memory_space<vmem>>, %arg3: memref<3x192x64xbf16, #tpu.memory_space<vmem>>, %arg4: memref<1x64xf32, #tpu.memory_space<vmem>>, %arg5: memref<1x4x4x64xf32, #tpu.memory_space<vmem>>) attributes {dimension_semantics = [#tpu.dimension_semantics<parallel>, #tpu.dimension_semantics<parallel>], iteration_bounds = array<i64: 2, 1>, scalar_prefetch = 0 : i64, scratch_operands = 0 : i64, tpu.core_type = #tpu.core_type<tc>, window_params = [{transform_indices = @transform_0, window_bounds = array<i64: 1, 8, 4, 128>}, {pipeline_mode = #tpu.pipeline_mode<synchronous>, transform_indices = @transform_1, window_bounds = array<i64: 3, 192, 64>}, {pipeline_mode = #tpu.pipeline_mode<synchronous>, transform_indices = @transform_2, window_bounds = array<i64: 1, 64>}, {transform_indices = @transform_3, window_bounds = array<i64: 1, 4, 4, 64>}]} {
    %c4_i32 = arith.constant 4 : i32
    %0 = arith.muli %arg1, %c4_i32 : i32
    %c2_i32 = arith.constant 2 : i32
    %1 = arith.muli %c2_i32, %0 : i32
    %c0 = arith.constant 0 : index
    %2 = arith.index_cast %1 : i32 to index
    %c0_0 = arith.constant 0 : index
    %c0_1 = arith.constant 0 : index
    %3 = vector.load %arg2[%c0, %2, %c0_0, %c0_1] : memref<1x8x4x128xbf16, #tpu.memory_space<vmem>>, vector<1x8x4x128xbf16>
    %4 = vector.shape_cast %3 : vector<1x8x4x128xbf16> to vector<8x4x128xbf16>
    %c2_i32_2 = arith.constant 2 : i32
    %5 = arith.muli %c2_i32_2, %0 : i32
    %c1_i32 = arith.constant 1 : i32
    %6 = arith.subi %5, %c1_i32 : i32
    %c0_i32 = arith.constant 0 : i32
    %7 = arith.maxsi %6, %c0_i32 : i32
    %c0_3 = arith.constant 0 : index
    %8 = arith.index_cast %7 : i32 to index
    %c0_4 = arith.constant 0 : index
    %c0_5 = arith.constant 0 : index
    %9 = vector.load %arg2[%c0_3, %8, %c0_4, %c0_5] : memref<1x8x4x128xbf16, #tpu.memory_space<vmem>>, vector<1x1x4x128xbf16>
    %10 = vector.shape_cast %9 : vector<1x1x4x128xbf16> to vector<1x4x128xbf16>
    %c0_i32_6 = arith.constant 0 : i32
    %11 = arith.cmpi sgt, %0, %c0_i32_6 : i32
    %12 = arith.extui %11 : i1 to i32
    %13 = arith.sitofp %12 : i32 to f32
    %14 = arith.truncf %13 : f32 to bf16
    %15 = vector.broadcast %14 : bf16 to vector<1x4x128xbf16>
    %16 = arith.mulf %10, %15 : vector<1x4x128xbf16>
    %cst = arith.constant 0.000000e+00 : bf16
    %17 = vector.broadcast %cst : bf16 to vector<1x4x128xbf16>
    %18 = tpu.concatenate %16, %4, %17 in 0 : vector<1x4x128xbf16>, vector<8x4x128xbf16>, vector<1x4x128xbf16> -> vector<10x4x128xbf16>
    %cst_7 = arith.constant 0.000000e+00 : bf16
    %19 = vector.broadcast %cst_7 : bf16 to vector<10x1x128xbf16>
    %20 = tpu.concatenate %19, %18 in 1 : vector<10x1x128xbf16>, vector<10x4x128xbf16> -> vector<10x5x128xbf16>
    %21 = vector.shape_cast %20 : vector<10x5x128xbf16> to vector<5x2x5x128xbf16>
    %cst_8 = arith.constant 0.000000e+00 : f32
    %22 = vector.broadcast %cst_8 : f32 to vector<16x64xf32>
    %23 = vector.extract_strided_slice %21 {offsets = [0, 0, 0, 0], sizes = [4, 1, 5, 128], strides = [1, 1, 1, 1]} : vector<5x2x5x128xbf16> to vector<4x1x5x128xbf16>
    %24 = vector.shape_cast %23 : vector<4x1x5x128xbf16> to vector<4x5x128xbf16>
    %25 = vector.extract_strided_slice %24 {offsets = [0, 0, 64], sizes = [4, 4, 64], strides = [1, 1, 1]} : vector<4x5x128xbf16> to vector<4x4x64xbf16>
    %26 = vector.extract_strided_slice %24 {offsets = [0, 1, 0], sizes = [4, 4, 64], strides = [1, 1, 1]} : vector<4x5x128xbf16> to vector<4x4x64xbf16>
    %27 = vector.extract_strided_slice %24 {offsets = [0, 1, 64], sizes = [4, 4, 64], strides = [1, 1, 1]} : vector<4x5x128xbf16> to vector<4x4x64xbf16>
    %28 = tpu.concatenate %25, %26, %27 in 2 : vector<4x4x64xbf16>, vector<4x4x64xbf16>, vector<4x4x64xbf16> -> vector<4x4x192xbf16>
    %29 = vector.shape_cast %28 : vector<4x4x192xbf16> to vector<16x192xbf16>
    %c0_9 = arith.constant 0 : index
    %c0_10 = arith.constant 0 : index
    %c0_11 = arith.constant 0 : index
    %30 = vector.load %arg3[%c0_9, %c0_10, %c0_11] : memref<3x192x64xbf16, #tpu.memory_space<vmem>>, vector<1x192x64xbf16>
    %31 = vector.shape_cast %30 : vector<1x192x64xbf16> to vector<192x64xbf16>
    %cst_12 = arith.constant dense<0.000000e+00> : vector<16x64xf32>
    %32 = tpu.matmul %29, %31, %cst_12 {dimension_numbers = #tpu.dot_dimension_numbers<[1], [0], [0], [1], [0, 0, 1, 1], [], []>} : vector<16x192xbf16>, vector<192x64xbf16>, vector<16x64xf32> -> vector<16x64xf32>
    %33 = arith.addf %22, %32 : vector<16x64xf32>
    %34 = vector.extract_strided_slice %21 {offsets = [0, 1, 0, 0], sizes = [4, 1, 5, 128], strides = [1, 1, 1, 1]} : vector<5x2x5x128xbf16> to vector<4x1x5x128xbf16>
    %35 = vector.shape_cast %34 : vector<4x1x5x128xbf16> to vector<4x5x128xbf16>
    %36 = vector.extract_strided_slice %35 {offsets = [0, 0, 64], sizes = [4, 4, 64], strides = [1, 1, 1]} : vector<4x5x128xbf16> to vector<4x4x64xbf16>
    %37 = vector.extract_strided_slice %35 {offsets = [0, 1, 0], sizes = [4, 4, 64], strides = [1, 1, 1]} : vector<4x5x128xbf16> to vector<4x4x64xbf16>
    %38 = vector.extract_strided_slice %35 {offsets = [0, 1, 64], sizes = [4, 4, 64], strides = [1, 1, 1]} : vector<4x5x128xbf16> to vector<4x4x64xbf16>
    %39 = tpu.concatenate %36, %37, %38 in 2 : vector<4x4x64xbf16>, vector<4x4x64xbf16>, vector<4x4x64xbf16> -> vector<4x4x192xbf16>
    %40 = vector.shape_cast %39 : vector<4x4x192xbf16> to vector<16x192xbf16>
    %c1 = arith.constant 1 : index
    %c0_13 = arith.constant 0 : index
    %c0_14 = arith.constant 0 : index
    %41 = vector.load %arg3[%c1, %c0_13, %c0_14] : memref<3x192x64xbf16, #tpu.memory_space<vmem>>, vector<1x192x64xbf16>
    %42 = vector.shape_cast %41 : vector<1x192x64xbf16> to vector<192x64xbf16>
    %cst_15 = arith.constant dense<0.000000e+00> : vector<16x64xf32>
    %43 = tpu.matmul %40, %42, %cst_15 {dimension_numbers = #tpu.dot_dimension_numbers<[1], [0], [0], [1], [0, 0, 1, 1], [], []>} : vector<16x192xbf16>, vector<192x64xbf16>, vector<16x64xf32> -> vector<16x64xf32>
    %44 = arith.addf %33, %43 : vector<16x64xf32>
    %45 = vector.extract_strided_slice %21 {offsets = [1, 0, 0, 0], sizes = [4, 1, 5, 128], strides = [1, 1, 1, 1]} : vector<5x2x5x128xbf16> to vector<4x1x5x128xbf16>
    %46 = vector.shape_cast %45 : vector<4x1x5x128xbf16> to vector<4x5x128xbf16>
    %47 = vector.extract_strided_slice %46 {offsets = [0, 0, 64], sizes = [4, 4, 64], strides = [1, 1, 1]} : vector<4x5x128xbf16> to vector<4x4x64xbf16>
    %48 = vector.extract_strided_slice %46 {offsets = [0, 1, 0], sizes = [4, 4, 64], strides = [1, 1, 1]} : vector<4x5x128xbf16> to vector<4x4x64xbf16>
    %49 = vector.extract_strided_slice %46 {offsets = [0, 1, 64], sizes = [4, 4, 64], strides = [1, 1, 1]} : vector<4x5x128xbf16> to vector<4x4x64xbf16>
    %50 = tpu.concatenate %47, %48, %49 in 2 : vector<4x4x64xbf16>, vector<4x4x64xbf16>, vector<4x4x64xbf16> -> vector<4x4x192xbf16>
    %51 = vector.shape_cast %50 : vector<4x4x192xbf16> to vector<16x192xbf16>
    %c2 = arith.constant 2 : index
    %c0_16 = arith.constant 0 : index
    %c0_17 = arith.constant 0 : index
    %52 = vector.load %arg3[%c2, %c0_16, %c0_17] : memref<3x192x64xbf16, #tpu.memory_space<vmem>>, vector<1x192x64xbf16>
    %53 = vector.shape_cast %52 : vector<1x192x64xbf16> to vector<192x64xbf16>
    %cst_18 = arith.constant dense<0.000000e+00> : vector<16x64xf32>
    %54 = tpu.matmul %51, %53, %cst_18 {dimension_numbers = #tpu.dot_dimension_numbers<[1], [0], [0], [1], [0, 0, 1, 1], [], []>} : vector<16x192xbf16>, vector<192x64xbf16>, vector<16x64xf32> -> vector<16x64xf32>
    %55 = arith.addf %44, %54 : vector<16x64xf32>
    %c0_19 = arith.constant 0 : index
    %c0_20 = arith.constant 0 : index
    %56 = vector.load %arg4[%c0_19, %c0_20] : memref<1x64xf32, #tpu.memory_space<vmem>>, vector<1x64xf32>
    %57 = vector.shape_cast %56 : vector<1x64xf32> to vector<64xf32>
    %58 = vector.shape_cast %57 : vector<64xf32> to vector<1x64xf32>
    %59 = vector.broadcast %58 : vector<1x64xf32> to vector<16x64xf32>
    %60 = arith.addf %55, %59 : vector<16x64xf32>
    %61 = vector.shape_cast %60 : vector<16x64xf32> to vector<4x4x64xf32>
    %c0_21 = arith.constant 0 : index
    %c0_22 = arith.constant 0 : index
    %c0_23 = arith.constant 0 : index
    %c0_24 = arith.constant 0 : index
    %62 = vector.load %arg5[%c0_21, %c0_22, %c0_23, %c0_24] : memref<1x4x4x64xf32, #tpu.memory_space<vmem>>, vector<1x4x4x64xf32>
    %63 = vector.shape_cast %62 : vector<1x4x4x64xf32> to vector<4x4x64xf32>
    %64 = vector.shape_cast %61 : vector<4x4x64xf32> to vector<1x4x4x64xf32>
    tpu.vector_store %arg5[%c0_21, %c0_22, %c0_23, %c0_24], %64 {strides = array<i32>} : memref<1x4x4x64xf32, #tpu.memory_space<vmem>>, vector<1x4x4x64xf32>,
    return
  }
  func.func @transform_0(%arg0: i32, %arg1: i32) -> (i32, i32, i32, i32) {
    %c0_i32 = arith.constant 0 : i32
    %c0_i32_0 = arith.constant 0 : i32
    %c0_i32_1 = arith.constant 0 : i32
    %c0_i32_2 = arith.constant 0 : i32
    return %arg0, %c0_i32, %c0_i32_0, %c0_i32_1 : i32, i32, i32, i32
  }
  func.func @transform_1(%arg0: i32, %arg1: i32) -> (i32, i32, i32) {
    %c0_i32 = arith.constant 0 : i32
    %c0_i32_0 = arith.constant 0 : i32
    %c0_i32_1 = arith.constant 0 : i32
    %c0_i32_2 = arith.constant 0 : i32
    return %c0_i32, %c0_i32_0, %c0_i32_1 : i32, i32, i32
  }
  func.func @transform_2(%arg0: i32, %arg1: i32) -> (i32, i32) {
    %c0_i32 = arith.constant 0 : i32
    %c0_i32_0 = arith.constant 0 : i32
    %c0_i32_1 = arith.constant 0 : i32
    return %c0_i32, %c0_i32_0 : i32, i32
  }
  func.func @transform_3(%arg0: i32, %arg1: i32) -> (i32, i32, i32, i32) {
    %c0_i32 = arith.constant 0 : i32
    %c0_i32_0 = arith.constant 0 : i32
    %c0_i32_1 = arith.constant 0 : i32
    return %arg0, %arg1, %c0_i32, %c0_i32_0 : i32, i32, i32, i32
  }
}

</mosaic_0001>

<bundles_post_ra>
// kernel: densefuse_bb.7
= control target key start
LH: loop header
LB: loop body
LE: loop exit
PB: predicated region body
PF: predicated region fallthrough
CT: control target
= control target key end

     0   :  { %s1832_s20 = smov 0   ;;  %s1834_s21 = smov 0   ;;  %s2209_s0 = inlined_call_operand.vmem [shape: bf16[2,16,16,64], index: 0, kind: input, shape index: {}]   ;;  %s2210_s1 = inlined_call_operand.vmem [shape: bf16[2,16,16,64], index: 1, kind: input, shape index: {}]   ;;  %s2211_s2 = inlined_call_operand.vmem [shape: f32[2,16,16], index: 2, kind: input, shape index: {}]   ;;  %s2212_s3 = inlined_call_operand.vmem [shape: f32[2,16,16], index: 3, kind: input, shape index: {}]   ;;  %s2213_s4 = inlined_call_operand.<no memory space> [shape: f32[1,1], index: 4, kind: input, shape index: {}]   ;;  %s2214_s5 = inlined_call_operand.vmem [shape: bf16[2,16,16,64], index: 5, kind: output, shape index: {}]  }
   0x1   :  { %v10_v0 = vstv %s2213_s4  ;;  %s1836_s22 = smov 0  }
   0x2   :  { %11 = vst [vmem:[#allocation2] sm:$0x1] %v10_v0 }
   0x3 LB: > { %s29_s4 = sadd.s32 1, %s1790_s21  ;;  %p1497_p0 = scmp.ge.s32.totalorder %s1794_s22, 1  ;;  %s1794_s22 = sphi %s1836_s22, %s17_s22   ;;  %s1790_s21 = sphi %s1834_s21, %s2216_s21   ;;  %s1786_s20 = sphi %s1832_s20, %s2215_s20  }
   0x4   : > { %p31_p1 = scmp.ge.s32.totalorder %s29_s4, 2  ;;  %p249_p2 = scmp.lt.s32.totalorder %s1794_s22, 3 }
   0x6   : > { %s2218_s4 = smov (%p31_p1, %s29_s4), 0  ;;  %p250_p3 = pnand %p1497_p0, %p249_p2 }
   0x7   : > { %p308_p4 = scmp.lt.s32.totalorder (!%p250_p3), %s1786_s20, 1  ;;  %vm376_vm0 = vcmask (!%p250_p3), 1040384   ;;  %s1796_s30 = smov (!%p250_p3), 1   ;;  %vm398_vm1 = vcmask (!%p250_p3), 7168   ;;  %vm402_vm2 = vcmask (!%p250_p3), 138240   ;;  %vm427_vm3 = vcmask (!%p250_p3), 1046528  }
   0x8   : > { %253 = sbr.rel (%p250_p3) target bundleno = 562 (0x232), region = 40  ;;  %s1797_s6 = smov (!%p250_p3), 127   ;;  %vm453_vm4 = vcmask (!%p250_p3), 1045504   ;;  %vm1311_vm5 = vcmask (!%p250_p3), 519168  }
   0x9   : > { %v481_v25 = vld [vmem:[#allocation2] sm:$0x1] (!%p250_p3)  ;;  %s1798_s7 = smov (!%p250_p3), 126  }
   0xa   : > { %1739 = vpush (!%p250_p3), %v481_v25 }
   0xf   : > { %s2220_s20 = smov (!%p308_p4, %s1786_s20), 1 }
  0x10   : > { %s1546_s23 = sshll.u32 %s2220_s20, 4  ;;  %s2044_s9 = sshll.u32 %s2220_s20, 7 }
  0x11   : > { %s338_s26 = scalar_lea.vmem %s2212_s3, %s1546_s23  ;;  %s333_s29 = scalar_lea.vmem %s2211_s2, %s1546_s23 }
  0x12   : > { %v487_v1 = vld [vmem:[%s338_s26] sm:$0xff]  ;;  %v488_v8 = vld [vmem:[%s338_s26 + $0x8] sm:$0xff]  ;;  %s2054_s12 = scalar_lea.vmem %s2209_s0, %s2044_s9  ;;  %s2060_s15 = scalar_lea.vmem %s2210_s1, %s2044_s9 }
  0x13   : > { %v490_v2 = vld [vmem:[%s338_s26] sm:$0x1]  ;;  %v497_v5 = vrot.slane %v487_v1, 7  ;;  %v498_v10 = vrot.slane %v488_v8, 7  ;;  %v353_v11 = vld [vmem:[%s333_s29 + $0x8] sm:$0xff]  ;;  %s2081_s18 = scalar_lea.vmem %s2214_s5, %s2044_s9 }
  0x14   : > { %v352_v3 = vld [vmem:[%s333_s29] sm:$0xff]  ;;  %v493_v4 = vmul.f32 0.0, %v490_v2  ;;  %v1509_v12 = vld [vmem:[%s338_s26 + $0xf] sm:$0x1]  ;;  %v378_v14 = vrot.slane %v353_v11, 7 }
  0x15   : > { %v358_v6 = vld [vmem:[%s333_s29] sm:$0x1]  ;;  %v377_v7 = vrot.slane %v352_v3, 7  ;;  %v494_v15 = vmul.f32 0.0, %v1509_v12  ;;  %v1508_v16 = vld [vmem:[%s333_s29 + $0xf] sm:$0x1]  ;;  %v499_v19 = vsel %vm376_vm0, %v497_v5, %v498_v10 }
  0x16   : > { %v368_v9 = vmul.f32 0.0, %v358_v6  ;;  %v505_v13 = vsel %vm376_vm0, %v493_v4, %v497_v5  ;;  %v373_v18 = vmul.f32 0.0, %v1508_v16 }
  0x17   : > { %509 = vrot.lane.b32.xlu1 %v505_v13, %s1796_s30  ;;  %v503_v20 = vrot.slane %v494_v15, 7  ;;  %v379_v21 = vsel %vm376_vm0, %v377_v7, %v378_v14 }
  0x18   : > { %v385_v17 = vsel %vm376_vm0, %v368_v9, %v377_v7  ;;  %v383_v22 = vrot.slane %v373_v18, 7 }
  0x19   : > { %389 = vrot.lane.b32.xlu0 %v385_v17, %s1796_s30  ;;  %v506_v23 = vsel %vm376_vm0, %v498_v10, %v503_v20 }
  0x1a   : > { %v386_v24 = vsel %vm376_vm0, %v378_v14, %v383_v22 }
  0x1b   : > { %511 = vrot.lane.b32.xlu1 %v499_v19, %s1796_s30 }
  0x1d   : > { %391 = vrot.lane.b32.xlu0 %v379_v21, %s1796_s30 }
  0x1f   : > { %513 = vrot.lane.b32.xlu1 %v506_v23, %s1796_s30 }
  0x21   : > { %393 = vrot.lane.b32.xlu0 %v386_v24, %s1796_s30 }
  0x3b   : > { %s1740_s8 = spop %1739 }
  0x89   : > { %v510_v26 = vpop.permute.xlu1 %509 }
  0x8a   : > { %v518_v36 = vsel %vm398_vm1, 0.0, %v510_v26 }
  0x8b   : > { %v390_v27 = vpop.permute.xlu0 %389  ;;  %v521_v37 = vsel %vm402_vm2, %v518_v36, 0.0 }
  0x8c   : > { %v399_v28 = vsel %vm398_vm1, 0.0, %v390_v27  ;;  %v545_v42 = vrot.slane %v521_v37, 1  ;;  %v570_v51 = vrot.slane %v521_v37, 2 }
  0x8d   : > { %v1867_v29 = vsel %vm402_vm2, %v399_v28, 0.0  ;;  %v512_v30 = vpop.permute.xlu1 %511 }
  0x8e   : > { %410 = vrot.lane.b32.xlu0 %v1867_v29, %s1797_s6  ;;  %v519_v34 = vsel %vm398_vm1, 0.0, %v512_v30  ;;  %v428_v39 = vrot.slane %v1867_v29, 1  ;;  %v454_v48 = vrot.slane %v1867_v29, 2 }
  0x8f   : > { %v392_v31 = vpop.permute.xlu0 %391  ;;  %v1881_v35 = vsel %vm402_vm2, %v519_v34, 0.0 }
  0x90   : > { %v400_v32 = vsel %vm398_vm1, 0.0, %v392_v31  ;;  %v546_v43 = vrot.slane %v1881_v35, 1  ;;  %v571_v52 = vrot.slane %v1881_v35, 2 }
  0x91   : > { %v1873_v33 = vsel %vm402_vm2, %v400_v32, 0.0  ;;  %v514_v53 = vpop.permute.xlu1 %513 }
  0x92   : > { %418 = vrot.lane.b32.xlu0 %v1867_v29, %s1798_s7  ;;  %412 = vrot.lane.b32.xlu1 %v1873_v33, %s1797_s6  ;;  %v429_v38 = vrot.slane %v1873_v33, 1  ;;  %v547_v45 = vsel %vm427_vm3, %v545_v42, %v546_v43  ;;  %v455_v46 = vrot.slane %v1873_v33, 2  ;;  %v572_v54 = vsel %vm453_vm4, %v570_v51, %v571_v52 }
  0x93   : > { %v394_v40 = vpop.permute.xlu0 %393  ;;  %v520_v56 = vsel %vm398_vm1, 0.0, %v514_v53 }
  0x94   : > { %v430_v41 = vsel %vm427_vm3, %v428_v39, %v429_v38  ;;  %v401_v44 = vsel %vm398_vm1, 0.0, %v394_v40  ;;  %v456_v50 = vsel %vm453_vm4, %v454_v48, %v455_v46  ;;  %v523_v58 = vsel %vm402_vm2, %v520_v56, 0.0 }
  0x95   : > { %v405_v47 = vsel %vm402_vm2, %v401_v44, 0.0  ;;  %v548_v59 = vrot.slane %v523_v58, 1  ;;  %v573_v60 = vrot.slane %v523_v58, 2  ;;  %v483_v44 = vstv %s1740_s8 }
  0x96   : > { %530 = vrot.lane.b32.xlu0 %v1881_v35, %s1797_s6  ;;  %420 = vrot.lane.b32.xlu1 %v1873_v33, %s1798_s7  ;;  %v431_v49 = vrot.slane %v405_v47, 1  ;;  %v457_v57 = vrot.slane %v405_v47, 2 }
  0x97   : > { %v549_v62 = vsel %vm427_vm3, %v546_v43, %v548_v59  ;;  %v1922_v63 = vsel %vm453_vm4, %v571_v52, %v573_v60 }
  0x98   : > { %v432_v55 = vsel %vm427_vm3, %v429_v38, %v431_v49  ;;  %v458_v61 = vsel %vm453_vm4, %v455_v46, %v457_v57  ;;  %v605_v57 = vlaneseq }
  0x9a   : > { %538 = vrot.lane.b32.xlu0 %v1881_v35, %s1798_s7  ;;  %528 = vrot.lane.b32.xlu1 %v521_v37, %s1797_s6 }
  0x9e   : > { %536 = vrot.lane.b32.xlu1 %v521_v37, %s1798_s7  ;;  %437 = vrot.lane.b32.xlu0 %v430_v41, %s1797_s6 }
  0xa2   : > { %554 = vrot.lane.b32.xlu1 %v547_v45, %s1797_s6  ;;  %445 = vrot.lane.b32.xlu0 %v430_v41, %s1798_s7 }
  0xa6   : > { %562 = vrot.lane.b32.xlu1 %v547_v45, %s1798_s7  ;;  %463 = vrot.lane.b32.xlu0 %v456_v50, %s1797_s6 }
  0xaa   : > { %579 = vrot.lane.b32.xlu0 %v572_v54, %s1797_s6  ;;  %439 = vrot.lane.b32.xlu1 %v432_v55, %s1797_s6 }
  0xae   : > { %471 = vrot.lane.b32.xlu0 %v456_v50, %s1798_s7  ;;  %447 = vrot.lane.b32.xlu1 %v432_v55, %s1798_s7 }
  0xb2   : > { %587 = vrot.lane.b32.xlu0 %v572_v54, %s1798_s7  ;;  %465 = vrot.lane.b32.xlu1 %v458_v61, %s1797_s6 }
  0xb6   : > { %556 = vrot.lane.b32.xlu0 %v549_v62, %s1797_s6  ;;  %581 = vrot.lane.b32.xlu1 %v1922_v63, %s1797_s6 }
  0xba   : > { %564 = vrot.lane.b32.xlu0 %v549_v62, %s1798_s7  ;;  %473 = vrot.lane.b32.xlu1 %v458_v61, %s1798_s7 }
  0xbe   : > { %589 = vrot.lane.b32.xlu1 %v1922_v63, %s1798_s7 }
 0x100   : > { %v411_v0 = vpop.permute.xlu0 %410 }
 0x101   : > { %v416_v7 = vadd.f32 %v411_v0, %v1867_v29 }
 0x104   : > { %v413_v1 = vpop.permute.xlu1 %412  ;;  %v419_v2 = vpop.permute.xlu0 %418 }
 0x105   : > { %v424_v8 = vadd.f32 %v419_v2, %v416_v7  ;;  %v417_v22 = vadd.f32 %v413_v1, %v1873_v33  ;;  %v606_v1 = vshrl.u32 %v605_v57, 7 }
 0x107   : > { %v435_v13 = vadd.f32 %v430_v41, %v424_v8 }
 0x108   : > { %v421_v3 = vpop.permute.xlu1 %420  ;;  %v531_v4 = vpop.permute.xlu0 %530 }
 0x109   : > { %v425_v27 = vadd.f32 %v421_v3, %v417_v22  ;;  %v535_v36 = vadd.f32 %v531_v4, %v1881_v35 }
 0x10b   : > { %v436_v32 = vadd.f32 %v432_v55, %v425_v27 }
 0x10c   : > { %v529_v5 = vpop.permute.xlu1 %528  ;;  %v539_v6 = vpop.permute.xlu0 %538 }
 0x10d   : > { %v534_v9 = vadd.f32 %v529_v5, %v521_v37  ;;  %v543_v41 = vadd.f32 %v539_v6, %v535_v36 }
 0x10f   : > { %v553_v51 = vadd.f32 %v549_v62, %v543_v41 }
 0x110   : > { %v537_v10 = vpop.permute.xlu1 %536  ;;  %v438_v11 = vpop.permute.xlu0 %437 }
 0x111   : > { %v542_v12 = vadd.f32 %v537_v10, %v534_v9  ;;  %v443_v16 = vadd.f32 %v438_v11, %v435_v13  ;;  %v618_v9 = vsub.s32 1, %v606_v1  ;;  %v629_v10 = vsub.s32 2, %v606_v1 }
 0x112   : > { %v651_v13 = vsub.s32 4, %v606_v1 }
 0x113   : > { %v552_v17 = vadd.f32 %v547_v45, %v542_v12  ;;  %v640_v12 = vsub.s32 3, %v606_v1 }
 0x114   : > { %v555_v14 = vpop.permute.xlu1 %554  ;;  %v446_v15 = vpop.permute.xlu0 %445 }
 0x115   : > { %v451_v18 = vadd.f32 %v446_v15, %v443_v16  ;;  %v560_v21 = vadd.f32 %v555_v14, %v552_v17  ;;  %v662_v14 = vsub.s32 5, %v606_v1  ;;  %v1937_v16 = vsub.s32 7, %v606_v1 }
 0x117   : > { %v461_v24 = vadd.f32 %v456_v50, %v451_v18 }
 0x118   : > { %v563_v19 = vpop.permute.xlu1 %562  ;;  %v464_v20 = vpop.permute.xlu0 %463 }
 0x119   : > { %v568_v23 = vadd.f32 %v563_v19, %v560_v21  ;;  %v469_v28 = vadd.f32 %v464_v20, %v461_v24 }
 0x11b   : > { %v577_v29 = vadd.f32 %v572_v54, %v568_v23 }
 0x11c   : > { %v440_v25 = vpop.permute.xlu1 %439  ;;  %v580_v26 = vpop.permute.xlu0 %579 }
 0x11d   : > { %v444_v37 = vadd.f32 %v440_v25, %v436_v32  ;;  %v585_v38 = vadd.f32 %v580_v26, %v577_v29 }
 0x120   : > { %v448_v30 = vpop.permute.xlu1 %447  ;;  %v472_v31 = vpop.permute.xlu0 %471 }
 0x121   : > { %v477_v34 = vadd.f32 %v472_v31, %v469_v28  ;;  %v452_v33 = vadd.f32 %v448_v30, %v444_v37 }
 0x123   : > { %v479_v42 = vmul.f32 0.11111111, %v477_v34  ;;  %v462_v49 = vadd.f32 %v458_v61, %v452_v33  ;;  %v607_v61 = vsub.s32 0, %v606_v1 }
 0x124   : > { %v466_v39 = vpop.permute.xlu1 %465  ;;  %v588_v40 = vpop.permute.xlu0 %587 }
 0x125   : > { %v593_v43 = vadd.f32 %v588_v40, %v585_v38  ;;  %v484_v48 = vadd.f32 %v483_v44, %v479_v42  ;;  %v470_v55 = vadd.f32 %v466_v39, %v462_v49 }
 0x127   : > { %v595_v45 = vmul.f32 0.11111111, %v593_v43 }
 0x128   : > { %v582_v46 = vpop.permute.xlu1 %581  ;;  %v557_v47 = vpop.permute.xlu0 %556 }
 0x129   : > { %v597_v50 = vadd.f32 %v595_v45, %v483_v44  ;;  %v561_v53 = vadd.f32 %v557_v47, %v553_v51 }
 0x12b   : > { %v599_v52 = vadd.f32 %v597_v50, %v484_v48 }
 0x12c   : > { %v474_v35 = vpop.permute.xlu1 %473  ;;  %v565_v54 = vpop.permute.xlu0 %564 }
 0x12d   : > { %1768 = vrcp.f32 %v599_v52  ;;  %v569_v56 = vadd.f32 %v565_v54, %v561_v53  ;;  %v478_v58 = vadd.f32 %v474_v35, %v470_v55 }
 0x12f   : > { %v578_v59 = vadd.f32 %v1922_v63, %v569_v56  ;;  %v480_v2 = vmul.f32 0.11111111, %v478_v58  ;;  %v1935_v63 = vsub.s32 6, %v606_v1 }
 0x130   : > { %v590_v0 = vpop.permute.xlu1 %589 }
 0x131   : > { %v586_v60 = vadd.f32 %v582_v46, %v578_v59  ;;  %v485_v62 = vadd.f32 %v483_v44, %v480_v2 }
 0x133   : > { %v594_v3 = vadd.f32 %v590_v0, %v586_v60 }
 0x135   : > { %v596_v4 = vmul.f32 0.11111111, %v594_v3 }
 0x137   : > { %v1769_v5 = vpop.eup %1768  ;;  %v598_v6 = vadd.f32 %v596_v4, %v483_v44 }
 0x138   : > { %v603_v7 = vmul.f32 %v1769_v5, %v484_v48  ;;  %v781_v8 = vmul.f32 %v1769_v5, %v597_v50 }
 0x139   : > { %v600_v11 = vadd.f32 %v598_v6, %v485_v62 }
 0x13a   : > { %v608_v15 = vrot.slane %v603_v7, %v607_v61  ;;  %v1939_v17 = vrot.slane %v781_v8, %v607_v61  ;;  %v1941_v18 = vrot.slane %v781_v8, %v618_v9  ;;  %v1943_v19 = vrot.slane %v781_v8, %v629_v10 }
 0x13b   : > { %1770 = vrcp.f32 %v600_v11  ;;  %v1945_v20 = vrot.slane %v781_v8, %v640_v12  ;;  %v1947_v21 = vrot.slane %v781_v8, %v651_v13  ;;  %v1949_v22 = vrot.slane %v781_v8, %v662_v14 }
 0x13c   : > { %614 = vbcast.lane.b32.xlu1 %v608_v15, 264  ;;  %610 = vbcast.lane.b32.xlu0 %v608_v15, 256  ;;  %v619_v23 = vrot.slane %v603_v7, %v618_v9  ;;  %v1952_v24 = vrot.slane %v781_v8, %v1935_v63  ;;  %v1955_v25 = vrot.slane %v781_v8, %v1937_v16 }
 0x13d   : > { %v630_v26 = vrot.slane %v603_v7, %v629_v10  ;;  %v641_v29 = vrot.slane %v603_v7, %v640_v12  ;;  %v652_v30 = vrot.slane %v603_v7, %v651_v13  ;;  %v663_v41 = vrot.slane %v603_v7, %v662_v14 }
 0x13e   : > { %v674_v33 = vrot.slane %v603_v7, %v1935_v63  ;;  %v685_v43 = vrot.slane %v603_v7, %v1937_v16 }
 0x140   : > { %625 = vbcast.lane.b32.xlu1 %v619_v23, 264  ;;  %621 = vbcast.lane.b32.xlu0 %v619_v23, 256  ;;  %v1709_v23 = vld [vmem:[%s2054_s12 + $0x8] sm:$0xff]  }
 0x144   : > { %636 = vbcast.lane.b32.xlu1 %v630_v26, 264  ;;  %632 = vbcast.lane.b32.xlu0 %v630_v26, 256  ;;  %v1724_v26 = vld [vmem:[%s2060_s15 + $0x8] sm:$0xff]  }
 0x145   : > { %v1771_v27 = vpop.eup %1770 }
 0x146   : > { %v782_v28 = vmul.f32 %v1771_v27, %v598_v6  ;;  %v604_v42 = vmul.f32 %v1771_v27, %v485_v62  ;;  %v1710_v27 = vld [vmem:[%s2054_s12 + $0x10] sm:$0xff]  }
 0x148   : > { %647 = vbcast.lane.b32.xlu1 %v641_v29, 264  ;;  %643 = vbcast.lane.b32.xlu0 %v641_v29, 256  ;;  %v874_v31 = vrot.slane %v782_v28, %v607_v61  ;;  %v885_v32 = vrot.slane %v782_v28, %v618_v9  ;;  %v896_v34 = vrot.slane %v782_v28, %v629_v10  ;;  %v1587_v29 = vunpack.c.l.bf16 %v1709_v23 }
 0x149   : > { %v1957_v36 = vrot.slane %v782_v28, %v640_v12  ;;  %v1959_v37 = vrot.slane %v782_v28, %v651_v13  ;;  %v1961_v38 = vrot.slane %v782_v28, %v662_v14  ;;  %v1964_v39 = vrot.slane %v782_v28, %v1935_v63 }
 0x14a   : > { %v1967_v40 = vrot.slane %v782_v28, %v1937_v16  ;;  %v696_v44 = vrot.slane %v604_v42, %v607_v61  ;;  %v707_v45 = vrot.slane %v604_v42, %v618_v9  ;;  %v718_v46 = vrot.slane %v604_v42, %v629_v10 }
 0x14b   : > { %v729_v47 = vrot.slane %v604_v42, %v640_v12  ;;  %v740_v48 = vrot.slane %v604_v42, %v651_v13  ;;  %v751_v49 = vrot.slane %v604_v42, %v662_v14  ;;  %v762_v50 = vrot.slane %v604_v42, %v1935_v63 }
 0x14c   : > { %658 = vbcast.lane.b32.xlu1 %v652_v30, 264  ;;  %654 = vbcast.lane.b32.xlu0 %v652_v30, 256  ;;  %v773_v51 = vrot.slane %v604_v42, %v1937_v16  ;;  %v1588_v28 = vunpack.c.h.bf16 %v1709_v23 }
 0x150   : > { %669 = vbcast.lane.b32.xlu1 %v663_v41, 264  ;;  %665 = vbcast.lane.b32.xlu0 %v663_v41, 256  ;;  %v1592_v41 = vunpack.c.h.bf16 %v1710_v27 }
 0x154   : > { %680 = vbcast.lane.b32.xlu1 %v674_v33, 264  ;;  %676 = vbcast.lane.b32.xlu0 %v674_v33, 256  ;;  %v1591_v33 = vunpack.c.l.bf16 %v1710_v27 }
 0x158   : > { %691 = vbcast.lane.b32.xlu1 %v685_v43, 264  ;;  %687 = vbcast.lane.b32.xlu0 %v685_v43, 256 }
 0x15c   : > { %702 = vbcast.lane.b32.xlu1 %v696_v44, 264  ;;  %698 = vbcast.lane.b32.xlu0 %v696_v44, 256 }
 0x160   : > { %713 = vbcast.lane.b32.xlu1 %v707_v45, 264  ;;  %709 = vbcast.lane.b32.xlu0 %v707_v45, 256 }
 0x164   : > { %724 = vbcast.lane.b32.xlu1 %v718_v46, 264  ;;  %720 = vbcast.lane.b32.xlu0 %v718_v46, 256  ;;  %v1711_v46 = vld [vmem:[%s2054_s12 + $0x18] sm:$0xff]  }
 0x168   : > { %735 = vbcast.lane.b32.xlu1 %v729_v47, 264  ;;  %731 = vbcast.lane.b32.xlu0 %v729_v47, 256 }
 0x16c   : > { %746 = vbcast.lane.b32.xlu1 %v740_v48, 264  ;;  %742 = vbcast.lane.b32.xlu0 %v740_v48, 256 }
 0x170   : > { %757 = vbcast.lane.b32.xlu1 %v751_v49, 264  ;;  %753 = vbcast.lane.b32.xlu0 %v751_v49, 256 }
 0x174   : > { %768 = vbcast.lane.b32.xlu1 %v762_v50, 264  ;;  %764 = vbcast.lane.b32.xlu0 %v762_v50, 256 }
 0x178   : > { %779 = vbcast.lane.b32.xlu1 %v773_v51, 264  ;;  %775 = vbcast.lane.b32.xlu0 %v773_v51, 256 }
 0x17c   : > { %792 = vbcast.lane.b32.xlu1 %v1939_v17, 264  ;;  %788 = vbcast.lane.b32.xlu0 %v1939_v17, 256  ;;  %v1582_v17 = vld [vmem:[%s2054_s12] sm:$0xff]  }
 0x180   : > { %803 = vbcast.lane.b32.xlu1 %v1941_v18, 264  ;;  %799 = vbcast.lane.b32.xlu0 %v1941_v18, 256  ;;  %v1646_v18 = vld [vmem:[%s2060_s15] sm:$0xff]  }
 0x184   : > { %814 = vbcast.lane.b32.xlu1 %v1943_v19, 264  ;;  %810 = vbcast.lane.b32.xlu0 %v1943_v19, 256 }
 0x188   : > { %825 = vbcast.lane.b32.xlu1 %v1945_v20, 264  ;;  %821 = vbcast.lane.b32.xlu0 %v1945_v20, 256 }
 0x18c   : > { %836 = vbcast.lane.b32.xlu1 %v1947_v21, 264  ;;  %832 = vbcast.lane.b32.xlu0 %v1947_v21, 256  ;;  %v1584_v21 = vunpack.c.h.bf16 %v1582_v17 }
 0x190   : > { %847 = vbcast.lane.b32.xlu1 %v1949_v22, 264  ;;  %843 = vbcast.lane.b32.xlu0 %v1949_v22, 256  ;;  %v1583_v22 = vunpack.c.l.bf16 %v1582_v17 }
 0x194   : > { %858 = vbcast.lane.b32.xlu1 %v1952_v24, 264  ;;  %854 = vbcast.lane.b32.xlu0 %v1952_v24, 256  ;;  %v1648_v24 = vunpack.c.h.bf16 %v1646_v18 }
 0x198   : > { %869 = vbcast.lane.b32.xlu1 %v1955_v25, 264  ;;  %865 = vbcast.lane.b32.xlu0 %v1955_v25, 256  ;;  %v1647_v25 = vunpack.c.l.bf16 %v1646_v18  ;;  %v1726_v18 = vld [vmem:[%s2060_s15 + $0x18] sm:$0xff]  }
 0x19c   : > { %880 = vbcast.lane.b32.xlu1 %v874_v31, 264  ;;  %876 = vbcast.lane.b32.xlu0 %v874_v31, 256 }
 0x1a0   : > { %891 = vbcast.lane.b32.xlu1 %v885_v32, 264  ;;  %887 = vbcast.lane.b32.xlu0 %v885_v32, 256  ;;  %v1652_v32 = vunpack.c.h.bf16 %v1724_v26 }
 0x1a4   : > { %902 = vbcast.lane.b32.xlu1 %v896_v34, 264  ;;  %898 = vbcast.lane.b32.xlu0 %v896_v34, 256  ;;  %v1651_v34 = vunpack.c.l.bf16 %v1724_v26 }
 0x1a8   : > { %913 = vbcast.lane.b32.xlu1 %v1957_v36, 264  ;;  %909 = vbcast.lane.b32.xlu0 %v1957_v36, 256 }
 0x1ac   : > { %924 = vbcast.lane.b32.xlu1 %v1959_v37, 264  ;;  %920 = vbcast.lane.b32.xlu0 %v1959_v37, 256 }
 0x1ae   : > { %v615_v52 = vpop.permute.xlu1 %614  ;;  %v611_v53 = vpop.permute.xlu0 %610 }
 0x1af   : > { %v1024_v36 = vmul.f32 %v1584_v21, %v615_v52  ;;  %v1023_v37 = vmul.f32 %v1583_v22, %v611_v53 }
 0x1b0   : > { %935 = vbcast.lane.b32.xlu1 %v1961_v38, 264  ;;  %931 = vbcast.lane.b32.xlu0 %v1961_v38, 256 }
 0x1b2   : > { %v626_v35 = vpop.permute.xlu1 %625  ;;  %v622_v54 = vpop.permute.xlu0 %621 }
 0x1b3   : > { %v1026_v44 = vmul.f32 %v1588_v28, %v626_v35  ;;  %v1025_v45 = vmul.f32 %v1587_v29, %v622_v54  ;;  %v1596_v35 = vunpack.c.h.bf16 %v1711_v46  ;;  %v1595_v54 = vunpack.c.l.bf16 %v1711_v46 }
 0x1b4   : > { %946 = vbcast.lane.b32.xlu1 %v1964_v39, 264  ;;  %942 = vbcast.lane.b32.xlu0 %v1964_v39, 256  ;;  %v1660_v28 = vunpack.c.h.bf16 %v1726_v18  ;;  %v1659_v29 = vunpack.c.l.bf16 %v1726_v18 }
 0x1b6   : > { %v1997_v55 = vpop.permute.xlu1 %636  ;;  %v1999_v56 = vpop.permute.xlu0 %632 }
 0x1b7   : > { %v1028_v23 = vmul.f32 %v1592_v41, %v1997_v55  ;;  %v1713_v41 = vld [vmem:[%s2054_s12 + $0x28] sm:$0xff]  }
 0x1b8   : > { %957 = vbcast.lane.b32.xlu1 %v1967_v40, 264  ;;  %953 = vbcast.lane.b32.xlu0 %v1967_v40, 256  ;;  %v1725_v40 = vld [vmem:[%s2060_s15 + $0x10] sm:$0xff]  }
 0x1b9   : > { %v1656_v49 = vunpack.c.h.bf16 %v1725_v40  ;;  %v1655_v50 = vunpack.c.l.bf16 %v1725_v40 }
 0x1ba   : > { %v2003_v57 = vpop.permute.xlu1 %647  ;;  %v2005_v58 = vpop.permute.xlu0 %643 }
 0x1bb   : > { %v1029_v40 = vmul.f32 %v1595_v54, %v2005_v58 }
 0x1be   : > { %v2007_v59 = vpop.permute.xlu1 %658  ;;  %v2009_v60 = vpop.permute.xlu0 %654 }
 0x1c2   : > { %v2011_v0 = vpop.permute.xlu1 %669  ;;  %v2013_v1 = vpop.permute.xlu0 %665 }
 0x1c6   : > { %v2015_v2 = vpop.permute.xlu1 %680  ;;  %v2017_v3 = vpop.permute.xlu0 %676 }
 0x1ca   : > { %v2019_v4 = vpop.permute.xlu1 %691  ;;  %v2021_v61 = vpop.permute.xlu0 %687 }
 0x1ce   : > { %v2023_v5 = vpop.permute.xlu1 %702  ;;  %v2025_v62 = vpop.permute.xlu0 %698 }
 0x1d2   : > { %v2027_v6 = vpop.permute.xlu1 %713  ;;  %v2029_v7 = vpop.permute.xlu0 %709 }
 0x1d6   : > { %v2031_v8 = vpop.permute.xlu1 %724  ;;  %v2033_v9 = vpop.permute.xlu0 %720 }
 0x1da   : > { %v2035_v10 = vpop.permute.xlu1 %735  ;;  %v2037_v11 = vpop.permute.xlu0 %731 }
 0x1de   : > { %v2039_v12 = vpop.permute.xlu1 %746  ;;  %v2041_v13 = vpop.permute.xlu0 %742 }
 0x1e2   : > { %v2046_v14 = vpop.permute.xlu1 %757  ;;  %v2048_v15 = vpop.permute.xlu0 %753 }
 0x1e6   : > { %v2062_v63 = vpop.permute.xlu1 %768  ;;  %v2064_v16 = vpop.permute.xlu0 %764 }
 0x1ea   : > { %v2068_v19 = vpop.permute.xlu1 %779  ;;  %v2070_v20 = vpop.permute.xlu0 %775 }
 0x1ee   : > { %v793_v30 = vpop.permute.xlu1 %792  ;;  %v789_v31 = vpop.permute.xlu0 %788 }
 0x1ef   : > { %v1120_v38 = vmul.f32 %v1648_v24, %v793_v30  ;;  %v1119_v39 = vmul.f32 %v1647_v25, %v789_v31  ;;  %v1027_v24 = vmul.f32 %v1591_v33, %v1999_v56  ;;  %v1712_v25 = vld [vmem:[%s2054_s12 + $0x20] sm:$0xff]  }
 0x1f1   : > { %v1152_v42 = vadd.f32 %v1120_v38, %v1024_v36  ;;  %v1151_v43 = vadd.f32 %v1119_v39, %v1023_v37  ;;  %v1727_v36 = vld [vmem:[%s2060_s15 + $0x20] sm:$0xff]   ;;  %v1600_v37 = vunpack.c.h.bf16 %v1712_v25  ;;  %v1599_v38 = vunpack.c.l.bf16 %v1712_v25 }
 0x1f2   : > { %v804_v47 = vpop.permute.xlu1 %803  ;;  %v800_v48 = vpop.permute.xlu0 %799  ;;  %v1030_v39 = vmul.f32 %v1596_v35, %v2003_v57 }
 0x1f3   : > { %v1550_v51 = vpack.c.bf16 %v1152_v42, %v1152_v42  ;;  %v1549_v52 = vpack.c.bf16 %v1151_v43, %v1151_v43  ;;  %v1122_v53 = vmul.f32 %v1652_v32, %v804_v47  ;;  %v1121_v17 = vmul.f32 %v1651_v34, %v800_v48 }
 0x1f4   : > { %v1664_v43 = vunpack.c.h.bf16 %v1727_v36 }
 0x1f5   : > { %1313 = vst.msk [vmem:[%s2081_s18 + $0x4] sm:$0xf] %vm1311_vm5, %v1550_v51  ;;  %1312 = vst.msk [vmem:[%s2081_s18] sm:$0xf] %vm1311_vm5, %v1549_v52  ;;  %v1154_v21 = vadd.f32 %v1122_v53, %v1026_v44  ;;  %v1153_v22 = vadd.f32 %v1121_v17, %v1025_v45  ;;  %v1663_v44 = vunpack.c.l.bf16 %v1727_v36  ;;  %v1603_v51 = vunpack.c.l.bf16 %v1713_v41  ;;  %v1714_v17 = vld [vmem:[%s2054_s12 + $0x30] sm:$0xff]  }
 0x1f6   : > { %v815_v26 = vpop.permute.xlu1 %814  ;;  %v811_v27 = vpop.permute.xlu0 %810  ;;  %v1032_v52 = vmul.f32 %v1600_v37, %v2007_v59  ;;  %v1031_v53 = vmul.f32 %v1599_v38, %v2009_v60 }
 0x1f7   : > { %v1552_v30 = vpack.c.bf16 %v1154_v21, %v1154_v21  ;;  %v1551_v31 = vpack.c.bf16 %v1153_v22, %v1153_v22  ;;  %v1124_v32 = vmul.f32 %v1656_v49, %v815_v26  ;;  %v1123_v34 = vmul.f32 %v1655_v50, %v811_v27  ;;  %v1728_v49 = vld [vmem:[%s2060_s15 + $0x28] sm:$0xff]   ;;  %v1729_v26 = vld [vmem:[%s2060_s15 + $0x30] sm:$0xff]  }
 0x1f8   : > { %v1604_v50 = vunpack.c.h.bf16 %v1713_v41  ;;  %v1668_v54 = vunpack.c.h.bf16 %v1728_v49  ;;  %v1667_v21 = vunpack.c.l.bf16 %v1728_v49  ;;  %v1608_v27 = vunpack.c.h.bf16 %v1714_v17 }
 0x1f9   : > { %1315 = vst.msk [vmem:[%s2081_s18 + $0xc] sm:$0xf] %vm1311_vm5, %v1552_v30  ;;  %1314 = vst.msk [vmem:[%s2081_s18 + $0x8] sm:$0xf] %vm1311_vm5, %v1551_v31  ;;  %v1156_v55 = vadd.f32 %v1124_v32, %v1028_v23  ;;  %v1155_v56 = vadd.f32 %v1123_v34, %v1027_v24  ;;  %v1033_v30 = vmul.f32 %v1603_v51, %v2013_v1  ;;  %v1715_v31 = vld [vmem:[%s2054_s12 + $0x38] sm:$0xff]   ;;  %v1672_v36 = vunpack.c.h.bf16 %v1729_v26 }
 0x1fa   : > { %v826_v33 = vpop.permute.xlu1 %825  ;;  %v822_v42 = vpop.permute.xlu0 %821  ;;  %v1671_v37 = vunpack.c.l.bf16 %v1729_v26  ;;  %v1612_v41 = vunpack.c.h.bf16 %v1715_v31 }
 0x1fb   : > { %v1554_v45 = vpack.c.bf16 %v1156_v55, %v1156_v55  ;;  %v1553_v46 = vpack.c.bf16 %v1155_v56, %v1155_v56  ;;  %v1126_v47 = vmul.f32 %v1660_v28, %v826_v33  ;;  %v1125_v48 = vmul.f32 %v1659_v29, %v822_v42 }
 0x1fc   : > { %v1607_v28 = vunpack.c.l.bf16 %v1714_v17  ;;  %v1034_v29 = vmul.f32 %v1604_v50, %v2011_v0  ;;  %v1611_v33 = vunpack.c.l.bf16 %v1715_v31  ;;  %v1036_v42 = vmul.f32 %v1608_v27, %v2015_v2  ;;  %v1718_v31 = vld [vmem:[%s2054_s12 + $0x50] sm:$0xff]  }
 0x1fd   : > { %1317 = vst.msk [vmem:[%s2081_s18 + $0x14] sm:$0xf] %vm1311_vm5, %v1554_v45  ;;  %1316 = vst.msk [vmem:[%s2081_s18 + $0x10] sm:$0xf] %vm1311_vm5, %v1553_v46  ;;  %v1158_v57 = vadd.f32 %v1126_v47, %v1030_v39  ;;  %v1157_v58 = vadd.f32 %v1125_v48, %v1029_v40  ;;  %v1730_v40 = vld [vmem:[%s2060_s15 + $0x38] sm:$0xff]   ;;  %v1038_v17 = vmul.f32 %v1612_v41, %v2019_v4  ;;  %v1624_v41 = vunpack.c.h.bf16 %v1718_v31 }
 0x1fe   : > { %v837_v18 = vpop.permute.xlu1 %836  ;;  %v833_v35 = vpop.permute.xlu0 %832  ;;  %v1676_v47 = vunpack.c.h.bf16 %v1730_v40  ;;  %v1675_v48 = vunpack.c.l.bf16 %v1730_v40  ;;  %v1733_v40 = vld [vmem:[%s2060_s15 + $0x50] sm:$0xff]  }
 0x1ff   : > { %v1556_v22 = vpack.c.bf16 %v1158_v57, %v1158_v57  ;;  %v1555_v23 = vpack.c.bf16 %v1157_v58, %v1157_v58  ;;  %v1128_v24 = vmul.f32 %v1664_v43, %v837_v18  ;;  %v1127_v25 = vmul.f32 %v1663_v44, %v833_v35  ;;  %v1716_v44 = vld [vmem:[%s2054_s12 + $0x40] sm:$0xff]   ;;  %v1717_v35 = vld [vmem:[%s2054_s12 + $0x48] sm:$0xff]  }
 0x200   : > { %v1035_v43 = vmul.f32 %v1607_v28, %v2017_v3  ;;  %v1731_v58 = vld [vmem:[%s2060_s15 + $0x40] sm:$0xff]   ;;  %v1037_v18 = vmul.f32 %v1611_v33, %v2021_v61  ;;  %v1732_v28 = vld [vmem:[%s2060_s15 + $0x48] sm:$0xff]   ;;  %v1623_v33 = vunpack.c.l.bf16 %v1718_v31 }
 0x201   : > { %1319 = vst.msk [vmem:[%s2081_s18 + $0x1c] sm:$0xf] %vm1311_vm5, %v1556_v22  ;;  %1318 = vst.msk [vmem:[%s2081_s18 + $0x18] sm:$0xf] %vm1311_vm5, %v1555_v23  ;;  %v1160_v59 = vadd.f32 %v1128_v24, %v1032_v52  ;;  %v1159_v60 = vadd.f32 %v1127_v25, %v1031_v53  ;;  %v1616_v52 = vunpack.c.h.bf16 %v1716_v44  ;;  %v1615_v53 = vunpack.c.l.bf16 %v1716_v44 }
 0x202   : > { %v848_v32 = vpop.permute.xlu1 %847  ;;  %v844_v34 = vpop.permute.xlu0 %843  ;;  %v1680_v22 = vunpack.c.h.bf16 %v1731_v58  ;;  %v1679_v23 = vunpack.c.l.bf16 %v1731_v58 }
 0x203   : > { %v1558_v38 = vpack.c.bf16 %v1160_v59, %v1160_v59  ;;  %v1557_v55 = vpack.c.bf16 %v1159_v60, %v1159_v60  ;;  %v1130_v56 = vmul.f32 %v1668_v54, %v848_v32  ;;  %v1129_v39 = vmul.f32 %v1667_v21, %v844_v34 }
 0x204   : > { %v1620_v59 = vunpack.c.h.bf16 %v1717_v35  ;;  %v1619_v60 = vunpack.c.l.bf16 %v1717_v35 }
 0x205   : > { %1321 = vst.msk [vmem:[%s2081_s18 + $0x24] sm:$0xf] %vm1311_vm5, %v1558_v38  ;;  %1320 = vst.msk [vmem:[%s2081_s18 + $0x20] sm:$0xf] %vm1311_vm5, %v1557_v55  ;;  %v1162_v0 = vadd.f32 %v1130_v56, %v1034_v29  ;;  %v1161_v1 = vadd.f32 %v1129_v39, %v1033_v30  ;;  %v1040_v29 = vmul.f32 %v1616_v52, %v2023_v5 }
 0x206   : > { %v859_v45 = vpop.permute.xlu1 %858  ;;  %v855_v46 = vpop.permute.xlu0 %854  ;;  %v1039_v30 = vmul.f32 %v1615_v53, %v2025_v62  ;;  %v1044_v52 = vmul.f32 %v1624_v41, %v2031_v8  ;;  %v1043_v53 = vmul.f32 %v1623_v33, %v2033_v9 }
 0x207   : > { %v1560_v49 = vpack.c.bf16 %v1162_v0, %v1162_v0  ;;  %v1559_v50 = vpack.c.bf16 %v1161_v1, %v1161_v1  ;;  %v1132_v51 = vmul.f32 %v1672_v36, %v859_v45  ;;  %v1131_v57 = vmul.f32 %v1671_v37, %v855_v46 }
 0x208   : > { %v1684_v36 = vunpack.c.h.bf16 %v1732_v28  ;;  %v1683_v37 = vunpack.c.l.bf16 %v1732_v28  ;;  %v1042_v0 = vmul.f32 %v1620_v59, %v2027_v6  ;;  %v1041_v1 = vmul.f32 %v1619_v60, %v2029_v7  ;;  %v1721_v59 = vld [vmem:[%s2054_s12 + $0x68] sm:$0xff]  }
 0x209   : > { %1323 = vst.msk [vmem:[%s2081_s18 + $0x2c] sm:$0xf] %vm1311_vm5, %v1560_v49  ;;  %1322 = vst.msk [vmem:[%s2081_s18 + $0x28] sm:$0xf] %vm1311_vm5, %v1559_v50  ;;  %v1164_v2 = vadd.f32 %v1132_v51, %v1036_v42  ;;  %v1163_v3 = vadd.f32 %v1131_v57, %v1035_v43  ;;  %v1719_v42 = vld [vmem:[%s2054_s12 + $0x58] sm:$0xff]   ;;  %v1688_v45 = vunpack.c.h.bf16 %v1733_v40  ;;  %v1687_v46 = vunpack.c.l.bf16 %v1733_v40 }
 0x20a   : > { %v870_v54 = vpop.permute.xlu1 %869  ;;  %v866_v21 = vpop.permute.xlu0 %865  ;;  %v1734_v51 = vld [vmem:[%s2060_s15 + $0x58] sm:$0xff]   ;;  %v1628_v57 = vunpack.c.h.bf16 %v1719_v42  ;;  %v1627_v58 = vunpack.c.l.bf16 %v1719_v42 }
 0x20b   : > { %v1562_v24 = vpack.c.bf16 %v1164_v2, %v1164_v2  ;;  %v1561_v25 = vpack.c.bf16 %v1163_v3, %v1163_v3  ;;  %v1134_v26 = vmul.f32 %v1676_v47, %v870_v54  ;;  %v1133_v27 = vmul.f32 %v1675_v48, %v866_v21  ;;  %v1720_v2 = vld [vmem:[%s2054_s12 + $0x60] sm:$0xff]  }
 0x20c   : > { %v1691_v35 = vunpack.c.l.bf16 %v1734_v51  ;;  %v1045_v28 = vmul.f32 %v1627_v58, %v2037_v11 }
 0x20d   : > { %1325 = vst.msk [vmem:[%s2081_s18 + $0x34] sm:$0xf] %vm1311_vm5, %v1562_v24  ;;  %1324 = vst.msk [vmem:[%s2081_s18 + $0x30] sm:$0xf] %vm1311_vm5, %v1561_v25  ;;  %v1166_v4 = vadd.f32 %v1134_v26, %v1038_v17  ;;  %v1165_v61 = vadd.f32 %v1133_v27, %v1037_v18  ;;  %v1692_v18 = vunpack.c.h.bf16 %v1734_v51  ;;  %v1735_v24 = vld [vmem:[%s2060_s15 + $0x60] sm:$0xff]   ;;  %v1632_v25 = vunpack.c.h.bf16 %v1720_v2 }
 0x20e   : > { %v881_v32 = vpop.permute.xlu1 %880  ;;  %v877_v34 = vpop.permute.xlu0 %876  ;;  %v1631_v26 = vunpack.c.l.bf16 %v1720_v2  ;;  %v1046_v27 = vmul.f32 %v1628_v57, %v2035_v10 }
 0x20f   : > { %v1564_v38 = vpack.c.bf16 %v1166_v4, %v1166_v4  ;;  %v1563_v55 = vpack.c.bf16 %v1165_v61, %v1165_v61  ;;  %v1136_v56 = vmul.f32 %v1680_v22, %v881_v32  ;;  %v1135_v39 = vmul.f32 %v1679_v23, %v877_v34 }
 0x210   : > { %v1696_v61 = vunpack.c.h.bf16 %v1735_v24 }
 0x211   : > { %1327 = vst.msk [vmem:[%s2081_s18 + $0x3c] sm:$0xf] %vm1311_vm5, %v1564_v38  ;;  %1326 = vst.msk [vmem:[%s2081_s18 + $0x38] sm:$0xf] %vm1311_vm5, %v1563_v55  ;;  %v1168_v5 = vadd.f32 %v1136_v56, %v1040_v29  ;;  %v1167_v62 = vadd.f32 %v1135_v39, %v1039_v30  ;;  %v1695_v29 = vunpack.c.l.bf16 %v1735_v24  ;;  %v1635_v38 = vunpack.c.l.bf16 %v1721_v59  ;;  %v1722_v39 = vld [vmem:[%s2054_s12 + $0x70] sm:$0xff]  }
 0x212   : > { %v892_v43 = vpop.permute.xlu1 %891  ;;  %v888_v44 = vpop.permute.xlu0 %887  ;;  %v1048_v55 = vmul.f32 %v1632_v25, %v2039_v12  ;;  %v1047_v56 = vmul.f32 %v1631_v26, %v2041_v13 }
 0x213   : > { %v1566_v47 = vpack.c.bf16 %v1168_v5, %v1168_v5  ;;  %v1565_v48 = vpack.c.bf16 %v1167_v62, %v1167_v62  ;;  %v1138_v49 = vmul.f32 %v1684_v36, %v892_v43  ;;  %v1137_v50 = vmul.f32 %v1683_v37, %v888_v44  ;;  %v1736_v36 = vld [vmem:[%s2060_s15 + $0x68] sm:$0xff]   ;;  %v1737_v43 = vld [vmem:[%s2060_s15 + $0x70] sm:$0xff]  }
 0x214   : > { %v1636_v37 = vunpack.c.h.bf16 %v1721_v59  ;;  %v1700_v33 = vunpack.c.h.bf16 %v1736_v36  ;;  %v1699_v5 = vunpack.c.l.bf16 %v1736_v36  ;;  %v1640_v44 = vunpack.c.h.bf16 %v1722_v39 }
 0x215   : > { %1329 = vst.msk [vmem:[%s2081_s18 + $0x44] sm:$0xf] %vm1311_vm5, %v1566_v47  ;;  %1328 = vst.msk [vmem:[%s2081_s18 + $0x40] sm:$0xf] %vm1311_vm5, %v1565_v48  ;;  %v1170_v6 = vadd.f32 %v1138_v49, %v1042_v0  ;;  %v1169_v7 = vadd.f32 %v1137_v50, %v1041_v1  ;;  %v1049_v47 = vmul.f32 %v1635_v38, %v2048_v15  ;;  %v1723_v48 = vld [vmem:[%s2054_s12 + $0x78] sm:$0xff]   ;;  %v1704_v51 = vunpack.c.h.bf16 %v1737_v43 }
 0x216   : > { %v903_v3 = vpop.permute.xlu1 %902  ;;  %v899_v17 = vpop.permute.xlu0 %898  ;;  %v1703_v57 = vunpack.c.l.bf16 %v1737_v43  ;;  %v1644_v2 = vunpack.c.h.bf16 %v1723_v48 }
 0x217   : > { %v1568_v54 = vpack.c.bf16 %v1170_v6, %v1170_v6  ;;  %v1567_v21 = vpack.c.bf16 %v1169_v7, %v1169_v7  ;;  %v1140_v22 = vmul.f32 %v1688_v45, %v903_v3  ;;  %v1139_v23 = vmul.f32 %v1687_v46, %v899_v17 }
 0x218   : > { %v1639_v45 = vunpack.c.l.bf16 %v1722_v39  ;;  %v1050_v46 = vmul.f32 %v1636_v37, %v2046_v14  ;;  %v1643_v3 = vunpack.c.l.bf16 %v1723_v48  ;;  %v1052_v17 = vmul.f32 %v1640_v44, %v2062_v63 }
 0x219   : > { %1331 = vst.msk [vmem:[%s2081_s18 + $0x4c] sm:$0xf] %vm1311_vm5, %v1568_v54  ;;  %1330 = vst.msk [vmem:[%s2081_s18 + $0x48] sm:$0xf] %vm1311_vm5, %v1567_v21  ;;  %v1172_v8 = vadd.f32 %v1140_v22, %v1044_v52  ;;  %v1171_v9 = vadd.f32 %v1139_v23, %v1043_v53  ;;  %v1738_v53 = vld [vmem:[%s2060_s15 + $0x78] sm:$0xff]   ;;  %v1054_v63 = vmul.f32 %v1644_v2, %v2068_v19 }
 0x21a   : > { %v914_v60 = vpop.permute.xlu1 %913  ;;  %v910_v4 = vpop.permute.xlu0 %909  ;;  %v1708_v21 = vunpack.c.h.bf16 %v1738_v53  ;;  %v1707_v22 = vunpack.c.l.bf16 %v1738_v53 }
 0x21b   : > { %v1570_v30 = vpack.c.bf16 %v1172_v8, %v1172_v8  ;;  %v1569_v31 = vpack.c.bf16 %v1171_v9, %v1171_v9  ;;  %v1142_v32 = vmul.f32 %v1692_v18, %v914_v60  ;;  %v1141_v34 = vmul.f32 %v1691_v35, %v910_v4 }
 0x21c   : > { %v1051_v18 = vmul.f32 %v1639_v45, %v2064_v16  ;;  %v1053_v16 = vmul.f32 %v1643_v3, %v2070_v20 }
 0x21d   : > { %1333 = vst.msk [vmem:[%s2081_s18 + $0x54] sm:$0xf] %vm1311_vm5, %v1570_v30  ;;  %1332 = vst.msk [vmem:[%s2081_s18 + $0x50] sm:$0xf] %vm1311_vm5, %v1569_v31  ;;  %v1174_v10 = vadd.f32 %v1142_v32, %v1046_v27  ;;  %v1173_v11 = vadd.f32 %v1141_v34, %v1045_v28 }
 0x21e   : > { %v925_v40 = vpop.permute.xlu1 %924  ;;  %v921_v41 = vpop.permute.xlu0 %920 }
 0x21f   : > { %v1572_v62 = vpack.c.bf16 %v1174_v10, %v1174_v10  ;;  %v1571_v0 = vpack.c.bf16 %v1173_v11, %v1173_v11  ;;  %v1144_v1 = vmul.f32 %v1696_v61, %v925_v40  ;;  %v1143_v42 = vmul.f32 %v1695_v29, %v921_v41 }
 0x221   : > { %1335 = vst.msk [vmem:[%s2081_s18 + $0x5c] sm:$0xf] %vm1311_vm5, %v1572_v62  ;;  %1334 = vst.msk [vmem:[%s2081_s18 + $0x58] sm:$0xf] %vm1311_vm5, %v1571_v0  ;;  %v1176_v12 = vadd.f32 %v1144_v1, %v1048_v55  ;;  %v1175_v13 = vadd.f32 %v1143_v42, %v1047_v56 }
 0x222   : > { %v936_v49 = vpop.permute.xlu1 %935  ;;  %v932_v50 = vpop.permute.xlu0 %931 }
 0x223   : > { %v1574_v58 = vpack.c.bf16 %v1176_v12, %v1176_v12  ;;  %v1573_v6 = vpack.c.bf16 %v1175_v13, %v1175_v13  ;;  %v1146_v7 = vmul.f32 %v1700_v33, %v936_v49  ;;  %v1145_v52 = vmul.f32 %v1699_v5, %v932_v50 }
 0x225   : > { %1337 = vst.msk [vmem:[%s2081_s18 + $0x64] sm:$0xf] %vm1311_vm5, %v1574_v58  ;;  %1336 = vst.msk [vmem:[%s2081_s18 + $0x60] sm:$0xf] %vm1311_vm5, %v1573_v6  ;;  %v1178_v14 = vadd.f32 %v1146_v7, %v1050_v46  ;;  %v1177_v15 = vadd.f32 %v1145_v52, %v1049_v47 }
 0x226   : > { %v947_v35 = vpop.permute.xlu1 %946  ;;  %v943_v54 = vpop.permute.xlu0 %942 }
 0x227   : > { %v1576_v23 = vpack.c.bf16 %v1178_v14, %v1178_v14  ;;  %v1575_v24 = vpack.c.bf16 %v1177_v15, %v1177_v15  ;;  %v1148_v25 = vmul.f32 %v1704_v51, %v947_v35  ;;  %v1147_v26 = vmul.f32 %v1703_v57, %v943_v54 }
 0x229   : > { %1339 = vst.msk [vmem:[%s2081_s18 + $0x6c] sm:$0xf] %vm1311_vm5, %v1576_v23  ;;  %1338 = vst.msk [vmem:[%s2081_s18 + $0x68] sm:$0xf] %vm1311_vm5, %v1575_v24  ;;  %v1180_v8 = vadd.f32 %v1148_v25, %v1052_v17  ;;  %v1179_v9 = vadd.f32 %v1147_v26, %v1051_v18 }
 0x22a   : > { %v958_v27 = vpop.permute.xlu1 %957  ;;  %v954_v28 = vpop.permute.xlu0 %953 }
 0x22b   : > { %v1578_v59 = vpack.c.bf16 %v1180_v8, %v1180_v8  ;;  %v1577_v60 = vpack.c.bf16 %v1179_v9, %v1179_v9  ;;  %v1150_v4 = vmul.f32 %v1708_v21, %v958_v27  ;;  %v1149_v61 = vmul.f32 %v1707_v22, %v954_v28 }
 0x22d   : > { %1341 = vst.msk [vmem:[%s2081_s18 + $0x74] sm:$0xf] %vm1311_vm5, %v1578_v59  ;;  %1340 = vst.msk [vmem:[%s2081_s18 + $0x70] sm:$0xf] %vm1311_vm5, %v1577_v60  ;;  %v1182_v29 = vadd.f32 %v1150_v4, %v1054_v63  ;;  %v1181_v30 = vadd.f32 %v1149_v61, %v1053_v16 }
 0x22f   : > { %v1580_v31 = vpack.c.bf16 %v1182_v29, %v1182_v29  ;;  %v1579_v32 = vpack.c.bf16 %v1181_v30, %v1181_v30 }
 0x231   : > { %1343 = vst.msk [vmem:[%s2081_s18 + $0x7c] sm:$0xf] %vm1311_vm5, %v1580_v31  ;;  %1342 = vst.msk [vmem:[%s2081_s18 + $0x78] sm:$0xf] %vm1311_vm5, %v1579_v32 }
 0x232 PF: > { %s17_s22 = sadd.s32 1, %s1794_s22   ;;  %s2215_s20 = smov %s1790_s21 }
 0x233   : > { %p14_p5 = scmp.ge.s32.totalorder %s17_s22, 4   ;;  %s2216_s21 = smov %s2218_s4 }
 0x235   :  { %16 = sbr.rel (!%p14_p5) target bundleno = 3 (0x3), region = 85 }

// kernel: densefuse_bb.8
= control target key start
LH: loop header
LB: loop body
LE: loop exit
PB: predicated region body
PF: predicated region fallthrough
CT: control target
= control target key end

     0   :  { %s1734_s12 = smov 0   ;;  %s1736_s13 = smov 0   ;;  %s2149_s0 = inlined_call_operand.vmem [shape: bf16[2,16,8,128], index: 0, kind: input, shape index: {}]   ;;  %s2150_s1 = inlined_call_operand.vmem [shape: bf16[3,192,64], index: 1, kind: input, shape index: {}]   ;;  %s2151_s2 = inlined_call_operand.vmem [shape: f32[1,64], index: 2, kind: input, shape index: {}]   ;;  %s2152_s3 = inlined_call_operand.vmem [shape: bf16[2,8,8,64], index: 3, kind: output, shape index: {}]  }
   0x1   :  { %s1738_s14 = smov 0  }
   0x2 LB: > { %s25_s15 = sadd.s32 1, %s1706_s13  ;;  %p1439_p0 = scmp.ge.s32.totalorder %s1710_s14, 1  ;;  %s1710_s14 = sphi %s1738_s14, %s13_s14   ;;  %s1706_s13 = sphi %s1736_s13, %s2156_s13   ;;  %s1702_s12 = sphi %s1734_s12, %s2155_s12  }
   0x3   : > { %p27_p1 = scmp.ge.s32.totalorder %s25_s15, 2  ;;  %p151_p2 = scmp.lt.s32.totalorder %s1710_s14, 3 }
   0x5   : > { %s2158_s15 = smov (%p27_p1, %s25_s15), 0  ;;  %p152_p3 = pnand %p1439_p0, %p151_p2 }
   0x6   : > { %p179_p4 = scmp.lt.s32.totalorder (!%p152_p3), %s1702_s12, 1  ;;  %vm427_vm0 = vsmask.f32 (!%p152_p3), 256  ;;  %v1712_v0 = vmov (!%p152_p3), 0   ;;  %v1652_v1 = vld [vmem:[%s2150_s1 + $0x60] sm:$0xff] (!%p152_p3)   ;;  %v1654_v3 = vld [vmem:[%s2150_s1 + $0x68] sm:$0xff] (!%p152_p3)  }
   0x7   : > { %155 = sbr.rel (%p152_p3) target bundleno = 440 (0x1b8), region = 32  ;;  %880 = vmatprep.subr.bf16.mxu0 (!%p152_p3), %v1712_v0  ;;  %1041 = vmatprep.subr.bf16.mxu1 (!%p152_p3), %v1712_v0  ;;  %v1653_v2 = vld [vmem:[%s2150_s1] sm:$0xff] (!%p152_p3)   ;;  %vm426_vm1 = vcmask (!%p152_p3), 1040384   ;;  %v1655_v4 = vld [vmem:[%s2150_s1 + $0x8] sm:$0xff] (!%p152_p3)   ;;  %v1656_v19 = vld [vmem:[%s2150_s1 + $0x70] sm:$0xff] (!%p152_p3)   ;;  %s1713_s9 = smov (!%p152_p3), 64  }
   0x8   : > { %881 = vmatpush1.bf16.msra.mxu0 (!%p152_p3), %v1652_v1  ;;  %1042 = vmatpush1.bf16.msra.mxu1 (!%p152_p3), %v1653_v2  ;;  %vm1788_vm2 = vmand (!%p152_p3), %vm426_vm1, %vm427_vm0  ;;  %v1657_v28 = vld [vmem:[%s2150_s1 + $0x10] sm:$0xff] (!%p152_p3)   ;;  %v1658_v33 = vld [vmem:[%s2150_s1 + $0x78] sm:$0xff] (!%p152_p3)   ;;  %vm542_vm3 = vcmask (!%p152_p3), 523264   ;;  %vm1341_vm4 = vcmask (!%p152_p3), 519168  }
   0x9   : > { %882 = vmatprep.subr.bf16.mxu0 (!%p152_p3), %v1712_v0  ;;  %1043 = vmatprep.subr.bf16.mxu1 (!%p152_p3), %v1712_v0  ;;  %v1659_v37 = vld [vmem:[%s2150_s1 + $0x18] sm:$0xff] (!%p152_p3)   ;;  %v1660_v57 = vld [vmem:[%s2150_s1 + $0x80] sm:$0xff] (!%p152_p3)  }
   0xa   : > { %v1661_v63 = vld [vmem:[%s2150_s1 + $0x20] sm:$0xff] (!%p152_p3)  }
   0xc   : > { %883 = vmatpush1.bf16.msra.mxu0 (!%p152_p3), %v1654_v3  ;;  %1044 = vmatpush1.bf16.msra.mxu1 (!%p152_p3), %v1655_v4  ;;  %v1662_v4 = vld [vmem:[%s2150_s1 + $0x88] sm:$0xff] (!%p152_p3)  }
   0xd   : > { %884 = vmatprep.subr.bf16.mxu0 (!%p152_p3), %v1712_v0  ;;  %1045 = vmatprep.subr.bf16.mxu1 (!%p152_p3), %v1712_v0 }
   0xe   : > { %s2160_s12 = smov (!%p179_p4, %s1702_s12), 1 }
   0xf   : > { %s1584_s20 = sshll.u32 %s2160_s12, 6  ;;  %s1585_s27 = sshll.u32 %s2160_s12, 5 }
  0x10   : > { %s1769_s25 = scalar_lea.vmem %s2149_s0, %s1584_s20  ;;  %885 = vmatpush1.bf16.msra.mxu0 %v1656_v19  ;;  %1046 = vmatpush1.bf16.msra.mxu1 %v1657_v28  ;;  %s2122_s30 = scalar_lea.vmem %s2152_s3, %s1585_s27 }
  0x11   : > { %v1636_v5 = vld [vmem:[%s1769_s25 + $0x8] ss:$0 sps:$4 sm:$0xff]   ;;  %v1637_v6 = vld [vmem:[%s1769_s25 + $0x4] ss:$0 sps:$4 sm:$0xff]   ;;  %v1638_v7 = vld [vmem:[%s1769_s25 + $0x14] ss:$0 sps:$4 sm:$0xff]   ;;  %886 = vmatprep.subr.bf16.mxu0 %v1712_v0  ;;  %1047 = vmatprep.subr.bf16.mxu1 %v1712_v0 }
  0x12   : > { %v312_v8 = vshrl.u32 %v1636_v5, 16  ;;  %v315_v9 = vshll.u32 %v1636_v5, 16  ;;  %v1639_v10 = vld [vmem:[%s1769_s25] ss:$0 sps:$4 sm:$0xff]   ;;  %v305_v11 = vshrl.u32 %v1637_v6, 16  ;;  %v308_v12 = vshll.u32 %v1637_v6, 16 }
  0x13   : > { %v333_v13 = vshrl.u32 %v1638_v7, 16  ;;  %v336_v14 = vshll.u32 %v1638_v7, 16  ;;  %v298_v16 = vshrl.u32 %v1639_v10, 16  ;;  %v301_v17 = vshll.u32 %v1639_v10, 16  ;;  %v1640_v18 = vld [vmem:[%s1769_s25 + $0xc] ss:$0 sps:$4 sm:$0xff]  }
  0x14   : > { %v314_v15 = vrot.slane %v312_v8, 7  ;;  %v307_v21 = vrot.slane %v305_v11, 7  ;;  %v220_v23 = vld [vmem:[%s1769_s25] sm:$0xf]  ;;  %v319_v26 = vshrl.u32 %v1640_v18, 16  ;;  %v322_v27 = vshll.u32 %v1640_v18, 16  ;;  %887 = vmatpush1.bf16.msra.mxu0 %v1658_v33  ;;  %1048 = vmatpush1.bf16.msra.mxu1 %v1659_v37 }
  0x15   : > { %v335_v22 = vrot.slane %v333_v13, 7  ;;  %v300_v25 = vrot.slane %v298_v16, 7  ;;  %v238_v31 = vmul.bf16 0.0, %v220_v23  ;;  %v1641_v32 = vld [vmem:[%s1769_s25 + $0x18] ss:$0 sps:$4 sm:$0xff]   ;;  %888 = vmatprep.subr.bf16.mxu0 %v1712_v0  ;;  %1049 = vmatprep.subr.bf16.mxu1 %v1712_v0  ;;  %v1663_v10 = vld [vmem:[%s2150_s1 + $0x28] sm:$0xff]  }
  0x16   : > { %v317_v24 = vor.u32 %v315_v9, %v314_v15  ;;  %v310_v29 = vor.u32 %v308_v12, %v307_v21  ;;  %v321_v36 = vrot.slane %v319_v26, 7  ;;  %v340_v47 = vshrl.u32 %v1641_v32, 16  ;;  %v1642_v48 = vld [vmem:[%s1769_s25 + $0x10] ss:$0 sps:$4 sm:$0xff]   ;;  %v1818_v53 = vld [vmem:[%s1769_s25 + $0x24] ss:$0 sps:$4 sm:$0xff]  }
  0x17   : > { %v338_v30 = vor.u32 %v336_v14, %v335_v22  ;;  %v303_v35 = vor.u32 %v301_v17, %v300_v25  ;;  %v1444_v46 = vcombine.low %v238_v31, %v238_v31  ;;  %v1832_v62 = vld [vmem:[%s1769_s25 + $0x1c] ss:$0 sps:$4 sm:$0xff]   ;;  %v343_v3 = vshll.u32 %v1641_v32, 16  ;;  %v1841_v9 = vld [vmem:[%s1769_s25 + $0x28] ss:$0 sps:$4 sm:$0xff]   ;;  %v1664_v23 = vld [vmem:[%s2150_s1 + $0x90] sm:$0xff]  }
  0x18   : > { %v432_v34 = vsel %vm1788_vm2, 0, %v317_v24  ;;  %v431_v39 = vsel %vm1788_vm2, 0, %v310_v29  ;;  %v324_v45 = vor.u32 %v322_v27, %v321_v36  ;;  %v342_v2 = vrot.slane %v340_v47, 7  ;;  %889 = vmatpush1.bf16.msra.mxu0 %v1660_v57  ;;  %1050 = vmatpush1.bf16.msra.mxu1 %v1661_v63  ;;  %v1646_v17 = vld [vmem:[%s1769_s25 + $0x20] ss:$0 sps:$4 sm:$0xff]  }
  0x19   : > { %625 = vrot.lane.b32.xlu1 %v432_v34, %s1713_s9  ;;  %v649_v38 = vshll.u32 %v432_v34, 16  ;;  %v435_v40 = vsel %vm1788_vm2, 0, %v338_v30  ;;  %456 = vrot.lane.b32.xlu0 %v431_v39, %s1713_s9  ;;  %v478_v41 = vshrl.u32 %v431_v39, 16  ;;  %v480_v42 = vshll.u32 %v431_v39, 16  ;;  %v1647_v36 = vld [vmem:[%s1769_s25 + $0x34] ss:$0 sps:$4 sm:$0xff]  }
  0x1a   : > { %v494_v43 = vshll.u32 %v435_v40, 16  ;;  %v430_v44 = vsel %vm1788_vm2, 0, %v303_v35  ;;  %v647_v49 = vshrl.u32 %v432_v34, 16  ;;  %v1823_v54 = vsel %vm1788_vm2, 0, %v324_v45  ;;  %890 = vmatprep.subr.bf16.mxu0 %v1712_v0  ;;  %1051 = vmatprep.subr.bf16.mxu1 %v1712_v0  ;;  %v1665_v39 = vld [vmem:[%s2150_s1 + $0x30] sm:$0xff]  }
  0x1b   : > { %v651_v50 = vrot.slane %v649_v38, 1  ;;  %v482_v51 = vrot.slane %v480_v42, 1  ;;  %v642_v52 = vshll.u32 %v430_v44, 16  ;;  %v291_v55 = vshrl.u32 %v1444_v46, 16  ;;  %v1882_v45 = vld [vmem:[%s1769_s25 + $0x2c] ss:$0 sps:$4 sm:$0xff]  }
  0x1c   : > { %v294_v56 = vshll.u32 %v1444_v46, 16  ;;  %v492_v58 = vshrl.u32 %v435_v40, 16  ;;  %v496_v59 = vrot.slane %v494_v43, 1  ;;  %v487_v61 = vshll.u32 %v1823_v54, 16  ;;  %891 = vmatpush1.bf16.msra.mxu0 %v1662_v4  ;;  %1052 = vmatpush1.bf16.msra.mxu1 %v1663_v10  ;;  %v1666_v46 = vld [vmem:[%s2150_s1 + $0x98] sm:$0xff]  }
  0x1d   : > { %460 = vrot.lane.b32.xlu1 %v435_v40, %s1713_s9  ;;  %623 = vrot.lane.b32.xlu0 %v430_v44, %s1713_s9  ;;  %v483_v60 = vor.u32 %v482_v51, %v478_v41  ;;  %v293_v1 = vrot.slane %v291_v55, 7  ;;  %v640_v5 = vshrl.u32 %v430_v44, 16  ;;  %v644_v6 = vrot.slane %v642_v52, 1  ;;  %v1667_v55 = vld [vmem:[%s2150_s1 + $0x38] sm:$0xff]  }
  0x1e   : > { %v652_v7 = vor.u32 %v651_v50, %v647_v49  ;;  %v326_v8 = vshrl.u32 %v1642_v48, 16  ;;  %v345_v12 = vor.u32 %v343_v3, %v342_v2  ;;  %v329_v13 = vshll.u32 %v1642_v48, 16  ;;  %892 = vmatprep.subr.bf16.mxu0 %v1712_v0  ;;  %1053 = vmatprep.subr.bf16.mxu1 %v1712_v0  ;;  %v1669_v2 = vld [vmem:[%s2150_s1 + $0x40] sm:$0xff]   ;;  %v1913_v4 = vld [vmem:[%s1769_s25 + $0x38] ss:$0 sps:$4 sm:$0xff]  }
  0x1f   : > { %v296_v11 = vor.u32 %v294_v56, %v293_v1  ;;  %v361_v14 = vshrl.u32 %v1818_v53, 16  ;;  %v347_v16 = vshrl.u32 %v1832_v62, 16  ;;  %v485_v18 = vshrl.u32 %v1823_v54, 16 }
  0x20   : > { %v328_v15 = vrot.slane %v326_v8, 7  ;;  %v489_v19 = vrot.slane %v487_v61, 1  ;;  %v497_v22 = vor.u32 %v496_v59, %v492_v58  ;;  %v645_v25 = vor.u32 %v644_v6, %v640_v5  ;;  %893 = vmatpush1.bf16.msra.mxu0 %v1664_v23  ;;  %1054 = vmatpush1.bf16.msra.mxu1 %v1665_v39  ;;  %v1670_v5 = vld [vmem:[%s2150_s1 + $0xa8] sm:$0xff]  }
  0x21   : > { %528 = vrot.lane.b32.xlu1 %v483_v60, %s1713_s9  ;;  %458 = vrot.lane.b32.xlu0 %v1823_v54, %s1713_s9  ;;  %v429_v21 = vsel %vm1788_vm2, 0, %v296_v11  ;;  %v1862_v26 = vsel %vm1788_vm2, 0, %v345_v12  ;;  %v368_v27 = vshrl.u32 %v1841_v9, 16  ;;  %v363_v30 = vrot.slane %v361_v14, 7  ;;  %v1671_v14 = vld [vmem:[%s2150_s1 + $0x48] sm:$0xff]  }
  0x22   : > { %v473_v24 = vshll.u32 %v429_v21, 16  ;;  %v471_v28 = vshrl.u32 %v429_v21, 16  ;;  %v331_v29 = vor.u32 %v329_v13, %v328_v15  ;;  %v364_v31 = vshll.u32 %v1818_v53, 16  ;;  %894 = vmatprep.subr.bf16.mxu0 %v1712_v0  ;;  %1055 = vmatprep.subr.bf16.mxu1 %v1712_v0 }
  0x23   : > { %v349_v33 = vrot.slane %v347_v16, 7  ;;  %v350_v34 = vshll.u32 %v1832_v62, 16  ;;  %v354_v35 = vshrl.u32 %v1646_v17, 16  ;;  %v663_v37 = vshll.u32 %v1862_v26, 16  ;;  %v1668_v62 = vld [vmem:[%s2150_s1 + $0xa0] sm:$0xff]  }
  0x24   : > { %v475_v32 = vrot.slane %v473_v24, 1  ;;  %v434_v38 = vsel %vm1788_vm2, 0, %v331_v29  ;;  %v370_v40 = vrot.slane %v368_v27, 7  ;;  %v371_v41 = vshll.u32 %v1841_v9, 16  ;;  %895 = vmatpush1.bf16.msra.mxu0 %v1666_v46  ;;  %1056 = vmatpush1.bf16.msra.mxu1 %v1667_v55  ;;  %v1921_v9 = vld [vmem:[%s1769_s25 + $0x30] ss:$0 sps:$4 sm:$0xff]  }
  0x25   : > { %697 = vrot.lane.b32.xlu1 %v652_v7, %s1713_s9  ;;  %454 = vrot.lane.b32.xlu0 %v429_v21, %s1713_s9  ;;  %v490_v43 = vor.u32 %v489_v19, %v485_v18  ;;  %v366_v44 = vor.u32 %v364_v31, %v363_v30  ;;  %v656_v47 = vshll.u32 %v434_v38, 16  ;;  %v352_v48 = vor.u32 %v350_v34, %v349_v33  ;;  %v1672_v21 = vld [vmem:[%s2150_s1 + $0xb0] sm:$0xff]  }
  0x26   : > { %v476_v42 = vor.u32 %v475_v32, %v471_v28  ;;  %v356_v49 = vrot.slane %v354_v35, 7  ;;  %v357_v50 = vshll.u32 %v1646_v17, 16  ;;  %v389_v51 = vshrl.u32 %v1647_v36, 16  ;;  %896 = vmatprep.subr.bf16.mxu0 %v1712_v0  ;;  %1057 = vmatprep.subr.bf16.mxu1 %v1712_v0  ;;  %v1651_v28 = vld [vmem:[%s1769_s25 + $0x3c] ss:$0 sps:$4 sm:$0xff]   ;;  %v1673_v29 = vld [vmem:[%s2150_s1 + $0x50] sm:$0xff]  }
  0x27   : > { %v661_v52 = vshrl.u32 %v1862_v26, 16  ;;  %v665_v53 = vrot.slane %v663_v37, 1  ;;  %v373_v54 = vor.u32 %v371_v41, %v370_v40  ;;  %v654_v56 = vshrl.u32 %v434_v38, 16  ;;  %v1674_v35 = vld [vmem:[%s2150_s1 + $0xb8] sm:$0xff]  }
  0x28   : > { %v439_v57 = vsel %vm1788_vm2, 0, %v366_v44  ;;  %v658_v58 = vrot.slane %v656_v47, 1  ;;  %v437_v59 = vsel %vm1788_vm2, 0, %v352_v48  ;;  %v359_v60 = vor.u32 %v357_v50, %v356_v49  ;;  %897 = vmatpush1.bf16.msra.mxu0 %v1668_v62  ;;  %1058 = vmatpush1.bf16.msra.mxu1 %v1669_v2 }
  0x29   : > { %532 = vrot.lane.b32.xlu1 %v497_v22, %s1713_s9  ;;  %695 = vrot.lane.b32.xlu0 %v645_v25, %s1713_s9  ;;  %v375_v61 = vshrl.u32 %v1882_v45, 16  ;;  %v391_v63 = vrot.slane %v389_v51, 7  ;;  %v392_v1 = vshll.u32 %v1647_v36, 16  ;;  %v1910_v3 = vsel %vm1788_vm2, 0, %v373_v54 }
  0x2a   : > { %v666_v6 = vor.u32 %v665_v53, %v661_v52  ;;  %v508_v7 = vshll.u32 %v439_v57, 16  ;;  %v501_v8 = vshll.u32 %v437_v59, 16  ;;  %898 = vmatprep.subr.bf16.mxu0 %v1712_v0  ;;  %v659_v10 = vor.u32 %v658_v58, %v654_v56  ;;  %1059 = vmatprep.subr.bf16.mxu1 %v1712_v0 }
  0x2b   : > { %v438_v11 = vsel %vm1788_vm2, 0, %v359_v60  ;;  %v377_v12 = vrot.slane %v375_v61, 7  ;;  %v378_v13 = vshll.u32 %v1882_v45, 16  ;;  %v677_v15 = vshll.u32 %v1910_v3, 16 }
  0x2c   : > { %v394_v16 = vor.u32 %v392_v1, %v391_v63  ;;  %v506_v17 = vshrl.u32 %v439_v57, 16  ;;  %v499_v18 = vshrl.u32 %v437_v59, 16  ;;  %v396_v19 = vshrl.u32 %v1913_v4, 16  ;;  %899 = vmatpush1.bf16.msra.mxu0 %v1670_v5  ;;  %1060 = vmatpush1.bf16.msra.mxu1 %v1671_v14 }
  0x2d   : > { %526 = vrot.lane.b32.xlu1 %v476_v42, %s1713_s9  ;;  %530 = vrot.lane.b32.xlu0 %v490_v43, %s1713_s9  ;;  %v510_v22 = vrot.slane %v508_v7, 1  ;;  %v670_v23 = vshll.u32 %v438_v11, 16  ;;  %v503_v24 = vrot.slane %v501_v8, 1  ;;  %v675_v25 = vshrl.u32 %v1910_v3, 16  ;;  %v1675_v43 = vld [vmem:[%s2150_s1 + $0x58] sm:$0xff]  }
  0x2e   : > { %900 = vmatprep.subr.bf16.mxu0 %v1712_v0  ;;  %v382_v27 = vshrl.u32 %v1921_v9, 16  ;;  %v679_v30 = vrot.slane %v677_v15, 1  ;;  %v443_v31 = vsel %vm1788_vm2, 0, %v394_v16  ;;  %1061 = vmatprep.subr.bf16.mxu1 %v1712_v0  ;;  %v668_v32 = vshrl.u32 %v438_v11, 16 }
  0x2f   : > { %v398_v33 = vrot.slane %v396_v19, 7  ;;  %v399_v34 = vshll.u32 %v1913_v4, 16  ;;  %v511_v36 = vor.u32 %v510_v22, %v506_v17  ;;  %v672_v37 = vrot.slane %v670_v23, 1 }
  0x30   : > { %901 = vmatpush1.bf16.msra.mxu0 %v1672_v21  ;;  %v504_v39 = vor.u32 %v503_v24, %v499_v18  ;;  %v522_v40 = vshll.u32 %v443_v31, 16  ;;  %v384_v42 = vrot.slane %v382_v27, 7  ;;  %1062 = vmatpush1.bf16.msra.mxu1 %v1673_v29  ;;  %v403_v44 = vshrl.u32 %v1651_v28, 16  ;;  %v1676_v24 = vld [vmem:[%s2150_s1 + $0xc0] sm:$0xff]  }
  0x31   : > { %629 = vrot.lane.b32.xlu1 %v1862_v26, %s1713_s9  ;;  %627 = vrot.lane.b32.xlu0 %v434_v38, %s1713_s9  ;;  %v380_v26 = vor.u32 %v378_v13, %v377_v12  ;;  %v385_v38 = vshll.u32 %v1921_v9, 16  ;;  %v406_v45 = vshll.u32 %v1651_v28, 16  ;;  %v680_v46 = vor.u32 %v679_v30, %v675_v25 }
  0x32   : > { %902 = vmatprep.subr.bf16.mxu0 %v1712_v0  ;;  %1063 = vmatprep.subr.bf16.mxu1 %v1712_v0  ;;  %v401_v47 = vor.u32 %v399_v34, %v398_v33  ;;  %v673_v48 = vor.u32 %v672_v37, %v668_v32  ;;  %v405_v50 = vrot.slane %v403_v44, 7  ;;  %v520_v52 = vshrl.u32 %v443_v31, 16  ;;  %v1677_v32 = vld [vmem:[%s2150_s1 + $0xc8] sm:$0xff]  }
  0x33   : > { %v441_v41 = vsel %vm1788_vm2, 0, %v380_v26  ;;  %v387_v51 = vor.u32 %v385_v38, %v384_v42  ;;  %v524_v53 = vrot.slane %v522_v40, 1 }
  0x34   : > { %903 = vmatpush1.bf16.msra.mxu0 %v1674_v35  ;;  %1064 = vmatpush1.bf16.msra.mxu1 %v1675_v43  ;;  %v515_v49 = vshll.u32 %v441_v41, 16  ;;  %v444_v54 = vsel %vm1788_vm2, 0, %v401_v47  ;;  %v513_v55 = vshrl.u32 %v441_v41, 16 }
  0x35   : > { %701 = vrot.lane.b32.xlu1 %v666_v6, %s1713_s9  ;;  %699 = vrot.lane.b32.xlu0 %v659_v10, %s1713_s9  ;;  %v442_v58 = vsel %vm1788_vm2, 0, %v387_v51  ;;  %v525_v60 = vor.u32 %v524_v53, %v520_v52  ;;  %v689_v1 = vshrl.u32 %v444_v54, 16 }
  0x36   : > { %1245 = vmatprep.subr.bf16.mxu0 %v1712_v0  ;;  %1586 = vmatprep.subr.bf16.mxu1 %v1712_v0  ;;  %v517_v56 = vrot.slane %v515_v49, 1  ;;  %v684_v62 = vshll.u32 %v442_v58, 16  ;;  %v682_v4 = vshrl.u32 %v442_v58, 16  ;;  %v1680_v49 = vld [vmem:[%s2150_s1 + $0xe0] sm:$0xff]  }
  0x38   : > { %v518_v61 = vor.u32 %v517_v56, %v513_v55  ;;  %v686_v5 = vrot.slane %v684_v62, 1  ;;  %v1681_v55 = vld [vmem:[%s2150_s1 + $0xe8] sm:$0xff]  }
  0x39   : > { %464 = vrot.lane.b32.xlu1 %v439_v57, %s1713_s9  ;;  %462 = vrot.lane.b32.xlu0 %v437_v59, %s1713_s9  ;;  %v408_v57 = vor.u32 %v406_v45, %v405_v50  ;;  %v691_v59 = vshll.u32 %v444_v54, 16  ;;  %v1679_v45 = vld [vmem:[%s2150_s1 + $0xd8] sm:$0xff]  }
  0x3a   : > { %v687_v9 = vor.u32 %v686_v5, %v682_v4 }
  0x3b   : > { %v445_v63 = vsel %vm1788_vm2, 0, %v408_v57  ;;  %v693_v2 = vrot.slane %v691_v59, 1  ;;  %v1682_v59 = vld [vmem:[%s2150_s1 + $0xf0] sm:$0xff]  }
  0x3c   : > { %v1110_v7 = vshrl.u32 %v445_v63, 16 }
  0x3d   : > { %536 = vrot.lane.b32.xlu1 %v511_v36, %s1713_s9  ;;  %534 = vrot.lane.b32.xlu0 %v504_v39, %s1713_s9  ;;  %v694_v6 = vor.u32 %v693_v2, %v689_v1  ;;  %v1678_v36 = vld [vmem:[%s2150_s1 + $0xd0] sm:$0xff]   ;;  %v1683_v2 = vld [vmem:[%s2150_s1 + $0xf8] sm:$0xff]  }
  0x41   : > { %633 = vrot.lane.b32.xlu1 %v1910_v3, %s1713_s9  ;;  %631 = vrot.lane.b32.xlu0 %v438_v11, %s1713_s9  ;;  %v1112_v3 = vshll.u32 %v445_v63, 16 }
  0x43   : > { %v1114_v8 = vrot.slane %v1112_v3, 1 }
  0x45   : > { %705 = vrot.lane.b32.xlu1 %v680_v46, %s1713_s9  ;;  %703 = vrot.lane.b32.xlu0 %v673_v48, %s1713_s9  ;;  %v1115_v20 = vor.u32 %v1114_v8, %v1110_v7 }
  0x49   : > { %468 = vrot.lane.b32.xlu1 %v443_v31, %s1713_s9  ;;  %466 = vrot.lane.b32.xlu0 %v441_v41, %s1713_s9 }
  0x4d   : > { %540 = vrot.lane.b32.xlu1 %v525_v60, %s1713_s9  ;;  %538 = vrot.lane.b32.xlu0 %v518_v61, %s1713_s9 }
  0x51   : > { %637 = vrot.lane.b32.xlu1 %v444_v54, %s1713_s9  ;;  %635 = vrot.lane.b32.xlu0 %v442_v58, %s1713_s9 }
  0x55   : > { %709 = vrot.lane.b32.xlu1 %v694_v6, %s1713_s9  ;;  %707 = vrot.lane.b32.xlu0 %v687_v9, %s1713_s9  ;;  %v1684_v6 = vld [vmem:[%s2150_s1 + $0x100] sm:$0xff]  }
  0x59   : > { %1116 = vrot.lane.b32.xlu1 %v1115_v20, %s1713_s9  ;;  %1107 = vrot.lane.b32.xlu0 %v445_v63, %s1713_s9 }
  0x8b   : > { %v626_v10 = vpop.permute.xlu1 %625  ;;  %v457_v11 = vpop.permute.xlu0 %456 }
  0x8f   : > { %v461_v12 = vpop.permute.xlu1 %460  ;;  %v624_v13 = vpop.permute.xlu0 %623 }
  0x93   : > { %v1988_v14 = vpop.permute.xlu1 %528  ;;  %v459_v15 = vpop.permute.xlu0 %458 }
  0x94   : > { %v2000_v27 = vsel %vm542_vm3, %v457_v11, %v1988_v14 }
  0x97   : > { %v698_v16 = vpop.permute.xlu1 %697  ;;  %v455_v17 = vpop.permute.xlu0 %454 }
  0x98   : > { %v716_v21 = vsel %vm542_vm3, %v626_v10, %v698_v16 }
  0x9b   : > { %v1990_v18 = vpop.permute.xlu1 %532  ;;  %v696_v19 = vpop.permute.xlu0 %695 }
  0x9c   : > { %v713_v22 = vsel %vm542_vm3, %v624_v13, %v696_v19  ;;  %v1486_v23 = vcombine.low %v696_v19, %v698_v16  ;;  %v2026_v39 = vsel %vm542_vm3, %v461_v12, %v1990_v18  ;;  %v1685_v12 = vld [vmem:[%s2150_s1 + $0x108] sm:$0xff]  }
  0x9d   : > { %v1485_v25 = vcombine.low %v713_v22, %v716_v21 }
  0x9e   : > { %1505 = vmatprep.mubr.msk.bf16.mxu0 %vm542_vm3, %v1486_v23 }
  0x9f   : > { %v527_v26 = vpop.permute.xlu1 %526  ;;  %913 = vmatmul.mubr.bf16.vlgmr.msra.gmra.mrb[0].mxu0 %v1485_v25  ;;  %v2003_v29 = vpop.permute.xlu0 %530 }
  0xa0   : > { %v545_v28 = vsel %vm542_vm3, %v455_v17, %v527_v26  ;;  %v1510_v30 = vcombine.low %v527_v26, %v1988_v14  ;;  %1246 = vmatpush1.bf16.msra.mxu0 %v1676_v24  ;;  %v1512_v33 = vcombine.low %v2003_v29, %v1990_v18  ;;  %v2021_v37 = vsel %vm542_vm3, %v459_v15, %v2003_v29  ;;  %v1686_v17 = vld [vmem:[%s2150_s1 + $0x110] sm:$0xff]   ;;  %v1687_v26 = vld [vmem:[%s2150_s1 + $0x118] sm:$0xff]  }
  0xa1   : > { %v1509_v31 = vcombine.low %v545_v28, %v2000_v27  ;;  %1247 = vmatprep.subr.bf16.mxu0 %v1712_v0  ;;  %v1511_v44 = vcombine.low %v2021_v37, %v2026_v39  ;;  %v1558_v28 = vcombine.low %v1988_v14, %v2003_v29 }
  0xa2   : > { %1529 = vmatprep.mubr.msk.bf16.mxu1 %vm542_vm3, %v1510_v30 }
  0xa3   : > { %v630_v34 = vpop.permute.xlu1 %629  ;;  %1074 = vmatmul.mubr.bf16.vlgmr.msra.gmra.mrb[0].mxu1 %v1509_v31  ;;  %v628_v35 = vpop.permute.xlu0 %627  ;;  %v1557_v31 = vcombine.low %v2000_v27, %v2021_v37 }
  0xa4   : > { %1598 = vmatpush1.bf16.msra.mxu1 %v1676_v24  ;;  %1530 = vmatprep.mubr.msk.bf16.mxu1 %vm542_vm3, %v1512_v33 }
  0xa5   : > { %1587 = vmatprep.subr.bf16.mxu1 %v1712_v0  ;;  %1248 = vmatpush1.bf16.msra.mxu0 %v1677_v32 }
  0xa6   : > { %1249 = vmatprep.subr.bf16.mxu0 %v1712_v0 }
  0xa7   : > { %v702_v38 = vpop.permute.xlu1 %701  ;;  %v700_v41 = vpop.permute.xlu0 %699 }
  0xa8   : > { %v722_v40 = vsel %vm542_vm3, %v630_v34, %v702_v38  ;;  %1599 = vmatpush1.bf16.msra.mxu1 %v1677_v32  ;;  %v719_v42 = vsel %vm542_vm3, %v628_v35, %v700_v41  ;;  %v1488_v43 = vcombine.low %v700_v41, %v702_v38 }
  0xa9   : > { %1588 = vmatprep.subr.bf16.mxu1 %v1712_v0  ;;  %1250 = vmatpush1.bf16.msra.mxu0 %v1678_v36  ;;  %v1487_v46 = vcombine.low %v719_v42, %v722_v40 }
  0xaa   : > { %1251 = vmatprep.subr.bf16.mxu0 %v1712_v0  ;;  %1506 = vmatprep.mubr.msk.bf16.mxu0 %vm542_vm3, %v1488_v43 }
  0xab   : > { %v465_v47 = vpop.permute.xlu1 %464  ;;  %1082 = vmatmul.mubr.bf16.gmra.mrb[4].mxu1 %v1511_v44  ;;  %921 = vmatmul.mubr.bf16.gmra.mrb[4].mxu0 %v1487_v46  ;;  %v463_v48 = vpop.permute.xlu0 %462 }
  0xac   : > { %1600 = vmatpush1.bf16.msra.mxu1 %v1678_v36 }
  0xad   : > { %1589 = vmatprep.subr.bf16.mxu1 %v1712_v0  ;;  %1252 = vmatpush1.bf16.msra.mxu0 %v1679_v45 }
  0xae   : > { %1253 = vmatprep.subr.bf16.mxu0 %v1712_v0 }
  0xaf   : > { %v537_v50 = vpop.permute.xlu1 %536  ;;  %v2046_v52 = vpop.permute.xlu0 %534 }
  0xb0   : > { %v2044_v51 = vsel %vm542_vm3, %v465_v47, %v537_v50  ;;  %1601 = vmatpush1.bf16.msra.mxu1 %v1679_v45  ;;  %v2050_v53 = vsel %vm542_vm3, %v463_v48, %v2046_v52  ;;  %v1514_v54 = vcombine.low %v2046_v52, %v537_v50  ;;  %v1560_v14 = vcombine.low %v1990_v18, %v2046_v52 }
  0xb1   : > { %1590 = vmatprep.subr.bf16.mxu1 %v1712_v0  ;;  %1254 = vmatpush1.bf16.msra.mxu0 %v1680_v49  ;;  %v1513_v56 = vcombine.low %v2050_v53, %v2044_v51  ;;  %v1559_v35 = vcombine.low %v2026_v39, %v2050_v53 }
  0xb2   : > { %1255 = vmatprep.subr.bf16.mxu0 %v1712_v0  ;;  %1531 = vmatprep.mubr.msk.bf16.mxu1 %vm542_vm3, %v1514_v54 }
  0xb3   : > { %v634_v57 = vpop.permute.xlu1 %633  ;;  %1090 = vmatmul.mubr.bf16.gmra.mrb[8].mxu1 %v1513_v56  ;;  %v632_v58 = vpop.permute.xlu0 %631 }
  0xb4   : > { %1602 = vmatpush1.bf16.msra.mxu1 %v1680_v49 }
  0xb5   : > { %1256 = vmatpush1.bf16.msra.mxu0 %v1681_v55  ;;  %1591 = vmatprep.subr.bf16.mxu1 %v1712_v0 }
  0xb6   : > { %1257 = vmatprep.subr.bf16.mxu0 %v1712_v0 }
  0xb7   : > { %v706_v60 = vpop.permute.xlu1 %705  ;;  %v704_v62 = vpop.permute.xlu0 %703 }
  0xb8   : > { %v728_v61 = vsel %vm542_vm3, %v634_v57, %v706_v60  ;;  %1603 = vmatpush1.bf16.msra.mxu1 %v1681_v55  ;;  %v725_v63 = vsel %vm542_vm3, %v632_v58, %v704_v62  ;;  %v1490_v1 = vcombine.low %v704_v62, %v706_v60 }
  0xb9   : > { %1258 = vmatpush1.bf16.msra.mxu0 %v1682_v59  ;;  %v1489_v3 = vcombine.low %v725_v63, %v728_v61  ;;  %1592 = vmatprep.subr.bf16.mxu1 %v1712_v0 }
  0xba   : > { %1259 = vmatprep.subr.bf16.mxu0 %v1712_v0  ;;  %1507 = vmatprep.mubr.msk.bf16.mxu0 %vm542_vm3, %v1490_v1 }
  0xbb   : > { %v469_v4 = vpop.permute.xlu1 %468  ;;  %929 = vmatmul.mubr.bf16.gmra.mrb[8].mxu0 %v1489_v3  ;;  %v467_v5 = vpop.permute.xlu0 %466 }
  0xbc   : > { %1604 = vmatpush1.bf16.msra.mxu1 %v1682_v59 }
  0xbd   : > { %1260 = vmatpush1.bf16.msra.mxu0 %v1683_v2  ;;  %1593 = vmatprep.subr.bf16.mxu1 %v1712_v0 }
  0xbe   : > { %1261 = vmatprep.subr.bf16.mxu0 %v1712_v0 }
  0xbf   : > { %v541_v7 = vpop.permute.xlu1 %540  ;;  %v539_v9 = vpop.permute.xlu0 %538 }
  0xc0   : > { %v566_v8 = vsel %vm542_vm3, %v469_v4, %v541_v7  ;;  %1605 = vmatpush1.bf16.msra.mxu1 %v1683_v2  ;;  %v563_v20 = vsel %vm542_vm3, %v467_v5, %v539_v9  ;;  %v1516_v10 = vcombine.low %v539_v9, %v541_v7  ;;  %v1562_v13 = vcombine.low %v537_v50, %v539_v9 }
  0xc1   : > { %1262 = vmatpush1.bf16.msra.mxu0 %v1684_v6  ;;  %1594 = vmatprep.subr.bf16.mxu1 %v1712_v0  ;;  %v1515_v11 = vcombine.low %v563_v20, %v566_v8  ;;  %v1561_v32 = vcombine.low %v2044_v51, %v563_v20 }
  0xc2   : > { %1263 = vmatprep.subr.bf16.mxu0 %v1712_v0  ;;  %1532 = vmatprep.mubr.msk.bf16.mxu1 %vm542_vm3, %v1516_v10 }
  0xc3   : > { %v638_v15 = vpop.permute.xlu1 %637  ;;  %1098 = vmatmul.mubr.bf16.gmra.mrb[12].mxu1 %v1515_v11  ;;  %v636_v16 = vpop.permute.xlu0 %635  ;;  %v1581_v11 = vld [vmem:[%s2151_s2] ss:$0 sm:$0xff] }
  0xc4   : > { %1606 = vmatpush1.bf16.msra.mxu1 %v1684_v6  ;;  %1579 = vmatprep.mubr.msk.bf16.mxu1 %vm542_vm3, %v1562_v13 }
  0xc5   : > { %1595 = vmatprep.subr.bf16.mxu1 %v1712_v0  ;;  %1264 = vmatpush1.bf16.msra.mxu0 %v1685_v12 }
  0xc6   : > { %1265 = vmatprep.subr.bf16.mxu0 %v1712_v0 }
  0xc7   : > { %v710_v19 = vpop.permute.xlu1 %709  ;;  %v708_v22 = vpop.permute.xlu0 %707 }
  0xc8   : > { %v734_v21 = vsel %vm542_vm3, %v638_v15, %v710_v19  ;;  %1607 = vmatpush1.bf16.msra.mxu1 %v1685_v12  ;;  %v731_v23 = vsel %vm542_vm3, %v636_v16, %v708_v22  ;;  %v1492_v24 = vcombine.low %v708_v22, %v710_v19 }
  0xc9   : > { %v1491_v25 = vcombine.low %v731_v23, %v734_v21  ;;  %1596 = vmatprep.subr.bf16.mxu1 %v1712_v0  ;;  %1266 = vmatpush1.bf16.msra.mxu0 %v1686_v17 }
  0xca   : > { %1508 = vmatprep.mubr.msk.bf16.mxu0 %vm542_vm3, %v1492_v24  ;;  %1267 = vmatprep.subr.bf16.mxu0 %v1712_v0 }
  0xcb   : > { %937 = vmatmul.mubr.bf16.gmra.mrb[12].mxu0 %v1491_v25  ;;  %v1117_v30 = vpop.permute.xlu1 %1116  ;;  %v1108_v33 = vpop.permute.xlu0 %1107 }
  0xcc   : > { %1608 = vmatpush1.bf16.msra.mxu1 %v1686_v17  ;;  %1577 = vmatprep.mubr.msk.bf16.mxu0 %vm542_vm3, %v1558_v28  ;;  %v1564_v29 = vcombine.low %v541_v7, %v1117_v30 }
  0xcd   : > { %1597 = vmatprep.subr.bf16.mxu1 %v1712_v0  ;;  %1268 = vmatpush1.bf16.msra.mxu0 %v1687_v26  ;;  %v1120_v0 = vsel %vm542_vm3, %v1108_v33, %v1117_v30 }
  0xce   : > { %v1563_v34 = vcombine.low %v566_v8, %v1120_v0 }
  0xd0   : > { %1609 = vmatpush1.bf16.msra.mxu1 %v1687_v26 }
  0xd3   : > { %1294 = vmatmul.mubr.bf16.vlgmr.msra.gmra.mrb[16].mxu1 %v1561_v32  ;;  %1278 = vmatmul.mubr.bf16.vlgmr.msra.gmra.mrb[16].mxu0 %v1557_v31 }
  0xd4   : > { %1580 = vmatprep.mubr.msk.bf16.mxu1 %vm542_vm3, %v1564_v29  ;;  %1578 = vmatprep.mubr.msk.bf16.mxu0 %vm542_vm3, %v1560_v14 }
  0xdb   : > { %1302 = vmatmul.mubr.bf16.gmra.mrb[20].mxu1 %v1563_v34  ;;  %1286 = vmatmul.mubr.bf16.gmra.mrb[20].mxu0 %v1559_v35 }
 0x172   : > { %v914_v27 = vpop.f32.mrb[0].mxu0 }
 0x173   : > { %v916_v36 = vpop.f32.mrb[1].mxu0 }
 0x174   : > { %v917_v37 = vpop.f32.mrb[2].mxu0 }
 0x175   : > { %v919_v18 = vpop.f32.mrb[3].mxu0 }
 0x176   : > { %v1075_v38 = vpop.f32.mrb[0].mxu1 }
 0x177   : > { %v1076_v40 = vadd.f32 %v1075_v38, %v914_v27  ;;  %v1077_v41 = vpop.f32.mrb[1].mxu1 }
 0x178   : > { %v1078_v42 = vpop.f32.mrb[2].mxu1 }
 0x179   : > { %v1079_v43 = vadd.f32 %v1078_v42, %v917_v37  ;;  %v1080_v44 = vpop.f32.mrb[3].mxu1 }
 0x17e   : > { %v1083_v45 = vpop.f32.mrb[4].mxu1  ;;  %v922_v46 = vpop.f32.mrb[4].mxu0 }
 0x17f   : > { %v1085_v47 = vpop.f32.mrb[5].mxu1  ;;  %v1084_v48 = vadd.f32 %v1083_v45, %v922_v46  ;;  %v924_v49 = vpop.f32.mrb[5].mxu0 }
 0x180   : > { %v1086_v50 = vpop.f32.mrb[6].mxu1  ;;  %v925_v51 = vpop.f32.mrb[6].mxu0 }
 0x181   : > { %v1088_v39 = vpop.f32.mrb[7].mxu1  ;;  %v1087_v52 = vadd.f32 %v1086_v50, %v925_v51  ;;  %v927_v53 = vpop.f32.mrb[7].mxu0 }
 0x186   : > { %v1091_v54 = vpop.f32.mrb[8].mxu1 }
 0x187   : > { %v1093_v55 = vpop.f32.mrb[9].mxu1 }
 0x188   : > { %v1094_v56 = vpop.f32.mrb[10].mxu1 }
 0x189   : > { %v1096_v57 = vpop.f32.mrb[11].mxu1 }
 0x18e   : > { %v930_v58 = vpop.f32.mrb[8].mxu0 }
 0x18f   : > { %v1092_v59 = vadd.f32 %v1091_v54, %v930_v58  ;;  %v932_v60 = vpop.f32.mrb[9].mxu0 }
 0x190   : > { %v933_v61 = vpop.f32.mrb[10].mxu0 }
 0x191   : > { %v1095_v62 = vadd.f32 %v1094_v56, %v933_v61  ;;  %v935_v63 = vpop.f32.mrb[11].mxu0 }
 0x196   : > { %v1099_v1 = vpop.f32.mrb[12].mxu1 }
 0x197   : > { %v1101_v2 = vpop.f32.mrb[13].mxu1 }
 0x198   : > { %v1102_v3 = vpop.f32.mrb[14].mxu1 }
 0x199   : > { %v1104_v4 = vpop.f32.mrb[15].mxu1 }
 0x19e   : > { %v938_v5 = vpop.f32.mrb[12].mxu0 }
 0x19f   : > { %v1100_v6 = vadd.f32 %v1099_v1, %v938_v5  ;;  %v940_v7 = vpop.f32.mrb[13].mxu0 }
 0x1a0   : > { %v941_v8 = vpop.f32.mrb[14].mxu0 }
 0x1a1   : > { %v1103_v9 = vadd.f32 %v1102_v3, %v941_v8  ;;  %v943_v20 = vpop.f32.mrb[15].mxu0 }
 0x1a6   : > { %v1295_v10 = vpop.f32.mrb[16].mxu1  ;;  %v1279_v12 = vpop.f32.mrb[16].mxu0 }
 0x1a7   : > { %v1314_v13 = vadd.f32 %v1295_v10, %v1092_v59  ;;  %v1310_v15 = vadd.f32 %v1279_v12, %v1076_v40  ;;  %v1297_v16 = vpop.f32.mrb[17].mxu1  ;;  %v1281_v17 = vpop.f32.mrb[17].mxu0 }
 0x1a8   : > { %v1298_v19 = vpop.f32.mrb[18].mxu1  ;;  %v1282_v21 = vpop.f32.mrb[18].mxu0 }
 0x1a9   : > { %v1329_v22 = vadd.f32 %v1581_v11, %v1314_v13  ;;  %v1325_v23 = vadd.f32 %v1581_v11, %v1310_v15  ;;  %v1315_v24 = vadd.f32 %v1298_v19, %v1095_v62  ;;  %v1311_v25 = vadd.f32 %v1282_v21, %v1079_v43  ;;  %v1300_v26 = vpop.f32.mrb[19].mxu1  ;;  %v1284_v28 = vpop.f32.mrb[19].mxu0 }
 0x1ab   : > { %v1337_v30 = vpack.c.bf16 %v1329_v22, %v1329_v22  ;;  %v1333_v31 = vpack.c.bf16 %v1325_v23, %v1325_v23  ;;  %v1330_v32 = vadd.f32 %v1581_v11, %v1315_v24  ;;  %v1326_v14 = vadd.f32 %v1581_v11, %v1311_v25 }
 0x1ad   : > { %1346 = vst.msk [vmem:[%s2122_s30 + $0x10] sm:$0xf] %vm1341_vm4, %v1337_v30  ;;  %1342 = vst.msk [vmem:[%s2122_s30] sm:$0xf] %vm1341_vm4, %v1333_v31  ;;  %v1338_v29 = vpack.c.bf16 %v1330_v32, %v1330_v32  ;;  %v1334_v33 = vpack.c.bf16 %v1326_v14, %v1326_v14 }
 0x1ae   : > { %v1303_v0 = vpop.f32.mrb[20].mxu1  ;;  %v1287_v34 = vpop.f32.mrb[20].mxu0 }
 0x1af   : > { %1347 = vst.msk [vmem:[%s2122_s30 + $0x14] sm:$0xf] %vm1341_vm4, %v1338_v29  ;;  %1343 = vst.msk [vmem:[%s2122_s30 + $0x4] sm:$0xf] %vm1341_vm4, %v1334_v33  ;;  %v1316_v35 = vadd.f32 %v1303_v0, %v1100_v6  ;;  %v1312_v27 = vadd.f32 %v1287_v34, %v1084_v48  ;;  %v1305_v36 = vpop.f32.mrb[21].mxu1  ;;  %v1289_v37 = vpop.f32.mrb[21].mxu0 }
 0x1b0   : > { %v1306_v18 = vpop.f32.mrb[22].mxu1  ;;  %v1290_v38 = vpop.f32.mrb[22].mxu0 }
 0x1b1   : > { %v1331_v40 = vadd.f32 %v1581_v11, %v1316_v35  ;;  %v1327_v41 = vadd.f32 %v1581_v11, %v1312_v27  ;;  %v1317_v42 = vadd.f32 %v1306_v18, %v1103_v9  ;;  %v1313_v43 = vadd.f32 %v1290_v38, %v1087_v52  ;;  %v1308_v44 = vpop.f32.mrb[23].mxu1  ;;  %v1292_v45 = vpop.f32.mrb[23].mxu0 }
 0x1b3   : > { %v1339_v46 = vpack.c.bf16 %v1331_v40, %v1331_v40  ;;  %v1335_v47 = vpack.c.bf16 %v1327_v41, %v1327_v41  ;;  %v1332_v49 = vadd.f32 %v1581_v11, %v1317_v42  ;;  %v1328_v50 = vadd.f32 %v1581_v11, %v1313_v43 }
 0x1b5   : > { %1348 = vst.msk [vmem:[%s2122_s30 + $0x18] sm:$0xf] %vm1341_vm4, %v1339_v46  ;;  %1344 = vst.msk [vmem:[%s2122_s30 + $0x8] sm:$0xf] %vm1341_vm4, %v1335_v47  ;;  %v1340_v48 = vpack.c.bf16 %v1332_v49, %v1332_v49  ;;  %v1336_v51 = vpack.c.bf16 %v1328_v50, %v1328_v50 }
 0x1b7   : > { %1349 = vst.msk [vmem:[%s2122_s30 + $0x1c] sm:$0xf] %vm1341_vm4, %v1340_v48  ;;  %1345 = vst.msk [vmem:[%s2122_s30 + $0xc] sm:$0xf] %vm1341_vm4, %v1336_v51 }
 0x1b8 PF: > { %s13_s14 = sadd.s32 1, %s1710_s14   ;;  %s2155_s12 = smov %s1706_s13 }
 0x1b9   : > { %p10_p5 = scmp.ge.s32.totalorder %s13_s14, 4   ;;  %s2156_s13 = smov %s2158_s15 }
 0x1bb   :  { %12 = sbr.rel (!%p10_p5) target bundleno = 2 (0x2), region = 66 }

// kernel: densefuse_bb.9
= control target key start
LH: loop header
LB: loop body
LE: loop exit
PB: predicated region body
PF: predicated region fallthrough
CT: control target
= control target key end

     0   :  { %8 = vsyncpa [#allocation3], 0  ;;  %s1850_s0 = inlined_call_operand.vmem [shape: bf16[2,8,4,128], index: 0, kind: input, shape index: {}]   ;;  %s1851_s1 = inlined_call_operand.vmem [shape: bf16[3,192,64], index: 1, kind: input, shape index: {}]   ;;  %s1852_s2 = inlined_call_operand.vmem [shape: f32[1,64], index: 2, kind: input, shape index: {}]   ;;  %s1853_s3 = inlined_call_operand.hbm [shape: f32[2,4,4,64], index: 3, kind: output, shape index: {}]  }
   0x1   :  { %10 = vsyncpa [#allocation3 + $0x1], 0  ;;  %s1499_s12 = smov 0   ;;  %s1501_s13 = smov 0  }
   0x2   :  { %s1503_s14 = smov 0   ;;  %s1505_s15 = smov 0  }
   0x3   :  { %s1507_s16 = smov 0   ;;  %s1509_s17 = smov 0  }
   0x4 LB: > { %s1188_s18 = sadd.s32 4294967295, %s1472_s17   ;;  %s1189_s19 = sadd.s32 4294967294, %s1472_s17   ;;  %s1472_s17 = sphi %s1509_s17, %s16_s17   ;;  %s1468_s16 = sphi %s1507_s16, %s1862_s16   ;;  %s1464_s15 = sphi %s1505_s15, %s1861_s15   ;;  %s1460_s14 = sphi %s1503_s14, %s1860_s14   ;;  %s1456_s13 = sphi %s1501_s13, %s1859_s13   ;;  %s1452_s12 = sphi %s1499_s12, %s1858_s12  }
   0x5   : > { %s28_s20 = sadd.s32 1, %s1468_s16  ;;  %s105_s21 = sadd.s32 1, %s1460_s14 }
   0x6   : > { %p30_p0 = scmp.ge.s32.totalorder %s28_s20, 2  ;;  %p115_p1 = scmp.ne.s32.totalorder %s1460_s14, %s1456_s13 }
   0x7   : > { %p116_p2 = scmp.eq.s32.totalorder %s1188_s18, 1  ;;  %p121_p3 = scmp.ne.s32.totalorder %s1456_s13, %s1452_s12 }
   0x8   : > { %s1864_s20 = smov (%p30_p0, %s28_s20), 0  ;;  %p122_p5 = scmp.eq.s32.totalorder %s1189_s19, 1 }
   0x9   : > { %p1539_p4 = por %p116_p2, %p115_p1  ;;  %s100_s23 = ssub.s32 %s1468_s16, %s1864_s20 }
   0xa   : > { %p1192_p6 = scmp.ge.s32.totalorder %s1472_s17, 1  ;;  %p103_p7 = scmp.eq.s32.totalorder %s100_s23, 0 }
   0xb   : > { %p1546_p8 = por %p122_p5, %p121_p3  ;;  %p154_p9 = scmp.lt.s32.totalorder %s1472_s17, 3 }
   0xc   : > { %s1552_s25 = scalar_select %p103_p7, %s1460_s14, %s105_s21  }
   0xd   : > { %p155_p10 = pnand %p1192_p6, %p154_p9 }
   0xe   : > { %p178_p11 = scmp.lt.s32.totalorder (!%p155_p10), %s1464_s15, 1  ;;  %v233_v0 = vlaneseq (!%p155_p10)  ;;  %v1474_v1 = vmov (!%p155_p10), 0   ;;  %vm365_vm0 = vcmask (!%p155_p10), 1040384   ;;  %v1475_v2 = vmov (!%p155_p10), 1983009808   ;;  %v1358_v5 = vld [vmem:[%s1851_s1 + $0x60] sm:$0xff] (!%p155_p10)  }
   0xf   : > { %158 = sbr.rel (%p155_p10) target bundleno = 458 (0x1ca), region = 32  ;;  %713 = vmatprep.subr.bf16.mxu0 (!%p155_p10), %v1474_v1  ;;  %848 = vmatprep.subr.bf16.mxu1 (!%p155_p10), %v1474_v1  ;;  %v231_v3 = vunpack.c.l.s4 (!%p155_p10), %v1475_v2  ;;  %v1359_v7 = vld [vmem:[%s1851_s1 + $0x68] sm:$0xff] (!%p155_p10)   ;;  %vm366_vm1 = vsmask.f32 (!%p155_p10), 256  ;;  %v1360_v10 = vld [vmem:[%s1851_s1 + $0x70] sm:$0xff] (!%p155_p10)   ;;  %v1363_v22 = vld [vmem:[%s1851_s1] sm:$0xff] (!%p155_p10)  }
  0x10   : > { %v234_v4 = vshrl.u32 (!%p155_p10), %v233_v0, 7  ;;  %714 = vmatpush1.bf16.msra.mxu0 (!%p155_p10), %v1358_v5  ;;  %vm1585_vm2 = vmand (!%p155_p10), %vm365_vm0, %vm366_vm1  ;;  %v1361_v26 = vld [vmem:[%s1851_s1 + $0x78] sm:$0xff] (!%p155_p10)   ;;  %849 = vmatpush1.bf16.msra.mxu1 (!%p155_p10), %v1363_v22  ;;  %v1365_v31 = vld [vmem:[%s1851_s1 + $0x8] sm:$0xff] (!%p155_p10)   ;;  %vm425_vm3 = vcmask (!%p155_p10), 523264   ;;  %s175_s19 = sand.u32 (!%p155_p10), 1, %s1456_s13   ;;  %vm1090_vm4 = vcmask (!%p155_p10), 519168  }
  0x11   : > { %v232_v6 = vunpack.c.0.s8 (!%p155_p10), %v231_v3  ;;  %715 = vmatprep.subr.bf16.mxu0 (!%p155_p10), %v1474_v1  ;;  %850 = vmatprep.subr.bf16.mxu1 (!%p155_p10), %v1474_v1  ;;  %v1367_v46 = vld [vmem:[%s1851_s1 + $0x10] sm:$0xff] (!%p155_p10)   ;;  %v1362_v50 = vld [vmem:[%s1851_s1 + $0x80] sm:$0xff] (!%p155_p10)   ;;  %v1364_v59 = vld [vmem:[%s1851_s1 + $0x88] sm:$0xff] (!%p155_p10)   ;;  %s1193_s21 = sshll.u32 (!%p155_p10), %s175_s19, 4  ;;  %s1298_s27 = sshll.u32 (!%p155_p10), %s1464_s15, 8 }
  0x12   : > { %v1369_v0 = vld [vmem:[%s1851_s1 + $0x18] sm:$0xff] (!%p155_p10)   ;;  %s177_s28 = scalar_lea.vmem (!%p155_p10), [#allocation2], %s1193_s21  ;;  %s1795_s5 = scalar_lea.hbm (!%p155_p10), %s1853_s3, %s1298_s27 }
  0x13   : > { %v1577_v17 = vsub.s32 (!%p155_p10), %v232_v6, %v234_v4  ;;  %s1477_s8 = smov (!%p155_p10), [#allocation2]  }
  0x14   : > { %716 = vmatpush1.bf16.msra.mxu0 (!%p155_p10), %v1359_v7  ;;  %851 = vmatpush1.bf16.msra.mxu1 (!%p155_p10), %v1365_v31  ;;  %s1398_s9 = sshll.u32 (!%p155_p10), %s1477_s8, 4  ;;  %s1399_s9 = int_to_ptr.vmem [resolvable:$false] %s1398_s9 }
  0x15   : > { %717 = vmatprep.subr.bf16.mxu0 (!%p155_p10), %v1474_v1  ;;  %852 = vmatprep.subr.bf16.mxu1 (!%p155_p10), %v1474_v1  ;;  %s1400_s10 = scalar_lea.vmem (!%p155_p10), %s1399_s9, 512 }
  0x16   : > { %s179_s26 = scalar_select %p178_p11, %s1464_s15, 1 }
  0x17   : > { %s1802_s15 = scalar_lea.sflag [#allocation3], %s175_s19 }
  0x18   : > { %s1297_s29 = sshll.u32 %s179_s26, 4  ;;  %718 = vmatpush1.bf16.msra.mxu0 %v1360_v10  ;;  %s1476_s26 = smov 64   ;;  %853 = vmatpush1.bf16.msra.mxu1 %v1367_v46  ;;  %v1377_v46 = vld [vmem:[%s1851_s1 + $0x38] sm:$0xff]  }
  0x19   : > { %s1567_s7 = scalar_lea.vmem %s1850_s0, %s1297_s29  ;;  %719 = vmatprep.subr.bf16.mxu0 %v1474_v1  ;;  %854 = vmatprep.subr.bf16.mxu1 %v1474_v1  ;;  %s1111_s29 = sshll.u32 %s177_s28, 4  ;;  %s1799_s29 = int_to_ptr.vmem [resolvable:$true] %s1111_s29 }
  0x1a   : > { %v1200_v8 = vld.sshfl [vmem:[%s1567_s7 + $0x8] sm:$0x3 pattern:$0x76325410]  ;;  %v202_v9 = vld [vmem:[%s1567_s7] sm:$0x3]  ;;  %p1401_p1 = scmp.lt.s32.totalorder %s1799_s29, %s1399_s9 }
  0x1b   : > { %v329_v11 = vshrl.u32 %v1200_v8, 16  ;;  %v332_v12 = vshll.u32 %v1200_v8, 16  ;;  %v1196_v13 = vld.sshfl [vmem:[%s1567_s7] sm:$0x3 pattern:$0x76325410] }
  0x1c   : > { %v301_v14 = vshrl.u32 %v1196_v13, 16  ;;  %v304_v15 = vshll.u32 %v1196_v13, 16  ;;  %v1202_v16 = vld.sshfl [vmem:[%s1567_s7 + $0xc] sm:$0x3 pattern:$0x76325410]  ;;  %720 = vmatpush1.bf16.msra.mxu0 %v1361_v26  ;;  %855 = vmatpush1.bf16.msra.mxu1 %v1369_v0 }
  0x1d   : > { %v331_v18 = vrot.slane %v329_v11, 7  ;;  %v343_v19 = vshrl.u32 %v1202_v16, 16  ;;  %v346_v20 = vshll.u32 %v1202_v16, 16  ;;  %v220_v21 = vmul.bf16 0.0, %v202_v9  ;;  %721 = vmatprep.subr.bf16.mxu0 %v1474_v1  ;;  %856 = vmatprep.subr.bf16.mxu1 %v1474_v1  ;;  %s1394_s6 = scalar_lea.vmem %s1799_s29, 256 }
  0x1e   : > { %v303_v24 = vrot.slane %v301_v14, 7  ;;  %v1198_v25 = vld.sshfl [vmem:[%s1567_s7 + $0x4] sm:$0x3 pattern:$0x76325410]  ;;  %p1395_p12 = scmp.ne.s32.totalorder %s1799_s29, %s1394_s6  ;;  %p1402_p2 = scmp.lt.s32.totalorder %s1400_s10, %s1394_s6 }
  0x1f   : > { %v334_v27 = vor.u32 %v332_v12, %v331_v18  ;;  %v345_v28 = vrot.slane %v343_v19, 7  ;;  %v315_v29 = vshrl.u32 %v1198_v25, 16  ;;  %v318_v30 = vshll.u32 %v1198_v25, 16  ;;  %v1366_v19 = vld [vmem:[%s1851_s1 + $0x90] sm:$0xff]  }
  0x20   : > { %v306_v32 = vor.u32 %v304_v15, %v303_v24  ;;  %v1197_v33 = vld.sshfl [vmem:[%s1567_s7 + $0x2] sm:$0x3 pattern:$0x76325410]  ;;  %v236_v34 = vrot.slane %v220_v21, %v1577_v17  ;;  %722 = vmatpush1.bf16.msra.mxu0 %v1362_v50  ;;  %p1396_p13 = pnand %p1395_p12, %p1539_p4  ;;  %p1403_p3 = por %p1402_p2, %p1401_p1 }
  0x21   : > { %v373_v35 = vsel %vm1585_vm2, 0, %v334_v27  ;;  %v348_v36 = vor.u32 %v346_v20, %v345_v28  ;;  %v317_v37 = vrot.slane %v315_v29, 7  ;;  %v308_v38 = vshrl.u32 %v1197_v33, 16  ;;  %723 = vmatprep.subr.bf16.mxu0 %v1474_v1  ;;  %v1371_v15 = vld [vmem:[%s1851_s1 + $0x20] sm:$0xff]   ;;  %v1368_v27 = vld [vmem:[%s1851_s1 + $0x98] sm:$0xff]  }
  0x22   : > { %506 = vrot.lane.b32.xlu1 %v373_v35, %s1476_s26  ;;  %v527_v39 = vshll.u32 %v373_v35, 16  ;;  %v369_v40 = vsel %vm1585_vm2, 0, %v306_v32  ;;  %v311_v41 = vshll.u32 %v1197_v33, 16  ;;  %v525_v47 = vshrl.u32 %v373_v35, 16  ;;  %857 = vmatpush1.bf16.msra.mxu1 %v1371_v15  ;;  %v1373_v32 = vld [vmem:[%s1851_s1 + $0x28] sm:$0xff]   ;;  %p1397_p0 = pneg %p1396_p13 }
  0x23   : > { %502 = vrot.lane.b32.xlu0 %v369_v40, %s1476_s26  ;;  %v511_v42 = vshrl.u32 %v369_v40, 16  ;;  %v513_v43 = vshll.u32 %v369_v40, 16  ;;  %v375_v44 = vsel %vm1585_vm2, 0, %v348_v36  ;;  %v320_v45 = vor.u32 %v318_v30, %v317_v37  ;;  %858 = vmatprep.subr.bf16.mxu1 %v1474_v1  ;;  %v1375_v37 = vld [vmem:[%s1851_s1 + $0x30] sm:$0xff]  }
  0x24   : > { %v534_v48 = vshll.u32 %v375_v44, 16  ;;  %v310_v49 = vrot.slane %v308_v38, 7  ;;  %v294_v53 = vshrl.u32 %v236_v34, 16  ;;  %v297_v54 = vshll.u32 %v236_v34, 16  ;;  %724 = vmatpush1.bf16.msra.mxu0 %v1364_v59  ;;  %p1404_p5 = pnand %p1403_p3, %p1397_p0 }
  0x25   : > { %v515_v51 = vrot.slane %v513_v43, 1  ;;  %v371_v52 = vsel %vm1585_vm2, 0, %v320_v45  ;;  %v529_v55 = vrot.slane %v527_v39, 1  ;;  %v532_v56 = vshrl.u32 %v375_v44, 16  ;;  %725 = vmatprep.subr.bf16.mxu0 %v1474_v1 }
  0x26   : > { %508 = vrot.lane.b32.xlu1 %v375_v44, %s1476_s26  ;;  %v518_v57 = vshrl.u32 %v371_v52, 16  ;;  %v520_v58 = vshll.u32 %v371_v52, 16  ;;  %v313_v61 = vor.u32 %v311_v41, %v310_v49  ;;  %v296_v62 = vrot.slane %v294_v53, 7  ;;  %v1370_v41 = vld [vmem:[%s1851_s1 + $0xa0] sm:$0xff]   ;;  %859 = vmatpush1.bf16.msra.mxu1 %v1373_v32 }
  0x27   : > { %504 = vrot.lane.b32.xlu0 %v371_v52, %s1476_s26  ;;  %v516_v60 = vor.u32 %v515_v51, %v511_v42  ;;  %v1201_v63 = vld.sshfl [vmem:[%s1567_s7 + $0xa] sm:$0x3 pattern:$0x76325410]  ;;  %v536_v2 = vrot.slane %v534_v48, 1  ;;  %v530_v11 = vor.u32 %v529_v55, %v525_v47  ;;  %860 = vmatprep.subr.bf16.mxu1 %v1474_v1  ;;  %v1374_v51 = vld [vmem:[%s1851_s1 + $0xb0] sm:$0xff]  }
  0x28   : > { %v522_v3 = vrot.slane %v520_v58, 1  ;;  %v336_v4 = vshrl.u32 %v1201_v63, 16  ;;  %v339_v5 = vshll.u32 %v1201_v63, 16  ;;  %v299_v6 = vor.u32 %v297_v54, %v296_v62  ;;  %726 = vmatpush1.bf16.msra.mxu0 %v1366_v19  ;;  %v1372_v47 = vld [vmem:[%s1851_s1 + $0xa8] sm:$0xff]   ;;  %v1379_v53 = vld [vmem:[%s1851_s1 + $0x40] sm:$0xff]  }
  0x29   : > { %v1199_v7 = vld.sshfl [vmem:[%s1567_s7 + $0x6] sm:$0x3 pattern:$0x76325410]  ;;  %v370_v9 = vsel %vm1585_vm2, 0, %v313_v61  ;;  %v537_v16 = vor.u32 %v536_v2, %v532_v56  ;;  %727 = vmatprep.subr.bf16.mxu0 %v1474_v1  ;;  %v1381_v58 = vld [vmem:[%s1851_s1 + $0x48] sm:$0xff]  }
  0x2a   : > { %v523_v8 = vor.u32 %v522_v3, %v518_v57  ;;  %v338_v10 = vrot.slane %v336_v4, 7  ;;  %v399_v12 = vshll.u32 %v370_v9, 16  ;;  %v322_v13 = vshrl.u32 %v1199_v7, 16  ;;  %861 = vmatpush1.bf16.msra.mxu1 %v1375_v37  ;;  %v1376_v57 = vld [vmem:[%s1851_s1 + $0xb8] sm:$0xff]  }
  0x2b   : > { %538 = vrot.lane.b32.xlu0 %v516_v60, %s1476_s26  ;;  %v325_v14 = vshll.u32 %v1199_v7, 16  ;;  %v368_v20 = vsel %vm1585_vm2, 0, %v299_v6  ;;  %v1203_v22 = vld.sshfl [vmem:[%s1567_s7 + $0xe] sm:$0x3 pattern:$0x76325410]  ;;  %862 = vmatprep.subr.bf16.mxu1 %v1474_v1 }
  0x2c   : > { %540 = vrot.lane.b32.xlu1 %v523_v8, %s1476_s26  ;;  %v341_v18 = vor.u32 %v339_v5, %v338_v10  ;;  %v324_v21 = vrot.slane %v322_v13, 7  ;;  %v397_v24 = vshrl.u32 %v370_v9, 16  ;;  %v392_v25 = vshll.u32 %v368_v20, 16  ;;  %728 = vmatpush1.bf16.msra.mxu0 %v1368_v27  ;;  %v1383_v60 = vld [vmem:[%s1851_s1 + $0x50] sm:$0xff]   ;;  %v1385_v61 = vld [vmem:[%s1851_s1 + $0x58] sm:$0xff]  }
  0x2d   : > { %v350_v26 = vshrl.u32 %v1203_v22, 16  ;;  %v401_v28 = vrot.slane %v399_v12, 1  ;;  %v390_v29 = vshrl.u32 %v368_v20, 16  ;;  %v353_v31 = vshll.u32 %v1203_v22, 16  ;;  %729 = vmatprep.subr.bf16.mxu0 %v1474_v1 }
  0x2e   : > { %v327_v30 = vor.u32 %v325_v14, %v324_v21  ;;  %v374_v33 = vsel %vm1585_vm2, 0, %v341_v18  ;;  %v394_v38 = vrot.slane %v392_v25, 1  ;;  %863 = vmatpush1.bf16.msra.mxu1 %v1377_v46 }
  0x2f   : > { %542 = vrot.lane.b32.xlu0 %v530_v11, %s1476_s26  ;;  %v352_v34 = vrot.slane %v350_v26, 7  ;;  %v413_v35 = vshll.u32 %v374_v33, 16  ;;  %v411_v42 = vshrl.u32 %v374_v33, 16  ;;  %v402_v50 = vor.u32 %v401_v28, %v397_v24  ;;  %864 = vmatprep.subr.bf16.mxu1 %v1474_v1 }
  0x30   : > { %544 = vrot.lane.b32.xlu1 %v537_v16, %s1476_s26  ;;  %v372_v36 = vsel %vm1585_vm2, 0, %v327_v30  ;;  %v395_v23 = vor.u32 %v394_v38, %v390_v29  ;;  %730 = vmatpush1.bf16.msra.mxu0 %v1370_v41  ;;  %v1380_v38 = vld [vmem:[%s1851_s1 + $0xc8] sm:$0xff]  }
  0x31   : > { %v406_v39 = vshll.u32 %v372_v36, 16  ;;  %v355_v40 = vor.u32 %v353_v31, %v352_v34  ;;  %v415_v44 = vrot.slane %v413_v35, 1  ;;  %v404_v45 = vshrl.u32 %v372_v36, 16  ;;  %731 = vmatprep.subr.bf16.mxu0 %v1474_v1  ;;  %v1378_v31 = vld [vmem:[%s1851_s1 + $0xc0] sm:$0xff]  }
  0x32   : > { %865 = vmatpush1.bf16.msra.mxu1 %v1379_v53 }
  0x33   : > { %381 = vrot.lane.b32.xlu0 %v368_v20, %s1476_s26  ;;  %v376_v43 = vsel %vm1585_vm2, 0, %v355_v40  ;;  %v408_v48 = vrot.slane %v406_v39, 1  ;;  %v416_v54 = vor.u32 %v415_v44, %v411_v42  ;;  %866 = vmatprep.subr.bf16.mxu1 %v1474_v1 }
  0x34   : > { %383 = vrot.lane.b32.xlu1 %v370_v9, %s1476_s26  ;;  %v895_v49 = vshll.u32 %v376_v43, 16  ;;  %v893_v55 = vshrl.u32 %v376_v43, 16  ;;  %732 = vmatpush1.bf16.msra.mxu0 %v1372_v47  ;;  %v1382_v47 = vld [vmem:[%s1851_s1 + $0xd0] sm:$0xff]  }
  0x35   : > { %v409_v52 = vor.u32 %v408_v48, %v404_v45  ;;  %733 = vmatprep.subr.bf16.mxu0 %v1474_v1 }
  0x36   : > { %v897_v56 = vrot.slane %v895_v49, 1  ;;  %867 = vmatpush1.bf16.msra.mxu1 %v1381_v58 }
  0x37   : > { %385 = vrot.lane.b32.xlu0 %v372_v36, %s1476_s26  ;;  %868 = vmatprep.subr.bf16.mxu1 %v1474_v1 }
  0x38   : > { %387 = vrot.lane.b32.xlu1 %v374_v33, %s1476_s26  ;;  %v898_v59 = vor.u32 %v897_v56, %v893_v55  ;;  %734 = vmatpush1.bf16.msra.mxu0 %v1374_v51 }
  0x39   : > { %735 = vmatprep.subr.bf16.mxu0 %v1474_v1 }
  0x3a   : > { %869 = vmatpush1.bf16.msra.mxu1 %v1383_v60 }
  0x3b   : > { %417 = vrot.lane.b32.xlu0 %v395_v23, %s1476_s26  ;;  %870 = vmatprep.subr.bf16.mxu1 %v1474_v1 }
  0x3c   : > { %419 = vrot.lane.b32.xlu1 %v402_v50, %s1476_s26  ;;  %736 = vmatpush1.bf16.msra.mxu0 %v1376_v57 }
  0x3d   : > { %1032 = vmatprep.subr.bf16.mxu0 %v1474_v1 }
  0x3e   : > { %871 = vmatpush1.bf16.msra.mxu1 %v1385_v61 }
  0x3f   : > { %421 = vrot.lane.b32.xlu0 %v409_v52, %s1476_s26 }
  0x40   : > { %423 = vrot.lane.b32.xlu1 %v416_v54, %s1476_s26  ;;  %v1384_v54 = vld [vmem:[%s1851_s1 + $0xd8] sm:$0xff]  }
  0x43   : > { %890 = vrot.lane.b32.xlu0 %v376_v43, %s1476_s26 }
  0x44   : > { %899 = vrot.lane.b32.xlu1 %v898_v59, %s1476_s26 }
  0x94   : > { %v507_v62 = vpop.permute.xlu1 %506 }
  0x95   : > { %v503_v63 = vpop.permute.xlu0 %502 }
  0x98   : > { %v509_v0 = vpop.permute.xlu1 %508 }
  0x99   : > { %v505_v2 = vpop.permute.xlu0 %504 }
  0x9d   : > { %v539_v3 = vpop.permute.xlu0 %538 }
  0x9e   : > { %v541_v4 = vpop.permute.xlu1 %540  ;;  %v548_v5 = vsel %vm425_vm3, %v503_v63, %v539_v3  ;;  %v1386_v63 = vld [vmem:[%s1851_s1 + $0xe0] sm:$0xff]  }
  0x9f   : > { %v551_v6 = vsel %vm425_vm3, %v505_v2, %v541_v4  ;;  %v562_v7 = vcombine.low %v548_v5, %v539_v3  ;;  %v1387_v3 = vld [vmem:[%s1851_s1 + $0xe8] sm:$0xff]   ;;  %v1388_v5 = vld [vmem:[%s1851_s1 + $0xf0] sm:$0xff]  }
  0xa0   : > { %v570_v8 = vcombine.low %v551_v6, %v541_v4  ;;  %v1390_v6 = vld [vmem:[%s1851_s1 + $0x100] sm:$0xff]  }
  0xa1   : > { %v543_v9 = vpop.permute.xlu0 %542  ;;  %v569_v11 = vrot.slane %v562_v7, %v1577_v17  ;;  %v1391_v7 = vld [vmem:[%s1851_s1 + $0x108] sm:$0xff]  }
  0xa2   : > { %v577_v10 = vrot.slane %v570_v8, %v1577_v17  ;;  %v545_v12 = vpop.permute.xlu1 %544  ;;  %v554_v13 = vsel %vm425_vm3, %v507_v62, %v543_v9  ;;  %v1392_v8 = vld [vmem:[%s1851_s1 + $0x110] sm:$0xff]  }
  0xa3   : > { %v557_v14 = vsel %vm425_vm3, %v509_v0, %v545_v12  ;;  %v578_v15 = vcombine.low %v554_v13, %v543_v9  ;;  %v1393_v9 = vld [vmem:[%s1851_s1 + $0x118] sm:$0xff]  }
  0xa4   : > { %v586_v16 = vcombine.low %v557_v14, %v545_v12  ;;  %v619_v22 = vcombine.low %v569_v11, %v577_v10 }
  0xa5   : > { %v585_v18 = vrot.slane %v578_v15, %v1577_v17  ;;  %v382_v19 = vpop.permute.xlu0 %381 }
  0xa6   : > { %v593_v20 = vrot.slane %v586_v16, %v1577_v17  ;;  %v384_v21 = vpop.permute.xlu1 %383  ;;  %v627_v27 = vrot.slane %v619_v22, %v1577_v17 }
  0xa8   : > { %v620_v24 = vcombine.low %v585_v18, %v593_v20 }
  0xa9   : > { %v386_v25 = vpop.permute.xlu0 %385 }
  0xaa   : > { %v388_v26 = vpop.permute.xlu1 %387  ;;  %v634_v28 = vrot.slane %v620_v24, %v1577_v17 }
  0xac   : > { %v636_v29 = vcombine.high %v627_v27, %v634_v28  ;;  %v635_v30 = vcombine.low %v627_v27, %v634_v28 }
  0xad   : > { %v418_v32 = vpop.permute.xlu0 %417 }
  0xae   : > { %v420_v33 = vpop.permute.xlu1 %419  ;;  %1240 = vmatprep.mubr.msk.bf16.mxu0 %vm425_vm3, %v636_v29  ;;  %v428_v34 = vsel %vm425_vm3, %v382_v19, %v418_v32 }
  0xaf   : > { %v431_v35 = vsel %vm425_vm3, %v384_v21, %v420_v33  ;;  %v442_v36 = vcombine.low %v428_v34, %v418_v32  ;;  %746 = vmatmul.mubr.bf16.vlgmr.msra.gmra.mrb[0].mxu0 %v635_v30 }
  0xb0   : > { %v450_v37 = vcombine.low %v431_v35, %v420_v33  ;;  %1033 = vmatpush1.bf16.msra.mxu0 %v1378_v31 }
  0xb1   : > { %v449_v39 = vrot.slane %v442_v36, %v1577_v17  ;;  %1034 = vmatprep.subr.bf16.mxu0 %v1474_v1  ;;  %v422_v40 = vpop.permute.xlu0 %421 }
  0xb2   : > { %v457_v41 = vrot.slane %v450_v37, %v1577_v17  ;;  %v424_v42 = vpop.permute.xlu1 %423  ;;  %v434_v43 = vsel %vm425_vm3, %v386_v25, %v422_v40 }
  0xb3   : > { %v437_v44 = vsel %vm425_vm3, %v388_v26, %v424_v42  ;;  %v458_v45 = vcombine.low %v434_v43, %v422_v40 }
  0xb4   : > { %v466_v46 = vcombine.low %v437_v44, %v424_v42  ;;  %1035 = vmatpush1.bf16.msra.mxu0 %v1380_v38  ;;  %v754_v48 = vcombine.low %v449_v39, %v457_v41 }
  0xb5   : > { %v465_v23 = vrot.slane %v458_v45, %v1577_v17  ;;  %1036 = vmatprep.subr.bf16.mxu0 %v1474_v1  ;;  %v891_v49 = vpop.permute.xlu0 %890 }
  0xb6   : > { %v473_v50 = vrot.slane %v466_v46, %v1577_v17  ;;  %v900_v51 = vpop.permute.xlu1 %899  ;;  %v762_v56 = vrot.slane %v754_v48, %v1577_v17 }
  0xb7   : > { %v903_v52 = vsel %vm425_vm3, %v891_v49, %v900_v51  ;;  %v938_v53 = vcombine.low %v457_v41, %v465_v23 }
  0xb8   : > { %1037 = vmatpush1.bf16.msra.mxu0 %v1382_v47  ;;  %v755_v55 = vcombine.low %v465_v23, %v473_v50  ;;  %v905_v57 = vcombine.low %v903_v52, %v900_v51 }
  0xb9   : > { %1038 = vmatprep.subr.bf16.mxu0 %v1474_v1  ;;  %v946_v60 = vrot.slane %v938_v53, %v1577_v17 }
  0xba   : > { %v769_v58 = vrot.slane %v755_v55, %v1577_v17  ;;  %v912_v59 = vrot.slane %v905_v57, %v1577_v17 }
  0xbc   : > { %1039 = vmatpush1.bf16.msra.mxu0 %v1384_v54  ;;  %v771_v61 = vcombine.high %v762_v56, %v769_v58  ;;  %v770_v62 = vcombine.low %v762_v56, %v769_v58  ;;  %v939_v0 = vcombine.low %v473_v50, %v912_v59 }
  0xbd   : > { %1040 = vmatprep.subr.bf16.mxu0 %v1474_v1 }
  0xbe   : > { %1253 = vmatprep.mubr.msk.bf16.mxu1 %vm425_vm3, %v771_v61  ;;  %v953_v2 = vrot.slane %v939_v0, %v1577_v17  ;;  %v1389_v17 = vld [vmem:[%s1851_s1 + $0xf8] sm:$0xff]  }
  0xbf   : > { %881 = vmatmul.mubr.bf16.vlgmr.msra.gmra.mrb[0].mxu1 %v770_v62 }
  0xc0   : > { %1041 = vmatpush1.bf16.msra.mxu0 %v1386_v63  ;;  %v955_v4 = vcombine.high %v946_v60, %v953_v2  ;;  %v954_v10 = vcombine.low %v946_v60, %v953_v2 }
  0xc1   : > { %1042 = vmatprep.subr.bf16.mxu0 %v1474_v1 }
  0xc2   : > { %1290 = vmatprep.mubr.msk.bf16.mxu0 %vm425_vm3, %v955_v4 }
  0xc4   : > { %1043 = vmatpush1.bf16.msra.mxu0 %v1387_v3 }
  0xc5   : > { %1044 = vmatprep.subr.bf16.mxu0 %v1474_v1 }
  0xc8   : > { %1045 = vmatpush1.bf16.msra.mxu0 %v1388_v5 }
  0xc9   : > { %1046 = vmatprep.subr.bf16.mxu0 %v1474_v1 }
  0xcc   : > { %1047 = vmatpush1.bf16.msra.mxu0 %v1389_v17 }
  0xcd   : > { %1048 = vmatprep.subr.bf16.mxu0 %v1474_v1 }
  0xd0   : > { %1049 = vmatpush1.bf16.msra.mxu0 %v1390_v6 }
  0xd1   : > { %1050 = vmatprep.subr.bf16.mxu0 %v1474_v1 }
  0xd4   : > { %1051 = vmatpush1.bf16.msra.mxu0 %v1391_v7 }
  0xd5   : > { %1052 = vmatprep.subr.bf16.mxu0 %v1474_v1 }
  0xd8   : > { %1053 = vmatpush1.bf16.msra.mxu0 %v1392_v8 }
  0xd9   : > { %1054 = vmatprep.subr.bf16.mxu0 %v1474_v1  ;;  %v1291_v1 = vld [vmem:[%s1852_s2] ss:$0 sm:$0xff] }
  0xdc   : > { %1055 = vmatpush1.bf16.msra.mxu0 %v1393_v9 }
  0xdf   : > { %1065 = vmatmul.mubr.bf16.vlgmr.msra.gmra.mrb[4].mxu0 %v954_v10 }
 0x182   : > { %v747_v11 = vpop.f32.mrb[0].mxu0 }
 0x183   : > { %v749_v12 = vpop.f32.mrb[1].mxu0 }
 0x184   : > { %v750_v13 = vpop.f32.mrb[2].mxu0 }
 0x185   : > { %v752_v14 = vpop.f32.mrb[3].mxu0 }
 0x192   : > { %v882_v15 = vpop.f32.mrb[0].mxu1 }
 0x193   : > { %v883_v16 = vadd.f32 %v882_v15, %v747_v11  ;;  %v884_v18 = vpop.f32.mrb[1].mxu1 }
 0x194   : > { %v885_v19 = vpop.f32.mrb[2].mxu1 }
 0x195   : > { %v886_v20 = vadd.f32 %v885_v19, %v750_v13  ;;  %v887_v21 = vpop.f32.mrb[3].mxu1 }
 0x1b2   : > { %v1066_v22 = vpop.f32.mrb[4].mxu0 }
 0x1b3   : > { %v1073_v24 = vadd.f32 %v1066_v22, %v883_v16  ;;  %v1068_v25 = vpop.f32.mrb[5].mxu0 }
 0x1b4   : > { %v1069_v26 = vpop.f32.mrb[6].mxu0 }
 0x1b5   : > { %v1082_v27 = vadd.f32 %v1291_v1, %v1073_v24  ;;  %v1074_v28 = vadd.f32 %v1069_v26, %v886_v20  ;;  %v1071_v29 = vpop.f32.mrb[7].mxu0 }
 0x1b7   : > { %v1086_v30 = vcombine.high %v1082_v27, %v1082_v27  ;;  %1091 = vst.msk [vmem:[%s177_s28] sm:$0xf] %vm1090_vm4, %v1082_v27  ;;  %v1083_v31 = vadd.f32 %v1291_v1, %v1074_v28 }
 0x1b9   : > { %1092 = vst.msk [vmem:[%s177_s28 + $0x4] sm:$0xf] %vm1090_vm4, %v1086_v30  ;;  %v1087_v32 = vcombine.high %v1083_v31, %v1083_v31  ;;  %1093 = vst.msk [vmem:[%s177_s28 + $0x8] sm:$0xf] %vm1090_vm4, %v1083_v31 }
 0x1bb   : > { %1094 = vst.msk [vmem:[%s177_s28 + $0xc] sm:$0xf] %vm1090_vm4, %v1087_v32 }
 0x1bc   : > { %1407 = shalt.err (!%p1404_p5)
}
 0x1bd   : > { %s1408_s11 = scalar_lea.hbm %s1795_s5, 256  ;;  %s1412_s21 = scalar_lea.hbm %s1853_s3, 512 }
 0x1be   : > { %p1409_p6 = scmp.ne.s32.totalorder %s1795_s5, %s1408_s11  ;;  %p1413_p10 = scmp.lt.u32.totalorder %s1795_s5, %s1853_s3 }
 0x1bf   : > { %p1414_p11 = scmp.lt.u32.totalorder %s1412_s21, %s1408_s11  ;;  %p1416_p13 = scmp.lt.u32.totalorder %s1408_s11, %s1795_s5 }
 0x1c0   : > { %p1410_p7 = pnand %p1409_p6, %p1539_p4 }
 0x1c1   : > { %p1415_p12 = por %p1414_p11, %p1413_p10 }
 0x1c2   : > { %p1411_p9 = pneg %p1410_p7 }
 0x1c3   : > { %p1417_p0 = por %p1416_p13, %p1415_p12 }
 0x1c5   : > { %p1418_p1 = pnand %p1417_p0, %p1411_p9 }
 0x1c7   : > { %1421 = shalt.err (!%p1418_p1)
}
 0x1c8   : > { %s1478_s27 = smov 4  }
 0x1c9   : > { %1299 = dma.vmem_to_hbm [thread:$0]  (%p1539_p4), %s1799_s29, 256, %s1795_s5, %s1802_s15, %s1476_s26, %s1476_s26, %s1478_s27  }
 0x1ca PF: > { %p1305_p2 = scmp.ge.s32.totalorder %s1472_s17, 2  ;;  %s1126_s28 = sand.u32 1, %s1452_s12  }
 0x1cb   : > { %s1127_s30 = scalar_lea.sflag [#allocation3], %s1126_s28 }
 0x1cc   : > { %p1302_p3 = pnand %p1305_p2, %p1546_p8 }
 0x1ce   : > { %1447 = dma.done.wait (!%p1302_p3), %s1127_s30, 256  }
 0x1cf   : > { %1449 = vsyncadd (!%p1302_p3), %s1127_s30, 4294967040  ;;  %s16_s17 = sadd.s32 1, %s1472_s17   ;;  %s1858_s12 = smov %s1456_s13 }
 0x1d0   : > { %p13_p5 = scmp.ge.s32.totalorder %s16_s17, 4   ;;  %s1859_s13 = smov %s1460_s14 }
 0x1d1   : > { %s1860_s14 = smov %s1552_s25  ;;  %s1861_s15 = smov %s1468_s16 }
 0x1d2   : > { %s1862_s16 = smov %s1864_s20  ;;  %15 = sbr.rel (!%p13_p5) target bundleno = 4 (0x4), region = 71 }
 0x1d9   :  { %1132 = vsyncpa [#allocation3], 1 }
 0x1da   :  { %1134 = vsyncpa [#allocation3 + $0x1], 1 }

// kernel: densefuse_bb.6
= control target key start
LH: loop header
LB: loop body
LE: loop exit
PB: predicated region body
PF: predicated region fallthrough
CT: control target
= control target key end

     0   :  { %s10144_s13 = smov 0   ;;  %s10146_s14 = smov 0   ;;  %s14069_s0 = inlined_call_operand.vmem [shape: bf16[2,24,18,8], index: 0, kind: input, shape index: {}]   ;;  %s14070_s1 = inlined_call_operand.vmem [shape: bf16[3,24,16], index: 1, kind: input, shape index: {}]   ;;  %s14071_s2 = inlined_call_operand.vmem [shape: f32[1,16], index: 2, kind: input, shape index: {}]   ;;  %s14072_s3 = inlined_call_operand.vmem [shape: bf16[3,48,16], index: 3, kind: input, shape index: {}]   ;;  %s14073_s4 = inlined_call_operand.vmem [shape: f32[1,16], index: 4, kind: input, shape index: {}]   ;;  %s14074_s5 = inlined_call_operand.vmem [shape: bf16[3,96,16], index: 5, kind: input, shape index: {}]   ;;  %s14075_s6 = inlined_call_operand.vmem [shape: f32[1,16], index: 6, kind: input, shape index: {}]   ;;  %s14076_s7 = inlined_call_operand.vmem [shape: bf16[3,144,16], index: 7, kind: input, shape index: {}]   ;;  %s14077_s8 = inlined_call_operand.vmem [shape: f32[1,16], index: 8, kind: input, shape index: {}]   ;;  %s14078_s9 = inlined_call_operand.vmem [shape: bf16[2,16,16,64], index: 9, kind: output, shape index: {0}]   ;;  %s14079_s10 = inlined_call_operand.vmem [shape: f32[2,16,16], index: 10, kind: output, shape index: {1}]  }
   0x1   :  { %s10148_s15 = smov 0  }
   0x2 LB: > { %s33_s16 = sadd.s32 1, %s10076_s14  ;;  %p8496_p0 = scmp.ge.s32.totalorder %s10080_s15, 1  ;;  %s10080_s15 = sphi %s10148_s15, %s21_s15   ;;  %s10076_s14 = sphi %s10146_s14, %s14430_s14   ;;  %s10072_s13 = sphi %s10144_s13, %s14429_s13  }
   0x3   : > { %p35_p1 = scmp.ge.s32.totalorder %s33_s16, 2  ;;  %p331_p2 = scmp.lt.s32.totalorder %s10080_s15, 3 }
   0x5   : > { %s14432_s16 = smov (%p35_p1, %s33_s16), 0  ;;  %p332_p3 = pnand %p8496_p0, %p331_p2 }
   0x7   : > { %335 = sbr.rel (%p332_p3) target bundleno = 2764 (0xacc), region = 56 }
   0xe   : > { %p383_p4 = scmp.lt.s32.totalorder %s10072_s13, 1  ;;  %v9990_v0 = vld [vmem:[%s14070_s1 + $0xc] sm:$0xff]   ;;  %vm971_vm0 = vcmask 1046528   ;;  %v9991_v1 = vld [vmem:[%s14070_s1 + $0x14] ss:$0 sps:$4 sm:$0xff]   ;;  %vm1264_vm1 = vcmask 1043456  }
   0xf   : > { %9201 = vmatprep.subr.bf16.mxu0 %v9990_v0  ;;  %vm662_vm2 = vsmask.f32 7424  ;;  %v1266_v2 = vsel %vm1264_vm1, %v9991_v1, 0  ;;  %s10082_s25 = smov 16   ;;  %s10083_s26 = smov 8   ;;  %vm1082_vm3 = vcmask 64512  }
  0x10   : > { %s14434_s13 = smov (!%p383_p4, %s10072_s13), 1  ;;  %9202 = vmatpush3.bf16.msra.mxu0 %v9990_v0  ;;  %vm1127_vm4 = vcmask 130048   ;;  %vm1219_vm5 = vcmask 195584   ;;  %vm2318_vm6 = vcmask 1040384   ;;  %s10084_s28 = smov 32   ;;  %vm2999_vm7 = vcmask 261120  }
  0x11   : > { %s9882_s19 = smul.u32 288, %s14434_s13  ;;  %9879 = vmatprep.subr.msk.bf16.mxu0 %vm1264_vm1, %v9991_v1  ;;  %vm3096_vm8 = vcmask 392192   ;;  %vm4930_vm9 = vcmask 523264   ;;  %vm5053_vm10 = vcmask 785408   ;;  %s10087_s23 = smov 96   ;;  %vm7987_vm11 = vcmask 519168  }
  0x12   : > { %s10088_s27 = smov 48   ;;  %s8954_s18 = sshll.u32 %s14434_s13, 7  ;;  %vm8191_vm12 = vcmask 130112   ;;  %vm8328_vm13 = vcmask 1041409   ;;  %vm8330_vm14 = vcmask 1042434   ;;  %vm8332_vm15 = vcmask 1043459  }
  0x13   : > { %s10174_s24 = scalar_lea.vmem %s14069_s0, %s9882_s19  ;;  %s10085_s19 = smov 64  }
  0x14   : > { %9204 = vmatpush3.bf16.msra.mxu0 %v1266_v2  ;;  %v10179_v3 = vld [vmem:[%s10174_s24 + $0xc] sm:$0xff]   ;;  %v9945_v4 = vld [vmem:[%s10174_s24 + $0x14] ss:$0 sps:$4 sm:$0x11]   ;;  %v10183_v5 = vld [vmem:[%s10174_s24 + $0x18] sm:$0xff]   ;;  %s13698_s22 = scalar_lea.vmem %s14078_s9, %s8954_s18 }
  0x15   : > { %v975_v6 = vrot.slane %v10179_v3, 1  ;;  %v976_v7 = vrot.slane %v9945_v4, 1  ;;  %v676_v8 = vshrl.u32 %v10179_v3, 16  ;;  %v678_v9 = vshll.u32 %v10179_v3, 16  ;;  %v10195_v20 = vld [vmem:[%s10174_s24 + $0x30] sm:$0xff]   ;;  %v10202_v28 = vld [vmem:[%s10174_s24 + $0x24] sm:$0xff]  }
  0x16   : > { %v683_v10 = vshll.u32 %v9945_v4, 16  ;;  %v9947_v11 = vld [vmem:[%s10174_s24 + $0x20] ss:$0 sps:$4 sm:$0x11]   ;;  %v978_v12 = vrot.slane %v10183_v5, 1  ;;  %v688_v13 = vshrl.u32 %v10183_v5, 16 }
  0x17   : > { %v977_v14 = vsel %vm971_vm0, %v975_v6, %v976_v7  ;;  %v680_v15 = vrot.slane %v678_v9, 1  ;;  %v690_v16 = vshll.u32 %v10183_v5, 16  ;;  %v979_v18 = vrot.slane %v9947_v11, 1  ;;  %v9949_v23 = vld [vmem:[%s10174_s24 + $0x38] ss:$0 sps:$4 sm:$0x11]  }
  0x18   : > { %1040 = vrot.lane.b32.xlu1 %v977_v14, %s10082_s25  ;;  %v685_v17 = vrot.slane %v683_v10, 1  ;;  %v695_v19 = vshll.u32 %v9947_v11, 16  ;;  %v712_v26 = vshrl.u32 %v10195_v20, 16  ;;  %v714_v27 = vshll.u32 %v10195_v20, 16  ;;  %v10207_v33 = vld [vmem:[%s10174_s24 + $0x48] sm:$0xff]   ;;  %v10216_v42 = vld [vmem:[%s10174_s24 + $0x3c] sm:$0xff]  }
  0x19   : > { %v681_v21 = vor.u32 %v680_v15, %v676_v8  ;;  %v692_v22 = vrot.slane %v690_v16, 1  ;;  %v980_v24 = vsel %vm971_vm0, %v978_v12, %v979_v18  ;;  %v719_v31 = vshll.u32 %v9949_v23, 16  ;;  %v9951_v32 = vld [vmem:[%s10174_s24 + $0x2c] ss:$0 sps:$4 sm:$0x11]   ;;  %v10231_v60 = vld [vmem:[%s10174_s24 + $0x60] sm:$0xff]  }
  0x1a   : > { %v697_v25 = vrot.slane %v695_v19, 1  ;;  %v716_v34 = vrot.slane %v714_v27, 1  ;;  %v700_v35 = vshrl.u32 %v10202_v28, 16  ;;  %v702_v36 = vshll.u32 %v10202_v28, 16  ;;  %v10234_v1 = vld [vmem:[%s10174_s24 + $0x54] sm:$0xff]  }
  0x1b   : > { %v686_v29 = vsel %vm662_vm2, %v681_v21, %v685_v17  ;;  %v693_v30 = vor.u32 %v692_v22, %v688_v13  ;;  %v984_v37 = vrot.slane %v10195_v20, 1  ;;  %v721_v39 = vrot.slane %v719_v31, 1  ;;  %v9953_v47 = vld [vmem:[%s10174_s24 + $0x50] ss:$0 sps:$4 sm:$0x11]   ;;  %v10245_v14 = vld [vmem:[%s10174_s24 + $0x78] sm:$0xff]  }
  0x1c   : > { %929 = vrot.lane.b32.xlu0 %v686_v29, %s10083_s26  ;;  %1042 = vrot.lane.b32.xlu1 %v980_v24, %s10082_s25  ;;  %v707_v40 = vshll.u32 %v9951_v32, 16  ;;  %v985_v41 = vrot.slane %v9949_v23, 1  ;;  %v717_v43 = vor.u32 %v716_v34, %v712_v26  ;;  %v704_v44 = vrot.slane %v702_v36, 1  ;;  %v9955_v56 = vld [vmem:[%s10174_s24 + $0x44] ss:$0 sps:$4 sm:$0x11]  }
  0x1d   : > { %v698_v38 = vsel %vm662_vm2, %v693_v30, %v697_v25  ;;  %v981_v45 = vrot.slane %v10202_v28, 1  ;;  %v736_v48 = vshrl.u32 %v10207_v33, 16  ;;  %v738_v49 = vshll.u32 %v10207_v33, 16  ;;  %v9957_v4 = vld [vmem:[%s10174_s24 + $0x68] ss:$0 sps:$4 sm:$0x11]  }
  0x1e   : > { %v709_v46 = vrot.slane %v707_v40, 1  ;;  %v722_v50 = vsel %vm662_vm2, %v717_v43, %v721_v39  ;;  %v705_v51 = vor.u32 %v704_v44, %v700_v35  ;;  %v982_v52 = vrot.slane %v9951_v32, 1  ;;  %v9959_v16 = vld [vmem:[%s10174_s24 + $0x5c] ss:$0 sps:$4 sm:$0x11]   ;;  %v10253_v22 = vld [vmem:[%s10174_s24 + $0x6c] sm:$0xff]  }
  0x1f   : > { %v724_v53 = vshrl.u32 %v10216_v42, 16  ;;  %v740_v54 = vrot.slane %v738_v49, 1  ;;  %v743_v55 = vshll.u32 %v9953_v47, 16  ;;  %v726_v57 = vshll.u32 %v10216_v42, 16 }
  0x20   : > { %931 = vrot.lane.b32.xlu0 %v698_v38, %s10083_s26  ;;  %935 = vrot.lane.b32.xlu1 %v722_v50, %s10083_s26  ;;  %v710_v58 = vsel %vm662_vm2, %v705_v51, %v709_v46  ;;  %v986_v59 = vsel %vm971_vm0, %v984_v37, %v985_v41  ;;  %v731_v0 = vshll.u32 %v9955_v56, 16  ;;  %v990_v2 = vrot.slane %v10207_v33, 1  ;;  %v9961_v30 = vld [vmem:[%s10174_s24 + $0x80] ss:$0 sps:$4 sm:$0x11]   ;;  %v10266_v38 = vld [vmem:[%s10174_s24 + $0x90] sm:$0xff]  }
  0x21   : > { %v741_v61 = vor.u32 %v740_v54, %v736_v48  ;;  %v745_v62 = vrot.slane %v743_v55, 1  ;;  %v728_v63 = vrot.slane %v726_v57, 1  ;;  %v983_v6 = vsel %vm971_vm0, %v981_v45, %v982_v52  ;;  %v10271_v44 = vld [vmem:[%s10174_s24 + $0x74] ss:$0 sps:$4 sm:$0x11]   ;;  %v10277_v51 = vld [vmem:[%s10174_s24 + $0x84] sm:$0xff]  }
  0x22   : > { %v733_v8 = vrot.slane %v731_v0, 1  ;;  %v991_v9 = vrot.slane %v9953_v47, 1  ;;  %v760_v11 = vshrl.u32 %v10231_v60, 16  ;;  %v762_v12 = vshll.u32 %v10231_v60, 16 }
  0x23   : > { %v729_v7 = vor.u32 %v728_v63, %v724_v53  ;;  %v746_v10 = vsel %vm662_vm2, %v741_v61, %v745_v62  ;;  %v767_v13 = vshll.u32 %v9957_v4, 16  ;;  %v987_v15 = vrot.slane %v10216_v42, 1  ;;  %v10281_v52 = vld [vmem:[%s10174_s24 + $0x98] ss:$0 sps:$4 sm:$0x11]  }
  0x24   : > { %933 = vrot.lane.b32.xlu0 %v710_v58, %s10083_s26  ;;  %1046 = vrot.lane.b32.xlu1 %v986_v59, %s10082_s25  ;;  %v750_v17 = vshll.u32 %v10234_v1, 16  ;;  %v988_v18 = vrot.slane %v9955_v56, 1  ;;  %v764_v19 = vrot.slane %v762_v12, 1  ;;  %v748_v21 = vshrl.u32 %v10234_v1, 16 }
  0x25   : > { %v734_v23 = vsel %vm662_vm2, %v729_v7, %v733_v8  ;;  %v769_v24 = vrot.slane %v767_v13, 1  ;;  %v755_v26 = vshll.u32 %v9959_v16, 16  ;;  %v992_v27 = vsel %vm971_vm0, %v990_v2, %v991_v9  ;;  %v10291_v63 = vld [vmem:[%s10174_s24 + $0x8c] ss:$0 sps:$4 sm:$0x11]  }
  0x26   : > { %v752_v25 = vrot.slane %v750_v17, 1  ;;  %v765_v29 = vor.u32 %v764_v19, %v760_v11  ;;  %v786_v31 = vshll.u32 %v10245_v14, 16  ;;  %v996_v32 = vrot.slane %v10231_v60, 1  ;;  %v10302_v11 = vld [vmem:[%s10174_s24 + $0x9c] sm:$0xff]  }
  0x27   : > { %v989_v34 = vsel %vm971_vm0, %v987_v15, %v988_v18  ;;  %v997_v35 = vrot.slane %v9957_v4, 1  ;;  %v993_v36 = vrot.slane %v10234_v1, 1  ;;  %v774_v37 = vshll.u32 %v10253_v22, 16  ;;  %v10308_v15 = vld [vmem:[%s10174_s24 + $0xb0] ss:$0 sps:$4 sm:$0x11]  }
  0x28   : > { %1044 = vrot.lane.b32.xlu0 %v983_v6, %s10082_s25  ;;  %939 = vrot.lane.b32.xlu1 %v746_v10, %s10083_s26  ;;  %v753_v39 = vor.u32 %v752_v25, %v748_v21  ;;  %v757_v40 = vrot.slane %v755_v26, 1  ;;  %v994_v41 = vrot.slane %v9959_v16, 1  ;;  %v784_v43 = vshrl.u32 %v10245_v14, 16  ;;  %v10297_v6 = vld [vmem:[%s10174_s24 + $0xa8] sm:$0xff]  }
  0x29   : > { %v770_v45 = vsel %vm662_vm2, %v765_v29, %v769_v24  ;;  %v788_v46 = vrot.slane %v786_v31, 1  ;;  %v791_v47 = vshll.u32 %v9961_v30, 16  ;;  %v772_v48 = vshrl.u32 %v10253_v22, 16  ;;  %v10324_v31 = vld [vmem:[%s10174_s24 + $0xc0] sm:$0xff]  }
  0x2a   : > { %v776_v49 = vrot.slane %v774_v37, 1  ;;  %v779_v50 = vshll.u32 %v10271_v44, 16  ;;  %v810_v53 = vshll.u32 %v10266_v38, 16  ;;  %v758_v54 = vsel %vm662_vm2, %v753_v39, %v757_v40 }
  0x2b   : > { %v998_v55 = vsel %vm971_vm0, %v996_v32, %v997_v35  ;;  %v1002_v56 = vrot.slane %v10245_v14, 1  ;;  %v1003_v57 = vrot.slane %v9961_v30, 1  ;;  %v789_v58 = vor.u32 %v788_v46, %v784_v43  ;;  %v10321_v30 = vld [vmem:[%s10174_s24 + $0xa4] ss:$0 sps:$4 sm:$0x11]   ;;  %v10334_v43 = vld [vmem:[%s10174_s24 + $0xb4] sm:$0xff]  }
  0x2c   : > { %937 = vrot.lane.b32.xlu0 %v734_v23, %s10083_s26  ;;  %1050 = vrot.lane.b32.xlu1 %v992_v27, %s10082_s25  ;;  %v793_v59 = vrot.slane %v791_v47, 1  ;;  %v999_v61 = vrot.slane %v10253_v22, 1  ;;  %v1000_v62 = vrot.slane %v10271_v44, 1  ;;  %v808_v0 = vshrl.u32 %v10266_v38, 16 }
  0x2d   : > { %v815_v2 = vshll.u32 %v10281_v52, 16  ;;  %v798_v4 = vshll.u32 %v10277_v51, 16  ;;  %v777_v7 = vor.u32 %v776_v49, %v772_v48  ;;  %v781_v8 = vrot.slane %v779_v50, 1 }
  0x2e   : > { %v812_v9 = vrot.slane %v810_v53, 1  ;;  %v796_v10 = vshrl.u32 %v10277_v51, 16  ;;  %v995_v12 = vsel %vm971_vm0, %v993_v36, %v994_v41  ;;  %v803_v13 = vshll.u32 %v10291_v63, 16 }
  0x2f   : > { %v794_v16 = vsel %vm662_vm2, %v789_v58, %v793_v59  ;;  %v1008_v17 = vrot.slane %v10266_v38, 1  ;;  %v1009_v18 = vrot.slane %v10281_v52, 1  ;;  %v817_v19 = vrot.slane %v815_v2, 1  ;;  %v10351_v58 = vld [vmem:[%s10174_s24 + $0xbc] ss:$0 sps:$4 sm:$0x11]  }
  0x30   : > { %1048 = vrot.lane.b32.xlu0 %v989_v34, %s10082_s25  ;;  %943 = vrot.lane.b32.xlu1 %v770_v45, %s10083_s26  ;;  %v800_v21 = vrot.slane %v798_v4, 1  ;;  %v1005_v23 = vrot.slane %v10277_v51, 1  ;;  %v834_v24 = vshll.u32 %v10297_v6, 16  ;;  %v782_v25 = vsel %vm662_vm2, %v777_v7, %v781_v8  ;;  %v10337_v45 = vld [vmem:[%s10174_s24 + $0xc8] ss:$0 sps:$4 sm:$0x11]  }
  0x31   : > { %v1004_v26 = vsel %vm971_vm0, %v1002_v56, %v1003_v57  ;;  %v1006_v27 = vrot.slane %v10291_v63, 1  ;;  %v839_v29 = vshll.u32 %v10308_v15, 16  ;;  %v805_v32 = vrot.slane %v803_v13, 1  ;;  %v10360_v4 = vld [vmem:[%s10174_s24 + $0xcc] sm:$0xff]  }
  0x32   : > { %v832_v34 = vshrl.u32 %v10297_v6, 16  ;;  %v820_v35 = vshrl.u32 %v10302_v11, 16  ;;  %v822_v36 = vshll.u32 %v10302_v11, 16  ;;  %v813_v37 = vor.u32 %v812_v9, %v808_v0  ;;  %v10365_v8 = vld [vmem:[%s10174_s24 + $0xe0] ss:$0 sps:$4 sm:$0x11]  }
  0x33   : > { %v827_v39 = vshll.u32 %v10321_v30, 16  ;;  %v1014_v40 = vrot.slane %v10297_v6, 1  ;;  %v1015_v41 = vrot.slane %v10308_v15, 1  ;;  %v836_v44 = vrot.slane %v834_v24, 1  ;;  %v10418_v15 = vld [vmem:[%s10174_s24 + $0x108] sm:$0xff]  }
  0x34   : > { %941 = vrot.lane.b32.xlu0 %v758_v54, %s10083_s26  ;;  %1054 = vrot.lane.b32.xlu1 %v998_v55, %s10082_s25  ;;  %v1001_v46 = vsel %vm971_vm0, %v999_v61, %v1000_v62  ;;  %v841_v47 = vrot.slane %v839_v29, 1  ;;  %v858_v48 = vshll.u32 %v10324_v31, 16  ;;  %v801_v49 = vor.u32 %v800_v21, %v796_v10  ;;  %v10346_v54 = vld [vmem:[%s10174_s24 + $0xd8] sm:$0xff]   ;;  %14194 = vst [vmem:[#allocation3_spill] sm:$0xff] %v10418_v15 }
  0x35   : > { %v824_v50 = vrot.slane %v822_v36, 1  ;;  %v1011_v52 = vrot.slane %v10302_v11, 1  ;;  %v856_v53 = vshrl.u32 %v10324_v31, 16  ;;  %v818_v55 = vsel %vm662_vm2, %v813_v37, %v817_v19 }
  0x36   : > { %v829_v56 = vrot.slane %v827_v39, 1  ;;  %v1012_v57 = vrot.slane %v10321_v30, 1  ;;  %v844_v59 = vshrl.u32 %v10334_v43, 16  ;;  %v863_v61 = vshll.u32 %v10337_v45, 16 }
  0x37   : > { %v846_v62 = vshll.u32 %v10334_v43, 16  ;;  %v860_v63 = vrot.slane %v858_v48, 1  ;;  %v851_v0 = vshll.u32 %v10351_v58, 16  ;;  %v1020_v2 = vrot.slane %v10324_v31, 1  ;;  %v10393_v48 = vld [vmem:[%s10174_s24 + $0xe4] sm:$0xff]  }
  0x38   : > { %1052 = vrot.lane.b32.xlu0 %v995_v12, %s10082_s25  ;;  %947 = vrot.lane.b32.xlu1 %v794_v16, %s10083_s26  ;;  %v806_v7 = vsel %vm662_vm2, %v801_v49, %v805_v32  ;;  %v882_v9 = vshll.u32 %v10346_v54, 16  ;;  %v1010_v10 = vsel %vm971_vm0, %v1008_v17, %v1009_v18  ;;  %v837_v12 = vor.u32 %v836_v44, %v832_v34  ;;  %v10381_v34 = vld [vmem:[%s10174_s24 + $0xf0] sm:$0xff]   ;;  %v10389_v44 = vld [vmem:[%s10174_s24 + $0xf8] ss:$0 sps:$4 sm:$0x11]  }
  0x39   : > { %v1021_v13 = vrot.slane %v10337_v45, 1  ;;  %v1007_v19 = vsel %vm971_vm0, %v1005_v23, %v1006_v27  ;;  %v865_v21 = vrot.slane %v863_v61, 1  ;;  %v848_v24 = vrot.slane %v846_v62, 1 }
  0x3a   : > { %v825_v29 = vor.u32 %v824_v50, %v820_v35  ;;  %v880_v17 = vshrl.u32 %v10346_v54, 16  ;;  %v887_v18 = vshll.u32 %v10365_v8, 16  ;;  %v870_v32 = vshll.u32 %v10360_v4, 16 }
  0x3b   : > { %v853_v23 = vrot.slane %v851_v0, 1  ;;  %v884_v27 = vrot.slane %v882_v9, 1  ;;  %v842_v39 = vsel %vm662_vm2, %v837_v12, %v841_v47  ;;  %v906_v61 = vshll.u32 %v10381_v34, 16  ;;  %v10410_v9 = vld [vmem:[%s10174_s24 + $0xec] ss:$0 sps:$4 sm:$0x11]  }
  0x3c   : > { %945 = vrot.lane.b32.xlu0 %v782_v25, %s10083_s26  ;;  %1058 = vrot.lane.b32.xlu1 %v1004_v26, %s10082_s25  ;;  %v1018_v25 = vrot.slane %v10351_v58, 1  ;;  %v10374_v26 = vld [vmem:[%s10174_s24 + $0xd4] ss:$0 sps:$4 sm:$0x11]   ;;  %v10396_v49 = vrot.slane %v887_v18, 1  ;;  %v872_v50 = vrot.slane %v870_v32, 1  ;;  %v830_v47 = vsel %vm662_vm2, %v825_v29, %v829_v56 }
  0x3d   : > { %v875_v35 = vshll.u32 %v10374_v26, 16  ;;  %v1016_v62 = vsel %vm971_vm0, %v1014_v40, %v1015_v41  ;;  %v861_v12 = vor.u32 %v860_v63, %v856_v53  ;;  %v904_v18 = vshrl.u32 %v10381_v34, 16  ;;  %v10426_v63 = vld [vmem:[%s10174_s24 + $0x104] ss:$0 sps:$4 sm:$0x11]  }
  0x3e   : > { %v892_v56 = vshrl.u32 %v10393_v48, 16  ;;  %v908_v29 = vrot.slane %v906_v61, 1  ;;  %v894_v40 = vshll.u32 %v10393_v48, 16  ;;  %v1032_v41 = vrot.slane %v10381_v34, 1 }
  0x3f   : > { %v1033_v32 = vrot.slane %v10389_v44, 1  ;;  %v899_v53 = vshll.u32 %v10410_v9, 16  ;;  %v1030_v0 = vrot.slane %v10410_v9, 1  ;;  %v1186_v37 = vshll.u32 %v10418_v15, 16 }
  0x40   : > { %1056 = vrot.lane.b32.xlu0 %v1001_v46, %s10082_s25  ;;  %951 = vrot.lane.b32.xlu1 %v818_v55, %s10083_s26  ;;  %v896_v30 = vrot.slane %v894_v40, 1  ;;  %v885_v45 = vor.u32 %v884_v27, %v880_v17  ;;  %v14195_v17 = vrot.slane %v10334_v43, 1  ;;  %v14197_v58 = vrot.slane %v10365_v8, 1 }
  0x42   : > { %v1019_v27 = vsel %vm971_vm0, %v14195_v17, %v1018_v25 }
  0x44   : > { %949 = vrot.lane.b32.xlu0 %v806_v7, %s10083_s26  ;;  %1062 = vrot.lane.b32.xlu1 %v1010_v10, %s10082_s25  ;;  %v911_v7 = vshll.u32 %v10389_v44, 16  ;;  %v10413_v10 = vld [vmem:[%s10174_s24 + $0xfc] sm:$0xff]   ;;  %v866_v44 = vsel %vm662_vm2, %v861_v12, %v865_v21  ;;  %v901_v12 = vrot.slane %v899_v53, 1 }
  0x45   : > { %14193 = vst [vmem:[#allocation2_spill] sm:$0xff] %v10413_v10  ;;  %v918_v55 = vshll.u32 %v10413_v10, 16  ;;  %v1035_v40 = vrot.slane %v10413_v10, 1 }
  0x46   : > { %v913_v61 = vrot.slane %v911_v7, 1  ;;  %v1022_v7 = vsel %vm971_vm0, %v1020_v2, %v1021_v13  ;;  %v1197_v2 = vrot.slane %v10418_v15, 1  ;;  %v9989_v13 = vld [vmem:[%s10174_s24 + $0x8] ss:$0 sps:$4 sm:$0x11]  }
  0x47   : > { %v920_v9 = vrot.slane %v918_v55, 1  ;;  %v1188_v55 = vrot.slane %v1186_v37, 1  ;;  %v671_v37 = vshll.u32 %v9989_v13, 16 }
  0x48   : > { %1060 = vrot.lane.b32.xlu0 %v1007_v19, %s10082_s25  ;;  %955 = vrot.lane.b32.xlu1 %v842_v39, %s10083_s26  ;;  %v877_v19 = vrot.slane %v875_v35, 1  ;;  %v849_v39 = vor.u32 %v848_v24, %v844_v59  ;;  %v1013_v35 = vsel %vm971_vm0, %v1011_v52, %v1012_v57  ;;  %v916_v59 = vshrl.u32 %v10413_v10, 16  ;;  %v10439_v24 = vld [vmem:[%s10174_s24] sm:$0xff]   ;;  %v9987_v57 = vld [vmem:[%s10174_s24 + $0x110] ss:$0 sps:$4 sm:$0x11]  }
  0x49   : > { %v923_v52 = vshll.u32 %v10426_v63, 16  ;;  %v1191_v46 = vshll.u32 %v9987_v57, 16  ;;  %v664_v36 = vshrl.u32 %v10439_v24, 16  ;;  %v1198_v16 = vrot.slane %v9987_v57, 1 }
  0x4a   : > { %v854_v21 = vsel %vm662_vm2, %v849_v39, %v853_v23  ;;  %v1184_v23 = vshrl.u32 %v10418_v15, 16  ;;  %v666_v39 = vshll.u32 %v10439_v24, 16  ;;  %v14196_v15 = vshrl.u32 %v10360_v4, 16 }
  0x4b   : > { %v925_v53 = vrot.slane %v923_v52, 1  ;;  %v890_v10 = vsel %vm662_vm2, %v885_v45, %v10396_v49  ;;  %v14198_v57 = vrot.slane %v10346_v54, 1  ;;  %v14199_v49 = vrot.slane %v10374_v26, 1 }
  0x4c   : > { %953 = vrot.lane.b32.xlu0 %v830_v47, %s10083_s26  ;;  %1066 = vrot.lane.b32.xlu1 %v1016_v62, %s10082_s25  ;;  %v1029_v47 = vrot.slane %v10393_v48, 1  ;;  %v10444_v62 = vld [vmem:[%s14070_s1] sm:$0xff]   ;;  %v873_v52 = vor.u32 %v872_v50, %v14196_v15  ;;  %v14200_v50 = vrot.slane %v10360_v4, 1 }
  0x4d   : > { %9249 = vmatprep.subr.bf16.mxu0 %v10444_v62  ;;  %v1028_v25 = vsel %vm971_vm0, %v14198_v57, %v14197_v58 }
  0x4e   : > { %v1025_v15 = vsel %vm971_vm0, %v14200_v50, %v14199_v49  ;;  %v1031_v26 = vsel %vm971_vm0, %v1029_v47, %v1030_v0 }
  0x50   : > { %1064 = vrot.lane.b32.xlu0 %v1013_v35, %s10082_s25  ;;  %959 = vrot.lane.b32.xlu1 %v866_v44, %s10083_s26  ;;  %v1036_v35 = vrot.slane %v10426_v63, 1  ;;  %v1193_v44 = vrot.slane %v1191_v46, 1  ;;  %v972_v63 = vrot.slane %v10439_v24, 1  ;;  %v878_v46 = vsel %vm662_vm2, %v873_v52, %v877_v19 }
  0x52   : > { %v1037_v45 = vsel %vm971_vm0, %v1035_v40, %v1036_v35 }
  0x54   : > { %957 = vrot.lane.b32.xlu0 %v854_v21, %s10083_s26  ;;  %1070 = vrot.lane.b32.xlu1 %v1022_v7, %s10082_s25  ;;  %v668_v21 = vrot.slane %v666_v39, 1  ;;  %v909_v7 = vor.u32 %v908_v29, %v904_v18  ;;  %v1034_v18 = vsel %vm971_vm0, %v1032_v41, %v1033_v32  ;;  %v921_v29 = vor.u32 %v920_v9, %v916_v59  ;;  %v9993_v39 = vld [vmem:[%s14070_s1 + $0x8] ss:$0 sps:$4 sm:$0xff]  }
  0x55   : > { %v1199_v41 = vsel %vm971_vm0, %v1197_v2, %v1198_v16 }
  0x56   : > { %v914_v19 = vsel %vm662_vm2, %v909_v7, %v913_v61  ;;  %v1189_v61 = vor.u32 %v1188_v55, %v1184_v23  ;;  %v669_v0 = vor.u32 %v668_v21, %v664_v36 }
  0x58   : > { %1068 = vrot.lane.b32.xlu0 %v1019_v27, %s10082_s25  ;;  %963 = vrot.lane.b32.xlu1 %v890_v10, %s10083_s26  ;;  %v897_v10 = vor.u32 %v896_v30, %v892_v56  ;;  %v926_v56 = vsel %vm662_vm2, %v921_v29, %v925_v53  ;;  %v673_v30 = vrot.slane %v671_v37, 1  ;;  %v1194_v32 = vsel %vm662_vm2, %v1189_v61, %v1193_v44  ;;  %v9997_v27 = vld [vmem:[%s10174_s24 + $0x11c] ss:$0 sps:$4 sm:$0x11]  }
  0x59   : > { %v1489_v44 = vsel %vm1264_vm1, %v9993_v39, 0 }
  0x5a   : > { %v902_v8 = vsel %vm662_vm2, %v897_v10, %v901_v12  ;;  %v973_v12 = vrot.slane %v9989_v13, 1  ;;  %v674_v59 = vsel %vm662_vm2, %v669_v0, %v673_v30 }
  0x5c   : > { %961 = vrot.lane.b32.xlu0 %v878_v46, %s10083_s26  ;;  %1074 = vrot.lane.b32.xlu1 %v1028_v25, %s10082_s25  ;;  %v974_v47 = vsel %vm971_vm0, %v972_v63, %v973_v12  ;;  %v10542_v63 = vld [vmem:[%s10174_s24 + $0x114] sm:$0xff]   ;;  %v1716_v25 = vshll.u32 %v9997_v27, 16 }
  0x5d   : > { %v1711_v52 = vshll.u32 %v10542_v63, 16  ;;  %v1709_v58 = vshrl.u32 %v10542_v63, 16  ;;  %v1722_v50 = vrot.slane %v10542_v63, 1 }
  0x5e   : > { %v1718_v7 = vrot.slane %v1716_v25, 1 }
  0x5f   : > { %v1713_v57 = vrot.slane %v1711_v52, 1 }
  0x60   : > { %1072 = vrot.lane.b32.xlu0 %v1025_v15, %s10082_s25  ;;  %967 = vrot.lane.b32.xlu1 %v914_v19, %s10083_s26  ;;  %v1723_v15 = vrot.slane %v9997_v27, 1 }
  0x64   : > { %965 = vrot.lane.b32.xlu0 %v902_v8, %s10083_s26  ;;  %1078 = vrot.lane.b32.xlu1 %v1034_v18, %s10082_s25  ;;  %v1724_v8 = vsel %vm971_vm0, %v1722_v50, %v1723_v15 }
  0x68   : > { %1076 = vrot.lane.b32.xlu0 %v1031_v26, %s10082_s25  ;;  %1080 = vrot.lane.b32.xlu1 %v1037_v45, %s10082_s25 }
  0x6c   : > { %969 = vrot.lane.b32.xlu0 %v926_v56, %s10083_s26  ;;  %1200 = vrot.lane.b32.xlu1 %v1199_v41, %s10082_s25 }
  0x70   : > { %1195 = vrot.lane.b32.xlu0 %v1194_v32, %s10083_s26  ;;  %1038 = vrot.lane.b32.xlu1 %v974_v47, %s10082_s25 }
  0x74   : > { %927 = vrot.lane.b32.xlu0 %v674_v59, %s10083_s26  ;;  %1725 = vrot.lane.b32.xlu1 %v1724_v8, %s10082_s25 }
  0x8a   : > { %v1041_v9 = vpop.permute.xlu1 %1040 }
  0x8e   : > { %v930_v16 = vpop.permute.xlu0 %929  ;;  %v1043_v40 = vpop.permute.xlu1 %1042 }
  0x8f   : > { %v1086_v36 = vsel %vm1082_vm3, %v10179_v3, %v930_v16 }
  0x90   : > { %v10519_v35 = vsel %vm1127_vm4, %v1086_v36, %v1041_v9 }
  0x91   : > { %9205 = vmatprep.mubr.msk.bf16.mxu0 %vm1219_vm5, %v10519_v35 }
  0x92   : > { %v932_v23 = vpop.permute.xlu0 %931  ;;  %v936_v13 = vpop.permute.xlu1 %935 }
  0x93   : > { %v1088_v2 = vsel %vm1082_vm3, %v10183_v5, %v932_v23  ;;  %v10539_v5 = vld [vmem:[%s14070_s1 + $0x18] sm:$0xff]   ;;  %v1092_v17 = vsel %vm1082_vm3, %v10195_v20, %v936_v13 }
  0x94   : > { %v10529_v53 = vsel %vm1127_vm4, %v1088_v2, %v1043_v40 }
  0x95   : > { %9206 = vmatmul.mubr.msk.bf16.vlgmr.msra.gmra.mrb[0].mxu0 %vm1219_vm5, %v10529_v53 }
  0x96   : > { %9250 = vmatpush3.bf16.msra.mxu0 %v10444_v62  ;;  %v934_v3 = vpop.permute.xlu0 %933  ;;  %v1047_v55 = vpop.permute.xlu1 %1046 }
  0x97   : > { %9880 = vmatprep.subr.msk.bf16.mxu0 %vm1264_vm1, %v9993_v39  ;;  %v1090_v62 = vsel %vm1082_vm3, %v10202_v28, %v934_v3  ;;  %v10556_v20 = vsel %vm1127_vm4, %v1092_v17, %v1047_v55  ;;  %v1714_v28 = vor.u32 %v1713_v57, %v1709_v58 }
  0x99   : > { %v1719_v19 = vsel %vm662_vm2, %v1714_v28, %v1718_v7 }
  0x9a   : > { %v1045_v21 = vpop.permute.xlu0 %1044  ;;  %9252 = vmatpush3.bf16.msra.mxu0 %v1489_v44  ;;  %v940_v46 = vpop.permute.xlu1 %939  ;;  %1720 = vrot.lane.b32.xlu0 %v1719_v19, %s10083_s26 }
  0x9b   : > { %v10551_v37 = vsel %vm1127_vm4, %v1090_v62, %v1045_v21  ;;  %9297 = vmatprep.subr.bf16.mxu0 %v10539_v5  ;;  %v1096_v18 = vsel %vm1082_vm3, %v10207_v33, %v940_v46 }
  0x9c   : > { %9209 = vmatprep.mubr.msk.bf16.mxu0 %vm1219_vm5, %v10551_v37 }
  0x9d   : > { %9210 = vmatmul.mubr.msk.bf16.gmra.mrb[4].mxu0 %vm1219_vm5, %v10556_v20 }
  0x9e   : > { %v938_v49 = vpop.permute.xlu0 %937  ;;  %v1051_v10 = vpop.permute.xlu1 %1050 }
  0x9f   : > { %v1094_v26 = vsel %vm1082_vm3, %v10216_v42, %v938_v49  ;;  %v10575_v61 = vsel %vm1127_vm4, %v1096_v18, %v1051_v10 }
  0xa2   : > { %v1049_v29 = vpop.permute.xlu0 %1048  ;;  %v944_v56 = vpop.permute.xlu1 %943 }
  0xa3   : > { %v10572_v45 = vsel %vm1127_vm4, %v1094_v26, %v1049_v29  ;;  %v1100_v12 = vsel %vm1082_vm3, %v10231_v60, %v944_v56 }
  0xa4   : > { %9213 = vmatprep.mubr.msk.bf16.mxu0 %vm1219_vm5, %v10572_v45 }
  0xa5   : > { %9214 = vmatmul.mubr.msk.bf16.gmra.mrb[8].mxu0 %vm1219_vm5, %v10575_v61 }
  0xa6   : > { %v942_v33 = vpop.permute.xlu0 %941  ;;  %v1055_v30 = vpop.permute.xlu1 %1054 }
  0xa7   : > { %v1098_v42 = vsel %vm1082_vm3, %v10234_v1, %v942_v33  ;;  %v10589_v47 = vsel %vm1127_vm4, %v1100_v12, %v1055_v30 }
  0xaa   : > { %v1053_v41 = vpop.permute.xlu0 %1052  ;;  %v948_v0 = vpop.permute.xlu1 %947 }
  0xab   : > { %v10586_v32 = vsel %vm1127_vm4, %v1098_v42, %v1053_v41  ;;  %v1104_v60 = vsel %vm1082_vm3, %v10245_v14, %v948_v0  ;;  %v14201_v41 = vld [vmem:[#allocation2_spill] sm:$0xff] }
  0xac   : > { %9217 = vmatprep.mubr.msk.bf16.mxu0 %vm1219_vm5, %v10586_v32 }
  0xad   : > { %9218 = vmatmul.mubr.msk.bf16.gmra.mrb[12].mxu0 %vm1219_vm5, %v10589_v47 }
  0xae   : > { %v946_v59 = vpop.permute.xlu0 %945  ;;  %v1059_v9 = vpop.permute.xlu1 %1058 }
  0xaf   : > { %v1102_v1 = vsel %vm1082_vm3, %v10253_v22, %v946_v59  ;;  %v10603_v23 = vsel %vm1127_vm4, %v1104_v60, %v1059_v9  ;;  %v14202_v9 = vld [vmem:[#allocation3_spill] sm:$0xff] }
  0xb2   : > { %v1057_v16 = vpop.permute.xlu0 %1056  ;;  %v952_v36 = vpop.permute.xlu1 %951 }
  0xb3   : > { %v10600_v40 = vsel %vm1127_vm4, %v1102_v1, %v1057_v16  ;;  %v1108_v14 = vsel %vm1082_vm3, %v10266_v38, %v952_v36 }
  0xb4   : > { %9221 = vmatprep.mubr.msk.bf16.mxu0 %vm1219_vm5, %v10600_v40 }
  0xb5   : > { %9222 = vmatmul.mubr.msk.bf16.gmra.mrb[16].mxu0 %vm1219_vm5, %v10603_v23 }
  0xb6   : > { %v950_v2 = vpop.permute.xlu0 %949  ;;  %v1063_v13 = vpop.permute.xlu1 %1062 }
  0xb7   : > { %v1106_v22 = vsel %vm1082_vm3, %v10277_v51, %v950_v2  ;;  %v10617_v44 = vsel %vm1127_vm4, %v1108_v14, %v1063_v13  ;;  %v9995_v14 = vld [vmem:[%s14070_s1 + $0x20] ss:$0 sps:$4 sm:$0xff]  }
  0xba   : > { %v1061_v39 = vpop.permute.xlu0 %1060  ;;  %v956_v55 = vpop.permute.xlu1 %955 }
  0xbb   : > { %v10614_v3 = vsel %vm1127_vm4, %v1106_v22, %v1061_v39  ;;  %v1112_v38 = vsel %vm1082_vm3, %v10297_v6, %v956_v55 }
  0xbc   : > { %9225 = vmatprep.mubr.msk.bf16.mxu0 %vm1219_vm5, %v10614_v3 }
  0xbd   : > { %9226 = vmatmul.mubr.msk.bf16.gmra.mrb[20].mxu0 %vm1219_vm5, %v10617_v44 }
  0xbe   : > { %v954_v17 = vpop.permute.xlu0 %953  ;;  %v1067_v27 = vpop.permute.xlu1 %1066 }
  0xbf   : > { %v1110_v51 = vsel %vm1082_vm3, %v10302_v11, %v954_v17  ;;  %v10631_v46 = vsel %vm1127_vm4, %v1112_v38, %v1067_v27 }
  0xc2   : > { %v1065_v52 = vpop.permute.xlu0 %1064  ;;  %v960_v21 = vpop.permute.xlu1 %959 }
  0xc3   : > { %v10628_v62 = vsel %vm1127_vm4, %v1110_v51, %v1065_v52  ;;  %v1116_v6 = vsel %vm1082_vm3, %v10324_v31, %v960_v21 }
  0xc4   : > { %9229 = vmatprep.mubr.msk.bf16.mxu0 %vm1219_vm5, %v10628_v62 }
  0xc5   : > { %9230 = vmatmul.mubr.msk.bf16.gmra.mrb[24].mxu0 %vm1219_vm5, %v10631_v46 }
  0xc6   : > { %v958_v58 = vpop.permute.xlu0 %957  ;;  %v1071_v57 = vpop.permute.xlu1 %1070 }
  0xc7   : > { %v1114_v11 = vsel %vm1082_vm3, %v10334_v43, %v958_v58  ;;  %v10645_v49 = vsel %vm1127_vm4, %v1116_v6, %v1071_v57 }
  0xca   : > { %v1069_v25 = vpop.permute.xlu0 %1068  ;;  %v964_v7 = vpop.permute.xlu1 %963 }
  0xcb   : > { %v10642_v28 = vsel %vm1127_vm4, %v1114_v11, %v1069_v25  ;;  %v1120_v31 = vsel %vm1082_vm3, %v10346_v54, %v964_v7 }
  0xcc   : > { %9233 = vmatprep.mubr.msk.bf16.mxu0 %vm1219_vm5, %v10642_v28 }
  0xcd   : > { %9234 = vmatmul.mubr.msk.bf16.gmra.mrb[28].mxu0 %vm1219_vm5, %v10645_v49 }
  0xce   : > { %v962_v50 = vpop.permute.xlu0 %961  ;;  %v1075_v15 = vpop.permute.xlu1 %1074 }
  0xcf   : > { %v1118_v43 = vsel %vm1082_vm3, %v10360_v4, %v962_v50  ;;  %v10659_v18 = vsel %vm1127_vm4, %v1120_v31, %v1075_v15 }
  0xd2   : > { %v1073_v10 = vpop.permute.xlu0 %1072  ;;  %v968_v8 = vpop.permute.xlu1 %967 }
  0xd3   : > { %v10656_v19 = vsel %vm1127_vm4, %v1118_v43, %v1073_v10  ;;  %v1124_v54 = vsel %vm1082_vm3, %v10381_v34, %v968_v8 }
  0xd4   : > { %9237 = vmatprep.mubr.msk.bf16.mxu0 %vm1219_vm5, %v10656_v19 }
  0xd5   : > { %9238 = vmatmul.mubr.msk.bf16.gmra.mrb[32].mxu0 %vm1219_vm5, %v10659_v18 }
  0xd6   : > { %v966_v26 = vpop.permute.xlu0 %965  ;;  %v1079_v29 = vpop.permute.xlu1 %1078 }
  0xd7   : > { %v1122_v4 = vsel %vm1082_vm3, %v10393_v48, %v966_v26  ;;  %v1169_v12 = vsel %vm1127_vm4, %v1124_v54, %v1079_v29  ;;  %v9998_v54 = vld [vmem:[%s14072_s3 + $0x18] sm:$0xff]  }
  0xd8   : > { %9345 = vmatprep.subr.bf16.mxu1 %v9998_v54 }
  0xd9   : > { %9346 = vmatpush3.bf16.msra.mxu1 %v9998_v54 }
  0xda   : > { %v1077_v56 = vpop.permute.xlu0 %1076  ;;  %v1081_v30 = vpop.permute.xlu1 %1080 }
  0xdb   : > { %v1167_v33 = vsel %vm1127_vm4, %v1122_v4, %v1077_v56 }
  0xdc   : > { %9241 = vmatprep.mubr.msk.bf16.mxu0 %vm1219_vm5, %v1167_v33 }
  0xdd   : > { %9242 = vmatmul.mubr.msk.bf16.gmra.mrb[36].mxu0 %vm1219_vm5, %v1169_v12 }
  0xde   : > { %v970_v42 = vpop.permute.xlu0 %969  ;;  %v1201_v34 = vpop.permute.xlu1 %1200 }
  0xdf   : > { %v1126_v0 = vsel %vm1082_vm3, %v14201_v41, %v970_v42 }
  0xe0   : > { %v1171_v59 = vsel %vm1127_vm4, %v1126_v0, %v1081_v30 }
  0xe1   : > { %9245 = vmatprep.mubr.msk.bf16.mxu0 %vm1219_vm5, %v1171_v59 }
  0xe2   : > { %v1196_v48 = vpop.permute.xlu0 %1195  ;;  %v1039_v16 = vpop.permute.xlu1 %1038 }
  0xe3   : > { %v1203_v60 = vsel %vm1082_vm3, %v14202_v9, %v1196_v48 }
  0xe4   : > { %v1205_v1 = vsel %vm1127_vm4, %v1203_v60, %v1201_v34 }
  0xe5   : > { %9246 = vmatmul.mubr.msk.bf16.gmra.mrb[40].mxu0 %vm1219_vm5, %v1205_v1 }
  0xe6   : > { %v928_v36 = vpop.permute.xlu0 %927 }
  0xe7   : > { %v1084_v2 = vsel %vm1082_vm3, %v10439_v24, %v928_v36  ;;  %v1747_v24 = vsel %vm1264_vm1, %v9995_v14, 0 }
  0xe8   : > { %v1129_v13 = vsel %vm1127_vm4, %v1084_v2, %v1039_v16 }
  0xe9   : > { %9253 = vmatprep.mubr.msk.bf16.mxu0 %vm1219_vm5, %v1129_v13 }
  0xed   : > { %9254 = vmatmul.mubr.msk.bf16.vlgmr.msra.gmra.mrb[0].mxu0 %vm1219_vm5, %v10519_v35 }
  0xee   : > { %9298 = vmatpush3.bf16.msra.mxu0 %v10539_v5  ;;  %9257 = vmatprep.mubr.msk.bf16.mxu0 %vm1219_vm5, %v10529_v53  ;;  %v1726_v5 = vpop.permute.xlu1 %1725 }
  0xef   : > { %9881 = vmatprep.subr.msk.bf16.mxu0 %vm1264_vm1, %v9995_v14  ;;  %vm8336_vm1 = vcmask 1045509  }
  0xf2   : > { %9300 = vmatpush3.bf16.msra.mxu0 %v1747_v24 }
  0xf5   : > { %9258 = vmatmul.mubr.msk.bf16.gmra.mrb[4].mxu0 %vm1219_vm5, %v10551_v37 }
  0xf6   : > { %9261 = vmatprep.mubr.msk.bf16.mxu0 %vm1219_vm5, %v10556_v20 }
  0xfd   : > { %9262 = vmatmul.mubr.msk.bf16.gmra.mrb[8].mxu0 %vm1219_vm5, %v10572_v45 }
  0xfe   : > { %9265 = vmatprep.mubr.msk.bf16.mxu0 %vm1219_vm5, %v10575_v61 }
 0x105   : > { %9266 = vmatmul.mubr.msk.bf16.gmra.mrb[12].mxu0 %vm1219_vm5, %v10586_v32 }
 0x106   : > { %9269 = vmatprep.mubr.msk.bf16.mxu0 %vm1219_vm5, %v10589_v47 }
 0x10c   : > { %v1721_v35 = vpop.permute.xlu0 %1720 }
 0x10d   : > { %9270 = vmatmul.mubr.msk.bf16.gmra.mrb[16].mxu0 %vm1219_vm5, %v10600_v40 }
 0x10e   : > { %9273 = vmatprep.mubr.msk.bf16.mxu0 %vm1219_vm5, %v10603_v23 }
 0x115   : > { %9274 = vmatmul.mubr.msk.bf16.gmra.mrb[20].mxu0 %vm1219_vm5, %v10614_v3 }
 0x116   : > { %9277 = vmatprep.mubr.msk.bf16.mxu0 %vm1219_vm5, %v10617_v44 }
 0x11d   : > { %9278 = vmatmul.mubr.msk.bf16.gmra.mrb[24].mxu0 %vm1219_vm5, %v10628_v62 }
 0x11e   : > { %9281 = vmatprep.mubr.msk.bf16.mxu0 %vm1219_vm5, %v10631_v46 }
 0x125   : > { %9282 = vmatmul.mubr.msk.bf16.gmra.mrb[28].mxu0 %vm1219_vm5, %v10642_v28 }
 0x126   : > { %9285 = vmatprep.mubr.msk.bf16.mxu0 %vm1219_vm5, %v10645_v49 }
 0x12d   : > { %9286 = vmatmul.mubr.msk.bf16.gmra.mrb[32].mxu0 %vm1219_vm5, %v10656_v19 }
 0x12e   : > { %9289 = vmatprep.mubr.msk.bf16.mxu0 %vm1219_vm5, %v10659_v18 }
 0x135   : > { %9290 = vmatmul.mubr.msk.bf16.gmra.mrb[36].mxu0 %vm1219_vm5, %v1167_v33 }
 0x136   : > { %9293 = vmatprep.mubr.msk.bf16.mxu0 %vm1219_vm5, %v1169_v12 }
 0x13d   : > { %9294 = vmatmul.mubr.msk.bf16.gmra.mrb[40].mxu0 %vm1219_vm5, %v1171_v59 }
 0x13e   : > { %9301 = vmatprep.mubr.msk.bf16.mxu0 %vm1219_vm5, %v10529_v53  ;;  %v1728_v53 = vsel %vm1082_vm3, %v10542_v63, %v1721_v35  ;;  %vm8340_vm3 = vcmask 1047559  }
 0x145   : > { %9302 = vmatmul.mubr.msk.bf16.vlgmr.msra.gmra.mrb[0].mxu0 %vm1219_vm5, %v10551_v37  ;;  %v1730_v37 = vsel %vm1127_vm4, %v1728_v53, %v1726_v5 }
 0x146   : > { %9305 = vmatprep.mubr.msk.bf16.mxu0 %vm1219_vm5, %v10556_v20  ;;  %v10775_v20 = vld [vmem:[%s14071_s2] ss:$0 sm:$0xff] }
 0x14d   : > { %9306 = vmatmul.mubr.msk.bf16.gmra.mrb[4].mxu0 %vm1219_vm5, %v10572_v45 }
 0x14e   : > { %9309 = vmatprep.mubr.msk.bf16.mxu0 %vm1219_vm5, %v10575_v61 }
 0x155   : > { %9310 = vmatmul.mubr.msk.bf16.gmra.mrb[8].mxu0 %vm1219_vm5, %v10586_v32 }
 0x156   : > { %9313 = vmatprep.mubr.msk.bf16.mxu0 %vm1219_vm5, %v10589_v47 }
 0x15d   : > { %9314 = vmatmul.mubr.msk.bf16.gmra.mrb[12].mxu0 %vm1219_vm5, %v10600_v40 }
 0x15e   : > { %9317 = vmatprep.mubr.msk.bf16.mxu0 %vm1219_vm5, %v10603_v23 }
 0x165   : > { %9318 = vmatmul.mubr.msk.bf16.gmra.mrb[16].mxu0 %vm1219_vm5, %v10614_v3 }
 0x166   : > { %9321 = vmatprep.mubr.msk.bf16.mxu0 %vm1219_vm5, %v10617_v44 }
 0x16d   : > { %9322 = vmatmul.mubr.msk.bf16.gmra.mrb[20].mxu0 %vm1219_vm5, %v10628_v62 }
 0x16e   : > { %9325 = vmatprep.mubr.msk.bf16.mxu0 %vm1219_vm5, %v10631_v46 }
 0x175   : > { %9326 = vmatmul.mubr.msk.bf16.gmra.mrb[24].mxu0 %vm1219_vm5, %v10642_v28 }
 0x176   : > { %9329 = vmatprep.mubr.msk.bf16.mxu0 %vm1219_vm5, %v10645_v49 }
 0x17d   : > { %9330 = vmatmul.mubr.msk.bf16.gmra.mrb[28].mxu0 %vm1219_vm5, %v10656_v19 }
 0x17e   : > { %9333 = vmatprep.mubr.msk.bf16.mxu0 %vm1219_vm5, %v10659_v18 }
 0x185   : > { %9334 = vmatmul.mubr.msk.bf16.gmra.mrb[32].mxu0 %vm1219_vm5, %v1167_v33 }
 0x186   : > { %9337 = vmatprep.mubr.msk.bf16.mxu0 %vm1219_vm5, %v1169_v12  ;;  %v9999_v12 = vld [vmem:[%s14072_s3 + $0x20] sm:$0xff]  }
 0x187   : > { %9347 = vmatprep.subr.bf16.mxu1 %v9999_v12 }
 0x188   : > { %9348 = vmatpush3.bf16.msra.mxu1 %v9999_v12 }
 0x18d   : > { %9338 = vmatmul.mubr.msk.bf16.gmra.mrb[36].mxu0 %vm1219_vm5, %v1171_v59 }
 0x18e   : > { %9341 = vmatprep.mubr.msk.bf16.mxu0 %vm1219_vm5, %v1205_v1 }
 0x195   : > { %9342 = vmatmul.mubr.msk.bf16.gmra.mrb[40].mxu0 %vm1219_vm5, %v1730_v37 }
 0x218   : > { %v9303_v45 = vpop.f32.mrb[0].mxu0 }
 0x219   : > { %v2011_v61 = vadd.f32 %v9303_v45, %v10775_v20  ;;  %v1783_v32 = vpop.f32.mrb[1].mxu0 }
 0x21a   : > { %v2009_v47 = vadd.f32 %v10775_v20, %v1783_v32  ;;  %v9304_v40 = vpop.f32.mrb[2].mxu0 }
 0x21b   : > { %v2055_v23 = vmax.f32 %v2011_v61, 0.0  ;;  %v2012_v63 = vadd.f32 %v9304_v40, %v10775_v20  ;;  %v1786_v22 = vpop.f32.mrb[3].mxu0 }
 0x21c   : > { %v2053_v39 = vmax.f32 %v2009_v47, 0.0  ;;  %v2010_v3 = vadd.f32 %v10775_v20, %v1786_v22 }
 0x21d   : > { %v10781_v55 = vmul.f32 0.0, %v2055_v23  ;;  %v2056_v44 = vmax.f32 %v2012_v63, 0.0 }
 0x21e   : > { %v2230_v17 = vmul.f32 0.0, %v2053_v39  ;;  %v2054_v27 = vmax.f32 %v2010_v3, 0.0 }
 0x21f   : > { %14203 = vst [vmem:[#allocation2_spill] sm:$0xff] %v10781_v55  ;;  %v2322_v38 = vrot.slane %v10781_v55, 7  ;;  %v10784_v51 = vmul.f32 0.0, %v2056_v44 }
 0x220   : > { %v2319_v52 = vrot.slane %v2230_v17, 7  ;;  %v10786_v62 = vmul.f32 0.0, %v2054_v27  ;;  %v9307_v21 = vpop.f32.mrb[4].mxu0 }
 0x221   : > { %14204 = vst [vmem:[#allocation3_spill] sm:$0xff] %v10784_v51  ;;  %v2323_v46 = vrot.slane %v10784_v51, 7  ;;  %v10790_v58 = vadd.f32 %v9307_v21, %v10775_v20  ;;  %v1799_v57 = vpop.f32.mrb[5].mxu0  ;;  %v2452_v6 = vsel %vm2318_vm6, 0.0, %v2322_v38 }
 0x222   : > { %v14100_v11 = vrot.slane %v10786_v62, 7  ;;  %v2013_v25 = vadd.f32 %v10775_v20, %v1799_v57  ;;  %v9308_v28 = vpop.f32.mrb[6].mxu0  ;;  %v2451_v43 = vsel %vm2318_vm6, 0.0, %v2319_v52 }
 0x223   : > { %v2324_v7 = vsel %vm2318_vm6, %v2322_v38, %v2323_v46  ;;  %v2474_v49 = vsel %vm2318_vm6, %v2323_v46, 0.0  ;;  %v14099_v50 = vmax.f32 %v10790_v58, 0.0  ;;  %v10799_v15 = vadd.f32 %v9308_v28, %v10775_v20  ;;  %v1802_v31 = vpop.f32.mrb[7].mxu0 }
 0x224   : > { %v10802_v10 = vpack.c.bf16 %v2324_v7, %v2452_v6  ;;  %v2321_v19 = vsel %vm2318_vm6, %v2319_v52, %v14100_v11  ;;  %v2498_v8 = vpack.c.bf16 %v2474_v49, %v2474_v49  ;;  %v2057_v29 = vmax.f32 %v2013_v25, 0.0 }
 0x225   : > { %v10807_v18 = vpack.c.bf16 %v2321_v19, %v2451_v43  ;;  %v2328_v26 = vrot.slane %v14099_v50, 7  ;;  %v14096_v4 = vmax.f32 %v10799_v15, 0.0  ;;  %v2014_v56 = vadd.f32 %v10775_v20, %v1802_v31 }
 0x226   : > { %v2554_v33 = vshll.u32 %v10802_v10, 16  ;;  %v10817_v30 = vmul.f32 0.0, %v2057_v29  ;;  %v2552_v34 = vshrl.u32 %v10802_v10, 16  ;;  %v2559_v16 = vshll.u32 %v2498_v8, 16 }
 0x227   : > { %v2454_v42 = vsel %vm2318_vm6, 0.0, %v2328_v26  ;;  %v2329_v41 = vrot.slane %v14096_v4, 7  ;;  %v2058_v0 = vmax.f32 %v2014_v56, 0.0  ;;  %v2862_v37 = vrot.slane %v10802_v10, 1 }
 0x228   : > { %v9311_v59 = vpop.f32.mrb[8].mxu0  ;;  %v2325_v48 = vrot.slane %v10817_v30, 7  ;;  %v2556_v1 = vrot.slane %v2554_v33, 1  ;;  %v2863_v45 = vrot.slane %v2498_v8, 1  ;;  %v2561_v22 = vrot.slane %v2559_v16, 1  ;;  %v10000_v8 = vld [vmem:[%s14072_s3 + $0x28] sm:$0xff]  }
 0x229   : > { %v10828_v9 = vadd.f32 %v9311_v59, %v10775_v20  ;;  %v1815_v60 = vpop.f32.mrb[9].mxu0  ;;  %v2330_v36 = vsel %vm2318_vm6, %v2328_v26, %v2329_v41  ;;  %v2476_v2 = vsel %vm2318_vm6, %v2329_v41, 0.0  ;;  %v10832_v13 = vmul.f32 0.0, %v2058_v0  ;;  %9349 = vmatprep.subr.bf16.mxu1 %v10000_v8 }
 0x22a   : > { %v10835_v14 = vadd.f32 %v10775_v20, %v1815_v60  ;;  %v9312_v24 = vpop.f32.mrb[10].mxu0  ;;  %v10837_v35 = vpack.c.bf16 %v2330_v36, %v2454_v42  ;;  %v10849_v23 = vpack.c.bf16 %v2476_v2, %v2476_v2  ;;  %v2557_v63 = vor.u32 %v2556_v1, %v2552_v34  ;;  %9350 = vmatpush3.bf16.msra.mxu1 %v10000_v8 }
 0x22b   : > { %v14091_v53 = vmax.f32 %v10828_v9, 0.0  ;;  %v1818_v5 = vpop.f32.mrb[11].mxu0  ;;  %v2326_v61 = vrot.slane %v10832_v13, 7  ;;  %v10844_v47 = vadd.f32 %v9312_v24, %v10775_v20  ;;  %v2453_v39 = vsel %vm2318_vm6, 0.0, %v2325_v48 }
 0x22c   : > { %v14095_v32 = vmax.f32 %v10835_v14, 0.0  ;;  %v10847_v40 = vadd.f32 %v10775_v20, %v1818_v5  ;;  %v2864_v21 = vsel %vm971_vm0, %v2862_v37, %v2863_v45  ;;  %v2562_v6 = vsel %vm662_vm2, %v2557_v63, %v2561_v22  ;;  %v10905_v5 = vld [vmem:[%s14072_s3] sm:$0xff]  }
 0x22d   : > { %v2327_v3 = vsel %vm2318_vm6, %v2325_v48, %v2326_v61  ;;  %v2334_v44 = vrot.slane %v14091_v53, 7  ;;  %v14090_v17 = vmax.f32 %v10844_v47, 0.0  ;;  %v2475_v46 = vsel %vm2318_vm6, %v2326_v61, 0.0  ;;  %2781 = vrot.lane.b32.xlu0 %v2562_v6, %s10082_s25  ;;  %9391 = vmatprep.subr.bf16.mxu1 %v10905_v5 }
 0x22e   : > { %v10856_v27 = vpack.c.bf16 %v2327_v3, %v2453_v39  ;;  %v2331_v38 = vrot.slane %v14095_v32, 7  ;;  %v14092_v52 = vmax.f32 %v10847_v40, 0.0  ;;  %v2578_v28 = vshll.u32 %v10837_v35, 16 }
 0x22f   : > { %v2335_v57 = vrot.slane %v14090_v17, 7  ;;  %v2576_v43 = vshrl.u32 %v10837_v35, 16  ;;  %v2583_v19 = vshll.u32 %v10849_v23, 16  ;;  %v10883_v12 = vpack.c.bf16 %v2475_v46, %v2475_v46 }
 0x230   : > { %v9315_v25 = vpop.f32.mrb[12].mxu0  ;;  %v2332_v7 = vrot.slane %v14092_v52, 7  ;;  %v2580_v33 = vrot.slane %v2578_v28, 1  ;;  %v2456_v42 = vsel %vm2318_vm6, 0.0, %v2334_v44  ;;  %v2455_v41 = vsel %vm2318_vm6, 0.0, %v2331_v38 }
 0x231   : > { %v10871_v49 = vadd.f32 %v9315_v25, %v10775_v20  ;;  %v1831_v31 = vpop.f32.mrb[13].mxu0  ;;  %v2336_v26 = vsel %vm2318_vm6, %v2334_v44, %v2335_v57  ;;  %v2478_v29 = vsel %vm2318_vm6, %v2335_v57, 0.0  ;;  %v2564_v59 = vshrl.u32 %v10856_v27, 16  ;;  %2921 = vrot.lane.b32.xlu0 %v2864_v21, %s10084_s28 }
 0x232   : > { %v10881_v54 = vadd.f32 %v10775_v20, %v1831_v31  ;;  %v9316_v56 = vpop.f32.mrb[14].mxu0  ;;  %v10888_v34 = vpack.c.bf16 %v2336_v26, %v2456_v42  ;;  %v10890_v48 = vpack.c.bf16 %v2478_v29, %v2478_v29  ;;  %v2333_v16 = vsel %vm2318_vm6, %v2331_v38, %v2332_v7 }
 0x233   : > { %14205 = vst [vmem:[#allocation4_spill] sm:$0xff] %v10871_v49  ;;  %v1834_v0 = vpop.f32.mrb[15].mxu0  ;;  %v14086_v60 = vmax.f32 %v10871_v49, 0.0  ;;  %v10897_v36 = vadd.f32 %v9316_v56, %v10775_v20  ;;  %v2581_v24 = vor.u32 %v2580_v33, %v2576_v43  ;;  %v2477_v37 = vsel %vm2318_vm6, %v2332_v7, 0.0 }
 0x234   : > { %v14089_v1 = vmax.f32 %v10881_v54, 0.0  ;;  %v10900_v2 = vadd.f32 %v10775_v20, %v1834_v0  ;;  %v2585_v61 = vrot.slane %v2583_v19, 1  ;;  %v2566_v63 = vshll.u32 %v10856_v27, 16 }
 0x235   : > { %14206 = vst [vmem:[#allocation5_spill] sm:$0xff] %v10897_v36  ;;  %v2340_v45 = vrot.slane %v14086_v60, 7  ;;  %v14084_v39 = vmax.f32 %v10897_v36, 0.0  ;;  %v2571_v44 = vshll.u32 %v10883_v12, 16  ;;  %v10917_v38 = vpack.c.bf16 %v2333_v16, %v2455_v41 }
 0x236   : > { %v2337_v22 = vrot.slane %v14089_v1, 7  ;;  %v14088_v3 = vmax.f32 %v10900_v2, 0.0  ;;  %v2586_v21 = vsel %vm662_vm2, %v2581_v24, %v2585_v61  ;;  %v2568_v46 = vrot.slane %v2566_v63, 1 }
 0x237   : > { %v2868_v6 = vrot.slane %v10837_v35, 1  ;;  %v2341_v25 = vrot.slane %v14084_v39, 7  ;;  %2785 = vrot.lane.b32.xlu0 %v2586_v21, %s10082_s25  ;;  %v2869_v31 = vrot.slane %v10849_v23, 1  ;;  %v10930_v19 = vpack.c.bf16 %v2477_v37, %v2477_v37 }
 0x238   : > { %v9319_v57 = vpop.f32.mrb[16].mxu0  ;;  %v2338_v28 = vrot.slane %v14088_v3, 7  ;;  %v2458_v8 = vsel %vm2318_vm6, 0.0, %v2340_v45  ;;  %v2569_v26 = vor.u32 %v2568_v46, %v2564_v59  ;;  %v2457_v33 = vsel %vm2318_vm6, 0.0, %v2337_v22 }
 0x239   : > { %v10927_v7 = vadd.f32 %v9319_v57, %v10775_v20  ;;  %v1847_v43 = vpop.f32.mrb[17].mxu0  ;;  %v2342_v42 = vsel %vm2318_vm6, %v2340_v45, %v2341_v25  ;;  %v2480_v41 = vsel %vm2318_vm6, %v2341_v25, 0.0  ;;  %v2573_v0 = vrot.slane %v2571_v44, 1 }
 0x23a   : > { %v10934_v29 = vadd.f32 %v10775_v20, %v1847_v43  ;;  %v9320_v56 = vpop.f32.mrb[18].mxu0  ;;  %v10939_v24 = vpack.c.bf16 %v2342_v42, %v2458_v8  ;;  %v2339_v23 = vsel %vm2318_vm6, %v2337_v22, %v2338_v28  ;;  %v2865_v37 = vrot.slane %v10856_v27, 1 }
 0x23b   : > { %14207 = vst [vmem:[#allocation6_spill] sm:$0xff] %v10927_v7  ;;  %v1850_v16 = vpop.f32.mrb[19].mxu0  ;;  %v2866_v59 = vrot.slane %v10883_v12, 1  ;;  %v2574_v61 = vsel %vm662_vm2, %v2569_v26, %v2573_v0  ;;  %v14082_v63 = vmax.f32 %v10927_v7, 0.0  ;;  %v2870_v21 = vsel %vm971_vm0, %v2868_v6, %v2869_v31 }
 0x23c   : > { %14208 = vst [vmem:[#allocation7_spill] sm:$0xff] %v10934_v29  ;;  %v14083_v45 = vmax.f32 %v10934_v29, 0.0  ;;  %v10948_v46 = vpack.c.bf16 %v2480_v41, %v2480_v41  ;;  %v2479_v44 = vsel %vm2318_vm6, %v2338_v28, 0.0  ;;  %2783 = vrot.lane.b32.xlu1 %v2574_v61, %s10082_s25  ;;  %2925 = vrot.lane.b32.xlu0 %v2870_v21, %s10084_s28  ;;  %v10954_v22 = vadd.f32 %v9320_v56, %v10775_v20 }
 0x23d   : > { %v10957_v12 = vadd.f32 %v10775_v20, %v1850_v16  ;;  %v10959_v57 = vpack.c.bf16 %v2339_v23, %v2457_v33  ;;  %v2346_v6 = vrot.slane %v14082_v63, 7  ;;  %v2602_v28 = vshll.u32 %v10888_v34, 16 }
 0x23e   : > { %14209 = vst [vmem:[#allocation8_spill] sm:$0xff] %v10954_v22  ;;  %v2343_v25 = vrot.slane %v14083_v45, 7  ;;  %v14085_v31 = vmax.f32 %v10954_v22, 0.0  ;;  %v2607_v8 = vshll.u32 %v10890_v48, 16  ;;  %v2590_v26 = vshll.u32 %v10917_v38, 16 }
 0x23f   : > { %14210 = vst [vmem:[#allocation9_spill] sm:$0xff] %v10957_v12  ;;  %v14087_v43 = vmax.f32 %v10957_v12, 0.0  ;;  %v10970_v42 = vpack.c.bf16 %v2479_v44, %v2479_v44  ;;  %v2867_v33 = vsel %vm971_vm0, %v2865_v37, %v2866_v59  ;;  %v2600_v41 = vshrl.u32 %v10888_v34, 16 }
 0x240   : > { %v9323_v56 = vpop.f32.mrb[20].mxu0  ;;  %v2604_v0 = vrot.slane %v2602_v28, 1  ;;  %2923 = vrot.lane.b32.xlu1 %v2867_v33, %s10084_s28  ;;  %v2347_v23 = vrot.slane %v14085_v31, 7  ;;  %v2592_v21 = vrot.slane %v2590_v26, 1  ;;  %v2595_v63 = vshll.u32 %v10930_v19, 16 }
 0x241   : > { %v1863_v16 = vpop.f32.mrb[21].mxu0  ;;  %v2344_v61 = vrot.slane %v14087_v43, 7  ;;  %v2460_v44 = vsel %vm2318_vm6, 0.0, %v2346_v6  ;;  %v2588_v37 = vshrl.u32 %v10917_v38, 16  ;;  %v10983_v59 = vadd.f32 %v9323_v56, %v10775_v20 }
 0x242   : > { %v9324_v45 = vpop.f32.mrb[22].mxu0  ;;  %v2605_v39 = vor.u32 %v2604_v0, %v2600_v41  ;;  %v2459_v33 = vsel %vm2318_vm6, 0.0, %v2343_v25  ;;  %v2348_v31 = vsel %vm2318_vm6, %v2346_v6, %v2347_v23  ;;  %v2482_v60 = vsel %vm2318_vm6, %v2347_v23, 0.0 }
 0x243   : > { %14211 = vst [vmem:[#allocation10_spill] sm:$0xff] %v10983_v59  ;;  %v1866_v28 = vpop.f32.mrb[23].mxu0  ;;  %v2609_v43 = vrot.slane %v2607_v8, 1  ;;  %v2345_v26 = vsel %vm2318_vm6, %v2343_v25, %v2344_v61  ;;  %v2481_v3 = vsel %vm2318_vm6, %v2344_v61, 0.0  ;;  %v2874_v1 = vrot.slane %v10888_v34, 1 }
 0x244   : > { %v2875_v41 = vrot.slane %v10890_v48, 1  ;;  %v2593_v56 = vor.u32 %v2592_v21, %v2588_v37  ;;  %v2597_v17 = vrot.slane %v2595_v63, 1  ;;  %v14093_v53 = vmax.f32 %v10983_v59, 0.0 }
 0x245   : > { %v2610_v0 = vsel %vm662_vm2, %v2605_v39, %v2609_v43  ;;  %v10994_v52 = vpack.c.bf16 %v2348_v31, %v2460_v44  ;;  %v10996_v6 = vpack.c.bf16 %v2482_v60, %v2482_v60  ;;  %v11000_v25 = vadd.f32 %v10775_v20, %v1863_v16 }
 0x246   : > { %2789 = vrot.lane.b32.xlu0 %v2610_v0, %s10082_s25  ;;  %v2871_v8 = vrot.slane %v10917_v38, 1  ;;  %v2598_v23 = vsel %vm662_vm2, %v2593_v56, %v2597_v17  ;;  %v2872_v48 = vrot.slane %v10930_v19, 1  ;;  %v11006_v39 = vadd.f32 %v9324_v45, %v10775_v20 }
 0x247   : > { %14212 = vst [vmem:[#allocation11_spill] sm:$0xff] %v11000_v25  ;;  %v11009_v63 = vadd.f32 %v10775_v20, %v1866_v28  ;;  %v11011_v60 = vpack.c.bf16 %v2345_v26, %v2459_v33  ;;  %2787 = vrot.lane.b32.xlu1 %v2598_v23, %s10082_s25  ;;  %v2876_v43 = vsel %vm971_vm0, %v2874_v1, %v2875_v41  ;;  %v14094_v16 = vmax.f32 %v11000_v25, 0.0 }
 0x248   : > { %14213 = vst [vmem:[#allocation12_spill] sm:$0xff] %v11006_v39  ;;  %v9327_v31 = vpop.f32.mrb[24].mxu0  ;;  %v2626_v61 = vshll.u32 %v10939_v24, 16  ;;  %v2352_v19 = vrot.slane %v14093_v53, 7  ;;  %v14097_v45 = vmax.f32 %v11006_v39, 0.0  ;;  %v2631_v44 = vshll.u32 %v10948_v46, 16 }
 0x249   : > { %14214 = vst [vmem:[#allocation13_spill] sm:$0xff] %v11009_v63  ;;  %v1879_v17 = vpop.f32.mrb[25].mxu0  ;;  %v14098_v21 = vmax.f32 %v11009_v63, 0.0  ;;  %v2349_v1 = vrot.slane %v14094_v16, 7  ;;  %v2624_v28 = vshrl.u32 %v10939_v24, 16  ;;  %v2614_v26 = vshll.u32 %v10959_v57, 16 }
 0x24a   : > { %v9328_v37 = vpop.f32.mrb[26].mxu0  ;;  %2929 = vrot.lane.b32.xlu0 %v2876_v43, %s10084_s28  ;;  %v2628_v33 = vrot.slane %v2626_v61, 1  ;;  %v2873_v0 = vsel %vm971_vm0, %v2871_v8, %v2872_v48  ;;  %v2353_v56 = vrot.slane %v14097_v45, 7  ;;  %v2619_v53 = vshll.u32 %v10970_v42, 16 }
 0x24b   : > { %v1882_v41 = vpop.f32.mrb[27].mxu0  ;;  %v2350_v23 = vrot.slane %v14098_v21, 7  ;;  %v11033_v43 = vpack.c.bf16 %v2481_v3, %v2481_v3  ;;  %2927 = vrot.lane.b32.xlu1 %v2873_v0, %s10084_s28  ;;  %v2616_v32 = vrot.slane %v2614_v26, 1  ;;  %v11037_v61 = vadd.f32 %v9327_v31, %v10775_v20 }
 0x24c   : > { %v2629_v16 = vor.u32 %v2628_v33, %v2624_v28  ;;  %v2462_v4 = vsel %vm2318_vm6, 0.0, %v2352_v19  ;;  %v2354_v8 = vsel %vm2318_vm6, %v2352_v19, %v2353_v56  ;;  %v2633_v48 = vrot.slane %v2631_v44, 1 }
 0x24d   : > { %14215 = vst [vmem:[#allocation14_spill] sm:$0xff] %v11037_v61  ;;  %v2612_v45 = vshrl.u32 %v10959_v57, 16  ;;  %v2461_v21 = vsel %vm2318_vm6, 0.0, %v2349_v1  ;;  %v2484_v50 = vsel %vm2318_vm6, %v2353_v56, 0.0  ;;  %v2351_v3 = vsel %vm2318_vm6, %v2349_v1, %v2350_v23 }
 0x24e   : > { %v2483_v0 = vsel %vm2318_vm6, %v2350_v23, 0.0  ;;  %v2634_v28 = vsel %vm662_vm2, %v2629_v16, %v2633_v48  ;;  %v2621_v31 = vrot.slane %v2619_v53, 1  ;;  %v14102_v26 = vmax.f32 %v11037_v61, 0.0 }
 0x24f   : > { %v2617_v33 = vor.u32 %v2616_v32, %v2612_v45  ;;  %v11048_v55 = vpack.c.bf16 %v2354_v8, %v2462_v4  ;;  %2793 = vrot.lane.b32.xlu0 %v2634_v28, %s10082_s25  ;;  %v2880_v19 = vrot.slane %v10939_v24, 1  ;;  %v2881_v44 = vrot.slane %v10948_v46, 1 }
 0x250   : > { %v9331_v11 = vpop.f32.mrb[28].mxu0  ;;  %v11054_v56 = vadd.f32 %v10775_v20, %v1879_v17  ;;  %v2877_v32 = vrot.slane %v10959_v57, 1  ;;  %v2878_v53 = vrot.slane %v10970_v42, 1  ;;  %v11060_v16 = vadd.f32 %v9328_v37, %v10775_v20 }
 0x251   : > { %v1895_v1 = vpop.f32.mrb[29].mxu0  ;;  %v2622_v23 = vsel %vm662_vm2, %v2617_v33, %v2621_v31  ;;  %v11062_v45 = vpack.c.bf16 %v2484_v50, %v2484_v50  ;;  %v11064_v8 = vpack.c.bf16 %v2351_v3, %v2461_v21  ;;  %v11069_v17 = vadd.f32 %v10775_v20, %v1882_v41 }
 0x252   : > { %14216 = vst [vmem:[#allocation15_spill] sm:$0xff] %v11054_v56  ;;  %14217 = vst [vmem:[#allocation16_spill] sm:$0xff] %v11060_v16  ;;  %v9332_v4 = vpop.f32.mrb[30].mxu0  ;;  %2791 = vrot.lane.b32.xlu1 %v2622_v23, %s10082_s25  ;;  %v14103_v46 = vmax.f32 %v11054_v56, 0.0  ;;  %v2358_v28 = vrot.slane %v14102_v26, 7  ;;  %v2882_v42 = vsel %vm971_vm0, %v2880_v19, %v2881_v44  ;;  %v14106_v37 = vmax.f32 %v11060_v16, 0.0 }
 0x253   : > { %14218 = vst [vmem:[#allocation17_spill] sm:$0xff] %v11069_v17  ;;  %v1898_v48 = vpop.f32.mrb[31].mxu0  ;;  %v2650_v50 = vshll.u32 %v10994_v52, 16  ;;  %2933 = vrot.lane.b32.xlu0 %v2882_v42, %s10084_s28  ;;  %v14109_v3 = vmax.f32 %v11069_v17, 0.0  ;;  %v2648_v41 = vshrl.u32 %v10994_v52, 16  ;;  %v2655_v33 = vshll.u32 %v10996_v6, 16 }
 0x254   : > { %v2355_v21 = vrot.slane %v14103_v46, 7  ;;  %v2879_v31 = vsel %vm971_vm0, %v2877_v32, %v2878_v53  ;;  %v2359_v19 = vrot.slane %v14106_v37, 7  ;;  %v2638_v23 = vshll.u32 %v11011_v60, 16 }
 0x255   : > { %v2652_v44 = vrot.slane %v2650_v50, 1  ;;  %v2356_v42 = vrot.slane %v14109_v3, 7  ;;  %v2636_v26 = vshrl.u32 %v11011_v60, 16  ;;  %v2643_v46 = vshll.u32 %v11033_v43, 16 }
 0x256   : > { %2931 = vrot.lane.b32.xlu1 %v2879_v31, %s10084_s28  ;;  %v11092_v51 = vadd.f32 %v9331_v11, %v10775_v20  ;;  %v2360_v32 = vsel %vm2318_vm6, %v2358_v28, %v2359_v19  ;;  %v2657_v16 = vrot.slane %v2655_v33, 1  ;;  %v2640_v37 = vrot.slane %v2638_v23, 1 }
 0x257   : > { %v2653_v53 = vor.u32 %v2652_v44, %v2648_v41  ;;  %v11095_v61 = vpack.c.bf16 %v2483_v0, %v2483_v0  ;;  %v2464_v31 = vsel %vm2318_vm6, 0.0, %v2358_v28  ;;  %v2463_v17 = vsel %vm2318_vm6, 0.0, %v2355_v21 }
 0x258   : > { %14219 = vst [vmem:[#allocation18_spill] sm:$0xff] %v11092_v51  ;;  %v9335_v50 = vpop.f32.mrb[32].mxu0  ;;  %v2486_v3 = vsel %vm2318_vm6, %v2359_v19, 0.0  ;;  %v11100_v39 = vpack.c.bf16 %v2360_v32, %v2464_v31  ;;  %v2357_v11 = vsel %vm2318_vm6, %v2355_v21, %v2356_v42  ;;  %v2641_v63 = vor.u32 %v2640_v37, %v2636_v26 }
 0x259   : > { %v1911_v56 = vpop.f32.mrb[33].mxu0  ;;  %v2658_v59 = vsel %vm662_vm2, %v2653_v53, %v2657_v16  ;;  %v2645_v33 = vrot.slane %v2643_v46, 1  ;;  %v14114_v0 = vmax.f32 %v11092_v51, 0.0  ;;  %v2886_v28 = vrot.slane %v10994_v52, 1 }
 0x25a   : > { %v9336_v41 = vpop.f32.mrb[34].mxu0  ;;  %2797 = vrot.lane.b32.xlu0 %v2658_v59, %s10082_s25  ;;  %v2887_v44 = vrot.slane %v10996_v6, 1  ;;  %v11108_v19 = vpack.c.bf16 %v2486_v3, %v2486_v3  ;;  %v2485_v32 = vsel %vm2318_vm6, %v2356_v42, 0.0  ;;  %v11112_v21 = vadd.f32 %v10775_v20, %v1895_v1 }
 0x25b   : > { %v1914_v23 = vpop.f32.mrb[35].mxu0  ;;  %v11115_v26 = vadd.f32 %v9332_v4, %v10775_v20  ;;  %v2646_v59 = vsel %vm662_vm2, %v2641_v63, %v2645_v33  ;;  %v2883_v16 = vrot.slane %v11011_v60, 1  ;;  %v2884_v46 = vrot.slane %v11033_v43, 1 }
 0x25c   : > { %14220 = vst [vmem:[#allocation19_spill] sm:$0xff] %v11112_v21  ;;  %v11121_v37 = vadd.f32 %v10775_v20, %v1898_v48  ;;  %v11123_v6 = vpack.c.bf16 %v2357_v11, %v2463_v17  ;;  %2795 = vrot.lane.b32.xlu1 %v2646_v59, %s10082_s25  ;;  %v2888_v3 = vsel %vm971_vm0, %v2886_v28, %v2887_v44  ;;  %v14115_v1 = vmax.f32 %v11112_v21, 0.0 }
 0x25d   : > { %14221 = vst [vmem:[#allocation20_spill] sm:$0xff] %v11115_v26  ;;  %v14116_v4 = vmax.f32 %v11115_v26, 0.0  ;;  %v2364_v63 = vrot.slane %v14114_v0, 7  ;;  %v2674_v48 = vshll.u32 %v11048_v55, 16  ;;  %v2679_v17 = vshll.u32 %v11062_v45, 16 }
 0x25e   : > { %14222 = vst [vmem:[#allocation21_spill] sm:$0xff] %v11121_v37  ;;  %2937 = vrot.lane.b32.xlu0 %v2888_v3, %s10084_s28  ;;  %v11135_v42 = vpack.c.bf16 %v2485_v32, %v2485_v32  ;;  %v2361_v53 = vrot.slane %v14115_v1, 7  ;;  %v2662_v11 = vshll.u32 %v11064_v8, 16  ;;  %v2885_v28 = vsel %vm971_vm0, %v2883_v16, %v2884_v46 }
 0x25f   : > { %v2365_v31 = vrot.slane %v14116_v4, 7  ;;  %v2672_v44 = vshrl.u32 %v11048_v55, 16  ;;  %v2676_v59 = vrot.slane %v2674_v48, 1  ;;  %v2667_v3 = vshll.u32 %v11095_v61, 16 }
 0x260   : > { %v11142_v33 = vpop.f32.mrb[36].mxu0  ;;  %2935 = vrot.lane.b32.xlu1 %v2885_v28, %s10084_s28  ;;  %v2660_v4 = vshrl.u32 %v11064_v8, 16  ;;  %v2664_v43 = vrot.slane %v2662_v11, 1  ;;  %v2466_v16 = vsel %vm2318_vm6, 0.0, %v2364_v63  ;;  %v2465_v46 = vsel %vm2318_vm6, 0.0, %v2361_v53 }
 0x261   : > { %v11147_v0 = vpop.f32.mrb[37].mxu0  ;;  %v2366_v32 = vsel %vm2318_vm6, %v2364_v63, %v2365_v31  ;;  %v2488_v1 = vsel %vm2318_vm6, %v2365_v31, 0.0  ;;  %v14223_v48 = vmax.f32 %v11121_v37, 0.0  ;;  %v2681_v21 = vrot.slane %v2679_v17, 1 }
 0x262   : > { %v11153_v26 = vpop.f32.mrb[38].mxu0  ;;  %v11161_v28 = vpack.c.bf16 %v2366_v32, %v2466_v16  ;;  %v11163_v22 = vpack.c.bf16 %v2488_v1, %v2488_v1  ;;  %v2677_v31 = vor.u32 %v2676_v59, %v2672_v44  ;;  %v2665_v7 = vor.u32 %v2664_v43, %v2660_v4 }
 0x263   : > { %v2362_v51 = vrot.slane %v14223_v48, 7  ;;  %v11159_v25 = vpop.f32.mrb[39].mxu0  ;;  %v2669_v12 = vrot.slane %v2667_v3, 1  ;;  %v11166_v11 = vadd.f32 %v9335_v50, %v10775_v20  ;;  %v2892_v63 = vrot.slane %v11048_v55, 1 }
 0x264   : > { %v2893_v29 = vrot.slane %v11062_v45, 1  ;;  %v2682_v37 = vsel %vm662_vm2, %v2677_v31, %v2681_v21  ;;  %v11172_v17 = vadd.f32 %v10775_v20, %v1911_v56  ;;  %v2889_v32 = vrot.slane %v11064_v8, 1 }
 0x265   : > { %14224 = vst [vmem:[#allocation22_spill] sm:$0xff] %v11166_v11  ;;  %v2890_v1 = vrot.slane %v11095_v61, 1  ;;  %v2363_v44 = vsel %vm2318_vm6, %v2361_v53, %v2362_v51  ;;  %2801 = vrot.lane.b32.xlu0 %v2682_v37, %s10082_s25  ;;  %v2670_v50 = vsel %vm662_vm2, %v2665_v7, %v2669_v12  ;;  %v14126_v4 = vmax.f32 %v11166_v11, 0.0 }
 0x266   : > { %14225 = vst [vmem:[#allocation23_spill] sm:$0xff] %v11172_v17  ;;  %v11181_v43 = vadd.f32 %v9336_v41, %v10775_v20  ;;  %v2487_v45 = vsel %vm2318_vm6, %v2362_v51, 0.0  ;;  %2799 = vrot.lane.b32.xlu1 %v2670_v50, %s10082_s25  ;;  %v2894_v56 = vsel %vm971_vm0, %v2892_v63, %v2893_v29  ;;  %v14127_v21 = vmax.f32 %v11172_v17, 0.0 }
 0x267   : > { %v11188_v61 = vadd.f32 %v10775_v20, %v1914_v23  ;;  %v2891_v7 = vsel %vm971_vm0, %v2889_v32, %v2890_v1  ;;  %v2698_v41 = vshll.u32 %v11100_v39, 16  ;;  %v2703_v37 = vshll.u32 %v11108_v19, 16 }
 0x268   : > { %14226 = vst [vmem:[#allocation24_spill] sm:$0xff] %v11181_v43  ;;  %v11190_v53 = vpop.f32.mrb[40].mxu0  ;;  %v14129_v12 = vmax.f32 %v11181_v43, 0.0  ;;  %v2370_v29 = vrot.slane %v14126_v4, 7  ;;  %v2367_v59 = vrot.slane %v14127_v21, 7  ;;  %v2686_v3 = vshll.u32 %v11123_v6, 16 }
 0x269   : > { %14227 = vst [vmem:[#allocation25_spill] sm:$0xff] %v11188_v61  ;;  %v11196_v51 = vpop.f32.mrb[41].mxu0  ;;  %v14133_v23 = vmax.f32 %v11188_v61, 0.0  ;;  %2941 = vrot.lane.b32.xlu0 %v2894_v56, %s10084_s28  ;;  %v2696_v31 = vshrl.u32 %v11100_v39, 16  ;;  %v2700_v63 = vrot.slane %v2698_v41, 1  ;;  %v2684_v32 = vshrl.u32 %v11123_v6, 16 }
 0x26a   : > { %v11204_v16 = vpop.f32.mrb[42].mxu0  ;;  %v2371_v48 = vrot.slane %v14129_v12, 7  ;;  %2939 = vrot.lane.b32.xlu1 %v2891_v7, %s10084_s28  ;;  %v2705_v4 = vrot.slane %v2703_v37, 1  ;;  %v2688_v21 = vrot.slane %v2686_v3, 1  ;;  %v2691_v11 = vshll.u32 %v11135_v42, 16 }
 0x26b   : > { %v11211_v1 = vpop.f32.mrb[43].mxu0  ;;  %v2368_v50 = vrot.slane %v14133_v23, 7  ;;  %v2701_v43 = vor.u32 %v2700_v63, %v2696_v31  ;;  %v2047_v41 = vadd.f32 %v11142_v33, %v10775_v20  ;;  %v11221_v17 = vpack.c.bf16 %v2363_v44, %v2465_v46 }
 0x26c   : > { %v2372_v56 = vsel %vm2318_vm6, %v2370_v29, %v2371_v48  ;;  %v2490_v12 = vsel %vm2318_vm6, %v2371_v48, 0.0  ;;  %v11223_v36 = vpack.c.bf16 %v2487_v45, %v2487_v45  ;;  %v2468_v7 = vsel %vm2318_vm6, 0.0, %v2370_v29 }
 0x26d   : > { %v2467_v23 = vsel %vm2318_vm6, 0.0, %v2367_v59  ;;  %v11227_v37 = vpack.c.bf16 %v2372_v56, %v2468_v7  ;;  %v11229_v3 = vpack.c.bf16 %v2490_v12, %v2490_v12  ;;  %v2706_v61 = vsel %vm662_vm2, %v2701_v43, %v2705_v4 }
 0x26e   : > { %v2689_v49 = vor.u32 %v2688_v21, %v2684_v32  ;;  %2805 = vrot.lane.b32.xlu0 %v2706_v61, %s10082_s25  ;;  %v2693_v48 = vrot.slane %v2691_v11, 1  ;;  %v2091_v31 = vmax.f32 %v2047_v41, 0.0  ;;  %v2898_v33 = vrot.slane %v11100_v39, 1 }
 0x26f   : > { %v2899_v46 = vrot.slane %v11108_v19, 1  ;;  %v2369_v44 = vsel %vm2318_vm6, %v2367_v59, %v2368_v50  ;;  %v11238_v45 = vadd.f32 %v10775_v20, %v11147_v0  ;;  %v2895_v12 = vrot.slane %v11123_v6, 1 }
 0x270   : > { %v2048_v4 = vadd.f32 %v11153_v26, %v10775_v20  ;;  %v2694_v43 = vsel %vm662_vm2, %v2689_v49, %v2693_v48  ;;  %v11244_v21 = vmul.f32 0.0, %v2091_v31  ;;  %v2896_v11 = vrot.slane %v11135_v42, 1 }
 0x271   : > { %v11249_v19 = vadd.f32 %v10775_v20, %v11159_v25  ;;  %v2489_v61 = vsel %vm2318_vm6, %v2368_v50, 0.0  ;;  %2803 = vrot.lane.b32.xlu1 %v2694_v43, %s10082_s25  ;;  %v2900_v0 = vsel %vm971_vm0, %v2898_v33, %v2899_v46  ;;  %v14137_v29 = vmax.f32 %v11238_v45, 0.0 }
 0x272   : > { %v2092_v59 = vmax.f32 %v2048_v4, 0.0  ;;  %v11255_v26 = vpack.c.bf16 %v2369_v44, %v2467_v23  ;;  %2945 = vrot.lane.b32.xlu0 %v2900_v0, %s10084_s28  ;;  %v2722_v42 = vshll.u32 %v11161_v28, 16  ;;  %v2727_v25 = vshll.u32 %v11163_v22, 16 }
 0x273   : > { %v14136_v49 = vmax.f32 %v11249_v19, 0.0  ;;  %v2376_v63 = vrot.slane %v11244_v21, 7  ;;  %v2373_v32 = vrot.slane %v14137_v29, 7  ;;  %v2710_v56 = vshll.u32 %v11221_v17, 16 }
 0x274   : > { %v11264_v50 = vmul.f32 0.0, %v2092_v59  ;;  %v2897_v23 = vsel %vm971_vm0, %v2895_v12, %v2896_v11  ;;  %v2720_v7 = vshrl.u32 %v11161_v28, 16  ;;  %v2724_v48 = vrot.slane %v2722_v42, 1 }
 0x275   : > { %v2374_v41 = vrot.slane %v14136_v49, 7  ;;  %v11271_v31 = vpack.c.bf16 %v2489_v61, %v2489_v61  ;;  %2943 = vrot.lane.b32.xlu1 %v2897_v23, %s10084_s28  ;;  %v2712_v46 = vrot.slane %v2710_v56, 1  ;;  %v2715_v44 = vshll.u32 %v11223_v36, 16 }
 0x276   : > { %v2377_v33 = vrot.slane %v11264_v50, 7  ;;  %v2725_v4 = vor.u32 %v2724_v48, %v2720_v7  ;;  %v2729_v43 = vrot.slane %v2727_v25, 1  ;;  %v2708_v0 = vshrl.u32 %v11221_v17, 16 }
 0x277   : > { %v2051_v12 = vadd.f32 %v11190_v53, %v10775_v20  ;;  %v2470_v11 = vsel %vm2318_vm6, 0.0, %v2376_v63  ;;  %v2469_v59 = vsel %vm2318_vm6, 0.0, %v2373_v32  ;;  %v2375_v61 = vsel %vm2318_vm6, %v2373_v32, %v2374_v41 }
 0x278   : > { %v2491_v42 = vsel %vm2318_vm6, %v2374_v41, 0.0  ;;  %v2378_v23 = vsel %vm2318_vm6, %v2376_v63, %v2377_v33  ;;  %v2492_v56 = vsel %vm2318_vm6, %v2377_v33, 0.0  ;;  %v2730_v7 = vsel %vm662_vm2, %v2725_v4, %v2729_v43 }
 0x279   : > { %v2713_v25 = vor.u32 %v2712_v46, %v2708_v0  ;;  %2809 = vrot.lane.b32.xlu0 %v2730_v7, %s10082_s25  ;;  %v2717_v48 = vrot.slane %v2715_v44, 1  ;;  %v2095_v49 = vmax.f32 %v2051_v12, 0.0  ;;  %v2904_v53 = vrot.slane %v11161_v28, 1 }
 0x27a   : > { %v2905_v29 = vrot.slane %v11163_v22, 1  ;;  %v2049_v32 = vadd.f32 %v10775_v20, %v11196_v51  ;;  %v2901_v41 = vrot.slane %v11221_v17, 1  ;;  %v2902_v63 = vrot.slane %v11223_v36, 1 }
 0x27b   : > { %v2052_v33 = vadd.f32 %v11204_v16, %v10775_v20  ;;  %v11295_v4 = vpack.c.bf16 %v2375_v61, %v2469_v59  ;;  %v2718_v46 = vsel %vm662_vm2, %v2713_v25, %v2717_v48  ;;  %v2272_v44 = vmul.f32 0.0, %v2095_v49 }
 0x27c   : > { %v2050_v43 = vadd.f32 %v10775_v20, %v11211_v1  ;;  %v11300_v0 = vpack.c.bf16 %v2491_v42, %v2491_v42  ;;  %2807 = vrot.lane.b32.xlu1 %v2718_v46, %s10082_s25  ;;  %v2906_v22 = vsel %vm971_vm0, %v2904_v53, %v2905_v29  ;;  %v2093_v51 = vmax.f32 %v2049_v32, 0.0 }
 0x27d   : > { %v2096_v12 = vmax.f32 %v2052_v33, 0.0  ;;  %v2382_v36 = vrot.slane %v2272_v44, 7  ;;  %2949 = vrot.lane.b32.xlu0 %v2906_v22, %s10084_s28  ;;  %v2903_v16 = vsel %vm971_vm0, %v2901_v41, %v2902_v63  ;;  %v2746_v61 = vshll.u32 %v11227_v37, 16 }
 0x27e   : > { %v2094_v59 = vmax.f32 %v2050_v43, 0.0  ;;  %v11307_v49 = vmul.f32 0.0, %v2093_v51  ;;  %v2751_v20 = vshll.u32 %v11229_v3, 16  ;;  %v2734_v1 = vshll.u32 %v11255_v26, 16 }
 0x27f   : > { %v2273_v7 = vmul.f32 0.0, %v2096_v12  ;;  %v2744_v29 = vshrl.u32 %v11227_v37, 16  ;;  %v2748_v25 = vrot.slane %v2746_v61, 1  ;;  %v2732_v48 = vshrl.u32 %v11255_v26, 16 }
 0x280   : > { %14228 = vst [vmem:[#allocation26_spill] sm:$0xff] %v11307_v49  ;;  %v11311_v42 = vmul.f32 0.0, %v2094_v59  ;;  %v2379_v53 = vrot.slane %v11307_v49, 7  ;;  %2947 = vrot.lane.b32.xlu1 %v2903_v16, %s10084_s28  ;;  %v2736_v41 = vrot.slane %v2734_v1, 1  ;;  %v2739_v63 = vshll.u32 %v11271_v31, 16 }
 0x281   : > { %v2383_v32 = vrot.slane %v2273_v7, 7  ;;  %v11318_v33 = vpack.c.bf16 %v2378_v23, %v2470_v11  ;;  %v11320_v46 = vpack.c.bf16 %v2492_v56, %v2492_v56  ;;  %v2749_v43 = vor.u32 %v2748_v25, %v2744_v29 }
 0x282   : > { %v2380_v44 = vrot.slane %v11311_v42, 7  ;;  %v2472_v22 = vsel %vm2318_vm6, 0.0, %v2382_v36  ;;  %v2753_v12 = vrot.slane %v2751_v20, 1  ;;  %v2737_v59 = vor.u32 %v2736_v41, %v2732_v48 }
 0x283   : > { %v2384_v51 = vsel %vm2318_vm6, %v2382_v36, %v2383_v32  ;;  %v2910_v7 = vrot.slane %v11227_v37, 1  ;;  %v2911_v11 = vrot.slane %v11229_v3, 1  ;;  %v2471_v23 = vsel %vm2318_vm6, 0.0, %v2379_v53 }
 0x284   : > { %v11325_v61 = vpack.c.bf16 %v2384_v51, %v2472_v22  ;;  %v2381_v16 = vsel %vm2318_vm6, %v2379_v53, %v2380_v44  ;;  %v2493_v56 = vsel %vm2318_vm6, %v2380_v44, 0.0  ;;  %v2754_v1 = vsel %vm662_vm2, %v2749_v43, %v2753_v12 }
 0x285   : > { %v2741_v29 = vrot.slane %v2739_v63, 1  ;;  %v14229_v25 = vrot.slane %v10786_v62, 7  ;;  %v11336_v20 = vpack.c.bf16 %v2381_v16, %v2471_v23  ;;  %2813 = vrot.lane.b32.xlu0 %v2754_v1, %s10082_s25  ;;  %v2907_v48 = vrot.slane %v11255_v26, 1 }
 0x286   : > { %v2908_v3 = vrot.slane %v11271_v31, 1  ;;  %v2770_v53 = vshll.u32 %v11318_v33, 16  ;;  %v2775_v44 = vshll.u32 %v11320_v46, 16  ;;  %v2536_v43 = vpack.c.bf16 %v2493_v56, %v2493_v56 }
 0x287   : > { %v2473_v36 = vsel %vm2318_vm6, %v14229_v25, 0.0  ;;  %v2742_v41 = vsel %vm662_vm2, %v2737_v59, %v2741_v29  ;;  %v2758_v62 = vshll.u32 %v11295_v4, 16  ;;  %v2912_v63 = vsel %vm971_vm0, %v2910_v7, %v2911_v11 }
 0x288   : > { %2811 = vrot.lane.b32.xlu1 %v2742_v41, %s10082_s25  ;;  %v2768_v22 = vshrl.u32 %v11318_v33, 16  ;;  %v2772_v51 = vrot.slane %v2770_v53, 1  ;;  %v2763_v12 = vshll.u32 %v11300_v0, 16  ;;  %v2496_v16 = vpack.c.bf16 %v2473_v36, %v2473_v36 }
 0x289   : > { %v2494_v59 = vsel %vm2318_vm6, %v2383_v32, 0.0  ;;  %2953 = vrot.lane.b32.xlu0 %v2912_v63, %s10084_s28  ;;  %v2756_v31 = vshrl.u32 %v11295_v4, 16  ;;  %v2760_v23 = vrot.slane %v2758_v62, 1  ;;  %v2909_v56 = vsel %vm971_vm0, %v2907_v48, %v2908_v3 }
 0x28a   : > { %v2773_v1 = vor.u32 %v2772_v51, %v2768_v22  ;;  %v2777_v29 = vrot.slane %v2775_v44, 1  ;;  %v3049_v25 = vshll.u32 %v11336_v20, 16  ;;  %v3054_v11 = vshll.u32 %v2536_v43, 16 }
 0x28b   : > { %v2761_v7 = vor.u32 %v2760_v23, %v2756_v31  ;;  %v2765_v36 = vrot.slane %v2763_v12, 1  ;;  %v3047_v32 = vshrl.u32 %v11336_v20, 16  ;;  %v2547_v63 = vshll.u32 %v2496_v16, 16 }
 0x28c   : > { %2951 = vrot.lane.b32.xlu1 %v2909_v56, %s10084_s28  ;;  %v2778_v41 = vsel %vm662_vm2, %v2773_v1, %v2777_v29  ;;  %v3051_v53 = vrot.slane %v3049_v25, 1  ;;  %v2538_v49 = vpack.c.bf16 %v2494_v59, %v2494_v59  ;;  %v2913_v48 = vrot.slane %v11295_v4, 1 }
 0x28d   : > { %2817 = vrot.lane.b32.xlu0 %v2778_v41, %s10082_s25  ;;  %v2542_v3 = vshll.u32 %v10807_v18, 16  ;;  %v2766_v44 = vsel %vm662_vm2, %v2761_v7, %v2765_v36  ;;  %v2914_v62 = vrot.slane %v11300_v0, 1  ;;  %v3056_v51 = vrot.slane %v3054_v11, 1 }
 0x28e   : > { %v3052_v22 = vor.u32 %v3051_v53, %v3047_v32  ;;  %v2540_v12 = vshrl.u32 %v10807_v18, 16  ;;  %v3546_v23 = vshll.u32 %v11325_v61, 16  ;;  %v3551_v56 = vshll.u32 %v2538_v49, 16 }
 0x28f   : > { %v2544_v31 = vrot.slane %v2542_v3, 1  ;;  %v2916_v1 = vrot.slane %v11318_v33, 1  ;;  %v2915_v0 = vsel %vm971_vm0, %v2913_v48, %v2914_v62  ;;  %v2917_v7 = vrot.slane %v11320_v46, 1 }
 0x290   : > { %2815 = vrot.lane.b32.xlu1 %v2766_v44, %s10082_s25  ;;  %v3057_v59 = vsel %vm662_vm2, %v3052_v22, %v3056_v51  ;;  %v3548_v25 = vrot.slane %v3546_v23, 1  ;;  %v2549_v11 = vrot.slane %v2547_v63, 1  ;;  %v3544_v41 = vshrl.u32 %v11325_v61, 16 }
 0x291   : > { %3058 = vrot.lane.b32.xlu0 %v3057_v59, %s10082_s25  ;;  %v2545_v29 = vor.u32 %v2544_v31, %v2540_v12  ;;  %v2918_v53 = vsel %vm971_vm0, %v2916_v1, %v2917_v7  ;;  %v3062_v3 = vrot.slane %v11336_v20, 1  ;;  %v3063_v44 = vrot.slane %v2536_v43, 1  ;;  %v10002_v7 = vld [vmem:[%s14072_s3 + $0x8] sm:$0xff]  }
 0x292   : > { %v3549_v32 = vor.u32 %v3548_v25, %v3544_v41  ;;  %v3553_v22 = vrot.slane %v3551_v56, 1  ;;  %v2859_v48 = vrot.slane %v10807_v18, 1  ;;  %v2860_v62 = vrot.slane %v2496_v16, 1 }
 0x293   : > { %v2550_v36 = vsel %vm662_vm2, %v2545_v29, %v2549_v11  ;;  %v3064_v63 = vsel %vm971_vm0, %v3062_v3, %v3063_v44  ;;  %v3559_v12 = vrot.slane %v11325_v61, 1  ;;  %v3560_v31 = vrot.slane %v2538_v49, 1 }
 0x294   : > { %2955 = vrot.lane.b32.xlu1 %v2915_v0, %s10084_s28  ;;  %v3554_v46 = vsel %vm662_vm2, %v3549_v32, %v3553_v22  ;;  %v2861_v51 = vsel %vm971_vm0, %v2859_v48, %v2860_v62  ;;  %v11418_v32 = vld [vmem:[%s14072_s3 + $0x30] sm:$0xff]  }
 0x295   : > { %2779 = vrot.lane.b32.xlu0 %v2550_v36, %s10082_s25  ;;  %v3561_v23 = vsel %vm971_vm0, %v3559_v12, %v3560_v31 }
 0x298   : > { %2957 = vrot.lane.b32.xlu1 %v2918_v53, %s10084_s28 }
 0x299   : > { %3555 = vrot.lane.b32.xlu0 %v3554_v46, %s10082_s25 }
 0x29c   : > { %3065 = vrot.lane.b32.xlu1 %v3064_v63, %s10084_s28 }
 0x29f   : > { %v2782_v43 = vpop.permute.xlu0 %2781 }
 0x2a0   : > { %2919 = vrot.lane.b32.xlu1 %v2861_v51, %s10084_s28  ;;  %v2962_v59 = vsel %vm1127_vm4, %v10802_v10, %v2782_v43 }
 0x2a3   : > { %v2922_v16 = vpop.permute.xlu0 %2921 }
 0x2a4   : > { %3562 = vrot.lane.b32.xlu1 %v3561_v23, %s10084_s28  ;;  %v11390_v56 = vsel %vm2999_vm7, %v2962_v59, %v2922_v16 }
 0x2a5   : > { %9351 = vmatprep.mubr.msk.bf16.mxu1 %vm3096_vm8, %v11390_v56 }
 0x2a9   : > { %v2786_v49 = vpop.permute.xlu0 %2785 }
 0x2aa   : > { %v2966_v10 = vsel %vm1127_vm4, %v10837_v35, %v2786_v49 }
 0x2ae   : > { %v2784_v1 = vpop.permute.xlu1 %2783  ;;  %v2926_v29 = vpop.permute.xlu0 %2925 }
 0x2af   : > { %v2964_v25 = vsel %vm1127_vm4, %v10856_v27, %v2784_v1  ;;  %v11405_v41 = vsel %vm2999_vm7, %v2966_v10, %v2926_v29  ;;  %v10003_v27 = vld [vmem:[%s14072_s3 + $0x10] sm:$0xff]  }
 0x2b2   : > { %v2924_v0 = vpop.permute.xlu1 %2923 }
 0x2b3   : > { %v11402_v11 = vsel %vm2999_vm7, %v2964_v25, %v2924_v0 }
 0x2b4   : > { %9352 = vmatmul.mubr.msk.bf16.vlgmr.msra.gmra.mrb[0].mxu1 %vm3096_vm8, %v11402_v11 }
 0x2b5   : > { %9392 = vmatpush3.bf16.msra.mxu1 %v10905_v5  ;;  %9355 = vmatprep.mubr.msk.bf16.mxu1 %vm3096_vm8, %v11405_v41 }
 0x2b6   : > { %9393 = vmatprep.subr.bf16.mxu1 %v10002_v7 }
 0x2b8   : > { %v2790_v35 = vpop.permute.xlu0 %2789 }
 0x2b9   : > { %v2788_v36 = vpop.permute.xlu1 %2787  ;;  %9394 = vmatpush3.bf16.msra.mxu1 %v10002_v7  ;;  %v2970_v44 = vsel %vm1127_vm4, %v10888_v34, %v2790_v35 }
 0x2ba   : > { %9395 = vmatprep.subr.bf16.mxu1 %v10003_v27  ;;  %v2968_v5 = vsel %vm1127_vm4, %v10917_v38, %v2788_v36 }
 0x2bc   : > { %v2930_v53 = vpop.permute.xlu0 %2929 }
 0x2bd   : > { %v2928_v3 = vpop.permute.xlu1 %2927  ;;  %9396 = vmatpush3.bf16.msra.mxu1 %v10003_v27  ;;  %v11429_v46 = vsel %vm2999_vm7, %v2970_v44, %v2930_v53 }
 0x2be   : > { %v11425_v22 = vsel %vm2999_vm7, %v2968_v5, %v2928_v3  ;;  %9437 = vmatprep.subr.bf16.mxu1 %v11418_v32 }
 0x2bf   : > { %9356 = vmatmul.mubr.msk.bf16.gmra.mrb[4].mxu1 %vm3096_vm8, %v11425_v22 }
 0x2c0   : > { %9359 = vmatprep.mubr.msk.bf16.mxu1 %vm3096_vm8, %v11429_v46 }
 0x2c1   : > { %v2794_v38 = vpop.permute.xlu0 %2793 }
 0x2c2   : > { %v2974_v51 = vsel %vm1127_vm4, %v10939_v24, %v2794_v38 }
 0x2c4   : > { %v2792_v63 = vpop.permute.xlu1 %2791 }
 0x2c5   : > { %v2934_v48 = vpop.permute.xlu0 %2933  ;;  %v2972_v34 = vsel %vm1127_vm4, %v10959_v57, %v2792_v63 }
 0x2c6   : > { %v11443_v31 = vsel %vm2999_vm7, %v2974_v51, %v2934_v48 }
 0x2c8   : > { %v2932_v62 = vpop.permute.xlu1 %2931 }
 0x2c9   : > { %v11440_v12 = vsel %vm2999_vm7, %v2972_v34, %v2932_v62 }
 0x2ca   : > { %9360 = vmatmul.mubr.msk.bf16.gmra.mrb[8].mxu1 %vm3096_vm8, %v11440_v12 }
 0x2cb   : > { %9363 = vmatprep.mubr.msk.bf16.mxu1 %vm3096_vm8, %v11443_v31 }
 0x2cc   : > { %v2798_v43 = vpop.permute.xlu0 %2797 }
 0x2cd   : > { %v2978_v24 = vsel %vm1127_vm4, %v10994_v52, %v2798_v43 }
 0x2ce   : > { %v2796_v23 = vpop.permute.xlu1 %2795 }
 0x2cf   : > { %v2976_v57 = vsel %vm1127_vm4, %v11011_v60, %v2796_v23 }
 0x2d0   : > { %v2938_v59 = vpop.permute.xlu0 %2937 }
 0x2d1   : > { %v11457_v1 = vsel %vm2999_vm7, %v2978_v24, %v2938_v59 }
 0x2d2   : > { %v2936_v16 = vpop.permute.xlu1 %2935 }
 0x2d3   : > { %v11454_v49 = vsel %vm2999_vm7, %v2976_v57, %v2936_v16 }
 0x2d4   : > { %9364 = vmatmul.mubr.msk.bf16.gmra.mrb[12].mxu1 %vm3096_vm8, %v11454_v49 }
 0x2d5   : > { %9367 = vmatprep.mubr.msk.bf16.mxu1 %vm3096_vm8, %v11457_v1 }
 0x2d7   : > { %v2802_v29 = vpop.permute.xlu0 %2801 }
 0x2d8   : > { %v2800_v25 = vpop.permute.xlu1 %2799  ;;  %v2982_v52 = vsel %vm1127_vm4, %v11048_v55, %v2802_v29 }
 0x2d9   : > { %v2980_v60 = vsel %vm1127_vm4, %v11064_v8, %v2800_v25 }
 0x2db   : > { %v2942_v0 = vpop.permute.xlu0 %2941 }
 0x2dc   : > { %v2940_v7 = vpop.permute.xlu1 %2939  ;;  %v11471_v27 = vsel %vm2999_vm7, %v2982_v52, %v2942_v0 }
 0x2dd   : > { %v11468_v10 = vsel %vm2999_vm7, %v2980_v60, %v2940_v7 }
 0x2de   : > { %9368 = vmatmul.mubr.msk.bf16.gmra.mrb[16].mxu1 %vm3096_vm8, %v11468_v10 }
 0x2df   : > { %9371 = vmatprep.mubr.msk.bf16.mxu1 %vm3096_vm8, %v11471_v27 }
 0x2e0   : > { %v2806_v35 = vpop.permute.xlu0 %2805 }
 0x2e1   : > { %v2986_v55 = vsel %vm1127_vm4, %v11100_v39, %v2806_v35 }
 0x2e3   : > { %v2804_v36 = vpop.permute.xlu1 %2803 }
 0x2e4   : > { %v2946_v53 = vpop.permute.xlu0 %2945  ;;  %v2984_v8 = vsel %vm1127_vm4, %v11123_v6, %v2804_v36 }
 0x2e5   : > { %v11485_v44 = vsel %vm2999_vm7, %v2986_v55, %v2946_v53 }
 0x2e7   : > { %v2944_v5 = vpop.permute.xlu1 %2943 }
 0x2e8   : > { %v11482_v3 = vsel %vm2999_vm7, %v2984_v8, %v2944_v5 }
 0x2e9   : > { %9372 = vmatmul.mubr.msk.bf16.gmra.mrb[20].mxu1 %vm3096_vm8, %v11482_v3 }
 0x2ea   : > { %9375 = vmatprep.mubr.msk.bf16.mxu1 %vm3096_vm8, %v11485_v44 }
 0x2eb   : > { %v2810_v38 = vpop.permute.xlu0 %2809 }
 0x2ec   : > { %v2990_v39 = vsel %vm1127_vm4, %v11161_v28, %v2810_v38  ;;  %v10005_v38 = vld [vmem:[%s14072_s3 + $0x38] sm:$0xff]  }
 0x2ee   : > { %v2808_v63 = vpop.permute.xlu1 %2807 }
 0x2ef   : > { %v2950_v48 = vpop.permute.xlu0 %2949  ;;  %v2988_v6 = vsel %vm1127_vm4, %v11221_v17, %v2808_v63 }
 0x2f0   : > { %v11499_v51 = vsel %vm2999_vm7, %v2990_v39, %v2950_v48 }
 0x2f2   : > { %v2948_v34 = vpop.permute.xlu1 %2947 }
 0x2f3   : > { %v11496_v62 = vsel %vm2999_vm7, %v2988_v6, %v2948_v34 }
 0x2f4   : > { %9376 = vmatmul.mubr.msk.bf16.gmra.mrb[24].mxu1 %vm3096_vm8, %v11496_v62 }
 0x2f5   : > { %9379 = vmatprep.mubr.msk.bf16.mxu1 %vm3096_vm8, %v11499_v51 }
 0x2f7   : > { %v2814_v43 = vpop.permute.xlu0 %2813 }
 0x2f8   : > { %v2994_v28 = vsel %vm1127_vm4, %v11227_v37, %v2814_v43 }
 0x2fa   : > { %v2812_v23 = vpop.permute.xlu1 %2811 }
 0x2fb   : > { %v2954_v59 = vpop.permute.xlu0 %2953  ;;  %v2992_v17 = vsel %vm1127_vm4, %v11255_v26, %v2812_v23 }
 0x2fc   : > { %v11513_v24 = vsel %vm2999_vm7, %v2994_v28, %v2954_v59 }
 0x2fe   : > { %v2952_v57 = vpop.permute.xlu1 %2951 }
 0x2ff   : > { %v11510_v16 = vsel %vm2999_vm7, %v2992_v17, %v2952_v57  ;;  %v2818_v25 = vpop.permute.xlu0 %2817 }
 0x300   : > { %9380 = vmatmul.mubr.msk.bf16.gmra.mrb[28].mxu1 %vm3096_vm8, %v11510_v16  ;;  %v2998_v7 = vsel %vm1127_vm4, %v11318_v33, %v2818_v25 }
 0x301   : > { %9383 = vmatprep.mubr.msk.bf16.mxu1 %vm3096_vm8, %v11513_v24 }
 0x302   : > { %v2816_v29 = vpop.permute.xlu1 %2815 }
 0x303   : > { %v2996_v26 = vsel %vm1127_vm4, %v11295_v4, %v2816_v29  ;;  %v3059_v60 = vpop.permute.xlu0 %3058 }
 0x304   : > { %v3068_v36 = vsel %vm1127_vm4, %v11336_v20, %v3059_v60 }
 0x306   : > { %v2956_v0 = vpop.permute.xlu1 %2955 }
 0x307   : > { %v3037_v37 = vsel %vm2999_vm7, %v2996_v26, %v2956_v0  ;;  %v2780_v8 = vpop.permute.xlu0 %2779 }
 0x308   : > { %9384 = vmatmul.mubr.msk.bf16.gmra.mrb[32].mxu1 %vm3096_vm8, %v3037_v37  ;;  %v2960_v5 = vsel %vm1127_vm4, %v10807_v18, %v2780_v8  ;;  %v10006_v18 = vld [vmem:[%s14072_s3 + $0x40] sm:$0xff]  }
 0x30a   : > { %v2958_v52 = vpop.permute.xlu1 %2957 }
 0x30b   : > { %v3039_v35 = vsel %vm2999_vm7, %v2998_v7, %v2958_v52  ;;  %v3556_v20 = vpop.permute.xlu0 %3555 }
 0x30c   : > { %9387 = vmatprep.mubr.msk.bf16.mxu1 %vm3096_vm8, %v3039_v35 }
 0x30e   : > { %v3066_v53 = vpop.permute.xlu1 %3065 }
 0x30f   : > { %v3070_v4 = vsel %vm2999_vm7, %v3068_v36, %v3066_v53 }
 0x310   : > { %9388 = vmatmul.mubr.msk.bf16.gmra.mrb[36].mxu1 %vm3096_vm8, %v3070_v4 }
 0x312   : > { %v2920_v55 = vpop.permute.xlu1 %2919 }
 0x313   : > { %v3001_v33 = vsel %vm2999_vm7, %v2960_v5, %v2920_v55 }
 0x314   : > { %9397 = vmatprep.mubr.msk.bf16.mxu1 %vm3096_vm8, %v3001_v33 }
 0x318   : > { %9398 = vmatmul.mubr.msk.bf16.vlgmr.msra.gmra.mrb[0].mxu1 %vm3096_vm8, %v11390_v56  ;;  %v3563_v56 = vpop.permute.xlu1 %3562 }
 0x319   : > { %9438 = vmatpush3.bf16.msra.mxu1 %v11418_v32  ;;  %9401 = vmatprep.mubr.msk.bf16.mxu1 %vm3096_vm8, %v11402_v11  ;;  %v11620_v32 = vld [vmem:[%s14073_s4] ss:$0 sm:$0xff] }
 0x31a   : > { %9439 = vmatprep.subr.bf16.mxu1 %v10005_v38 }
 0x31d   : > { %9440 = vmatpush3.bf16.msra.mxu1 %v10005_v38 }
 0x31e   : > { %9441 = vmatprep.subr.bf16.mxu1 %v10006_v18 }
 0x320   : > { %9402 = vmatmul.mubr.msk.bf16.gmra.mrb[4].mxu1 %vm3096_vm8, %v11405_v41 }
 0x321   : > { %9405 = vmatprep.mubr.msk.bf16.mxu1 %vm3096_vm8, %v11425_v22  ;;  %9442 = vmatpush3.bf16.msra.mxu1 %v10006_v18 }
 0x328   : > { %9406 = vmatmul.mubr.msk.bf16.gmra.mrb[8].mxu1 %vm3096_vm8, %v11429_v46 }
 0x329   : > { %9409 = vmatprep.mubr.msk.bf16.mxu1 %vm3096_vm8, %v11440_v12 }
 0x330   : > { %9410 = vmatmul.mubr.msk.bf16.gmra.mrb[12].mxu1 %vm3096_vm8, %v11443_v31 }
 0x331   : > { %9413 = vmatprep.mubr.msk.bf16.mxu1 %vm3096_vm8, %v11454_v49 }
 0x338   : > { %9414 = vmatmul.mubr.msk.bf16.gmra.mrb[16].mxu1 %vm3096_vm8, %v11457_v1 }
 0x339   : > { %9417 = vmatprep.mubr.msk.bf16.mxu1 %vm3096_vm8, %v11468_v10 }
 0x340   : > { %9418 = vmatmul.mubr.msk.bf16.gmra.mrb[20].mxu1 %vm3096_vm8, %v11471_v27 }
 0x341   : > { %9421 = vmatprep.mubr.msk.bf16.mxu1 %vm3096_vm8, %v11482_v3 }
 0x348   : > { %9422 = vmatmul.mubr.msk.bf16.gmra.mrb[24].mxu1 %vm3096_vm8, %v11485_v44 }
 0x349   : > { %9425 = vmatprep.mubr.msk.bf16.mxu1 %vm3096_vm8, %v11496_v62 }
 0x350   : > { %9426 = vmatmul.mubr.msk.bf16.gmra.mrb[28].mxu1 %vm3096_vm8, %v11499_v51 }
 0x351   : > { %9429 = vmatprep.mubr.msk.bf16.mxu1 %vm3096_vm8, %v11510_v16 }
 0x358   : > { %9430 = vmatmul.mubr.msk.bf16.gmra.mrb[32].mxu1 %vm3096_vm8, %v11513_v24 }
 0x359   : > { %9433 = vmatprep.mubr.msk.bf16.mxu1 %vm3096_vm8, %v3037_v37 }
 0x360   : > { %9434 = vmatmul.mubr.msk.bf16.gmra.mrb[36].mxu1 %vm3096_vm8, %v3039_v35 }
 0x361   : > { %9443 = vmatprep.mubr.msk.bf16.mxu1 %vm3096_vm8, %v11402_v11  ;;  %v3565_v11 = vsel %vm1127_vm4, %v11325_v61, %v3556_v20 }
 0x368   : > { %9444 = vmatmul.mubr.msk.bf16.vlgmr.msra.gmra.mrb[0].mxu1 %vm3096_vm8, %v11405_v41  ;;  %v3567_v41 = vsel %vm2999_vm7, %v3565_v11, %v3563_v56 }
 0x369   : > { %9447 = vmatprep.mubr.msk.bf16.mxu1 %vm3096_vm8, %v11425_v22 }
 0x370   : > { %9448 = vmatmul.mubr.msk.bf16.gmra.mrb[4].mxu1 %vm3096_vm8, %v11429_v46 }
 0x371   : > { %9451 = vmatprep.mubr.msk.bf16.mxu1 %vm3096_vm8, %v11440_v12 }
 0x378   : > { %9452 = vmatmul.mubr.msk.bf16.gmra.mrb[8].mxu1 %vm3096_vm8, %v11443_v31 }
 0x379   : > { %9455 = vmatprep.mubr.msk.bf16.mxu1 %vm3096_vm8, %v11454_v49 }
 0x380   : > { %9456 = vmatmul.mubr.msk.bf16.gmra.mrb[12].mxu1 %vm3096_vm8, %v11457_v1 }
 0x381   : > { %9459 = vmatprep.mubr.msk.bf16.mxu1 %vm3096_vm8, %v11468_v10 }
 0x388   : > { %9460 = vmatmul.mubr.msk.bf16.gmra.mrb[16].mxu1 %vm3096_vm8, %v11471_v27 }
 0x389   : > { %9463 = vmatprep.mubr.msk.bf16.mxu1 %vm3096_vm8, %v11482_v3 }
 0x390   : > { %9464 = vmatmul.mubr.msk.bf16.gmra.mrb[20].mxu1 %vm3096_vm8, %v11485_v44 }
 0x391   : > { %9467 = vmatprep.mubr.msk.bf16.mxu1 %vm3096_vm8, %v11496_v62 }
 0x398   : > { %9468 = vmatmul.mubr.msk.bf16.gmra.mrb[24].mxu1 %vm3096_vm8, %v11499_v51 }
 0x399   : > { %9471 = vmatprep.mubr.msk.bf16.mxu1 %vm3096_vm8, %v11510_v16 }
 0x3a0   : > { %9472 = vmatmul.mubr.msk.bf16.gmra.mrb[28].mxu1 %vm3096_vm8, %v11513_v24 }
 0x3a1   : > { %9475 = vmatprep.mubr.msk.bf16.mxu1 %vm3096_vm8, %v3037_v37 }
 0x3a8   : > { %9476 = vmatmul.mubr.msk.bf16.gmra.mrb[32].mxu1 %vm3096_vm8, %v3039_v35 }
 0x3a9   : > { %9479 = vmatprep.mubr.msk.bf16.mxu1 %vm3096_vm8, %v3070_v4 }
 0x3b0   : > { %9480 = vmatmul.mubr.msk.bf16.gmra.mrb[36].mxu1 %vm3096_vm8, %v3567_v41 }
 0x43b   : > { %v9445_v22 = vpop.f32.mrb[0].mxu1 }
 0x43c   : > { %v3837_v46 = vadd.f32 %v9445_v22, %v11620_v32  ;;  %v3629_v12 = vpop.f32.mrb[1].mxu1 }
 0x43d   : > { %v3835_v31 = vadd.f32 %v11620_v32, %v3629_v12  ;;  %v9446_v49 = vpop.f32.mrb[2].mxu1 }
 0x43e   : > { %v3877_v1 = vmax.f32 %v3837_v46, 0.0  ;;  %v3838_v10 = vadd.f32 %v9446_v49, %v11620_v32  ;;  %v3632_v61 = vpop.f32.mrb[3].mxu1 }
 0x43f   : > { %v3875_v27 = vmax.f32 %v3835_v31, 0.0  ;;  %v3836_v3 = vadd.f32 %v11620_v32, %v3632_v61 }
 0x440   : > { %v3878_v44 = vmax.f32 %v3838_v10, 0.0  ;;  %v4038_v48 = vmul.f32 0.0, %v3877_v1 }
 0x441   : > { %v3876_v63 = vmax.f32 %v3836_v3, 0.0  ;;  %v11626_v34 = vmul.f32 0.0, %v3875_v27 }
 0x442   : > { %v4039_v6 = vmul.f32 0.0, %v3878_v44 }
 0x443   : > { %v11628_v39 = vmul.f32 0.0, %v3876_v63  ;;  %v9449_v62 = vpop.f32.mrb[4].mxu1 }
 0x444   : > { %v9914_v51 = vpack.i.bf16 %v4039_v6, %v4038_v48  ;;  %v3645_v43 = vpop.f32.mrb[5].mxu1  ;;  %v3841_v28 = vadd.f32 %v9449_v62, %v11620_v32 }
 0x445   : > { %v9924_v23 = vpack.i.bf16 %v11628_v39, %v11626_v34  ;;  %v3839_v59 = vadd.f32 %v11620_v32, %v3645_v43  ;;  %v9450_v17 = vpop.f32.mrb[6].mxu1  ;;  %v10012_v34 = vld [vmem:[%s14074_s5 + $0x60] sm:$0xff]   ;;  %v10013_v39 = vld [vmem:[%s14074_s5 + $0x68] sm:$0xff]  }
 0x446   : > { %9915 = vrot.lane.b32.xlu0 %v9914_v51, %s10082_s25  ;;  %v3648_v57 = vpop.f32.mrb[7].mxu1  ;;  %v3842_v29 = vadd.f32 %v9450_v17, %v11620_v32  ;;  %v3881_v26 = vmax.f32 %v3841_v28, 0.0  ;;  %9579 = vmatprep.subr.bf16.mxu0 %v10012_v34 }
 0x447   : > { %v3879_v16 = vmax.f32 %v3839_v59, 0.0  ;;  %v3840_v24 = vadd.f32 %v11620_v32, %v3648_v57  ;;  %9580 = vmatpush3.bf16.msra.mxu0 %v10012_v34  ;;  %v14237_v34 = vmax.f32 %v10844_v47, 0.0 }
 0x448   : > { %v3882_v60 = vmax.f32 %v3842_v29, 0.0  ;;  %9581 = vmatprep.subr.bf16.mxu0 %v10013_v39 }
 0x449   : > { %v3880_v25 = vmax.f32 %v3840_v24, 0.0  ;;  %4124 = vrot.lane.b32.xlu1 %v3879_v16, %s10082_s25 }
 0x44b   : > { %4126 = vrot.lane.b32.xlu0 %v3880_v25, %s10082_s25  ;;  %v9453_v0 = vpop.f32.mrb[8].mxu1  ;;  %9582 = vmatpush3.bf16.msra.mxu0 %v10013_v39 }
 0x44c   : > { %v3661_v37 = vpop.f32.mrb[9].mxu1  ;;  %v3845_v36 = vadd.f32 %v9453_v0, %v11620_v32 }
 0x44d   : > { %v3843_v7 = vadd.f32 %v11620_v32, %v3661_v37  ;;  %4128 = vrot.lane.b32.xlu1 %v3881_v26, %s10082_s25  ;;  %v9454_v52 = vpop.f32.mrb[10].mxu1 }
 0x44e   : > { %v3664_v35 = vpop.f32.mrb[11].mxu1  ;;  %v3846_v8 = vadd.f32 %v9454_v52, %v11620_v32  ;;  %v3885_v55 = vmax.f32 %v3845_v36, 0.0 }
 0x44f   : > { %v3883_v53 = vmax.f32 %v3843_v7, 0.0  ;;  %v3844_v4 = vadd.f32 %v11620_v32, %v3664_v35  ;;  %4130 = vrot.lane.b32.xlu0 %v3882_v60, %s10082_s25 }
 0x450   : > { %v3886_v18 = vmax.f32 %v3846_v8, 0.0 }
 0x451   : > { %v3884_v5 = vmax.f32 %v3844_v4, 0.0  ;;  %4132 = vrot.lane.b32.xlu1 %v3883_v53, %s10082_s25 }
 0x453   : > { %4134 = vrot.lane.b32.xlu0 %v3884_v5, %s10082_s25  ;;  %v9457_v33 = vpop.f32.mrb[12].mxu1 }
 0x454   : > { %v3677_v38 = vpop.f32.mrb[13].mxu1  ;;  %v3849_v41 = vadd.f32 %v9457_v33, %v11620_v32 }
 0x455   : > { %v3847_v20 = vadd.f32 %v11620_v32, %v3677_v38  ;;  %4136 = vrot.lane.b32.xlu1 %v3885_v55, %s10082_s25  ;;  %v9458_v56 = vpop.f32.mrb[14].mxu1 }
 0x456   : > { %v3680_v11 = vpop.f32.mrb[15].mxu1  ;;  %v3850_v12 = vadd.f32 %v9458_v56, %v11620_v32  ;;  %v3889_v49 = vmax.f32 %v3849_v41, 0.0 }
 0x457   : > { %v3887_v22 = vmax.f32 %v3847_v20, 0.0  ;;  %v3848_v46 = vadd.f32 %v11620_v32, %v3680_v11  ;;  %4138 = vrot.lane.b32.xlu0 %v3886_v18, %s10082_s25 }
 0x458   : > { %v3890_v61 = vmax.f32 %v3850_v12, 0.0 }
 0x459   : > { %v3888_v31 = vmax.f32 %v3848_v46, 0.0  ;;  %4140 = vrot.lane.b32.xlu1 %v3887_v22, %s10082_s25 }
 0x45b   : > { %4142 = vrot.lane.b32.xlu0 %v3888_v31, %s10082_s25  ;;  %v9461_v1 = vpop.f32.mrb[16].mxu1 }
 0x45c   : > { %v3693_v10 = vpop.f32.mrb[17].mxu1  ;;  %v3853_v63 = vadd.f32 %v9461_v1, %v11620_v32 }
 0x45d   : > { %v3851_v27 = vadd.f32 %v11620_v32, %v3693_v10  ;;  %4144 = vrot.lane.b32.xlu1 %v3889_v49, %s10082_s25  ;;  %v9462_v3 = vpop.f32.mrb[18].mxu1 }
 0x45e   : > { %v3696_v44 = vpop.f32.mrb[19].mxu1  ;;  %v3854_v62 = vadd.f32 %v9462_v3, %v11620_v32  ;;  %v3893_v43 = vmax.f32 %v3853_v63, 0.0 }
 0x45f   : > { %v3891_v48 = vmax.f32 %v3851_v27, 0.0  ;;  %v3852_v6 = vadd.f32 %v11620_v32, %v3696_v44  ;;  %4146 = vrot.lane.b32.xlu0 %v3890_v61, %s10082_s25 }
 0x460   : > { %v3894_v57 = vmax.f32 %v3854_v62, 0.0 }
 0x461   : > { %v3892_v51 = vmax.f32 %v3852_v6, 0.0  ;;  %4148 = vrot.lane.b32.xlu1 %v3891_v48, %s10082_s25 }
 0x463   : > { %4150 = vrot.lane.b32.xlu0 %v3892_v51, %s10082_s25  ;;  %v9465_v59 = vpop.f32.mrb[20].mxu1 }
 0x464   : > { %v3709_v17 = vpop.f32.mrb[21].mxu1  ;;  %v3857_v29 = vadd.f32 %v9465_v59, %v11620_v32 }
 0x465   : > { %v3855_v28 = vadd.f32 %v11620_v32, %v3709_v17  ;;  %4152 = vrot.lane.b32.xlu1 %v3893_v43, %s10082_s25  ;;  %v9466_v16 = vpop.f32.mrb[22].mxu1 }
 0x466   : > { %v3712_v24 = vpop.f32.mrb[23].mxu1  ;;  %v3858_v0 = vadd.f32 %v9466_v16, %v11620_v32  ;;  %v3897_v60 = vmax.f32 %v3857_v29, 0.0  ;;  %v10007_v16 = vld [vmem:[%s14074_s5 + $0x30] sm:$0xff]  }
 0x467   : > { %v3895_v25 = vmax.f32 %v3855_v28, 0.0  ;;  %v3856_v26 = vadd.f32 %v11620_v32, %v3712_v24  ;;  %4154 = vrot.lane.b32.xlu0 %v3894_v57, %s10082_s25  ;;  %9483 = vmatprep.subr.bf16.mxu1 %v10007_v16 }
 0x468   : > { %v3898_v35 = vmax.f32 %v3858_v0, 0.0  ;;  %9484 = vmatpush3.bf16.msra.mxu1 %v10007_v16 }
 0x469   : > { %v3896_v37 = vmax.f32 %v3856_v26, 0.0  ;;  %4156 = vrot.lane.b32.xlu1 %v3895_v25, %s10082_s25 }
 0x46b   : > { %4158 = vrot.lane.b32.xlu0 %v3896_v37, %s10082_s25  ;;  %v9469_v7 = vpop.f32.mrb[24].mxu1 }
 0x46c   : > { %v3725_v52 = vpop.f32.mrb[25].mxu1  ;;  %v3861_v8 = vadd.f32 %v9469_v7, %v11620_v32 }
 0x46d   : > { %v3859_v36 = vadd.f32 %v11620_v32, %v3725_v52  ;;  %4160 = vrot.lane.b32.xlu1 %v3897_v60, %s10082_s25  ;;  %v9470_v53 = vpop.f32.mrb[26].mxu1 }
 0x46e   : > { %v3728_v4 = vpop.f32.mrb[27].mxu1  ;;  %v3862_v33 = vadd.f32 %v9470_v53, %v11620_v32  ;;  %v3901_v18 = vmax.f32 %v3861_v8, 0.0 }
 0x46f   : > { %v3899_v5 = vmax.f32 %v3859_v36, 0.0  ;;  %v3860_v55 = vadd.f32 %v11620_v32, %v3728_v4  ;;  %4162 = vrot.lane.b32.xlu0 %v3898_v35, %s10082_s25 }
 0x470   : > { %v3902_v11 = vmax.f32 %v3862_v33, 0.0 }
 0x471   : > { %v3900_v38 = vmax.f32 %v3860_v55, 0.0  ;;  %4164 = vrot.lane.b32.xlu1 %v3899_v5, %s10082_s25 }
 0x473   : > { %4166 = vrot.lane.b32.xlu0 %v3900_v38, %s10082_s25  ;;  %v9473_v20 = vpop.f32.mrb[28].mxu1 }
 0x474   : > { %v3741_v56 = vpop.f32.mrb[29].mxu1  ;;  %v3865_v12 = vadd.f32 %v9473_v20, %v11620_v32  ;;  %v10010_v20 = vld [vmem:[%s14074_s5 + $0x48] sm:$0xff]  }
 0x475   : > { %v3863_v41 = vadd.f32 %v11620_v32, %v3741_v56  ;;  %4168 = vrot.lane.b32.xlu1 %v3901_v18, %s10082_s25  ;;  %v9474_v22 = vpop.f32.mrb[30].mxu1  ;;  %v10009_v18 = vld [vmem:[%s14074_s5 + $0x40] sm:$0xff]   ;;  %v10011_v56 = vld [vmem:[%s14074_s5 + $0x50] sm:$0xff]  }
 0x476   : > { %v3744_v46 = vpop.f32.mrb[31].mxu1  ;;  %v3866_v1 = vadd.f32 %v9474_v22, %v11620_v32  ;;  %v3905_v61 = vmax.f32 %v3865_v12, 0.0 }
 0x477   : > { %v3903_v31 = vmax.f32 %v3863_v41, 0.0  ;;  %v3864_v49 = vadd.f32 %v11620_v32, %v3744_v46  ;;  %4170 = vrot.lane.b32.xlu0 %v3902_v11, %s10082_s25  ;;  %v10015_v11 = vld [vmem:[%s14074_s5 + $0x58] sm:$0xff]  }
 0x478   : > { %v3906_v44 = vmax.f32 %v3866_v1, 0.0 }
 0x479   : > { %v3904_v10 = vmax.f32 %v3864_v49, 0.0  ;;  %4172 = vrot.lane.b32.xlu1 %v3903_v31, %s10082_s25 }
 0x47b   : > { %4174 = vrot.lane.b32.xlu0 %v3904_v10, %s10082_s25  ;;  %v9477_v27 = vpop.f32.mrb[32].mxu1 }
 0x47c   : > { %v3757_v3 = vpop.f32.mrb[33].mxu1  ;;  %v3869_v62 = vadd.f32 %v9477_v27, %v11620_v32 }
 0x47d   : > { %v3867_v63 = vadd.f32 %v11620_v32, %v3757_v3  ;;  %4176 = vrot.lane.b32.xlu1 %v3905_v61, %s10082_s25  ;;  %v9478_v48 = vpop.f32.mrb[34].mxu1  ;;  %v14232_v61 = vmax.f32 %v10790_v58, 0.0 }
 0x47e   : > { %v3760_v6 = vpop.f32.mrb[35].mxu1  ;;  %v3870_v59 = vadd.f32 %v9478_v48, %v11620_v32  ;;  %v3909_v57 = vmax.f32 %v3869_v62, 0.0 }
 0x47f   : > { %v3907_v51 = vmax.f32 %v3867_v63, 0.0  ;;  %v3868_v43 = vadd.f32 %v11620_v32, %v3760_v6  ;;  %4178 = vrot.lane.b32.xlu0 %v3906_v44, %s10082_s25  ;;  %v14233_v63 = vmax.f32 %v10799_v15, 0.0 }
 0x480   : > { %v3910_v25 = vmax.f32 %v3870_v59, 0.0 }
 0x481   : > { %v3908_v17 = vmax.f32 %v3868_v43, 0.0  ;;  %4180 = vrot.lane.b32.xlu1 %v3907_v51, %s10082_s25  ;;  %v10016_v43 = vld [vmem:[%s14074_s5 + $0x78] sm:$0xff]  }
 0x483   : > { %4182 = vrot.lane.b32.xlu0 %v3908_v17, %s10082_s25  ;;  %v9481_v28 = vpop.f32.mrb[36].mxu1  ;;  %v14234_v17 = vmax.f32 %v10835_v14, 0.0 }
 0x484   : > { %v3873_v24 = vadd.f32 %v9481_v28, %v11620_v32  ;;  %v3773_v29 = vpop.f32.mrb[37].mxu1 }
 0x485   : > { %v3871_v26 = vadd.f32 %v11620_v32, %v3773_v29  ;;  %4184 = vrot.lane.b32.xlu1 %v3909_v57, %s10082_s25  ;;  %v9482_v0 = vpop.f32.mrb[38].mxu1  ;;  %v14235_v29 = vmax.f32 %v10847_v40, 0.0 }
 0x486   : > { %v3913_v37 = vmax.f32 %v3873_v24, 0.0  ;;  %v3874_v60 = vadd.f32 %v9482_v0, %v11620_v32  ;;  %v3776_v7 = vpop.f32.mrb[39].mxu1 }
 0x487   : > { %v3911_v52 = vmax.f32 %v3871_v26, 0.0  ;;  %v3872_v35 = vadd.f32 %v11620_v32, %v3776_v7  ;;  %4186 = vrot.lane.b32.xlu0 %v3910_v25, %s10082_s25  ;;  %v10008_v32 = vld [vmem:[%s14074_s5 + $0x38] sm:$0xff]  }
 0x488   : > { %v3914_v36 = vmax.f32 %v3874_v60, 0.0  ;;  %v11704_v4 = vmul.f32 0.0, %v3913_v37  ;;  %9485 = vmatprep.subr.bf16.mxu1 %v10008_v32 }
 0x489   : > { %v3912_v53 = vmax.f32 %v3872_v35, 0.0  ;;  %v4072_v5 = vmul.f32 0.0, %v3911_v52  ;;  %9486 = vmatpush3.bf16.msra.mxu1 %v10008_v32 }
 0x48a   : > { %v11706_v8 = vmul.f32 0.0, %v3914_v36  ;;  %9487 = vmatprep.subr.bf16.mxu1 %v10009_v18 }
 0x48b   : > { %v4073_v55 = vmul.f32 0.0, %v3912_v53 }
 0x48d   : > { %v9919_v38 = vpack.i.bf16 %v4073_v55, %v4072_v5  ;;  %9488 = vmatpush3.bf16.msra.mxu1 %v10009_v18  ;;  %v14236_v5 = vmax.f32 %v10828_v9, 0.0  ;;  %v10017_v18 = vld [vmem:[%s14074_s5 + $0x80] sm:$0xff]  }
 0x48e   : > { %9489 = vmatprep.subr.bf16.mxu1 %v10010_v20 }
 0x48f   : > { %9920 = vrot.lane.b32.xlu1 %v9919_v38, %s10082_s25 }
 0x491   : > { %9490 = vmatpush3.bf16.msra.mxu1 %v10010_v20 }
 0x492   : > { %9491 = vmatprep.subr.bf16.mxu1 %v10011_v56 }
 0x493   : > { %9925 = vrot.lane.b32.xlu1 %v9924_v23, %s10082_s25  ;;  %v10014_v23 = vld [vmem:[%s14074_s5 + $0x70] sm:$0xff]  }
 0x494   : > { %9583 = vmatprep.subr.bf16.mxu0 %v10014_v23 }
 0x495   : > { %9492 = vmatpush3.bf16.msra.mxu1 %v10011_v56  ;;  %9584 = vmatpush3.bf16.msra.mxu0 %v10014_v23 }
 0x496   : > { %9493 = vmatprep.subr.bf16.mxu1 %v10015_v11  ;;  %9585 = vmatprep.subr.bf16.mxu0 %v10016_v43 }
 0x499   : > { %9494 = vmatpush3.bf16.msra.mxu1 %v10015_v11  ;;  %9586 = vmatpush3.bf16.msra.mxu0 %v10016_v43  ;;  %v10018_v43 = vld [vmem:[%s14074_s5 + $0x88] sm:$0xff]  }
 0x49a   : > { %9587 = vmatprep.subr.bf16.mxu0 %v10017_v18 }
 0x49d   : > { %9588 = vmatpush3.bf16.msra.mxu0 %v10017_v18 }
 0x49e   : > { %9589 = vmatprep.subr.bf16.mxu0 %v10018_v43 }
 0x4a1   : > { %9590 = vmatpush3.bf16.msra.mxu0 %v10018_v43 }
 0x4b8   : > { %v9916_v41 = vpop.permute.xlu0 %9915 }
 0x4b9   : > { %v9918_v22 = vunpack.i.h.bf16 %v9916_v41  ;;  %v9917_v46 = vunpack.i.l.bf16 %v9916_v41 }
 0x4bb   : > { %v11741_v12 = vsel %vm1127_vm4, %v10832_v13, %v9918_v22  ;;  %v11745_v31 = vsel %vm1127_vm4, %v10817_v30, %v9917_v46  ;;  %v4125_v49 = vpop.permute.xlu1 %4124 }
 0x4bc   : > { %14230 = vst [vmem:[#allocation27_spill] sm:$0xff] %v11741_v12  ;;  %14231 = vst [vmem:[#allocation28_spill] sm:$0xff] %v11745_v31  ;;  %v4320_v1 = vrot.slane %v11741_v12, 7  ;;  %v4319_v10 = vrot.slane %v11745_v31, 7  ;;  %v11752_v27 = vsel %vm1127_vm4, %v14232_v61, %v4125_v49  ;;  %v14272_v12 = vld [vmem:[#allocation14_spill] sm:$0xff] }
 0x4bd   : > { %v4127_v3 = vpop.permute.xlu0 %4126  ;;  %v4322_v59 = vrot.slane %v11752_v27, 7 }
 0x4be   : > { %v4321_v44 = vsel %vm2318_vm6, %v4319_v10, %v4320_v1  ;;  %v4437_v13 = vsel %vm2318_vm6, 0.0, %v4319_v10  ;;  %v11759_v30 = vsel %vm1127_vm4, %v14233_v63, %v4127_v3  ;;  %v4457_v48 = vsel %vm2318_vm6, %v4320_v1, 0.0 }
 0x4bf   : > { %v11762_v6 = vpack.c.bf16 %v4321_v44, %v4437_v13  ;;  %v4323_v62 = vrot.slane %v11759_v30, 7  ;;  %v4129_v58 = vpop.permute.xlu1 %4128  ;;  %v4479_v51 = vpack.c.bf16 %v4457_v48, %v4457_v48  ;;  %v4438_v52 = vsel %vm2318_vm6, 0.0, %v4322_v59 }
 0x4c0   : > { %v11772_v15 = vsel %vm1127_vm4, %v14234_v17, %v4129_v58  ;;  %v14238_v10 = vmax.f32 %v10881_v54, 0.0 }
 0x4c1   : > { %v4458_v57 = vsel %vm2318_vm6, %v4323_v62, 0.0  ;;  %v4131_v28 = vpop.permute.xlu0 %4130  ;;  %v4807_v16 = vrot.slane %v11762_v6, 1  ;;  %v4808_v26 = vrot.slane %v4479_v51, 1  ;;  %v4324_v14 = vsel %vm2318_vm6, %v4322_v59, %v4323_v62  ;;  %v11837_v59 = vld [vmem:[%s14074_s5] sm:$0xff]  }
 0x4c2   : > { %v11776_v24 = vpack.c.bf16 %v4458_v57, %v4458_v57  ;;  %v11781_v25 = vsel %vm1127_vm4, %v14235_v29, %v4131_v28  ;;  %v4325_v0 = vrot.slane %v11772_v15, 7  ;;  %v4531_v7 = vshll.u32 %v11762_v6, 16  ;;  %9531 = vmatprep.subr.bf16.mxu1 %v11837_v59 }
 0x4c3   : > { %v4326_v37 = vrot.slane %v11781_v25, 7  ;;  %v4133_v60 = vpop.permute.xlu1 %4132  ;;  %v4809_v35 = vsel %vm971_vm0, %v4807_v16, %v4808_v26  ;;  %v4529_v40 = vshrl.u32 %v11762_v6, 16  ;;  %v11801_v20 = vpack.c.bf16 %v4324_v14, %v4438_v52  ;;  %v14240_v14 = vld [vmem:[#allocation4_spill] sm:$0xff] }
 0x4c4   : > { %v4548_v36 = vshll.u32 %v11776_v24, 16  ;;  %v11795_v55 = vsel %vm1127_vm4, %v14236_v5, %v4133_v60  ;;  %4860 = vrot.lane.b32.xlu1 %v4809_v35, %s10085_s19  ;;  %v4533_v32 = vrot.slane %v4531_v7, 1  ;;  %v4439_v39 = vsel %vm2318_vm6, 0.0, %v4325_v0 }
 0x4c5   : > { %v4459_v53 = vsel %vm2318_vm6, %v4326_v37, 0.0  ;;  %v4135_v38 = vpop.permute.xlu0 %4134  ;;  %v4536_v22 = vshll.u32 %v4479_v51, 16  ;;  %v4811_v46 = vrot.slane %v11776_v24, 1  ;;  %v4327_v49 = vsel %vm2318_vm6, %v4325_v0, %v4326_v37 }
 0x4c6   : > { %v11803_v56 = vpack.c.bf16 %v4459_v53, %v4459_v53  ;;  %v11808_v9 = vsel %vm1127_vm4, %v14237_v34, %v4135_v38  ;;  %v4534_v41 = vor.u32 %v4533_v32, %v4529_v40  ;;  %v4328_v1 = vrot.slane %v11795_v55, 7  ;;  %v14242_v32 = vld [vmem:[#allocation5_spill] sm:$0xff] }
 0x4c7   : > { %v4329_v23 = vrot.slane %v11808_v9, 7  ;;  %v4137_v11 = vpop.permute.xlu1 %4136  ;;  %v4550_v61 = vrot.slane %v4548_v36, 1  ;;  %v4538_v13 = vrot.slane %v4536_v22, 1  ;;  %v14239_v51 = vmax.f32 %v10900_v2, 0.0 }
 0x4c8   : > { %v11818_v47 = vsel %vm1127_vm4, %v14238_v10, %v4137_v11  ;;  %v4560_v3 = vshll.u32 %v11803_v56, 16  ;;  %v11839_v17 = vpack.c.bf16 %v4327_v49, %v4439_v39  ;;  %v4543_v2 = vshll.u32 %v11801_v20, 16  ;;  %v14244_v10 = vld [vmem:[#allocation7_spill] sm:$0xff] }
 0x4c9   : > { %v4460_v44 = vsel %vm2318_vm6, %v4329_v23, 0.0  ;;  %v4139_v63 = vpop.permute.xlu0 %4138  ;;  %v4330_v48 = vsel %vm2318_vm6, %v4328_v1, %v4329_v23  ;;  %v4331_v58 = vrot.slane %v11818_v47, 7  ;;  %v4539_v57 = vsel %vm662_vm2, %v4534_v41, %v4538_v13 }
 0x4ca   : > { %v11823_v62 = vpack.c.bf16 %v4460_v44, %v4460_v44  ;;  %v11829_v54 = vsel %vm1127_vm4, %v14239_v51, %v4139_v63  ;;  %v4814_v29 = vrot.slane %v11803_v56, 1  ;;  %v4440_v26 = vsel %vm2318_vm6, 0.0, %v4328_v1  ;;  %4734 = vrot.lane.b32.xlu0 %v4539_v57, %s10084_s28 }
 0x4cb   : > { %v4332_v28 = vrot.slane %v11829_v54, 7  ;;  %v4141_v16 = vpop.permute.xlu1 %4140  ;;  %v14241_v0 = vmax.f32 %v14240_v14, 0.0  ;;  %v4541_v60 = vshrl.u32 %v11801_v20, 16  ;;  %v4562_v7 = vrot.slane %v4560_v3, 1 }
 0x4cc   : > { %v11853_v52 = vpack.c.bf16 %v4330_v48, %v4440_v26  ;;  %v4545_v40 = vrot.slane %v4543_v2, 1  ;;  %v4572_v53 = vshll.u32 %v11823_v62, 16  ;;  %v4441_v5 = vsel %vm2318_vm6, 0.0, %v4331_v58 }
 0x4cd   : > { %v11850_v37 = vsel %vm1127_vm4, %v14241_v0, %v4141_v16  ;;  %v4461_v35 = vsel %vm2318_vm6, %v4332_v28, 0.0  ;;  %v4143_v36 = vpop.permute.xlu0 %4142  ;;  %v14243_v18 = vmax.f32 %v14242_v32, 0.0  ;;  %v4555_v22 = vshll.u32 %v11839_v17, 16 }
 0x4ce   : > { %v11859_v38 = vpack.c.bf16 %v4461_v35, %v4461_v35  ;;  %v4334_v39 = vrot.slane %v11850_v37, 7  ;;  %v4546_v23 = vor.u32 %v4545_v40, %v4541_v60  ;;  %v4817_v49 = vrot.slane %v11823_v62, 1 }
 0x4cf   : > { %v11864_v34 = vsel %vm1127_vm4, %v14243_v18, %v4143_v36  ;;  %v4145_v41 = vpop.permute.xlu1 %4144  ;;  %v4333_v1 = vsel %vm2318_vm6, %v4331_v58, %v4332_v28  ;;  %v14245_v3 = vmax.f32 %v14244_v10, 0.0  ;;  %v4553_v13 = vshrl.u32 %v11839_v17, 16 }
 0x4d0   : > { %v4335_v11 = vrot.slane %v11864_v34, 7  ;;  %v4584_v63 = vshll.u32 %v11859_v38, 16  ;;  %v4551_v48 = vsel %vm662_vm2, %v4546_v23, %v4550_v61  ;;  %v4810_v43 = vrot.slane %v11801_v20, 1  ;;  %v14246_v61 = vld [vmem:[#allocation9_spill] sm:$0xff] }
 0x4d1   : > { %v11874_v44 = vsel %vm1127_vm4, %v14245_v3, %v4145_v41  ;;  %v4147_v57 = vpop.permute.xlu0 %4146  ;;  %v4574_v16 = vrot.slane %v4572_v53, 1  ;;  %4736 = vrot.lane.b32.xlu0 %v4551_v48, %s10084_s28  ;;  %v4557_v2 = vrot.slane %v4555_v22, 1  ;;  %v11884_v26 = vpack.c.bf16 %v4333_v1, %v4441_v5  ;;  %v14248_v3 = vld [vmem:[#allocation6_spill] sm:$0xff] }
 0x4d2   : > { %v4462_v51 = vsel %vm2318_vm6, %v4335_v11, 0.0  ;;  %v4336_v58 = vsel %vm2318_vm6, %v4334_v39, %v4335_v11  ;;  %v4337_v28 = vrot.slane %v11874_v44, 7  ;;  %v4442_v14 = vsel %vm2318_vm6, 0.0, %v4334_v39 }
 0x4d3   : > { %v11887_v0 = vpack.c.bf16 %v4462_v51, %v4462_v51  ;;  %v14247_v60 = vmax.f32 %v14246_v61, 0.0  ;;  %v4149_v40 = vpop.permute.xlu1 %4148  ;;  %v4820_v36 = vrot.slane %v11859_v38, 1  ;;  %v4558_v53 = vor.u32 %v4557_v2, %v4553_v13 }
 0x4d4   : > { %v4813_v18 = vrot.slane %v11839_v17, 1  ;;  %v4586_v23 = vrot.slane %v4584_v63, 1  ;;  %v11897_v5 = vpack.c.bf16 %v4336_v58, %v4442_v14  ;;  %v4812_v39 = vsel %vm971_vm0, %v4810_v43, %v4811_v46  ;;  %v14251_v58 = vld [vmem:[#allocation8_spill] sm:$0xff] }
 0x4d5   : > { %v11892_v35 = vsel %vm1127_vm4, %v14247_v60, %v4147_v57  ;;  %v4567_v11 = vshll.u32 %v11853_v52, 16  ;;  %v4151_v41 = vpop.permute.xlu0 %4150  ;;  %v4443_v22 = vsel %vm2318_vm6, 0.0, %v4337_v28  ;;  %v4563_v1 = vsel %vm662_vm2, %v4558_v53, %v4562_v7  ;;  %4862 = vrot.lane.b32.xlu0 %v4812_v39, %s10085_s19  ;;  %v14254_v39 = vld [vmem:[#allocation11_spill] sm:$0xff] }
 0x4d6   : > { %v4338_v32 = vrot.slane %v11892_v35, 7  ;;  %v14249_v13 = vmax.f32 %v14248_v3, 0.0  ;;  %v4596_v24 = vshll.u32 %v11887_v0, 16  ;;  %4738 = vrot.lane.b32.xlu1 %v4563_v1, %s10084_s28  ;;  %v4565_v48 = vshrl.u32 %v11853_v52, 16 }
 0x4d7   : > { %v4569_v51 = vrot.slane %v4567_v11, 1  ;;  %v4153_v43 = vpop.permute.xlu1 %4152  ;;  %v4815_v57 = vsel %vm971_vm0, %v4813_v18, %v4814_v29  ;;  %v14252_v2 = vmax.f32 %v14251_v58, 0.0  ;;  %v4579_v61 = vshll.u32 %v11884_v26, 16 }
 0x4d8   : > { %v4463_v10 = vsel %vm2318_vm6, %v4338_v32, 0.0  ;;  %v11910_v63 = vsel %vm1127_vm4, %v14249_v13, %v4149_v40  ;;  %v4339_v60 = vsel %vm2318_vm6, %v4337_v28, %v4338_v32  ;;  %v14255_v11 = vmax.f32 %v14254_v39, 0.0  ;;  %v14257_v13 = vld [vmem:[#allocation13_spill] sm:$0xff] }
 0x4d9   : > { %14250 = vst [vmem:[#allocation4_spill] sm:$0xff] %v11910_v63  ;;  %v11914_v46 = vpack.c.bf16 %v4463_v10, %v4463_v10  ;;  %v11924_v14 = vsel %vm1127_vm4, %v14252_v2, %v4151_v41  ;;  %v4340_v40 = vrot.slane %v11910_v63, 7  ;;  %v4570_v53 = vor.u32 %v4569_v51, %v4565_v48  ;;  %v4155_v56 = vpop.permute.xlu0 %4154 }
 0x4da   : > { %14253 = vst [vmem:[#allocation5_spill] sm:$0xff] %v11924_v14  ;;  %v11932_v1 = vsel %vm1127_vm4, %v14255_v11, %v4153_v43  ;;  %v4341_v18 = vrot.slane %v11924_v14, 7  ;;  %v4577_v41 = vshrl.u32 %v11884_v26, 16  ;;  %v4581_v10 = vrot.slane %v4579_v61, 1  ;;  %4864 = vrot.lane.b32.xlu1 %v4815_v57, %s10085_s19 }
 0x4db   : > { %14256 = vst [vmem:[#allocation7_spill] sm:$0xff] %v11932_v1  ;;  %v4608_v29 = vshll.u32 %v11914_v46, 16  ;;  %v4598_v3 = vrot.slane %v4596_v24, 1  ;;  %v4575_v28 = vsel %vm662_vm2, %v4570_v53, %v4574_v16  ;;  %v4816_v32 = vrot.slane %v11853_v52, 1  ;;  %v4157_v43 = vpop.permute.xlu1 %4156 }
 0x4dc   : > { %v14258_v48 = vmax.f32 %v14257_v13, 0.0  ;;  %v11945_v58 = vpack.c.bf16 %v4339_v60, %v4443_v22  ;;  %4740 = vrot.lane.b32.xlu0 %v4575_v28, %s10084_s28  ;;  %v4464_v2 = vsel %vm2318_vm6, %v4341_v18, 0.0  ;;  %v4343_v24 = vrot.slane %v11932_v1, 7 }
 0x4dd   : > { %v4582_v61 = vor.u32 %v4581_v10, %v4577_v41  ;;  %v11951_v16 = vpack.c.bf16 %v4464_v2, %v4464_v2  ;;  %v4819_v39 = vrot.slane %v11884_v26, 1  ;;  %v4159_v11 = vpop.permute.xlu0 %4158  ;;  %v4444_v22 = vsel %vm2318_vm6, 0.0, %v4340_v40 }
 0x4de   : > { %v11943_v51 = vsel %vm1127_vm4, %v14258_v48, %v4155_v56  ;;  %v4610_v56 = vrot.slane %v4608_v29, 1  ;;  %v4342_v60 = vsel %vm2318_vm6, %v4340_v40, %v4341_v18  ;;  %v4818_v41 = vsel %vm971_vm0, %v4816_v32, %v4817_v49  ;;  %v14263_v32 = vld [vmem:[#allocation12_spill] sm:$0xff] }
 0x4df   : > { %14259 = vst [vmem:[#allocation9_spill] sm:$0xff] %v11943_v51  ;;  %v4344_v53 = vrot.slane %v11943_v51, 7  ;;  %v4587_v28 = vsel %vm662_vm2, %v4582_v61, %v4586_v23  ;;  %v4620_v13 = vshll.u32 %v11951_v16, 16  ;;  %v4161_v2 = vpop.permute.xlu1 %4160  ;;  %v4445_v29 = vsel %vm2318_vm6, 0.0, %v4343_v24  ;;  %v14260_v23 = vld [vmem:[#allocation10_spill] sm:$0xff] }
 0x4e0   : > { %4742 = vrot.lane.b32.xlu1 %v4587_v28, %s10084_s28  ;;  %4866 = vrot.lane.b32.xlu0 %v4818_v41, %s10085_s19  ;;  %v14261_v18 = vmax.f32 %v14260_v23, 0.0  ;;  %v4591_v62 = vshll.u32 %v11897_v5, 16  ;;  %v11975_v28 = vpack.c.bf16 %v4342_v60, %v4444_v22  ;;  %v4821_v49 = vsel %vm971_vm0, %v4819_v39, %v4820_v36  ;;  %v14266_v41 = vld [vmem:[#allocation15_spill] sm:$0xff] }
 0x4e1   : > { %v4345_v10 = vsel %vm2318_vm6, %v4343_v24, %v4344_v53  ;;  %v4465_v48 = vsel %vm2318_vm6, %v4344_v53, 0.0  ;;  %v14264_v53 = vmax.f32 %v14263_v32, 0.0  ;;  %v4589_v22 = vshrl.u32 %v11897_v5, 16 }
 0x4e2   : > { %v11967_v40 = vpack.c.bf16 %v4465_v48, %v4465_v48  ;;  %v11972_v61 = vsel %vm1127_vm4, %v14261_v18, %v4157_v43  ;;  %v14267_v48 = vmax.f32 %v14266_v41, 0.0  ;;  %v4163_v43 = vpop.permute.xlu0 %4162  ;;  %v11991_v33 = vpack.c.bf16 %v4345_v10, %v4445_v29  ;;  %v14269_v10 = vld [vmem:[#allocation17_spill] sm:$0xff] }
 0x4e3   : > { %14262 = vst [vmem:[#allocation6_spill] sm:$0xff] %v11972_v61  ;;  %v11983_v24 = vsel %vm1127_vm4, %v14264_v53, %v4159_v11  ;;  %v4593_v38 = vrot.slane %v4591_v62, 1  ;;  %v4622_v60 = vrot.slane %v4620_v13, 1  ;;  %v4346_v36 = vrot.slane %v11972_v61, 7  ;;  %v4165_v32 = vpop.permute.xlu1 %4164 }
 0x4e4   : > { %14265 = vst [vmem:[#allocation8_spill] sm:$0xff] %v11983_v24  ;;  %v11988_v23 = vsel %vm1127_vm4, %v14267_v48, %v4161_v2  ;;  %4868 = vrot.lane.b32.xlu1 %v4821_v49, %s10085_s19  ;;  %v4347_v39 = vrot.slane %v11983_v24, 7  ;;  %v4603_v11 = vshll.u32 %v11945_v58, 16  ;;  %v4632_v2 = vshll.u32 %v11967_v40, 16 }
 0x4e5   : > { %14268 = vst [vmem:[#allocation11_spill] sm:$0xff] %v11988_v23  ;;  %v4594_v53 = vor.u32 %v4593_v38, %v4589_v22  ;;  %v4349_v41 = vrot.slane %v11988_v23, 7  ;;  %v14270_v29 = vmax.f32 %v14269_v10, 0.0  ;;  %v4601_v62 = vshrl.u32 %v11945_v58, 16 }
 0x4e6   : > { %v4466_v13 = vsel %vm2318_vm6, %v4347_v39, 0.0  ;;  %v4605_v49 = vrot.slane %v4603_v11, 1  ;;  %v4822_v18 = vrot.slane %v11897_v5, 1  ;;  %v4167_v57 = vpop.permute.xlu0 %4166  ;;  %v4348_v22 = vsel %vm2318_vm6, %v4346_v36, %v4347_v39 }
 0x4e7   : > { %v12003_v48 = vsel %vm1127_vm4, %v14270_v29, %v4163_v43  ;;  %v4599_v31 = vsel %vm662_vm2, %v4594_v53, %v4598_v3  ;;  %v12011_v38 = vpack.c.bf16 %v4466_v13, %v4466_v13  ;;  %v4446_v10 = vsel %vm2318_vm6, 0.0, %v4346_v36  ;;  %v4169_v24 = vpop.permute.xlu1 %4168 }
 0x4e8   : > { %14271 = vst [vmem:[#allocation13_spill] sm:$0xff] %v12003_v48  ;;  %4744 = vrot.lane.b32.xlu0 %v4599_v31, %s10084_s28  ;;  %v4606_v43 = vor.u32 %v4605_v49, %v4601_v62  ;;  %v4350_v29 = vrot.slane %v12003_v48, 7  ;;  %v14273_v11 = vmax.f32 %v14272_v12, 0.0  ;;  %v4634_v7 = vrot.slane %v4632_v2, 1 }
 0x4e9   : > { %v4447_v3 = vsel %vm2318_vm6, 0.0, %v4349_v41  ;;  %v4825_v39 = vrot.slane %v11945_v58, 1  ;;  %v4615_v53 = vshll.u32 %v11975_v28, 16  ;;  %v12024_v13 = vpack.c.bf16 %v4348_v22, %v4446_v10  ;;  %v14276_v10 = vld [vmem:[#allocation16_spill] sm:$0xff] }
 0x4ea   : > { %v12019_v23 = vsel %vm1127_vm4, %v14273_v11, %v4165_v32  ;;  %v4611_v31 = vsel %vm662_vm2, %v4606_v43, %v4610_v56  ;;  %v14275_v36 = vrot.slane %v11887_v0, 1  ;;  %v4467_v12 = vsel %vm2318_vm6, %v4350_v29, 0.0  ;;  %v4171_v32 = vpop.permute.xlu0 %4170 }
 0x4eb   : > { %14274 = vst [vmem:[#allocation10_spill] sm:$0xff] %v12019_v23  ;;  %v4644_v49 = vshll.u32 %v12011_v38, 16  ;;  %4746 = vrot.lane.b32.xlu1 %v4611_v31, %s10084_s28  ;;  %v12034_v11 = vpack.c.bf16 %v4467_v12, %v4467_v12  ;;  %v4352_v22 = vrot.slane %v12019_v23, 7  ;;  %v4613_v56 = vshrl.u32 %v11975_v28, 16  ;;  %v4173_v31 = vpop.permute.xlu1 %4172 }
 0x4ec   : > { %v4824_v62 = vsel %vm971_vm0, %v4822_v18, %v14275_v36  ;;  %v4617_v0 = vrot.slane %v4615_v53, 1  ;;  %v14277_v18 = vmax.f32 %v14276_v10, 0.0  ;;  %v14279_v36 = vld [vmem:[#allocation19_spill] sm:$0xff]  ;;  %v4351_v12 = vsel %vm2318_vm6, %v4349_v41, %v4350_v29 }
 0x4ed   : > { %4870 = vrot.lane.b32.xlu0 %v4824_v62, %s10085_s19  ;;  %v14280_v48 = vmax.f32 %v14279_v36, 0.0  ;;  %v4656_v23 = vshll.u32 %v12034_v11, 16  ;;  %v14282_v62 = vrot.slane %v11914_v46, 1  ;;  %v14283_v36 = vld [vmem:[#allocation21_spill] sm:$0xff]  ;;  %v4448_v41 = vsel %vm2318_vm6, 0.0, %v4352_v22 }
 0x4ee   : > { %v12042_v43 = vsel %vm1127_vm4, %v14277_v18, %v4167_v57  ;;  %v4618_v10 = vor.u32 %v4617_v0, %v4613_v56  ;;  %v4627_v18 = vshll.u32 %v11991_v33, 16  ;;  %v14284_v51 = vmax.f32 %v14283_v36, 0.0 }
 0x4ef   : > { %14278 = vst [vmem:[#allocation12_spill] sm:$0xff] %v12042_v43  ;;  %v12047_v2 = vsel %vm1127_vm4, %v14280_v48, %v4169_v24  ;;  %v4827_v61 = vsel %vm971_vm0, %v4825_v39, %v14282_v62  ;;  %v4353_v53 = vrot.slane %v12042_v43, 7  ;;  %v4175_v48 = vpop.permute.xlu0 %4174  ;;  %v4625_v29 = vshrl.u32 %v11991_v33, 16 }
 0x4f0   : > { %14281 = vst [vmem:[#allocation15_spill] sm:$0xff] %v12047_v2  ;;  %v4355_v57 = vrot.slane %v12047_v2, 7  ;;  %v12060_v24 = vsel %vm1127_vm4, %v14284_v51, %v4171_v32  ;;  %4872 = vrot.lane.b32.xlu1 %v4827_v61, %s10085_s19  ;;  %v4828_v39 = vrot.slane %v11975_v28, 1  ;;  %v4623_v56 = vsel %vm662_vm2, %v4618_v10, %v4622_v60  ;;  %v4177_v51 = vpop.permute.xlu1 %4176 }
 0x4f1   : > { %14285 = vst [vmem:[#allocation17_spill] sm:$0xff] %v12060_v24  ;;  %v4468_v46 = vsel %vm2318_vm6, %v4353_v53, 0.0  ;;  %v4354_v0 = vsel %vm2318_vm6, %v4352_v22, %v4353_v53  ;;  %v4629_v36 = vrot.slane %v4627_v18, 1  ;;  %v4646_v32 = vrot.slane %v4644_v49, 1  ;;  %4748 = vrot.lane.b32.xlu0 %v4623_v56, %s10084_s28 }
 0x4f2   : > { %v12069_v62 = vpack.c.bf16 %v4468_v46, %v4468_v46  ;;  %v12071_v2 = vpack.c.bf16 %v4351_v12, %v4447_v3  ;;  %v4356_v61 = vrot.slane %v12060_v24, 7  ;;  %v4658_v1 = vrot.slane %v4656_v23, 1  ;;  %v14286_v3 = vld [vmem:[#allocation18_spill] sm:$0xff] }
 0x4f3   : > { %v4449_v63 = vsel %vm2318_vm6, 0.0, %v4355_v57  ;;  %v4630_v14 = vor.u32 %v4629_v36, %v4625_v29  ;;  %v4831_v60 = vrot.slane %v11991_v33, 1  ;;  %v12078_v22 = vpack.c.bf16 %v4354_v0, %v4448_v41  ;;  %v4179_v41 = vpop.permute.xlu0 %4178  ;;  %v14290_v36 = vld [vmem:[#allocation20_spill] sm:$0xff] }
 0x4f4   : > { %v4668_v53 = vshll.u32 %v12069_v62, 16  ;;  %v4469_v49 = vsel %vm2318_vm6, %v4356_v61, 0.0  ;;  %v14287_v12 = vmax.f32 %v14286_v3, 0.0  ;;  %v14289_v46 = vrot.slane %v11951_v16, 1 }
 0x4f5   : > { %v4635_v23 = vsel %vm662_vm2, %v4630_v14, %v4634_v7  ;;  %v12092_v56 = vpack.c.bf16 %v4469_v49, %v4469_v49  ;;  %v4357_v0 = vsel %vm2318_vm6, %v4355_v57, %v4356_v61  ;;  %v14291_v3 = vmax.f32 %v14290_v36, 0.0  ;;  %v14293_v7 = vld [vmem:[#allocation23_spill] sm:$0xff] }
 0x4f6   : > { %v12085_v10 = vsel %vm1127_vm4, %v14287_v12, %v4173_v31  ;;  %v4830_v29 = vsel %vm971_vm0, %v4828_v39, %v14289_v46  ;;  %4750 = vrot.lane.b32.xlu1 %v4635_v23, %s10084_s28  ;;  %v4639_v31 = vshll.u32 %v12024_v13, 16  ;;  %v14294_v14 = vmax.f32 %v14293_v7, 0.0  ;;  %v4181_v46 = vpop.permute.xlu1 %4180 }
 0x4f7   : > { %14288 = vst [vmem:[#allocation14_spill] sm:$0xff] %v12085_v10  ;;  %4874 = vrot.lane.b32.xlu0 %v4830_v29, %s10085_s19  ;;  %v12101_v12 = vsel %vm1127_vm4, %v14291_v3, %v4175_v48  ;;  %v4680_v39 = vshll.u32 %v12092_v56, 16  ;;  %v4358_v49 = vrot.slane %v12085_v10, 7  ;;  %v14296_v23 = vrot.slane %v11967_v40, 1  ;;  %v4183_v10 = vpop.permute.xlu0 %4182 }
 0x4f8   : > { %14292 = vst [vmem:[#allocation16_spill] sm:$0xff] %v12101_v12  ;;  %v12106_v16 = vsel %vm1127_vm4, %v14294_v14, %v4177_v51  ;;  %v4359_v61 = vrot.slane %v12101_v12, 7  ;;  %v4670_v29 = vrot.slane %v4668_v53, 1  ;;  %v4637_v48 = vshrl.u32 %v12024_v13, 16 }
 0x4f9   : > { %14295 = vst [vmem:[#allocation19_spill] sm:$0xff] %v12106_v16  ;;  %v4833_v57 = vsel %vm971_vm0, %v4831_v60, %v14296_v23  ;;  %v4641_v36 = vrot.slane %v4639_v31, 1  ;;  %v4651_v3 = vshll.u32 %v12071_v2, 16  ;;  %v12116_v7 = vpack.c.bf16 %v4357_v0, %v4449_v63  ;;  %v14297_v0 = vld [vmem:[#allocation25_spill] sm:$0xff] }
 0x4fa   : > { %v4470_v51 = vsel %vm2318_vm6, %v4359_v61, 0.0  ;;  %v4361_v14 = vrot.slane %v12106_v16, 7  ;;  %v4649_v18 = vshrl.u32 %v12071_v2, 16  ;;  %4876 = vrot.lane.b32.xlu1 %v4833_v57, %s10085_s19  ;;  %v4834_v53 = vrot.slane %v12024_v13, 1  ;;  %v4185_v24 = vpop.permute.xlu1 %4184 }
 0x4fb   : > { %v4642_v40 = vor.u32 %v4641_v36, %v4637_v48  ;;  %v12122_v60 = vpack.c.bf16 %v4470_v51, %v4470_v51  ;;  %v4653_v23 = vrot.slane %v4651_v3, 1  ;;  %v12125_v43 = vrot.slane %v4680_v39, 1  ;;  %v14299_v3 = vld [vmem:[#allocation22_spill] sm:$0xff] }
 0x4fc   : > { %v4450_v63 = vsel %vm2318_vm6, 0.0, %v4358_v49  ;;  %v14298_v12 = vmax.f32 %v14297_v0, 0.0  ;;  %v4360_v48 = vsel %vm2318_vm6, %v4358_v49, %v4359_v61  ;;  %v14300_v51 = vmax.f32 %v14299_v3, 0.0 }
 0x4fd   : > { %v4647_v57 = vsel %vm662_vm2, %v4642_v40, %v4646_v32  ;;  %v4654_v36 = vor.u32 %v4653_v23, %v4649_v18  ;;  %v4692_v31 = vshll.u32 %v12122_v60, 16  ;;  %v4451_v0 = vsel %vm2318_vm6, 0.0, %v4361_v14 }
 0x4fe   : > { %v12132_v16 = vsel %vm1127_vm4, %v14298_v12, %v4179_v41  ;;  %v12139_v39 = vsel %vm1127_vm4, %v14300_v51, %v4181_v46  ;;  %4752 = vrot.lane.b32.xlu0 %v4647_v57, %s10084_s28  ;;  %v4837_v12 = vrot.slane %v12071_v2, 1  ;;  %v14302_v18 = vrot.slane %v12011_v38, 1  ;;  %v14303_v46 = vld [vmem:[#allocation24_spill] sm:$0xff] }
 0x4ff   : > { %14301 = vst [vmem:[#allocation21_spill] sm:$0xff] %v12139_v39  ;;  %v4362_v41 = vrot.slane %v12132_v16, 7  ;;  %v4659_v32 = vsel %vm662_vm2, %v4654_v36, %v4658_v1  ;;  %v4663_v61 = vshll.u32 %v12078_v22, 16  ;;  %v14304_v40 = vmax.f32 %v14303_v46, 0.0 }
 0x500   : > { %v4836_v49 = vsel %vm971_vm0, %v4834_v53, %v14302_v18  ;;  %4754 = vrot.lane.b32.xlu1 %v4659_v32, %s10084_s28  ;;  %v4364_v3 = vrot.slane %v12139_v39, 7  ;;  %v4661_v51 = vshrl.u32 %v12078_v22, 16  ;;  %v14306_v18 = vmax.f32 %v11238_v45, 0.0 }
 0x501   : > { %v12154_v23 = vsel %vm1127_vm4, %v14304_v40, %v4183_v10  ;;  %v4471_v57 = vsel %vm2318_vm6, %v4362_v41, 0.0  ;;  %v4363_v38 = vsel %vm2318_vm6, %v4361_v14, %v4362_v41  ;;  %v4665_v36 = vrot.slane %v4663_v61, 1  ;;  %v4187_v14 = vpop.permute.xlu0 %4186 }
 0x502   : > { %14305 = vst [vmem:[#allocation18_spill] sm:$0xff] %v12154_v23  ;;  %v4365_v1 = vrot.slane %v12154_v23, 7  ;;  %v12162_v53 = vpack.c.bf16 %v4471_v57, %v4471_v57  ;;  %v12167_v10 = vsel %vm1127_vm4, %v14306_v18, %v4185_v24  ;;  %v12169_v46 = vpack.c.bf16 %v4360_v48, %v4450_v63  ;;  %4878 = vrot.lane.b32.xlu0 %v4836_v49, %s10085_s19 }
 0x503   : > { %14307 = vst [vmem:[#allocation20_spill] sm:$0xff] %v12167_v10  ;;  %v4694_v32 = vrot.slane %v4692_v31, 1  ;;  %v4847_v40 = vrot.slane %v12122_v60, 1  ;;  %v14308_v39 = vrot.slane %v12034_v11, 1  ;;  %v4666_v41 = vor.u32 %v4665_v36, %v4661_v51 }
 0x504   : > { %v4366_v61 = vsel %vm2318_vm6, %v4364_v3, %v4365_v1  ;;  %v4472_v45 = vsel %vm2318_vm6, %v4365_v1, 0.0  ;;  %v4367_v24 = vrot.slane %v12167_v10, 7  ;;  %v12179_v57 = vpack.c.bf16 %v4363_v38, %v4451_v0  ;;  %v9921_v1 = vpop.permute.xlu1 %9920 }
 0x505   : > { %v4839_v23 = vsel %vm971_vm0, %v4837_v12, %v14308_v39  ;;  %v4452_v31 = vsel %vm2318_vm6, 0.0, %v4364_v3  ;;  %v4675_v60 = vshll.u32 %v12116_v7, 16  ;;  %v4840_v11 = vrot.slane %v12078_v22, 1 }
 0x506   : > { %4880 = vrot.lane.b32.xlu1 %v4839_v23, %s10085_s19  ;;  %v4704_v63 = vshll.u32 %v12162_v53, 16  ;;  %v4671_v48 = vsel %vm662_vm2, %v4666_v41, %v4670_v29  ;;  %v4673_v39 = vshrl.u32 %v12116_v7, 16  ;;  %v14309_v12 = vmax.f32 %v11249_v19, 0.0 }
 0x507   : > { %4756 = vrot.lane.b32.xlu0 %v4671_v48, %s10084_s28  ;;  %v12195_v23 = vpack.c.bf16 %v4366_v61, %v4452_v31  ;;  %v12197_v3 = vpack.c.bf16 %v4472_v45, %v4472_v45  ;;  %v4677_v51 = vrot.slane %v4675_v60, 1  ;;  %v4453_v38 = vsel %vm2318_vm6, 0.0, %v4367_v24 }
 0x508   : > { %v12191_v49 = vsel %vm1127_vm4, %v14309_v12, %v4187_v14  ;;  %v4843_v36 = vrot.slane %v12116_v7, 1  ;;  %v4687_v19 = vshll.u32 %v12169_v46, 16  ;;  %v14311_v14 = vrot.slane %v12069_v62, 1 }
 0x509   : > { %14310 = vst [vmem:[#allocation23_spill] sm:$0xff] %v12191_v49  ;;  %v4368_v29 = vrot.slane %v12191_v49, 7  ;;  %v4678_v18 = vor.u32 %v4677_v51, %v4673_v39  ;;  %v4685_v61 = vshrl.u32 %v12169_v46, 16  ;;  %v4699_v45 = vshll.u32 %v12179_v57, 16 }
 0x50a   : > { %v4842_v41 = vsel %vm971_vm0, %v4840_v11, %v14311_v14  ;;  %v4689_v48 = vrot.slane %v4687_v19, 1  ;;  %v4846_v12 = vrot.slane %v12169_v46, 1  ;;  %v4697_v62 = vshrl.u32 %v12179_v57, 16 }
 0x50b   : > { %v4369_v31 = vsel %vm2318_vm6, %v4367_v24, %v4368_v29  ;;  %v4473_v60 = vsel %vm2318_vm6, %v4368_v29, 0.0  ;;  %v4683_v0 = vsel %vm662_vm2, %v4678_v18, %v12125_v43  ;;  %4882 = vrot.lane.b32.xlu0 %v4842_v41, %s10085_s19  ;;  %v4701_v11 = vrot.slane %v4699_v45, 1  ;;  %v9926_v41 = vpop.permute.xlu1 %9925 }
 0x50c   : > { %v12214_v39 = vpack.c.bf16 %v4473_v60, %v4473_v60  ;;  %v4706_v51 = vrot.slane %v4704_v63, 1  ;;  %4758 = vrot.lane.b32.xlu1 %v4683_v0, %s10084_s28  ;;  %v4690_v14 = vor.u32 %v4689_v48, %v4685_v61  ;;  %v9923_v24 = vunpack.i.h.bf16 %v9921_v1 }
 0x50d   : > { %v9922_v49 = vunpack.i.l.bf16 %v9921_v1  ;;  %v4716_v29 = vshll.u32 %v12197_v3, 16  ;;  %v12219_v19 = vpack.c.bf16 %v4369_v31, %v4453_v38  ;;  %v14312_v10 = vrot.slane %v12092_v56, 1 }
 0x50e   : > { %v4702_v18 = vor.u32 %v4701_v11, %v4697_v62  ;;  %v4695_v60 = vsel %vm662_vm2, %v4690_v14, %v4694_v32  ;;  %v4848_v45 = vsel %vm971_vm0, %v4846_v12, %v4847_v40  ;;  %v12228_v63 = vsel %vm1127_vm4, %v11264_v50, %v9923_v24  ;;  %v14313_v12 = vld [vmem:[#allocation3_spill] sm:$0xff]  ;;  %v14314_v11 = vld [vmem:[#allocation2_spill] sm:$0xff] }
 0x50f   : > { %v4845_v43 = vsel %vm971_vm0, %v4843_v36, %v14312_v10  ;;  %v12232_v0 = vsel %vm1127_vm4, %v11244_v21, %v9922_v49  ;;  %v4728_v1 = vshll.u32 %v12214_v39, 16  ;;  %4760 = vrot.lane.b32.xlu0 %v4695_v60, %s10084_s28  ;;  %v4371_v56 = vrot.slane %v12228_v63, 7 }
 0x510   : > { %v4370_v10 = vrot.slane %v12232_v0, 7  ;;  %v4849_v32 = vrot.slane %v12179_v57, 1  ;;  %4884 = vrot.lane.b32.xlu1 %v4845_v43, %s10085_s19  ;;  %v4709_v40 = vshrl.u32 %v12195_v23, 16  ;;  %v4711_v50 = vshll.u32 %v12195_v23, 16 }
 0x511   : > { %v9928_v38 = vunpack.i.h.bf16 %v9926_v41  ;;  %v9927_v36 = vunpack.i.l.bf16 %v9926_v41  ;;  %v4707_v21 = vsel %vm662_vm2, %v4702_v18, %v4706_v51  ;;  %v4723_v31 = vshll.u32 %v12219_v19, 16 }
 0x512   : > { %v4372_v49 = vsel %vm2318_vm6, %v4370_v10, %v4371_v56  ;;  %v4454_v61 = vsel %vm2318_vm6, 0.0, %v4370_v10  ;;  %v4713_v48 = vrot.slane %v4711_v50, 1  ;;  %v4721_v24 = vshrl.u32 %v12219_v19, 16 }
 0x513   : > { %v4237_v62 = vsel %vm1127_vm4, %v14313_v12, %v9928_v38  ;;  %v4236_v14 = vsel %vm1127_vm4, %v14314_v11, %v9927_v36  ;;  %4886 = vrot.lane.b32.xlu0 %v4848_v45, %s10085_s19  ;;  %v12252_v43 = vpack.c.bf16 %v4372_v49, %v4454_v61  ;;  %v4725_v41 = vrot.slane %v4723_v31, 1 }
 0x514   : > { %v4317_v51 = vrot.slane %v4237_v62, 7  ;;  %v4316_v18 = vrot.slane %v4236_v14, 7  ;;  %v4718_v60 = vrot.slane %v4716_v29, 1  ;;  %4762 = vrot.lane.b32.xlu1 %v4707_v21, %s10084_s28  ;;  %v4714_v10 = vor.u32 %v4713_v48, %v4709_v40 }
 0x515   : > { %v4474_v50 = vsel %vm2318_vm6, %v4371_v56, 0.0  ;;  %v4853_v38 = vrot.slane %v12197_v3, 1  ;;  %v4726_v11 = vor.u32 %v4725_v41, %v4721_v24  ;;  %v4852_v61 = vrot.slane %v12195_v23, 1 }
 0x516   : > { %v4318_v12 = vsel %vm2318_vm6, %v4316_v18, %v4317_v51  ;;  %v4436_v36 = vsel %vm2318_vm6, 0.0, %v4316_v18  ;;  %v4719_v45 = vsel %vm662_vm2, %v4714_v10, %v4718_v60  ;;  %v4513_v31 = vpack.c.bf16 %v4474_v50, %v4474_v50 }
 0x517   : > { %v12260_v49 = vpack.c.bf16 %v4318_v12, %v4436_v36  ;;  %v4730_v29 = vrot.slane %v4728_v1, 1  ;;  %v14315_v21 = vrot.slane %v12162_v53, 1  ;;  %4764 = vrot.lane.b32.xlu0 %v4719_v45, %s10084_s28  ;;  %v4982_v3 = vshll.u32 %v12252_v43, 16 }
 0x518   : > { %v4456_v56 = vsel %vm2318_vm6, %v4317_v51, 0.0  ;;  %v4987_v48 = vshll.u32 %v4513_v31, 16  ;;  %v4980_v24 = vshrl.u32 %v12252_v43, 16  ;;  %v4856_v53 = vrot.slane %v12214_v39, 1 }
 0x519   : > { %v4851_v40 = vsel %vm971_vm0, %v4849_v32, %v14315_v21  ;;  %v4477_v62 = vpack.c.bf16 %v4456_v56, %v4456_v56  ;;  %v4731_v14 = vsel %vm662_vm2, %v4726_v11, %v4730_v29  ;;  %v4984_v18 = vrot.slane %v4982_v3, 1 }
 0x51a   : > { %4888 = vrot.lane.b32.xlu1 %v4851_v40, %s10085_s19  ;;  %v4519_v1 = vshll.u32 %v12260_v49, 16  ;;  %v4854_v32 = vsel %vm971_vm0, %v4852_v61, %v4853_v38  ;;  %v4855_v41 = vrot.slane %v12219_v19, 1  ;;  %v4517_v60 = vshrl.u32 %v12260_v49, 16 }
 0x51b   : > { %4890 = vrot.lane.b32.xlu0 %v4854_v32, %s10085_s19  ;;  %v4985_v51 = vor.u32 %v4984_v18, %v4980_v24  ;;  %v4989_v10 = vrot.slane %v4987_v48, 1  ;;  %v4524_v12 = vshll.u32 %v4477_v62, 16  ;;  %v4995_v39 = vrot.slane %v12252_v43, 1 }
 0x51c   : > { %v4521_v50 = vrot.slane %v4519_v1, 1  ;;  %v4857_v45 = vsel %vm971_vm0, %v4855_v41, %v4856_v53  ;;  %v4996_v38 = vrot.slane %v4513_v31, 1  ;;  %v4804_v40 = vrot.slane %v12260_v49, 1  ;;  %v10021_v41 = vld [vmem:[%s14074_s5 + $0x10] sm:$0xff]  }
 0x51d   : > { %v4990_v36 = vsel %vm662_vm2, %v4985_v51, %v4989_v10  ;;  %v4526_v61 = vrot.slane %v4524_v12, 1  ;;  %v4805_v3 = vrot.slane %v4477_v62, 1  ;;  %v14316_v31 = vpack.i.bf16 %v11706_v8, %v11704_v4  ;;  %v10020_v4 = vld [vmem:[%s14074_s5 + $0x8] sm:$0xff]  }
 0x51e   : > { %4766 = vrot.lane.b32.xlu1 %v4731_v14, %s10084_s28  ;;  %v4522_v11 = vor.u32 %v4521_v50, %v4517_v60  ;;  %v4997_v21 = vsel %vm971_vm0, %v4995_v39, %v4996_v38  ;;  %v10022_v50 = vld [vmem:[%s14074_s5 + $0x18] sm:$0xff]  }
 0x51f   : > { %4892 = vrot.lane.b32.xlu0 %v4857_v45, %s10085_s19  ;;  %v4806_v56 = vsel %vm971_vm0, %v4804_v40, %v4805_v3  ;;  %v10023_v45 = vld [vmem:[%s14074_s5 + $0x20] sm:$0xff]  }
 0x520   : > { %v4527_v29 = vsel %vm662_vm2, %v4522_v11, %v4526_v61 }
 0x522   : > { %4991 = vrot.lane.b32.xlu1 %v4990_v36, %s10084_s28 }
 0x523   : > { %4998 = vrot.lane.b32.xlu0 %v4997_v21, %s10085_s19 }
 0x526   : > { %4732 = vrot.lane.b32.xlu1 %v4527_v29, %s10084_s28 }
 0x527   : > { %4858 = vrot.lane.b32.xlu0 %v4806_v56, %s10085_s19 }
 0x52a   : > { %9930 = vrot.lane.b32.xlu1 %v14316_v31, %s10082_s25  ;;  %v12375_v31 = vld [vmem:[%s14074_s5 + $0x60] sm:$0xff]  }
 0x536   : > { %v4861_v14 = vpop.permute.xlu1 %4860 }
 0x53c   : > { %v4735_v48 = vpop.permute.xlu0 %4734 }
 0x53d   : > { %v4897_v62 = vsel %vm2999_vm7, %v11762_v6, %v4735_v48 }
 0x53e   : > { %v12298_v24 = vsel %vm4930_vm9, %v4897_v62, %v4861_v14 }
 0x53f   : > { %9495 = vmatprep.mubr.msk.bf16.mxu1 %vm5053_vm10, %v12298_v24 }
 0x543   : > { %v4737_v18 = vpop.permute.xlu0 %4736 }
 0x544   : > { %v4899_v1 = vsel %vm2999_vm7, %v11801_v20, %v4737_v18 }
 0x547   : > { %v4863_v53 = vpop.permute.xlu0 %4862 }
 0x548   : > { %v4739_v8 = vpop.permute.xlu1 %4738  ;;  %v12308_v32 = vsel %vm4930_vm9, %v4899_v1, %v4863_v53 }
 0x549   : > { %9496 = vmatmul.mubr.msk.bf16.vlgmr.msra.gmra.mrb[40].mxu1 %vm5053_vm10, %v12308_v32  ;;  %9591 = vmatprep.mubr.msk.bf16.mxu0 %vm5053_vm10, %v12308_v32  ;;  %v4901_v6 = vsel %vm2999_vm7, %v11839_v17, %v4739_v8 }
 0x54a   : > { %9532 = vmatpush3.bf16.msra.mxu1 %v11837_v59 }
 0x54b   : > { %9533 = vmatprep.subr.bf16.mxu1 %v10020_v4 }
 0x54c   : > { %v4865_v20 = vpop.permute.xlu1 %4864 }
 0x54d   : > { %v12321_v60 = vsel %vm4930_vm9, %v4901_v6, %v4865_v20 }
 0x54e   : > { %v4741_v51 = vpop.permute.xlu0 %4740  ;;  %9499 = vmatprep.mubr.msk.bf16.mxu1 %vm5053_vm10, %v12321_v60  ;;  %9592 = vmatmul.mubr.msk.bf16.vlgmr.msra.gmra.mrb[44].mxu0 %vm5053_vm10, %v12321_v60 }
 0x54f   : > { %9534 = vmatpush3.bf16.msra.mxu1 %v10020_v4  ;;  %v4903_v17 = vsel %vm2999_vm7, %v11853_v52, %v4741_v51 }
 0x550   : > { %9535 = vmatprep.subr.bf16.mxu1 %v10021_v41 }
 0x552   : > { %v4743_v59 = vpop.permute.xlu1 %4742  ;;  %v4867_v10 = vpop.permute.xlu0 %4866 }
 0x553   : > { %v12333_v12 = vsel %vm4930_vm9, %v4903_v17, %v4867_v10  ;;  %v4905_v36 = vsel %vm2999_vm7, %v11884_v26, %v4743_v59  ;;  %9536 = vmatpush3.bf16.msra.mxu1 %v10021_v41  ;;  %v10024_v26 = vld [vmem:[%s14074_s5 + $0x28] sm:$0xff]  }
 0x554   : > { %9500 = vmatmul.mubr.msk.bf16.gmra.mrb[44].mxu1 %vm5053_vm10, %v12333_v12  ;;  %9595 = vmatprep.mubr.msk.bf16.mxu0 %vm5053_vm10, %v12333_v12 }
 0x555   : > { %9537 = vmatprep.subr.bf16.mxu1 %v10022_v50 }
 0x556   : > { %v4869_v11 = vpop.permute.xlu1 %4868 }
 0x557   : > { %v12342_v52 = vsel %vm4930_vm9, %v4905_v36, %v4869_v11  ;;  %9538 = vmatpush3.bf16.msra.mxu1 %v10022_v50 }
 0x558   : > { %9503 = vmatprep.mubr.msk.bf16.mxu1 %vm5053_vm10, %v12342_v52  ;;  %9596 = vmatmul.mubr.msk.bf16.gmra.mrb[48].mxu0 %vm5053_vm10, %v12342_v52 }
 0x559   : > { %9539 = vmatprep.subr.bf16.mxu1 %v10023_v45 }
 0x55a   : > { %v4745_v39 = vpop.permute.xlu0 %4744 }
 0x55b   : > { %v4907_v61 = vsel %vm2999_vm7, %v11897_v5, %v4745_v39  ;;  %9540 = vmatpush3.bf16.msra.mxu1 %v10023_v45 }
 0x55c   : > { %9541 = vmatprep.subr.bf16.mxu1 %v10024_v26 }
 0x55d   : > { %v4747_v38 = vpop.permute.xlu1 %4746 }
 0x55e   : > { %v4909_v40 = vsel %vm2999_vm7, %v11945_v58, %v4747_v38 }
 0x55f   : > { %v4871_v29 = vpop.permute.xlu0 %4870  ;;  %9542 = vmatpush3.bf16.msra.mxu1 %v10024_v26 }
 0x560   : > { %v12357_v21 = vsel %vm4930_vm9, %v4907_v61, %v4871_v29  ;;  %9627 = vmatprep.subr.bf16.mxu1 %v12375_v31 }
 0x561   : > { %9504 = vmatmul.mubr.msk.bf16.gmra.mrb[48].mxu1 %vm5053_vm10, %v12357_v21  ;;  %9599 = vmatprep.mubr.msk.bf16.mxu0 %vm5053_vm10, %v12357_v21 }
 0x562   : > { %v4873_v3 = vpop.permute.xlu1 %4872 }
 0x563   : > { %v12366_v56 = vsel %vm4930_vm9, %v4909_v40, %v4873_v3  ;;  %v4749_v5 = vpop.permute.xlu0 %4748 }
 0x564   : > { %9507 = vmatprep.mubr.msk.bf16.mxu1 %vm5053_vm10, %v12366_v56  ;;  %9600 = vmatmul.mubr.msk.bf16.gmra.mrb[52].mxu0 %vm5053_vm10, %v12366_v56  ;;  %v4911_v58 = vsel %vm2999_vm7, %v11975_v28, %v4749_v5 }
 0x568   : > { %v4751_v48 = vpop.permute.xlu1 %4750 }
 0x569   : > { %v4875_v14 = vpop.permute.xlu0 %4874  ;;  %v4913_v18 = vsel %vm2999_vm7, %v11991_v33, %v4751_v48 }
 0x56a   : > { %v12381_v62 = vsel %vm4930_vm9, %v4911_v58, %v4875_v14 }
 0x56b   : > { %9508 = vmatmul.mubr.msk.bf16.gmra.mrb[52].mxu1 %vm5053_vm10, %v12381_v62  ;;  %9603 = vmatprep.mubr.msk.bf16.mxu0 %vm5053_vm10, %v12381_v62 }
 0x56c   : > { %v4877_v1 = vpop.permute.xlu1 %4876 }
 0x56d   : > { %v12390_v53 = vsel %vm4930_vm9, %v4913_v18, %v4877_v1 }
 0x56e   : > { %9511 = vmatprep.mubr.msk.bf16.mxu1 %vm5053_vm10, %v12390_v53  ;;  %9604 = vmatmul.mubr.msk.bf16.gmra.mrb[56].mxu0 %vm5053_vm10, %v12390_v53 }
 0x570   : > { %v4753_v28 = vpop.permute.xlu0 %4752 }
 0x571   : > { %v4915_v8 = vsel %vm2999_vm7, %v12024_v13, %v4753_v28 }
 0x572   : > { %v4755_v4 = vpop.permute.xlu1 %4754 }
 0x573   : > { %v4917_v33 = vsel %vm2999_vm7, %v12071_v2, %v4755_v4 }
 0x574   : > { %v4879_v6 = vpop.permute.xlu0 %4878 }
 0x575   : > { %v12399_v20 = vsel %vm4930_vm9, %v4915_v8, %v4879_v6 }
 0x576   : > { %9512 = vmatmul.mubr.msk.bf16.gmra.mrb[56].mxu1 %vm5053_vm10, %v12399_v20 }
 0x578   : > { %v4881_v41 = vpop.permute.xlu1 %4880 }
 0x579   : > { %v12406_v51 = vsel %vm4930_vm9, %v4917_v33, %v4881_v41  ;;  %v4757_v59 = vpop.permute.xlu0 %4756 }
 0x57a   : > { %9515 = vmatprep.mubr.msk.bf16.mxu1 %vm5053_vm10, %v12406_v51  ;;  %v4919_v13 = vsel %vm2999_vm7, %v12078_v22, %v4757_v59 }
 0x57d   : > { %v4883_v17 = vpop.permute.xlu0 %4882 }
 0x57e   : > { %v4759_v10 = vpop.permute.xlu1 %4758  ;;  %v12413_v50 = vsel %vm4930_vm9, %v4919_v13, %v4883_v17  ;;  %v14317_v13 = vld [vmem:[#allocation26_spill] sm:$0xff] }
 0x57f   : > { %9516 = vmatmul.mubr.msk.bf16.gmra.mrb[60].mxu1 %vm5053_vm10, %v12413_v50  ;;  %v4921_v36 = vsel %vm2999_vm7, %v12116_v7, %v4759_v10 }
 0x581   : > { %v4761_v2 = vpop.permute.xlu0 %4760 }
 0x582   : > { %v4885_v11 = vpop.permute.xlu1 %4884  ;;  %v4923_v22 = vsel %vm2999_vm7, %v12169_v46, %v4761_v2 }
 0x583   : > { %v12420_v45 = vsel %vm4930_vm9, %v4921_v36, %v4885_v11 }
 0x584   : > { %9519 = vmatprep.mubr.msk.bf16.mxu1 %vm5053_vm10, %v12420_v45 }
 0x585   : > { %v4887_v39 = vpop.permute.xlu0 %4886 }
 0x586   : > { %v4763_v26 = vpop.permute.xlu1 %4762  ;;  %v12427_v38 = vsel %vm4930_vm9, %v4923_v22, %v4887_v39  ;;  %v10053_v39 = vld [vmem:[%s14074_s5 + $0x68] sm:$0xff]  }
 0x587   : > { %9520 = vmatmul.mubr.msk.bf16.gmra.mrb[64].mxu1 %vm5053_vm10, %v12427_v38  ;;  %v4925_v7 = vsel %vm2999_vm7, %v12179_v57, %v4763_v26 }
 0x589   : > { %v4765_v61 = vpop.permute.xlu0 %4764 }
 0x58a   : > { %v4927_v46 = vsel %vm2999_vm7, %v12195_v23, %v4765_v61 }
 0x58c   : > { %v4889_v29 = vpop.permute.xlu1 %4888 }
 0x58d   : > { %v12434_v40 = vsel %vm4930_vm9, %v4925_v7, %v4889_v29  ;;  %v4891_v3 = vpop.permute.xlu0 %4890 }
 0x58e   : > { %9523 = vmatprep.mubr.msk.bf16.mxu1 %vm5053_vm10, %v12434_v40  ;;  %v12441_v58 = vsel %vm4930_vm9, %v4927_v46, %v4891_v3 }
 0x58f   : > { %9524 = vmatmul.mubr.msk.bf16.gmra.mrb[68].mxu1 %vm5053_vm10, %v12441_v58 }
 0x590   : > { %v4767_v5 = vpop.permute.xlu1 %4766 }
 0x591   : > { %v4929_v57 = vsel %vm2999_vm7, %v12219_v19, %v4767_v5  ;;  %v4893_v48 = vpop.permute.xlu0 %4892 }
 0x592   : > { %v12448_v14 = vsel %vm4930_vm9, %v4929_v57, %v4893_v48  ;;  %v10055_v48 = vld [vmem:[%s14074_s5 + $0x78] sm:$0xff]  }
 0x593   : > { %9527 = vmatprep.mubr.msk.bf16.mxu1 %vm5053_vm10, %v12448_v14 }
 0x594   : > { %v4992_v18 = vpop.permute.xlu1 %4991 }
 0x595   : > { %v5001_v23 = vsel %vm2999_vm7, %v12252_v43, %v4992_v18  ;;  %v4999_v1 = vpop.permute.xlu0 %4998 }
 0x596   : > { %v12455_v28 = vsel %vm4930_vm9, %v5001_v23, %v4999_v1 }
 0x597   : > { %9528 = vmatmul.mubr.msk.bf16.gmra.mrb[72].mxu1 %vm5053_vm10, %v12455_v28 }
 0x598   : > { %v4733_v4 = vpop.permute.xlu1 %4732 }
 0x599   : > { %v4895_v19 = vsel %vm2999_vm7, %v12260_v49, %v4733_v4  ;;  %v4859_v8 = vpop.permute.xlu0 %4858 }
 0x59a   : > { %v4932_v6 = vsel %vm4930_vm9, %v4895_v19, %v4859_v8 }
 0x59b   : > { %9543 = vmatprep.mubr.msk.bf16.mxu1 %vm5053_vm10, %v4932_v6 }
 0x59c   : > { %v9931_v33 = vpop.permute.xlu1 %9930 }
 0x59d   : > { %v9933_v41 = vunpack.i.h.bf16 %v9931_v33  ;;  %v9932_v59 = vunpack.i.l.bf16 %v9931_v33  ;;  %v12554_v33 = vld [vmem:[%s14075_s6] ss:$0 sm:$0xff] }
 0x59f   : > { %v4275_v43 = vsel %vm1127_vm4, %v11311_v42, %v9933_v41  ;;  %v4274_v17 = vsel %vm1127_vm4, %v14317_v13, %v9932_v59  ;;  %9544 = vmatmul.mubr.msk.bf16.vlgmr.msra.gmra.mrb[40].mxu1 %vm5053_vm10, %v12298_v24 }
 0x5a0   : > { %v4374_v10 = vrot.slane %v4275_v43, 7  ;;  %v4373_v2 = vrot.slane %v4274_v17, 7  ;;  %9547 = vmatprep.mubr.msk.bf16.mxu1 %vm5053_vm10, %v12308_v32  ;;  %9633 = vmatpush3.bf16.msra.mxu1 %v12375_v31  ;;  %v10054_v31 = vld [vmem:[%s14074_s5 + $0x70] sm:$0xff]  }
 0x5a1   : > { %9628 = vmatprep.subr.bf16.mxu1 %v10053_v39 }
 0x5a2   : > { %v4375_v49 = vsel %vm2318_vm6, %v4373_v2, %v4374_v10  ;;  %v4455_v36 = vsel %vm2318_vm6, 0.0, %v4373_v2  ;;  %v4475_v11 = vsel %vm2318_vm6, %v4374_v10, 0.0 }
 0x5a3   : > { %v4514_v42 = vpack.c.bf16 %v4375_v49, %v4455_v36  ;;  %v4515_v22 = vpack.c.bf16 %v4475_v11, %v4475_v11 }
 0x5a4   : > { %9634 = vmatpush3.bf16.msra.mxu1 %v10053_v39 }
 0x5a5   : > { %v5498_v26 = vrot.slane %v4514_v42, 1  ;;  %v5499_v24 = vrot.slane %v4515_v22, 1  ;;  %v5485_v61 = vshll.u32 %v4514_v42, 16  ;;  %v5490_v7 = vshll.u32 %v4515_v22, 16  ;;  %9629 = vmatprep.subr.bf16.mxu1 %v10054_v31 }
 0x5a6   : > { %v5483_v46 = vshrl.u32 %v4514_v42, 16 }
 0x5a7   : > { %v5500_v29 = vsel %vm971_vm0, %v5498_v26, %v5499_v24  ;;  %v5487_v32 = vrot.slane %v5485_v61, 1  ;;  %9548 = vmatmul.mubr.msk.bf16.gmra.mrb[44].mxu1 %vm5053_vm10, %v12321_v60  ;;  %v5492_v5 = vrot.slane %v5490_v7, 1  ;;  %v10056_v60 = vld [vmem:[%s14074_s5 + $0x80] sm:$0xff]  }
 0x5a8   : > { %5501 = vrot.lane.b32.xlu1 %v5500_v29, %s10085_s19  ;;  %9551 = vmatprep.mubr.msk.bf16.mxu1 %vm5053_vm10, %v12333_v12  ;;  %v10057_v12 = vld [vmem:[%s14074_s5 + $0x88] sm:$0xff]  }
 0x5a9   : > { %v5488_v3 = vor.u32 %v5487_v32, %v5483_v46  ;;  %9635 = vmatpush3.bf16.msra.mxu1 %v10054_v31 }
 0x5aa   : > { %9630 = vmatprep.subr.bf16.mxu1 %v10055_v48 }
 0x5ab   : > { %v5493_v57 = vsel %vm662_vm2, %v5488_v3, %v5492_v5 }
 0x5ac   : > { %5494 = vrot.lane.b32.xlu0 %v5493_v57, %s10084_s28 }
 0x5ad   : > { %9636 = vmatpush3.bf16.msra.mxu1 %v10055_v48 }
 0x5ae   : > { %9631 = vmatprep.subr.bf16.mxu1 %v10056_v60 }
 0x5af   : > { %9552 = vmatmul.mubr.msk.bf16.gmra.mrb[48].mxu1 %vm5053_vm10, %v12342_v52 }
 0x5b0   : > { %9555 = vmatprep.mubr.msk.bf16.mxu1 %vm5053_vm10, %v12357_v21 }
 0x5b1   : > { %9637 = vmatpush3.bf16.msra.mxu1 %v10056_v60 }
 0x5b2   : > { %9632 = vmatprep.subr.bf16.mxu1 %v10057_v12 }
 0x5b5   : > { %9638 = vmatpush3.bf16.msra.mxu1 %v10057_v12 }
 0x5b7   : > { %9556 = vmatmul.mubr.msk.bf16.gmra.mrb[52].mxu1 %vm5053_vm10, %v12366_v56 }
 0x5b8   : > { %9559 = vmatprep.mubr.msk.bf16.mxu1 %vm5053_vm10, %v12381_v62 }
 0x5bf   : > { %9560 = vmatmul.mubr.msk.bf16.gmra.mrb[56].mxu1 %vm5053_vm10, %v12390_v53 }
 0x5c0   : > { %9563 = vmatprep.mubr.msk.bf16.mxu1 %vm5053_vm10, %v12399_v20 }
 0x5c7   : > { %9564 = vmatmul.mubr.msk.bf16.gmra.mrb[60].mxu1 %vm5053_vm10, %v12406_v51 }
 0x5c8   : > { %9567 = vmatprep.mubr.msk.bf16.mxu1 %vm5053_vm10, %v12413_v50 }
 0x5cf   : > { %9568 = vmatmul.mubr.msk.bf16.gmra.mrb[64].mxu1 %vm5053_vm10, %v12420_v45 }
 0x5d0   : > { %9571 = vmatprep.mubr.msk.bf16.mxu1 %vm5053_vm10, %v12427_v38 }
 0x5d7   : > { %9572 = vmatmul.mubr.msk.bf16.gmra.mrb[68].mxu1 %vm5053_vm10, %v12434_v40 }
 0x5d8   : > { %9575 = vmatprep.mubr.msk.bf16.mxu1 %vm5053_vm10, %v12441_v58 }
 0x5df   : > { %9576 = vmatmul.mubr.msk.bf16.gmra.mrb[72].mxu1 %vm5053_vm10, %v12448_v14 }
 0x5e0   : > { %9607 = vmatprep.mubr.msk.bf16.mxu1 %vm5053_vm10, %v12399_v20 }
 0x5e7   : > { %9608 = vmatmul.mubr.msk.bf16.vlgmr.msra.gmra.mrb[56].mxu1 %vm5053_vm10, %v12406_v51 }
 0x5e8   : > { %9611 = vmatprep.mubr.msk.bf16.mxu1 %vm5053_vm10, %v12413_v50 }
 0x5ef   : > { %9612 = vmatmul.mubr.msk.bf16.gmra.mrb[60].mxu1 %vm5053_vm10, %v12420_v45 }
 0x5f0   : > { %9615 = vmatprep.mubr.msk.bf16.mxu1 %vm5053_vm10, %v12427_v38 }
 0x5f7   : > { %9616 = vmatmul.mubr.msk.bf16.gmra.mrb[64].mxu1 %vm5053_vm10, %v12434_v40 }
 0x5f8   : > { %9619 = vmatprep.mubr.msk.bf16.mxu1 %vm5053_vm10, %v12441_v58 }
 0x5ff   : > { %9620 = vmatmul.mubr.msk.bf16.gmra.mrb[68].mxu1 %vm5053_vm10, %v12448_v14 }
 0x600   : > { %9623 = vmatprep.mubr.msk.bf16.mxu1 %vm5053_vm10, %v12455_v28 }
 0x61a   : > { %v5502_v21 = vpop.permute.xlu1 %5501 }
 0x61e   : > { %v5495_v52 = vpop.permute.xlu0 %5494 }
 0x61f   : > { %v5504_v56 = vsel %vm2999_vm7, %v4514_v42, %v5495_v52 }
 0x620   : > { %v5506_v62 = vsel %vm4930_vm9, %v5504_v56, %v5502_v21 }
 0x621   : > { %9624 = vmatmul.mubr.msk.bf16.gmra.mrb[72].mxu1 %vm5053_vm10, %v5506_v62  ;;  %v9593_v53 = vpop.f32.mrb[44].mxu0 }
 0x622   : > { %v5592_v20 = vpop.f32.mrb[45].mxu0 }
 0x623   : > { %v9594_v51 = vpop.f32.mrb[46].mxu0 }
 0x624   : > { %v5595_v50 = vpop.f32.mrb[47].mxu0 }
 0x62b   : > { %v9597_v45 = vpop.f32.mrb[48].mxu0 }
 0x62c   : > { %v5608_v38 = vpop.f32.mrb[49].mxu0 }
 0x62d   : > { %v9598_v40 = vpop.f32.mrb[50].mxu0 }
 0x62e   : > { %v5611_v58 = vpop.f32.mrb[51].mxu0 }
 0x637   : > { %v9601_v14 = vpop.f32.mrb[52].mxu0 }
 0x638   : > { %v5624_v18 = vpop.f32.mrb[53].mxu0 }
 0x639   : > { %v9602_v23 = vpop.f32.mrb[54].mxu0 }
 0x63a   : > { %v5627_v1 = vpop.f32.mrb[55].mxu0 }
 0x641   : > { %v9605_v28 = vpop.f32.mrb[56].mxu0 }
 0x642   : > { %v12545_v4 = vpop.f32.mrb[57].mxu0 }
 0x643   : > { %v12547_v19 = vpop.f32.mrb[58].mxu0 }
 0x644   : > { %v12549_v8 = vpop.f32.mrb[59].mxu0 }
 0x672   : > { %v9545_v6 = vpop.f32.mrb[40].mxu1 }
 0x673   : > { %v9639_v41 = vadd.f32 %v9593_v53, %v9545_v6  ;;  %v5339_v59 = vpop.f32.mrb[41].mxu1 }
 0x674   : > { %v9640_v43 = vadd.f32 %v5592_v20, %v5339_v59  ;;  %v9546_v13 = vpop.f32.mrb[42].mxu1 }
 0x675   : > { %v5780_v17 = vadd.f32 %v9639_v41, %v12554_v33  ;;  %v9641_v10 = vadd.f32 %v9594_v51, %v9546_v13  ;;  %v5342_v2 = vpop.f32.mrb[43].mxu1 }
 0x676   : > { %v5778_v49 = vadd.f32 %v9640_v43, %v12554_v33  ;;  %v9642_v36 = vadd.f32 %v5595_v50, %v5342_v2 }
 0x677   : > { %v5816_v11 = vmax.f32 %v5780_v17, 0.0  ;;  %v5781_v42 = vadd.f32 %v9641_v10, %v12554_v33 }
 0x678   : > { %v5814_v22 = vmax.f32 %v5778_v49, 0.0  ;;  %v5779_v39 = vadd.f32 %v9642_v36, %v12554_v33 }
 0x679   : > { %v5817_v26 = vmax.f32 %v5781_v42, 0.0  ;;  %6035 = vrot.lane.b32.xlu0 %v5816_v11, %s10084_s28 }
 0x67a   : > { %v5815_v24 = vmax.f32 %v5779_v39, 0.0  ;;  %v9549_v61 = vpop.f32.mrb[44].mxu1  ;;  %v12562_v46 = vmul.f32 0.0, %v5814_v22 }
 0x67b   : > { %v9643_v7 = vadd.f32 %v9597_v45, %v9549_v61  ;;  %6037 = vrot.lane.b32.xlu1 %v5817_v26, %s10084_s28  ;;  %v5355_v29 = vpop.f32.mrb[45].mxu1 }
 0x67c   : > { %v12564_v32 = vmul.f32 0.0, %v5815_v24  ;;  %v9644_v31 = vadd.f32 %v5608_v38, %v5355_v29  ;;  %v9550_v3 = vpop.f32.mrb[46].mxu1 }
 0x67d   : > { %v9645_v5 = vadd.f32 %v9598_v40, %v9550_v3  ;;  %v5358_v57 = vpop.f32.mrb[47].mxu1  ;;  %v5784_v52 = vadd.f32 %v9643_v7, %v12554_v33 }
 0x67e   : > { %v9934_v48 = vpack.i.bf16 %v12564_v32, %v12562_v46  ;;  %v5782_v60 = vadd.f32 %v9644_v31, %v12554_v33  ;;  %v9646_v12 = vadd.f32 %v5611_v58, %v5358_v57  ;;  %v14336_v46 = vld [vmem:[#allocation9_spill] sm:$0xff] }
 0x67f   : > { %v5785_v62 = vadd.f32 %v9645_v5, %v12554_v33  ;;  %v5820_v45 = vmax.f32 %v5784_v52, 0.0 }
 0x680   : > { %v5818_v21 = vmax.f32 %v5782_v60, 0.0  ;;  %v5783_v56 = vadd.f32 %v9646_v12, %v12554_v33 }
 0x681   : > { %v5821_v41 = vmax.f32 %v5785_v62, 0.0 }
 0x682   : > { %v5819_v53 = vmax.f32 %v5783_v56, 0.0  ;;  %6039 = vrot.lane.b32.xlu0 %v5818_v21, %s10084_s28  ;;  %v9553_v20 = vpop.f32.mrb[48].mxu1 }
 0x683   : > { %v9647_v51 = vadd.f32 %v9601_v14, %v9553_v20  ;;  %v5371_v50 = vpop.f32.mrb[49].mxu1 }
 0x684   : > { %v9648_v38 = vadd.f32 %v5624_v18, %v5371_v50  ;;  %6041 = vrot.lane.b32.xlu1 %v5819_v53, %s10084_s28  ;;  %v9554_v40 = vpop.f32.mrb[50].mxu1 }
 0x685   : > { %v9649_v6 = vadd.f32 %v9602_v23, %v9554_v40  ;;  %v5374_v58 = vpop.f32.mrb[51].mxu1  ;;  %v5788_v13 = vadd.f32 %v9647_v51, %v12554_v33 }
 0x686   : > { %v5786_v59 = vadd.f32 %v9648_v38, %v12554_v33  ;;  %v9650_v43 = vadd.f32 %v5627_v1, %v5374_v58  ;;  %6043 = vrot.lane.b32.xlu0 %v5820_v45, %s10084_s28 }
 0x687   : > { %v5789_v14 = vadd.f32 %v9649_v6, %v12554_v33  ;;  %v5824_v36 = vmax.f32 %v5788_v13, 0.0  ;;  %v14161_v13 = vmov 0  }
 0x688   : > { %v5822_v17 = vmax.f32 %v5786_v59, 0.0  ;;  %v5787_v10 = vadd.f32 %v9650_v43, %v12554_v33  ;;  %6045 = vrot.lane.b32.xlu1 %v5821_v41, %s10084_s28  ;;  %v10025_v59 = vld [vmem:[%s14076_s7 + $0x48] sm:$0xff]   ;;  %6956 = vmatprep.subr.bf16.mxu0 %v14161_v13 }
 0x689   : > { %v5825_v39 = vmax.f32 %v5789_v14, 0.0  ;;  %7435 = vmatprep.subr.bf16.mxu1 %v14161_v13  ;;  %6957 = vmatpush1.bf16.msra.mxu0 %v10025_v59  ;;  %v10026_v14 = vld [vmem:[%s14076_s7 + $0x50] sm:$0xff]  }
 0x68a   : > { %v5823_v18 = vmax.f32 %v5787_v10, 0.0  ;;  %6047 = vrot.lane.b32.xlu0 %v5822_v17, %s10084_s28  ;;  %v9557_v23 = vpop.f32.mrb[52].mxu1  ;;  %v10028_v17 = vld [vmem:[%s14076_s7 + $0x90] sm:$0xff]   ;;  %6958 = vmatprep.subr.bf16.mxu0 %v14161_v13 }
 0x68b   : > { %v9651_v2 = vadd.f32 %v9605_v28, %v9557_v23  ;;  %v5387_v49 = vpop.f32.mrb[53].mxu1  ;;  %7436 = vmatpush1.bf16.msra.mxu1 %v10028_v17  ;;  %v10027_v23 = vld [vmem:[%s14076_s7 + $0x58] sm:$0xff]  }
 0x68c   : > { %v9652_v1 = vadd.f32 %v12545_v4, %v5387_v49  ;;  %6049 = vrot.lane.b32.xlu1 %v5823_v18, %s10084_s28  ;;  %v9558_v11 = vpop.f32.mrb[54].mxu1  ;;  %v10030_v18 = vld [vmem:[%s14076_s7 + $0x98] sm:$0xff]   ;;  %7437 = vmatprep.subr.bf16.mxu1 %v14161_v13  ;;  %v10032_v49 = vld [vmem:[%s14076_s7 + $0xa0] sm:$0xff]  }
 0x68d   : > { %v9653_v42 = vadd.f32 %v12547_v19, %v9558_v11  ;;  %v5390_v22 = vpop.f32.mrb[55].mxu1  ;;  %v5792_v61 = vadd.f32 %v9651_v2, %v12554_v33  ;;  %6959 = vmatpush1.bf16.msra.mxu0 %v10026_v14 }
 0x68e   : > { %v5790_v26 = vadd.f32 %v9652_v1, %v12554_v33  ;;  %v9654_v24 = vadd.f32 %v12549_v8, %v5390_v22  ;;  %6051 = vrot.lane.b32.xlu0 %v5824_v36, %s10084_s28  ;;  %6960 = vmatprep.subr.bf16.mxu0 %v14161_v13  ;;  %v10034_v22 = vld [vmem:[%s14076_s7 + $0xa8] sm:$0xff]  }
 0x68f   : > { %v5793_v4 = vadd.f32 %v9653_v42, %v12554_v33  ;;  %v5828_v19 = vmax.f32 %v5792_v61, 0.0  ;;  %7438 = vmatpush1.bf16.msra.mxu1 %v10030_v18  ;;  %v10029_v42 = vld [vmem:[%s14076_s7 + $0x60] sm:$0xff]   ;;  %v10035_v61 = vld [vmem:[%s14076_s7 + $0x78] sm:$0xff]  }
 0x690   : > { %v5826_v28 = vmax.f32 %v5790_v26, 0.0  ;;  %v5791_v7 = vadd.f32 %v9654_v24, %v12554_v33  ;;  %6053 = vrot.lane.b32.xlu1 %v5825_v39, %s10084_s28  ;;  %7439 = vmatprep.subr.bf16.mxu1 %v14161_v13  ;;  %v10031_v39 = vld [vmem:[%s14076_s7 + $0x68] sm:$0xff]   ;;  %v10036_v26 = vld [vmem:[%s14076_s7 + $0xb0] sm:$0xff]  }
 0x691   : > { %v5829_v31 = vmax.f32 %v5793_v4, 0.0  ;;  %6961 = vmatpush1.bf16.msra.mxu0 %v10027_v23  ;;  %v10033_v24 = vld [vmem:[%s14076_s7 + $0x70] sm:$0xff]   ;;  %v10038_v4 = vld [vmem:[%s14076_s7 + $0xb8] sm:$0xff]  }
 0x692   : > { %v5827_v29 = vmax.f32 %v5791_v7, 0.0  ;;  %6055 = vrot.lane.b32.xlu0 %v5826_v28, %s10084_s28  ;;  %6962 = vmatprep.subr.bf16.mxu0 %v14161_v13  ;;  %v10037_v28 = vld [vmem:[%s14076_s7 + $0x80] sm:$0xff]  }
 0x693   : > { %7440 = vmatpush1.bf16.msra.mxu1 %v10032_v49 }
 0x694   : > { %6057 = vrot.lane.b32.xlu1 %v5827_v29, %s10084_s28  ;;  %7441 = vmatprep.subr.bf16.mxu1 %v14161_v13  ;;  %v10039_v29 = vld [vmem:[%s14076_s7 + $0x88] sm:$0xff]  }
 0x695   : > { %6963 = vmatpush1.bf16.msra.mxu0 %v10029_v42 }
 0x696   : > { %6059 = vrot.lane.b32.xlu0 %v5828_v19, %s10084_s28  ;;  %6964 = vmatprep.subr.bf16.mxu0 %v14161_v13 }
 0x697   : > { %7442 = vmatpush1.bf16.msra.mxu1 %v10034_v22 }
 0x698   : > { %6061 = vrot.lane.b32.xlu1 %v5829_v31, %s10084_s28  ;;  %7443 = vmatprep.subr.bf16.mxu1 %v14161_v13 }
 0x699   : > { %6965 = vmatpush1.bf16.msra.mxu0 %v10031_v39 }
 0x69a   : > { %6966 = vmatprep.subr.bf16.mxu0 %v14161_v13 }
 0x69b   : > { %7444 = vmatpush1.bf16.msra.mxu1 %v10036_v26 }
 0x69c   : > { %7445 = vmatprep.subr.bf16.mxu1 %v14161_v13 }
 0x69d   : > { %6967 = vmatpush1.bf16.msra.mxu0 %v10033_v24 }
 0x69e   : > { %6968 = vmatprep.subr.bf16.mxu0 %v14161_v13 }
 0x69f   : > { %7446 = vmatpush1.bf16.msra.mxu1 %v10038_v4 }
 0x6a0   : > { %7447 = vmatprep.subr.bf16.mxu1 %v14161_v13 }
 0x6a1   : > { %6969 = vmatpush1.bf16.msra.mxu0 %v10035_v61 }
 0x6a2   : > { %6970 = vmatprep.subr.bf16.mxu0 %v14161_v13 }
 0x6a5   : > { %6971 = vmatpush1.bf16.msra.mxu0 %v10037_v28 }
 0x6a6   : > { %6972 = vmatprep.subr.bf16.mxu0 %v14161_v13 }
 0x6a9   : > { %6973 = vmatpush1.bf16.msra.mxu0 %v10039_v29 }
 0x6aa   : > { %7173 = vmatprep.subr.bf16.mxu0 %v14161_v13 }
 0x6ba   : > { %v9609_v8 = vpop.f32.mrb[56].mxu1 }
 0x6bb   : > { %v5656_v3 = vpop.f32.mrb[57].mxu1  ;;  %v5796_v12 = vadd.f32 %v9609_v8, %v12554_v33 }
 0x6bc   : > { %v5794_v5 = vadd.f32 %v12554_v33, %v5656_v3  ;;  %v9610_v57 = vpop.f32.mrb[58].mxu1 }
 0x6bd   : > { %v5659_v60 = vpop.f32.mrb[59].mxu1  ;;  %v5797_v56 = vadd.f32 %v9610_v57, %v12554_v33  ;;  %v5832_v53 = vmax.f32 %v5796_v12, 0.0 }
 0x6be   : > { %v5830_v52 = vmax.f32 %v5794_v5, 0.0  ;;  %v5795_v21 = vadd.f32 %v12554_v33, %v5659_v60 }
 0x6bf   : > { %v5833_v50 = vmax.f32 %v5797_v56, 0.0 }
 0x6c0   : > { %v5831_v62 = vmax.f32 %v5795_v21, 0.0  ;;  %6063 = vrot.lane.b32.xlu0 %v5830_v52, %s10084_s28 }
 0x6c2   : > { %6065 = vrot.lane.b32.xlu1 %v5831_v62, %s10084_s28  ;;  %v12601_v20 = vpop.f32.mrb[60].mxu1 }
 0x6c3   : > { %v5672_v51 = vpop.f32.mrb[61].mxu1 }
 0x6c4   : > { %v5798_v45 = vadd.f32 %v12554_v33, %v5672_v51  ;;  %6067 = vrot.lane.b32.xlu0 %v5832_v53, %s10084_s28  ;;  %v12605_v38 = vpop.f32.mrb[62].mxu1  ;;  %v10040_v53 = vld [vmem:[%s14076_s7 + $0xc0] sm:$0xff]  }
 0x6c5   : > { %v12607_v40 = vpop.f32.mrb[63].mxu1  ;;  %7448 = vmatpush1.bf16.msra.mxu1 %v10040_v53 }
 0x6c6   : > { %6069 = vrot.lane.b32.xlu1 %v5833_v50, %s10084_s28  ;;  %v5834_v6 = vmax.f32 %v5798_v45, 0.0  ;;  %7449 = vmatprep.subr.bf16.mxu1 %v14161_v13 }
 0x6ca   : > { %6071 = vrot.lane.b32.xlu1 %v5834_v6, %s10084_s28  ;;  %v12611_v58 = vpop.f32.mrb[64].mxu1 }
 0x6cb   : > { %v12613_v41 = vpop.f32.mrb[65].mxu1 }
 0x6cc   : > { %v12618_v43 = vpop.f32.mrb[66].mxu1 }
 0x6cd   : > { %v12625_v10 = vpop.f32.mrb[67].mxu1 }
 0x6d2   : > { %v12638_v2 = vpop.f32.mrb[68].mxu1 }
 0x6d3   : > { %v12644_v36 = vpop.f32.mrb[69].mxu1 }
 0x6d4   : > { %v12647_v1 = vpop.f32.mrb[70].mxu1 }
 0x6d5   : > { %v12649_v11 = vpop.f32.mrb[71].mxu1 }
 0x6eb   : > { %v6036_v7 = vpop.permute.xlu0 %6035 }
 0x6ec   : > { %v12689_v19 = vsel %vm2999_vm7, %v11752_v27, %v6036_v7 }
 0x6ed   : > { %14318 = vst [vmem:[#allocation25_spill] sm:$0xff] %v12689_v19  ;;  %v6214_v31 = vrot.slane %v12689_v19, 7  ;;  %v6038_v8 = vpop.permute.xlu1 %6037 }
 0x6ee   : > { %v12694_v3 = vsel %vm2999_vm7, %v11759_v30, %v6038_v8  ;;  %v5800_v30 = vadd.f32 %v12601_v20, %v12554_v33 }
 0x6ef   : > { %14319 = vst [vmem:[#allocation22_spill] sm:$0xff] %v12694_v3  ;;  %v6215_v5 = vrot.slane %v12694_v3, 7  ;;  %v6320_v57 = vsel %vm2318_vm6, 0.0, %v6214_v31 }
 0x6f0   : > { %v5836_v49 = vmax.f32 %v5800_v30, 0.0 }
 0x6f1   : > { %v6216_v27 = vsel %vm2318_vm6, %v6214_v31, %v6215_v5  ;;  %v6338_v60 = vsel %vm2318_vm6, %v6215_v5, 0.0 }
 0x6f2   : > { %v12702_v12 = vpack.c.bf16 %v6216_v27, %v6320_v57  ;;  %v6358_v52 = vpack.c.bf16 %v6338_v60, %v6338_v60 }
 0x6f4   : > { %v9625_v21 = vpop.f32.mrb[72].mxu1  ;;  %v6651_v51 = vrot.slane %v6358_v52, 1  ;;  %v6040_v50 = vpop.permute.xlu0 %6039  ;;  %v6650_v6 = vrot.slane %v12702_v12, 1  ;;  %v6404_v61 = vshrl.u32 %v12702_v12, 16  ;;  %v6406_v28 = vshll.u32 %v12702_v12, 16 }
 0x6f5   : > { %v5812_v56 = vadd.f32 %v9625_v21, %v12554_v33  ;;  %v12707_v62 = vpop.f32.mrb[73].mxu1  ;;  %v12715_v17 = vsel %vm2999_vm7, %v11772_v15, %v6040_v50  ;;  %v6411_v15 = vshll.u32 %v6358_v52, 16  ;;  %v5799_v50 = vadd.f32 %v12554_v33, %v12607_v40 }
 0x6f6   : > { %v9626_v45 = vpop.f32.mrb[74].mxu1  ;;  %14320 = vst [vmem:[#allocation24_spill] sm:$0xff] %v12715_v17  ;;  %v6217_v18 = vrot.slane %v12715_v17, 7  ;;  %v6042_v23 = vpop.permute.xlu1 %6041  ;;  %v6652_v39 = vsel %vm971_vm0, %v6650_v6, %v6651_v51  ;;  %v6408_v27 = vrot.slane %v6406_v28, 1 }
 0x6f7   : > { %v5848_v59 = vmax.f32 %v5812_v56, 0.0  ;;  %v5813_v20 = vadd.f32 %v9626_v45, %v12554_v33  ;;  %v12718_v14 = vpop.f32.mrb[75].mxu1  ;;  %v12724_v42 = vsel %vm2999_vm7, %v11781_v25, %v6042_v23  ;;  %6697 = vrot.lane.b32.xlu1 %v6652_v39, %s10087_s23  ;;  %v5835_v28 = vmax.f32 %v5799_v50, 0.0 }
 0x6f8   : > { %14321 = vst [vmem:[#allocation3_spill] sm:$0xff] %v12724_v42  ;;  %v6218_v26 = vrot.slane %v12724_v42, 7  ;;  %v6044_v24 = vpop.permute.xlu0 %6043  ;;  %v6321_v4 = vsel %vm2318_vm6, 0.0, %v6217_v18  ;;  %v6409_v53 = vor.u32 %v6408_v27, %v6404_v61  ;;  %v10042_v61 = vld [vmem:[%s14076_s7 + $0xd0] sm:$0xff]   ;;  %v5801_v50 = vadd.f32 %v12605_v38, %v12554_v33 }
 0x6f9   : > { %v5849_v22 = vmax.f32 %v5813_v20, 0.0  ;;  %v12731_v7 = vmul.f32 0.0, %v5848_v59  ;;  %v12738_v29 = vsel %vm2999_vm7, %v11795_v55, %v6044_v24  ;;  %v6413_v55 = vrot.slane %v6411_v15, 1 }
 0x6fa   : > { %14322 = vst [vmem:[#allocation2_spill] sm:$0xff] %v12738_v29  ;;  %v6219_v31 = vsel %vm2318_vm6, %v6217_v18, %v6218_v26  ;;  %v6339_v8 = vsel %vm2318_vm6, %v6218_v26, 0.0  ;;  %v6220_v5 = vrot.slane %v12738_v29, 7  ;;  %v6046_v57 = vpop.permute.xlu1 %6045  ;;  %v5802_v59 = vadd.f32 %v12554_v33, %v12613_v41 }
 0x6fb   : > { %v12734_v25 = vmul.f32 0.0, %v5849_v22  ;;  %v12743_v60 = vpack.c.bf16 %v6219_v31, %v6321_v4  ;;  %v6360_v52 = vpack.c.bf16 %v6339_v8, %v6339_v8  ;;  %v12749_v30 = vsel %vm2999_vm7, %v11808_v9, %v6046_v57  ;;  %6075 = vrot.lane.b32.xlu1 %v5836_v49, %s10084_s28  ;;  %v10041_v49 = vld [vmem:[%s14076_s7 + $0xc8] sm:$0xff]  }
 0x6fc   : > { %14323 = vst [vmem:[#allocation26_spill] sm:$0xff] %v12749_v30  ;;  %v6221_v56 = vrot.slane %v12749_v30, 7  ;;  %v6048_v51 = vpop.permute.xlu0 %6047  ;;  %v6414_v18 = vsel %vm662_vm2, %v6409_v53, %v6413_v55  ;;  %v6322_v22 = vsel %vm2318_vm6, 0.0, %v6220_v5  ;;  %7450 = vmatpush1.bf16.msra.mxu1 %v10041_v49  ;;  %v5838_v8 = vmax.f32 %v5802_v59, 0.0 }
 0x6fd   : > { %v6654_v45 = vrot.slane %v6360_v52, 1  ;;  %v6653_v6 = vrot.slane %v12743_v60, 1  ;;  %6585 = vrot.lane.b32.xlu0 %v6414_v18, %s10088_s27  ;;  %v12768_v41 = vsel %vm2999_vm7, %v11818_v47, %v6048_v51  ;;  %v6418_v47 = vshll.u32 %v12743_v60, 16  ;;  %7451 = vmatprep.subr.bf16.mxu1 %v14161_v13 }
 0x6fe   : > { %v6222_v20 = vsel %vm2318_vm6, %v6220_v5, %v6221_v56  ;;  %v6340_v9 = vsel %vm2318_vm6, %v6221_v56, 0.0  ;;  %v6050_v23 = vpop.permute.xlu1 %6049  ;;  %14324 = vst [vmem:[#allocation29_spill] sm:$0xff] %v12768_v41  ;;  %v6223_v4 = vrot.slane %v12768_v41, 7  ;;  %v6416_v57 = vshrl.u32 %v12743_v60, 16 }
 0x6ff   : > { %v6362_v40 = vpack.c.bf16 %v6340_v9, %v6340_v9  ;;  %v12772_v39 = vsel %vm2999_vm7, %v11829_v54, %v6050_v23  ;;  %v12774_v15 = vpack.c.bf16 %v6222_v20, %v6322_v22  ;;  %v6655_v24 = vsel %vm971_vm0, %v6653_v6, %v6654_v45 }
 0x700   : > { %14325 = vst [vmem:[#allocation30_spill] sm:$0xff] %v12772_v39  ;;  %v6224_v26 = vrot.slane %v12772_v39, 7  ;;  %6699 = vrot.lane.b32.xlu1 %v6655_v24, %s10087_s23  ;;  %v6423_v54 = vshll.u32 %v6360_v52, 16  ;;  %v6052_v56 = vpop.permute.xlu0 %6051  ;;  %v6420_v53 = vrot.slane %v6418_v47, 1  ;;  %7452 = vmatpush1.bf16.msra.mxu1 %v10042_v61  ;;  %v6323_v6 = vsel %vm2318_vm6, 0.0, %v6223_v4 }
 0x701   : > { %v6657_v5 = vrot.slane %v6362_v40, 1  ;;  %6073 = vrot.lane.b32.xlu0 %v5835_v28, %s10084_s28  ;;  %v6656_v51 = vrot.slane %v12774_v15, 1  ;;  %v5804_v20 = vadd.f32 %v12611_v58, %v12554_v33  ;;  %v12804_v23 = vsel %vm2999_vm7, %v11850_v37, %v6052_v56 }
 0x702   : > { %v6054_v31 = vpop.permute.xlu1 %6053  ;;  %v6225_v27 = vsel %vm2318_vm6, %v6223_v4, %v6224_v26  ;;  %v6341_v55 = vsel %vm2318_vm6, %v6224_v26, 0.0  ;;  %v6425_v45 = vrot.slane %v6423_v54, 1  ;;  %v6421_v59 = vor.u32 %v6420_v53, %v6416_v57  ;;  %14327 = vst [vmem:[#allocation32_spill] sm:$0xff] %v12804_v23 }
 0x703   : > { %v12792_v52 = vsel %vm2999_vm7, %v11864_v34, %v6054_v31  ;;  %v12800_v9 = vpack.c.bf16 %v6225_v27, %v6323_v6  ;;  %v6364_v18 = vpack.c.bf16 %v6341_v55, %v6341_v55  ;;  %v6658_v38 = vsel %vm971_vm0, %v6656_v51, %v6657_v5 }
 0x704   : > { %14326 = vst [vmem:[#allocation31_spill] sm:$0xff] %v12792_v52  ;;  %6079 = vrot.lane.b32.xlu1 %v5838_v8, %s10084_s28  ;;  %v6227_v34 = vrot.slane %v12792_v52, 7  ;;  %v6426_v49 = vsel %vm662_vm2, %v6421_v59, %v6425_v45  ;;  %v6430_v22 = vshll.u32 %v12774_v15, 16  ;;  %v6435_v58 = vshll.u32 %v6362_v40, 16  ;;  %v6056_v4 = vpop.permute.xlu0 %6055 }
 0x705   : > { %6587 = vrot.lane.b32.xlu0 %v6426_v49, %s10088_s27  ;;  %v6428_v24 = vshrl.u32 %v12774_v15, 16  ;;  %v5837_v28 = vmax.f32 %v5801_v50, 0.0  ;;  %v5840_v37 = vmax.f32 %v5804_v20, 0.0  ;;  %v6660_v47 = vrot.slane %v6364_v18, 1 }
 0x706   : > { %v6058_v26 = vpop.permute.xlu1 %6057  ;;  %v6432_v61 = vrot.slane %v6430_v22, 1  ;;  %v6226_v54 = vrot.slane %v12804_v23, 7  ;;  %v6342_v31 = vsel %vm2318_vm6, %v6227_v34, 0.0  ;;  %v6659_v57 = vrot.slane %v12800_v9, 1 }
 0x707   : > { %v12817_v8 = vsel %vm2999_vm7, %v11892_v35, %v6058_v26  ;;  %v6442_v27 = vshll.u32 %v12800_v9, 16  ;;  %v5803_v55 = vadd.f32 %v12554_v33, %v12625_v10  ;;  %v6437_v56 = vrot.slane %v6435_v58, 1 }
 0x708   : > { %6701 = vrot.lane.b32.xlu1 %v6658_v38, %s10087_s23  ;;  %14328 = vst [vmem:[#allocation33_spill] sm:$0xff] %v12817_v8  ;;  %v6433_v5 = vor.u32 %v6432_v61, %v6428_v24  ;;  %v6228_v40 = vsel %vm2318_vm6, %v6226_v54, %v6227_v34  ;;  %v12828_v53 = vsel %vm2999_vm7, %v11874_v44, %v6056_v4  ;;  %v6324_v51 = vsel %vm2318_vm6, 0.0, %v6226_v54  ;;  %v6060_v61 = vpop.permute.xlu0 %6059  ;;  %v14330_v54 = vld [vmem:[#allocation5_spill] sm:$0xff] }
 0x709   : > { %6077 = vrot.lane.b32.xlu0 %v5837_v28, %s10084_s28  ;;  %14329 = vst [vmem:[#allocation34_spill] sm:$0xff] %v12828_v53  ;;  %v5806_v35 = vadd.f32 %v12554_v33, %v12644_v36  ;;  %v6366_v50 = vpack.c.bf16 %v6342_v31, %v6342_v31  ;;  %v6230_v45 = vrot.slane %v12817_v8, 7  ;;  %v12834_v6 = vpack.c.bf16 %v6228_v40, %v6324_v51 }
 0x70a   : > { %v6438_v59 = vsel %vm662_vm2, %v6433_v5, %v6437_v56  ;;  %v6661_v20 = vsel %vm971_vm0, %v6659_v57, %v6660_v47  ;;  %v6444_v10 = vrot.slane %v6442_v27, 1  ;;  %v6229_v34 = vrot.slane %v12828_v53, 7  ;;  %v6062_v36 = vpop.permute.xlu1 %6061 }
 0x70b   : > { %v6447_v44 = vshll.u32 %v6364_v18, 16  ;;  %v6440_v49 = vshrl.u32 %v12800_v9, 16  ;;  %v5839_v38 = vmax.f32 %v5803_v55, 0.0  ;;  %v5842_v22 = vmax.f32 %v5806_v35, 0.0  ;;  %v14332_v55 = vld [vmem:[#allocation4_spill] sm:$0xff] }
 0x70c   : > { %6083 = vrot.lane.b32.xlu1 %v5840_v37, %s10084_s28  ;;  %v6663_v26 = vrot.slane %v6366_v50, 1  ;;  %v6231_v58 = vsel %vm2318_vm6, %v6229_v34, %v6230_v45  ;;  %v6343_v24 = vsel %vm2318_vm6, %v6230_v45, 0.0  ;;  %v6662_v37 = vrot.slane %v12834_v6, 1 }
 0x70d   : > { %6589 = vrot.lane.b32.xlu0 %v6438_v59, %s10088_s27  ;;  %v6445_v28 = vor.u32 %v6444_v10, %v6440_v49  ;;  %v6454_v47 = vshll.u32 %v12834_v6, 16  ;;  %v12848_v4 = vsel %vm2999_vm7, %v14330_v54, %v6062_v36  ;;  %v5805_v18 = vadd.f32 %v12618_v43, %v12554_v33 }
 0x70e   : > { %14331 = vst [vmem:[#allocation5_spill] sm:$0xff] %v12848_v4  ;;  %v6449_v31 = vrot.slane %v6447_v44, 1  ;;  %v6325_v5 = vsel %vm2318_vm6, 0.0, %v6229_v34  ;;  %v5808_v57 = vadd.f32 %v12638_v2, %v12554_v33  ;;  %v6368_v27 = vpack.c.bf16 %v6343_v24, %v6343_v24 }
 0x70f   : > { %v12857_v40 = vpack.c.bf16 %v6231_v58, %v6325_v5  ;;  %v12861_v56 = vsel %vm2999_vm7, %v14332_v55, %v6060_v61  ;;  %v6233_v35 = vrot.slane %v12848_v4, 7  ;;  %v6664_v45 = vsel %vm971_vm0, %v6662_v37, %v6663_v26 }
 0x710   : > { %6703 = vrot.lane.b32.xlu1 %v6661_v20, %s10087_s23  ;;  %14333 = vst [vmem:[#allocation4_spill] sm:$0xff] %v12861_v56  ;;  %v6450_v51 = vsel %vm662_vm2, %v6445_v28, %v6449_v31  ;;  %v6456_v43 = vrot.slane %v6454_v47, 1  ;;  %v6459_v59 = vshll.u32 %v6366_v50, 16  ;;  %v6232_v2 = vrot.slane %v12861_v56, 7 }
 0x711   : > { %6081 = vrot.lane.b32.xlu0 %v5839_v38, %s10084_s28  ;;  %v6452_v20 = vshrl.u32 %v12834_v6, 16  ;;  %v5841_v10 = vmax.f32 %v5805_v18, 0.0  ;;  %v5844_v34 = vmax.f32 %v5808_v57, 0.0  ;;  %v6666_v44 = vrot.slane %v6368_v27, 1 }
 0x712   : > { %v6234_v36 = vsel %vm2318_vm6, %v6232_v2, %v6233_v35  ;;  %v6665_v38 = vrot.slane %v12857_v40, 1  ;;  %v6344_v26 = vsel %vm2318_vm6, %v6233_v35, 0.0  ;;  %v6461_v50 = vrot.slane %v6459_v59, 1 }
 0x713   : > { %v6457_v49 = vor.u32 %v6456_v43, %v6452_v20  ;;  %v6326_v58 = vsel %vm2318_vm6, 0.0, %v6232_v2  ;;  %v5807_v24 = vadd.f32 %v12554_v33, %v12649_v11  ;;  %v5810_v61 = vadd.f32 %v12554_v33, %v12707_v62 }
 0x714   : > { %6087 = vrot.lane.b32.xlu1 %v5842_v22, %s10084_s28  ;;  %v6466_v22 = vshll.u32 %v12857_v40, 16  ;;  %v12881_v28 = vpack.c.bf16 %v6234_v36, %v6326_v58  ;;  %v6370_v37 = vpack.c.bf16 %v6344_v26, %v6344_v26  ;;  %v6667_v54 = vsel %vm971_vm0, %v6665_v38, %v6666_v44  ;;  %v14334_v26 = vld [vmem:[#allocation7_spill] sm:$0xff] }
 0x715   : > { %6591 = vrot.lane.b32.xlu0 %v6450_v51, %s10088_s27  ;;  %v6462_v47 = vsel %vm662_vm2, %v6457_v49, %v6461_v50  ;;  %v6471_v31 = vshll.u32 %v6368_v27, 16  ;;  %v6464_v5 = vshrl.u32 %v12857_v40, 16  ;;  %v5843_v57 = vmax.f32 %v5807_v24, 0.0 }
 0x716   : > { %v6468_v18 = vrot.slane %v6466_v22, 1  ;;  %v5846_v11 = vmax.f32 %v5810_v61, 0.0  ;;  %v6669_v55 = vrot.slane %v6370_v37, 1  ;;  %v6668_v62 = vrot.slane %v12881_v28, 1 }
 0x717   : > { %v6478_v51 = vshll.u32 %v12881_v28, 16  ;;  %v5809_v43 = vadd.f32 %v12647_v1, %v12554_v33  ;;  %v6483_v20 = vshll.u32 %v6370_v37, 16  ;;  %v5811_v36 = vadd.f32 %v12554_v33, %v12718_v14  ;;  %v14338_v14 = vld [vmem:[#allocation6_spill] sm:$0xff] }
 0x718   : > { %6705 = vrot.lane.b32.xlu1 %v6664_v45, %s10087_s23  ;;  %v6469_v35 = vor.u32 %v6468_v18, %v6464_v5  ;;  %v6473_v45 = vrot.slane %v6471_v31, 1  ;;  %v6670_v59 = vsel %vm971_vm0, %v6668_v62, %v6669_v55 }
 0x719   : > { %6085 = vrot.lane.b32.xlu0 %v5841_v10, %s10084_s28  ;;  %v6480_v2 = vrot.slane %v6478_v51, 1  ;;  %v6476_v10 = vshrl.u32 %v12881_v28, 16  ;;  %v6485_v1 = vrot.slane %v6483_v20, 1  ;;  %v5847_v22 = vmax.f32 %v5811_v36, 0.0 }
 0x71a   : > { %v6474_v27 = vsel %vm662_vm2, %v6469_v35, %v6473_v45 }
 0x71b   : > { %v6481_v44 = vor.u32 %v6480_v2, %v6476_v10 }
 0x71c   : > { %6091 = vrot.lane.b32.xlu1 %v5844_v34, %s10084_s28  ;;  %v5845_v34 = vmax.f32 %v5809_v43, 0.0 }
 0x71d   : > { %6593 = vrot.lane.b32.xlu0 %v6462_v47, %s10088_s27  ;;  %v6486_v49 = vsel %vm662_vm2, %v6481_v44, %v6485_v1 }
 0x720   : > { %6707 = vrot.lane.b32.xlu1 %v6667_v54, %s10087_s23 }
 0x721   : > { %6089 = vrot.lane.b32.xlu0 %v5843_v57, %s10084_s28 }
 0x724   : > { %6095 = vrot.lane.b32.xlu1 %v5846_v11, %s10084_s28  ;;  %v14340_v11 = vld [vmem:[#allocation8_spill] sm:$0xff] }
 0x725   : > { %6595 = vrot.lane.b32.xlu0 %v6474_v27, %s10088_s27 }
 0x728   : > { %6709 = vrot.lane.b32.xlu1 %v6670_v59, %s10087_s23 }
 0x729   : > { %6093 = vrot.lane.b32.xlu0 %v5845_v34, %s10084_s28 }
 0x72c   : > { %9935 = vrot.lane.b32.xlu1 %v9934_v48, %s10084_s28 }
 0x72d   : > { %6597 = vrot.lane.b32.xlu0 %v6486_v49, %s10088_s27 }
 0x731   : > { %6097 = vrot.lane.b32.xlu0 %v5847_v22, %s10084_s28 }
 0x732   : > { %v6064_v38 = vpop.permute.xlu0 %6063 }
 0x733   : > { %v12910_v50 = vsel %vm2999_vm7, %v14334_v26, %v6064_v38 }
 0x734   : > { %14335 = vst [vmem:[#allocation7_spill] sm:$0xff] %v12910_v50  ;;  %v6235_v58 = vrot.slane %v12910_v50, 7  ;;  %v6066_v24 = vpop.permute.xlu1 %6065 }
 0x735   : > { %v12916_v32 = vsel %vm2999_vm7, %v14336_v46, %v6066_v24 }
 0x736   : > { %14337 = vst [vmem:[#allocation9_spill] sm:$0xff] %v12916_v32  ;;  %v6236_v33 = vrot.slane %v12916_v32, 7  ;;  %v6068_v48 = vpop.permute.xlu0 %6067  ;;  %v6327_v37 = vsel %vm2318_vm6, 0.0, %v6235_v58 }
 0x737   : > { %v12921_v61 = vsel %vm2999_vm7, %v14338_v14, %v6068_v48 }
 0x738   : > { %14339 = vst [vmem:[#allocation6_spill] sm:$0xff] %v12921_v61  ;;  %v6237_v47 = vsel %vm2318_vm6, %v6235_v58, %v6236_v33  ;;  %v6345_v54 = vsel %vm2318_vm6, %v6236_v33, 0.0  ;;  %v6238_v18 = vrot.slane %v12921_v61, 7  ;;  %v6070_v31 = vpop.permute.xlu1 %6069 }
 0x739   : > { %v12927_v5 = vpack.c.bf16 %v6237_v47, %v6327_v37  ;;  %v6372_v57 = vpack.c.bf16 %v6345_v54, %v6345_v54  ;;  %v12931_v55 = vsel %vm2999_vm7, %v14340_v11, %v6070_v31  ;;  %v10043_v11 = vld [vmem:[%s14076_s7] sm:$0xff]  }
 0x73a   : > { %14341 = vst [vmem:[#allocation8_spill] sm:$0xff] %v12931_v55  ;;  %v6239_v35 = vrot.slane %v12931_v55, 7  ;;  %v6328_v45 = vsel %vm2318_vm6, 0.0, %v6238_v18 }
 0x73b   : > { %v6490_v62 = vshll.u32 %v12927_v5, 16  ;;  %v6495_v51 = vshll.u32 %v6372_v57, 16  ;;  %v6488_v20 = vshrl.u32 %v12927_v5, 16  ;;  %v6672_v22 = vrot.slane %v6372_v57, 1 }
 0x73c   : > { %v6240_v43 = vsel %vm2318_vm6, %v6238_v18, %v6239_v35  ;;  %v6346_v27 = vsel %vm2318_vm6, %v6239_v35, 0.0  ;;  %v6671_v58 = vrot.slane %v12927_v5, 1  ;;  %v6072_v54 = vpop.permute.xlu1 %6071  ;;  %v14342_v35 = vld [vmem:[#allocation11_spill] sm:$0xff] }
 0x73d   : > { %v12938_v59 = vpack.c.bf16 %v6240_v43, %v6328_v45  ;;  %v6374_v2 = vpack.c.bf16 %v6346_v27, %v6346_v27  ;;  %v6492_v10 = vrot.slane %v6490_v62, 1  ;;  %v6497_v1 = vrot.slane %v6495_v51, 1 }
 0x73e   : > { %v6673_v14 = vsel %vm971_vm0, %v6671_v58, %v6672_v22  ;;  %v12962_v62 = vsel %vm2999_vm7, %v14342_v35, %v6072_v54  ;;  %v14346_v58 = vld [vmem:[#allocation10_spill] sm:$0xff] }
 0x73f   : > { %v6507_v34 = vshll.u32 %v6374_v2, 16  ;;  %v6502_v44 = vshll.u32 %v12938_v59, 16  ;;  %v6493_v36 = vor.u32 %v6492_v10, %v6488_v20  ;;  %v6500_v49 = vshrl.u32 %v12938_v59, 16  ;;  %14343 = vst [vmem:[#allocation11_spill] sm:$0xff] %v12962_v62  ;;  %v14344_v20 = vld [vmem:[#allocation13_spill] sm:$0xff] }
 0x740   : > { %v6675_v48 = vrot.slane %v6374_v2, 1  ;;  %v6674_v37 = vrot.slane %v12938_v59, 1  ;;  %v6241_v27 = vrot.slane %v12962_v62, 7 }
 0x741   : > { %v6504_v38 = vrot.slane %v6502_v44, 1  ;;  %v6498_v26 = vsel %vm662_vm2, %v6493_v36, %v6497_v1  ;;  %v6509_v24 = vrot.slane %v6507_v34, 1 }
 0x742   : > { %6599 = vrot.lane.b32.xlu0 %v6498_v26, %s10088_s27  ;;  %v6676_v47 = vsel %vm971_vm0, %v6674_v37, %v6675_v48  ;;  %v6329_v1 = vsel %vm2318_vm6, 0.0, %v6241_v27 }
 0x743   : > { %v6505_v46 = vor.u32 %v6504_v38, %v6500_v49  ;;  %v10045_v38 = vld [vmem:[%s14076_s7 + $0x10] sm:$0xff]  }
 0x745   : > { %v6510_v33 = vsel %vm662_vm2, %v6505_v46, %v6509_v24 }
 0x746   : > { %6601 = vrot.lane.b32.xlu1 %v6510_v33, %s10088_s27  ;;  %6711 = vrot.lane.b32.xlu0 %v6673_v14, %s10087_s23 }
 0x74a   : > { %6713 = vrot.lane.b32.xlu0 %v6676_v47, %s10087_s23 }
 0x769   : > { %v12953_v18 = vpop.permute.xlu1 %6697 }
 0x76a   : > { %8835 = vmatprep.mubr.msk.bf16.mxu0 %vm1127_vm4, %v12953_v18 }
 0x76d   : > { %v6076_v31 = vpop.permute.xlu1 %6075 }
 0x76e   : > { %v12998_v24 = vsel %vm2999_vm7, %v14346_v58, %v6076_v31  ;;  %v10046_v31 = vld [vmem:[%s14076_s7 + $0x18] sm:$0xff]  }
 0x76f   : > { %v6586_v57 = vpop.permute.xlu0 %6585  ;;  %14347 = vst [vmem:[#allocation10_spill] sm:$0xff] %v12998_v24 }
 0x770   : > { %v6730_v51 = vsel %vm3096_vm8, %v12702_v12, %v6586_v57  ;;  %v10044_v12 = vld [vmem:[%s14076_s7 + $0x8] sm:$0xff]  }
 0x771   : > { %v12968_v45 = vsel %vm5053_vm10, %v6730_v51, %v12953_v18 }
 0x772   : > { %v12970_v43 = vpop.permute.xlu1 %6699  ;;  %6989 = vmatmul.mubr.bf16.vlgmr.msra.gmra.mrb[60].mxu0 %v12968_v45 }
 0x773   : > { %8903 = vmatprep.mubr.msk.bf16.mxu1 %vm1127_vm4, %v12970_v43  ;;  %v6074_v2 = vpop.permute.xlu0 %6073  ;;  %8836 = vmatprep.mubr.msk.bf16.mxu0 %vm1127_vm4, %v12970_v43 }
 0x774   : > { %7174 = vmatpush1.bf16.msra.mxu0 %v10043_v11  ;;  %v12983_v10 = vsel %vm2999_vm7, %v14344_v20, %v6074_v2  ;;  %v6244_v11 = vrot.slane %v12998_v24, 7 }
 0x775   : > { %14345 = vst [vmem:[#allocation13_spill] sm:$0xff] %v12983_v10  ;;  %7175 = vmatprep.subr.bf16.mxu0 %v14161_v13  ;;  %v6242_v34 = vrot.slane %v12983_v10, 7 }
 0x776   : > { %v6080_v44 = vpop.permute.xlu1 %6079 }
 0x777   : > { %v6243_v36 = vsel %vm2318_vm6, %v6241_v27, %v6242_v34  ;;  %v6347_v49 = vsel %vm2318_vm6, %v6242_v34, 0.0  ;;  %v6588_v46 = vpop.permute.xlu0 %6587 }
 0x778   : > { %7176 = vmatpush1.bf16.msra.mxu0 %v10044_v12  ;;  %v12993_v22 = vpack.c.bf16 %v6243_v36, %v6329_v1  ;;  %v6376_v26 = vpack.c.bf16 %v6347_v49, %v6347_v49  ;;  %v6732_v14 = vsel %vm3096_vm8, %v12743_v60, %v6588_v46  ;;  %v14348_v12 = vld [vmem:[#allocation12_spill] sm:$0xff]  ;;  %v10047_v49 = vld [vmem:[%s14076_s7 + $0x20] sm:$0xff]  }
 0x779   : > { %7177 = vmatprep.subr.bf16.mxu0 %v14161_v13  ;;  %v13007_v54 = vsel %vm5053_vm10, %v6732_v14, %v12970_v43 }
 0x77a   : > { %v13000_v33 = vpop.permute.xlu1 %6701  ;;  %v6678_v48 = vrot.slane %v6376_v26, 1  ;;  %v6677_v37 = vrot.slane %v12993_v22, 1  ;;  %v6519_v47 = vshll.u32 %v6376_v26, 16  ;;  %v6514_v57 = vshll.u32 %v12993_v22, 16  ;;  %6997 = vmatmul.mubr.bf16.gmra.mrb[64].mxu0 %v13007_v54  ;;  %7468 = vmatmul.mubr.bf16.vlgmr.msra.gmra.mrb[76].mxu1 %v13007_v54  ;;  %v14350_v26 = vld [vmem:[#allocation15_spill] sm:$0xff] }
 0x77b   : > { %v6078_v35 = vpop.permute.xlu0 %6077  ;;  %8837 = vmatprep.mubr.msk.bf16.mxu0 %vm1127_vm4, %v13000_v33  ;;  %v6512_v27 = vshrl.u32 %v12993_v22, 16  ;;  %8904 = vmatprep.mubr.msk.bf16.mxu1 %vm1127_vm4, %v13000_v33  ;;  %v13036_v58 = vsel %vm2999_vm7, %v14350_v26, %v6080_v44 }
 0x77c   : > { %7178 = vmatpush1.bf16.msra.mxu0 %v10045_v38  ;;  %v6679_v60 = vsel %vm971_vm0, %v6677_v37, %v6678_v48  ;;  %v6516_v2 = vrot.slane %v6514_v57, 1  ;;  %v13023_v20 = vsel %vm2999_vm7, %v14348_v12, %v6078_v35  ;;  %v6521_v34 = vrot.slane %v6519_v47, 1  ;;  %14351 = vst [vmem:[#allocation15_spill] sm:$0xff] %v13036_v58 }
 0x77d   : > { %6715 = vrot.lane.b32.xlu0 %v6679_v60, %s10087_s23  ;;  %14349 = vst [vmem:[#allocation12_spill] sm:$0xff] %v13023_v20  ;;  %7179 = vmatprep.subr.bf16.mxu0 %v14161_v13  ;;  %v6245_v1 = vrot.slane %v13023_v20, 7  ;;  %v6330_v38 = vsel %vm2318_vm6, 0.0, %v6244_v11  ;;  %v6247_v35 = vrot.slane %v13036_v58, 7 }
 0x77e   : > { %v6084_v51 = vpop.permute.xlu1 %6083  ;;  %v6517_v36 = vor.u32 %v6516_v2, %v6512_v27 }
 0x77f   : > { %v6246_v46 = vsel %vm2318_vm6, %v6244_v11, %v6245_v1  ;;  %v6348_v48 = vsel %vm2318_vm6, %v6245_v1, 0.0  ;;  %v6590_v14 = vpop.permute.xlu0 %6589  ;;  %v10048_v11 = vld [vmem:[%s14076_s7 + $0x28] sm:$0xff]  }
 0x780   : > { %7180 = vmatpush1.bf16.msra.mxu0 %v10046_v31  ;;  %v6522_v37 = vsel %vm662_vm2, %v6517_v36, %v6521_v34  ;;  %v13043_v57 = vpack.c.bf16 %v6246_v46, %v6330_v38  ;;  %v6378_v31 = vpack.c.bf16 %v6348_v48, %v6348_v48  ;;  %v6734_v60 = vsel %vm3096_vm8, %v12774_v15, %v6590_v14  ;;  %v14352_v36 = vld [vmem:[#allocation17_spill] sm:$0xff]  ;;  %v10049_v14 = vld [vmem:[%s14076_s7 + $0x30] sm:$0xff]  }
 0x781   : > { %7181 = vmatprep.subr.bf16.mxu0 %v14161_v13  ;;  %6603 = vrot.lane.b32.xlu1 %v6522_v37, %s10088_s27  ;;  %v13050_v44 = vsel %vm5053_vm10, %v6734_v60, %v13000_v33  ;;  %v6331_v37 = vsel %vm2318_vm6, 0.0, %v6247_v35 }
 0x782   : > { %v13041_v47 = vpop.permute.xlu1 %6703  ;;  %v6681_v27 = vrot.slane %v6378_v31, 1  ;;  %7005 = vmatmul.mubr.bf16.gmra.mrb[68].mxu0 %v13050_v44  ;;  %7476 = vmatmul.mubr.bf16.gmra.mrb[80].mxu1 %v13050_v44  ;;  %v6680_v15 = vrot.slane %v13043_v57, 1  ;;  %v6531_v2 = vshll.u32 %v6378_v31, 16  ;;  %v6526_v1 = vshll.u32 %v13043_v57, 16  ;;  %v14354_v31 = vld [vmem:[#allocation14_spill] sm:$0xff] }
 0x783   : > { %v6082_v12 = vpop.permute.xlu0 %6081  ;;  %8838 = vmatprep.mubr.msk.bf16.mxu0 %vm1127_vm4, %v13041_v47  ;;  %8905 = vmatprep.mubr.msk.bf16.mxu1 %vm1127_vm4, %v13041_v47  ;;  %v6524_v46 = vshrl.u32 %v13043_v57, 16  ;;  %v13079_v60 = vsel %vm2999_vm7, %v14354_v31, %v6084_v51 }
 0x784   : > { %7182 = vmatpush1.bf16.msra.mxu0 %v10047_v49  ;;  %v13066_v49 = vsel %vm2999_vm7, %v14352_v36, %v6082_v12  ;;  %v6682_v38 = vsel %vm971_vm0, %v6680_v15, %v6681_v27  ;;  %v6528_v48 = vrot.slane %v6526_v1, 1  ;;  %14355 = vst [vmem:[#allocation14_spill] sm:$0xff] %v13079_v60  ;;  %v6533_v27 = vrot.slane %v6531_v2, 1 }
 0x785   : > { %14353 = vst [vmem:[#allocation17_spill] sm:$0xff] %v13066_v49  ;;  %7183 = vmatprep.subr.bf16.mxu0 %v14161_v13  ;;  %v6248_v26 = vrot.slane %v13066_v49, 7  ;;  %6717 = vrot.lane.b32.xlu0 %v6682_v38, %s10087_s23 }
 0x786   : > { %v6088_v34 = vpop.permute.xlu1 %6087  ;;  %v6529_v1 = vor.u32 %v6528_v48, %v6524_v46 }
 0x787   : > { %v6249_v15 = vsel %vm2318_vm6, %v6247_v35, %v6248_v26  ;;  %v6349_v12 = vsel %vm2318_vm6, %v6248_v26, 0.0  ;;  %v6592_v36 = vpop.permute.xlu0 %6591  ;;  %v6250_v35 = vrot.slane %v13079_v60, 7 }
 0x788   : > { %7184 = vmatpush1.bf16.msra.mxu0 %v10048_v11  ;;  %v13086_v38 = vpack.c.bf16 %v6249_v15, %v6331_v37  ;;  %v6380_v21 = vpack.c.bf16 %v6349_v12, %v6349_v12  ;;  %v6736_v49 = vsel %vm3096_vm8, %v12800_v9, %v6592_v36  ;;  %v6534_v51 = vsel %vm662_vm2, %v6529_v1, %v6533_v27  ;;  %v14358_v1 = vld [vmem:[#allocation19_spill] sm:$0xff] }
 0x789   : > { %7185 = vmatprep.subr.bf16.mxu0 %v14161_v13  ;;  %v13093_v31 = vsel %vm5053_vm10, %v6736_v49, %v13041_v47  ;;  %6605 = vrot.lane.b32.xlu1 %v6534_v51, %s10088_s27  ;;  %v6332_v36 = vsel %vm2318_vm6, 0.0, %v6250_v35  ;;  %v13117_v51 = vsel %vm2999_vm7, %v14358_v1, %v6088_v34  ;;  %v10050_v34 = vld [vmem:[%s14076_s7 + $0x38] sm:$0xff]  }
 0x78a   : > { %v13084_v11 = vpop.permute.xlu1 %6705  ;;  %v6684_v2 = vrot.slane %v6380_v21, 1  ;;  %7013 = vmatmul.mubr.bf16.gmra.mrb[72].mxu0 %v13093_v31  ;;  %v6683_v26 = vrot.slane %v13086_v38, 1  ;;  %v6543_v46 = vshll.u32 %v6380_v21, 16  ;;  %7484 = vmatmul.mubr.bf16.gmra.mrb[84].mxu1 %v13093_v31  ;;  %v6538_v49 = vshll.u32 %v13086_v38, 16  ;;  %14359 = vst [vmem:[#allocation19_spill] sm:$0xff] %v13117_v51 }
 0x78b   : > { %v6086_v9 = vpop.permute.xlu0 %6085  ;;  %8839 = vmatprep.mubr.msk.bf16.mxu0 %vm1127_vm4, %v13084_v11  ;;  %8906 = vmatprep.mubr.msk.bf16.mxu1 %vm1127_vm4, %v13084_v11  ;;  %v6536_v15 = vshrl.u32 %v13086_v38, 16 }
 0x78c   : > { %7186 = vmatpush1.bf16.msra.mxu0 %v10049_v14  ;;  %v14356_v14 = vld [vmem:[#allocation16_spill] sm:$0xff]  ;;  %v6685_v27 = vsel %vm971_vm0, %v6683_v26, %v6684_v2  ;;  %v6540_v12 = vrot.slane %v6538_v49, 1 }
 0x78d   : > { %v13105_v37 = vsel %vm2999_vm7, %v14356_v14, %v6086_v9  ;;  %7187 = vmatprep.subr.bf16.mxu0 %v14161_v13  ;;  %6719 = vrot.lane.b32.xlu0 %v6685_v27, %s10087_s23  ;;  %v6545_v9 = vrot.slane %v6543_v46, 1 }
 0x78e   : > { %v6092_v48 = vpop.permute.xlu1 %6091  ;;  %14357 = vst [vmem:[#allocation16_spill] sm:$0xff] %v13105_v37  ;;  %v6251_v21 = vrot.slane %v13105_v37, 7  ;;  %v6541_v13 = vor.u32 %v6540_v12, %v6536_v15 }
 0x78f   : > { %v6594_v26 = vpop.permute.xlu0 %6593 }
 0x790   : > { %v6252_v14 = vsel %vm2318_vm6, %v6250_v35, %v6251_v21  ;;  %v6350_v2 = vsel %vm2318_vm6, %v6251_v21, 0.0  ;;  %v6738_v49 = vsel %vm3096_vm8, %v12834_v6, %v6594_v26  ;;  %v6546_v46 = vsel %vm662_vm2, %v6541_v13, %v6545_v9  ;;  %7188 = vmatpush1.bf16.msra.mxu0 %v10050_v34 }
 0x791   : > { %v13123_v37 = vpack.c.bf16 %v6252_v14, %v6332_v36  ;;  %v6382_v27 = vpack.c.bf16 %v6350_v2, %v6350_v2  ;;  %v13133_v35 = vsel %vm5053_vm10, %v6738_v49, %v13084_v11  ;;  %v6253_v21 = vrot.slane %v13117_v51, 7  ;;  %6607 = vrot.lane.b32.xlu1 %v6546_v46, %s10088_s27  ;;  %v14362_v51 = vld [vmem:[#allocation21_spill] sm:$0xff] }
 0x792   : > { %v13121_v60 = vpop.permute.xlu1 %6707  ;;  %7021 = vmatmul.mubr.bf16.gmra.mrb[76].mxu0 %v13133_v35  ;;  %7492 = vmatmul.mubr.bf16.gmra.mrb[88].mxu1 %v13133_v35  ;;  %v14361_v49 = vmov 0  }
 0x793   : > { %v6687_v15 = vrot.slane %v6382_v27, 1  ;;  %v6686_v12 = vrot.slane %v13123_v37, 1  ;;  %v6555_v6 = vshll.u32 %v6382_v27, 16  ;;  %v6090_v36 = vpop.permute.xlu0 %6089  ;;  %8840 = vmatprep.mubr.msk.bf16.mxu0 %vm1127_vm4, %v13121_v60  ;;  %v6550_v1 = vshll.u32 %v13123_v37, 16  ;;  %8907 = vmatprep.mubr.msk.bf16.mxu1 %vm1127_vm4, %v13121_v60 }
 0x794   : > { %v13145_v9 = vsel %vm2999_vm7, %v12132_v16, %v6090_v36  ;;  %v6548_v26 = vshrl.u32 %v13123_v37, 16  ;;  %7189 = vmatprep.subr.bf16.mxu0 %v14361_v49  ;;  %v6333_v46 = vsel %vm2318_vm6, 0.0, %v6253_v21  ;;  %v13157_v16 = vsel %vm2999_vm7, %v14362_v51, %v6092_v48 }
 0x795   : > { %14360 = vst [vmem:[#allocation35_spill] sm:$0xff] %v13145_v9  ;;  %v6688_v14 = vsel %vm971_vm0, %v6686_v12, %v6687_v15  ;;  %v6254_v2 = vrot.slane %v13145_v9, 7  ;;  %v6552_v27 = vrot.slane %v6550_v1, 1  ;;  %14363 = vst [vmem:[#allocation21_spill] sm:$0xff] %v13157_v16  ;;  %v6557_v36 = vrot.slane %v6555_v6, 1 }
 0x796   : > { %v6096_v13 = vpop.permute.xlu1 %6095  ;;  %6721 = vrot.lane.b32.xlu0 %v6688_v14, %s10087_s23  ;;  %v6256_v51 = vrot.slane %v13157_v16, 7  ;;  %v14366_v16 = vld [vmem:[#allocation20_spill] sm:$0xff] }
 0x797   : > { %v6255_v58 = vsel %vm2318_vm6, %v6253_v21, %v6254_v2  ;;  %v6351_v34 = vsel %vm2318_vm6, %v6254_v2, 0.0  ;;  %v6596_v15 = vpop.permute.xlu0 %6595  ;;  %v6553_v12 = vor.u32 %v6552_v27, %v6548_v26  ;;  %v14364_v26 = vld [vmem:[#allocation18_spill] sm:$0xff]  ;;  %v13192_v24 = vsel %vm2999_vm7, %v14366_v16, %v6096_v13 }
 0x798   : > { %v13163_v14 = vpack.c.bf16 %v6255_v58, %v6333_v46  ;;  %v6384_v1 = vpack.c.bf16 %v6351_v34, %v6351_v34  ;;  %v6740_v49 = vsel %vm3096_vm8, %v12857_v40, %v6596_v15  ;;  %14367 = vst [vmem:[#allocation20_spill] sm:$0xff] %v13192_v24 }
 0x799   : > { %v6558_v20 = vsel %vm662_vm2, %v6553_v12, %v6557_v36  ;;  %v13170_v48 = vsel %vm5053_vm10, %v6740_v49, %v13121_v60  ;;  %v6334_v49 = vsel %vm2318_vm6, 0.0, %v6256_v51 }
 0x79a   : > { %v13161_v9 = vpop.permute.xlu1 %6709  ;;  %v6690_v21 = vrot.slane %v6384_v1, 1  ;;  %6609 = vrot.lane.b32.xlu1 %v6558_v20, %s10088_s27  ;;  %7029 = vmatmul.mubr.bf16.gmra.mrb[80].mxu0 %v13170_v48  ;;  %v6689_v58 = vrot.slane %v13163_v14, 1  ;;  %v6562_v2 = vshll.u32 %v13163_v14, 16  ;;  %v6567_v36 = vshll.u32 %v6384_v1, 16 }
 0x79b   : > { %7500 = vmatmul.mubr.bf16.gmra.mrb[92].mxu1 %v13170_v48  ;;  %v6094_v6 = vpop.permute.xlu0 %6093  ;;  %8841 = vmatprep.mubr.msk.bf16.mxu0 %vm1127_vm4, %v13161_v9  ;;  %v6560_v10 = vshrl.u32 %v13163_v14, 16 }
 0x79c   : > { %v13182_v27 = vsel %vm2999_vm7, %v14364_v26, %v6094_v6  ;;  %8908 = vmatprep.mubr.msk.bf16.mxu1 %vm1127_vm4, %v13161_v9  ;;  %v6691_v20 = vsel %vm971_vm0, %v6689_v58, %v6690_v21  ;;  %v6564_v12 = vrot.slane %v6562_v2, 1  ;;  %v14368_v6 = vld [vmem:[#allocation27_spill] sm:$0xff]  ;;  %v6569_v16 = vrot.slane %v6567_v36, 1 }
 0x79d   : > { %14365 = vst [vmem:[#allocation18_spill] sm:$0xff] %v13182_v27  ;;  %v6257_v34 = vrot.slane %v13182_v27, 7  ;;  %6723 = vrot.lane.b32.xlu0 %v6691_v20, %s10087_s23  ;;  %v14369_v27 = vld [vmem:[#allocation28_spill] sm:$0xff] }
 0x79e   : > { %v9936_v40 = vpop.permute.xlu1 %9935 }
 0x79f   : > { %v9938_v46 = vunpack.i.h.bf16 %v9936_v40  ;;  %v9937_v15 = vunpack.i.l.bf16 %v9936_v40  ;;  %v6258_v21 = vsel %vm2318_vm6, %v6256_v51, %v6257_v34  ;;  %v6352_v1 = vsel %vm2318_vm6, %v6257_v34, 0.0  ;;  %v6598_v2 = vpop.permute.xlu0 %6597 }
 0x7a0   : > { %v13201_v20 = vpack.c.bf16 %v6258_v21, %v6334_v49  ;;  %v6386_v62 = vpack.c.bf16 %v6352_v1, %v6352_v1  ;;  %v6742_v13 = vsel %vm3096_vm8, %v12881_v28, %v6598_v2  ;;  %v14370_v21 = vld [vmem:[#allocation23_spill] sm:$0xff] }
 0x7a1   : > { %v6140_v26 = vsel %vm2999_vm7, %v14368_v6, %v9938_v46  ;;  %v6139_v40 = vsel %vm2999_vm7, %v14369_v27, %v9937_v15  ;;  %v6565_v46 = vor.u32 %v6564_v12, %v6560_v10  ;;  %v13207_v6 = vsel %vm5053_vm10, %v6742_v13, %v13161_v9  ;;  %v10051_v27 = vld [vmem:[%s14076_s7 + $0x40] sm:$0xff]  }
 0x7a2   : > { %v6212_v58 = vrot.slane %v6140_v26, 7  ;;  %v6211_v55 = vrot.slane %v6139_v40, 7  ;;  %v6693_v51 = vrot.slane %v6386_v62, 1  ;;  %7037 = vmatmul.mubr.bf16.gmra.mrb[84].mxu0 %v13207_v6  ;;  %v6259_v15 = vrot.slane %v13192_v24, 7 }
 0x7a3   : > { %v6570_v28 = vsel %vm662_vm2, %v6565_v46, %v6569_v16  ;;  %7508 = vmatmul.mubr.bf16.gmra.mrb[96].mxu1 %v13207_v6  ;;  %v6098_v10 = vpop.permute.xlu0 %6097  ;;  %v6692_v36 = vrot.slane %v13201_v20, 1  ;;  %v6579_v12 = vshll.u32 %v6386_v62, 16  ;;  %v6574_v40 = vshll.u32 %v13201_v20, 16  ;;  %7190 = vmatpush1.bf16.msra.mxu0 %v10051_v27 }
 0x7a4   : > { %v6213_v34 = vsel %vm2318_vm6, %v6211_v55, %v6212_v58  ;;  %v6319_v49 = vsel %vm2318_vm6, 0.0, %v6211_v55  ;;  %v6337_v26 = vsel %vm2318_vm6, %v6212_v58, 0.0  ;;  %6611 = vrot.lane.b32.xlu1 %v6570_v28, %s10088_s27  ;;  %v13223_v1 = vsel %vm2999_vm7, %v14370_v21, %v6098_v10 }
 0x7a5   : > { %14371 = vst [vmem:[#allocation27_spill] sm:$0xff] %v13223_v1  ;;  %v13226_v55 = vpack.c.bf16 %v6213_v34, %v6319_v49  ;;  %v6260_v2 = vrot.slane %v13223_v1, 7  ;;  %v6694_v13 = vsel %vm971_vm0, %v6692_v36, %v6693_v51  ;;  %v6572_v62 = vshrl.u32 %v13201_v20, 16 }
 0x7a6   : > { %6725 = vrot.lane.b32.xlu0 %v6694_v13, %s10087_s23  ;;  %v6576_v58 = vrot.slane %v6574_v40, 1  ;;  %v6335_v16 = vsel %vm2318_vm6, 0.0, %v6259_v15  ;;  %v6356_v46 = vpack.c.bf16 %v6337_v26, %v6337_v26  ;;  %v6581_v21 = vrot.slane %v6579_v12, 1 }
 0x7a7   : > { %v6261_v28 = vsel %vm2318_vm6, %v6259_v15, %v6260_v2  ;;  %v6353_v10 = vsel %vm2318_vm6, %v6260_v2, 0.0  ;;  %v6394_v1 = vshll.u32 %v13226_v55, 16  ;;  %v6647_v12 = vrot.slane %v13226_v55, 1 }
 0x7a8   : > { %v13235_v27 = vpack.c.bf16 %v6261_v28, %v6335_v16  ;;  %v6388_v34 = vpack.c.bf16 %v6353_v10, %v6353_v10  ;;  %v6577_v49 = vor.u32 %v6576_v58, %v6572_v62  ;;  %v6648_v2 = vrot.slane %v6356_v46, 1 }
 0x7a9   : > { %v6396_v16 = vrot.slane %v6394_v1, 1 }
 0x7aa   : > { %v6842_v51 = vrot.slane %v6388_v34, 1  ;;  %v6582_v36 = vsel %vm662_vm2, %v6577_v49, %v6581_v21  ;;  %v6841_v13 = vrot.slane %v13235_v27, 1  ;;  %v6833_v40 = vshll.u32 %v6388_v34, 16 }
 0x7ab   : > { %6613 = vrot.lane.b32.xlu1 %v6582_v36, %s10088_s27  ;;  %v6828_v26 = vshll.u32 %v13235_v27, 16  ;;  %v6826_v62 = vshrl.u32 %v13235_v27, 16  ;;  %v6392_v21 = vshrl.u32 %v13226_v55, 16  ;;  %v6399_v34 = vshll.u32 %v6356_v46, 16 }
 0x7ac   : > { %v6843_v15 = vsel %vm971_vm0, %v6841_v13, %v6842_v51  ;;  %v6835_v28 = vrot.slane %v6833_v40, 1  ;;  %v6649_v49 = vsel %vm971_vm0, %v6647_v12, %v6648_v2 }
 0x7ad   : > { %6844 = vrot.lane.b32.xlu0 %v6843_v15, %s10087_s23  ;;  %v6830_v58 = vrot.slane %v6828_v26, 1  ;;  %v6397_v36 = vor.u32 %v6396_v16, %v6392_v21  ;;  %v6401_v15 = vrot.slane %v6399_v34, 1 }
 0x7af   : > { %v6831_v10 = vor.u32 %v6830_v58, %v6826_v62  ;;  %v6402_v24 = vsel %vm662_vm2, %v6397_v36, %v6401_v15 }
 0x7b1   : > { %6695 = vrot.lane.b32.xlu0 %v6649_v49, %s10087_s23  ;;  %v6836_v51 = vsel %vm662_vm2, %v6831_v10, %v6835_v28 }
 0x7b2   : > { %6837 = vrot.lane.b32.xlu1 %v6836_v51, %s10088_s27 }
 0x7b4   : > { %v6600_v13 = vpop.permute.xlu0 %6599 }
 0x7b5   : > { %v6744_v1 = vsel %vm3096_vm8, %v12927_v5, %v6600_v13 }
 0x7b6   : > { %6583 = vrot.lane.b32.xlu1 %v6402_v24, %s10088_s27  ;;  %v14372_v24 = vpack.i.bf16 %v12734_v25, %v12731_v7 }
 0x7b8   : > { %v13254_v40 = vpop.permute.xlu0 %6711  ;;  %v6602_v5 = vpop.permute.xlu1 %6601 }
 0x7b9   : > { %8842 = vmatprep.mubr.msk.bf16.mxu0 %vm1127_vm4, %v13254_v40  ;;  %v13261_v46 = vsel %vm5053_vm10, %v6744_v1, %v13254_v40  ;;  %8909 = vmatprep.mubr.msk.bf16.mxu1 %vm1127_vm4, %v13254_v40  ;;  %v6746_v12 = vsel %vm3096_vm8, %v12938_v59, %v6602_v5 }
 0x7ba   : > { %7045 = vmatmul.mubr.bf16.gmra.mrb[88].mxu0 %v13261_v46  ;;  %7516 = vmatmul.mubr.bf16.gmra.mrb[100].mxu1 %v13261_v46 }
 0x7bb   : > { %9940 = vrot.lane.b32.xlu1 %v14372_v24, %s10084_s28 }
 0x7bc   : > { %v13267_v26 = vpop.permute.xlu0 %6713 }
 0x7bd   : > { %8843 = vmatprep.mubr.msk.bf16.mxu0 %vm1127_vm4, %v13267_v26  ;;  %8910 = vmatprep.mubr.msk.bf16.mxu1 %vm1127_vm4, %v13267_v26  ;;  %v13281_v2 = vsel %vm5053_vm10, %v6746_v12, %v13267_v26 }
 0x7c2   : > { %7053 = vmatmul.mubr.bf16.gmra.mrb[92].mxu0 %v13281_v2  ;;  %7524 = vmatmul.mubr.bf16.gmra.mrb[104].mxu1 %v13281_v2 }
 0x7ef   : > { %v13285_v62 = vpop.permute.xlu0 %6715 }
 0x7f0   : > { %8844 = vmatprep.mubr.msk.bf16.mxu0 %vm1127_vm4, %v13285_v62  ;;  %8911 = vmatprep.mubr.msk.bf16.mxu1 %vm1127_vm4, %v13285_v62 }
 0x7f3   : > { %v6604_v7 = vpop.permute.xlu1 %6603 }
 0x7f4   : > { %v6748_v25 = vsel %vm3096_vm8, %v12993_v22, %v6604_v7 }
 0x7f5   : > { %v13295_v59 = vsel %vm5053_vm10, %v6748_v25, %v13285_v62 }
 0x7f6   : > { %7061 = vmatmul.mubr.bf16.gmra.mrb[96].mxu0 %v13295_v59  ;;  %7532 = vmatmul.mubr.bf16.gmra.mrb[108].mxu1 %v13295_v59 }
 0x7f7   : > { %v13299_v58 = vpop.permute.xlu0 %6717 }
 0x7f8   : > { %8845 = vmatprep.mubr.msk.bf16.mxu0 %vm1127_vm4, %v13299_v58  ;;  %8912 = vmatprep.mubr.msk.bf16.mxu1 %vm1127_vm4, %v13299_v58 }
 0x7fb   : > { %v6606_v16 = vpop.permute.xlu1 %6605 }
 0x7fc   : > { %v6750_v22 = vsel %vm3096_vm8, %v13043_v57, %v6606_v16 }
 0x7fd   : > { %v13309_v28 = vsel %vm5053_vm10, %v6750_v22, %v13299_v58 }
 0x7fe   : > { %7069 = vmatmul.mubr.bf16.gmra.mrb[100].mxu0 %v13309_v28  ;;  %7540 = vmatmul.mubr.bf16.gmra.mrb[112].mxu1 %v13309_v28 }
 0x7ff   : > { %v13313_v10 = vpop.permute.xlu0 %6719 }
 0x800   : > { %8846 = vmatprep.mubr.msk.bf16.mxu0 %vm1127_vm4, %v13313_v10  ;;  %8913 = vmatprep.mubr.msk.bf16.mxu1 %vm1127_vm4, %v13313_v10 }
 0x803   : > { %v6608_v21 = vpop.permute.xlu1 %6607 }
 0x804   : > { %v6752_v57 = vsel %vm3096_vm8, %v13086_v38, %v6608_v21 }
 0x805   : > { %v13323_v34 = vsel %vm5053_vm10, %v6752_v57, %v13313_v10 }
 0x806   : > { %7077 = vmatmul.mubr.bf16.gmra.mrb[104].mxu0 %v13323_v34  ;;  %7548 = vmatmul.mubr.bf16.gmra.mrb[116].mxu1 %v13323_v34 }
 0x808   : > { %v13327_v49 = vpop.permute.xlu0 %6721 }
 0x809   : > { %8847 = vmatprep.mubr.msk.bf16.mxu0 %vm1127_vm4, %v13327_v49  ;;  %8914 = vmatprep.mubr.msk.bf16.mxu1 %vm1127_vm4, %v13327_v49 }
 0x80c   : > { %v6610_v51 = vpop.permute.xlu1 %6609 }
 0x80d   : > { %v6754_v38 = vsel %vm3096_vm8, %v13123_v37, %v6610_v51 }
 0x80e   : > { %v13337_v36 = vsel %vm5053_vm10, %v6754_v38, %v13327_v49 }
 0x80f   : > { %7085 = vmatmul.mubr.bf16.gmra.mrb[108].mxu0 %v13337_v36  ;;  %7556 = vmatmul.mubr.bf16.gmra.mrb[120].mxu1 %v13337_v36  ;;  %v13341_v13 = vpop.permute.xlu0 %6723 }
 0x810   : > { %8848 = vmatprep.mubr.msk.bf16.mxu0 %vm1127_vm4, %v13341_v13  ;;  %8915 = vmatprep.mubr.msk.bf16.mxu1 %vm1127_vm4, %v13341_v13 }
 0x816   : > { %v6612_v15 = vpop.permute.xlu1 %6611 }
 0x817   : > { %v6756_v37 = vsel %vm3096_vm8, %v13163_v14, %v6612_v15 }
 0x818   : > { %v13351_v1 = vsel %vm5053_vm10, %v6756_v37, %v13341_v13  ;;  %v13353_v5 = vpop.permute.xlu0 %6725 }
 0x819   : > { %7093 = vmatmul.mubr.bf16.gmra.mrb[112].mxu0 %v13351_v1  ;;  %7564 = vmatmul.mubr.bf16.gmra.mrb[124].mxu1 %v13351_v1 }
 0x81a   : > { %8849 = vmatprep.mubr.msk.bf16.mxu0 %vm1127_vm4, %v13353_v5  ;;  %8916 = vmatprep.mubr.msk.bf16.mxu1 %vm1127_vm4, %v13353_v5 }
 0x81d   : > { %v6614_v24 = vpop.permute.xlu1 %6613 }
 0x81e   : > { %v6758_v14 = vsel %vm3096_vm8, %v13201_v20, %v6614_v24 }
 0x81f   : > { %v13365_v12 = vsel %vm5053_vm10, %v6758_v14, %v13353_v5  ;;  %v6845_v7 = vpop.permute.xlu0 %6844 }
 0x821   : > { %7101 = vmatmul.mubr.bf16.gmra.mrb[116].mxu0 %v13365_v12  ;;  %7572 = vmatmul.mubr.bf16.gmra.mrb[128].mxu1 %v13365_v12 }
 0x822   : > { %8850 = vmatprep.mubr.msk.bf16.mxu0 %vm1127_vm4, %v6845_v7  ;;  %8917 = vmatprep.mubr.msk.bf16.mxu1 %vm1127_vm4, %v6845_v7 }
 0x823   : > { %v6696_v21 = vpop.permute.xlu0 %6695 }
 0x824   : > { %v6838_v25 = vpop.permute.xlu1 %6837 }
 0x825   : > { %v6847_v16 = vsel %vm3096_vm8, %v13235_v27, %v6838_v25 }
 0x826   : > { %v6849_v22 = vsel %vm5053_vm10, %v6847_v16, %v6845_v7 }
 0x828   : > { %v6584_v20 = vpop.permute.xlu1 %6583 }
 0x829   : > { %7109 = vmatmul.mubr.bf16.gmra.mrb[120].mxu0 %v6849_v22  ;;  %7580 = vmatmul.mubr.bf16.gmra.mrb[132].mxu1 %v6849_v22  ;;  %v6728_v51 = vsel %vm3096_vm8, %v13226_v55, %v6584_v20 }
 0x82a   : > { %8860 = vmatprep.mubr.msk.bf16.mxu0 %vm1127_vm4, %v6696_v21  ;;  %v6760_v24 = vsel %vm5053_vm10, %v6728_v51, %v6696_v21 }
 0x82d   : > { %v9941_v57 = vpop.permute.xlu1 %9940 }
 0x82e   : > { %v9943_v38 = vunpack.i.h.bf16 %v9941_v57  ;;  %v9942_v15 = vunpack.i.l.bf16 %v9941_v57 }
 0x830   : > { %v6174_v37 = vsel %vm2999_vm7, %v12228_v63, %v9943_v38  ;;  %v6173_v27 = vsel %vm2999_vm7, %v12232_v0, %v9942_v15 }
 0x831   : > { %v6263_v14 = vrot.slane %v6174_v37, 7  ;;  %v6262_v7 = vrot.slane %v6173_v27, 7  ;;  %7206 = vmatmul.mubr.bf16.vlgmr.msra.gmra.mrb[124].mxu0 %v6760_v24 }
 0x832   : > { %8861 = vmatprep.mubr.msk.bf16.mxu0 %vm1127_vm4, %v12953_v18 }
 0x833   : > { %v6354_v25 = vsel %vm2318_vm6, %v6263_v14, 0.0  ;;  %v6264_v16 = vsel %vm2318_vm6, %v6262_v7, %v6263_v14  ;;  %v6336_v22 = vsel %vm2318_vm6, 0.0, %v6262_v7 }
 0x834   : > { %v6390_v55 = vpack.c.bf16 %v6354_v25, %v6354_v25  ;;  %v13387_v20 = vpack.c.bf16 %v6264_v16, %v6336_v22 }
 0x836   : > { %v7350_v63 = vrot.slane %v13387_v20, 1  ;;  %v7351_v0 = vrot.slane %v6390_v55, 1  ;;  %v7337_v21 = vshll.u32 %v13387_v20, 16  ;;  %v7342_v57 = vshll.u32 %v6390_v55, 16 }
 0x837   : > { %v7335_v38 = vshrl.u32 %v13387_v20, 16 }
 0x838   : > { %v7352_v51 = vsel %vm971_vm0, %v7350_v63, %v7351_v0  ;;  %v7339_v15 = vrot.slane %v7337_v21, 1  ;;  %v7344_v18 = vrot.slane %v7342_v57, 1  ;;  %vm8334_vm0 = vcmask 1044484  }
 0x839   : > { %7353 = vrot.lane.b32.xlu1 %v7352_v51, %s10087_s23  ;;  %7214 = vmatmul.mubr.bf16.gmra.mrb[128].mxu0 %v12968_v45 }
 0x83a   : > { %v7340_v37 = vor.u32 %v7339_v15, %v7335_v38  ;;  %8862 = vmatprep.mubr.msk.bf16.mxu0 %vm1127_vm4, %v12970_v43 }
 0x83c   : > { %v7345_v27 = vsel %vm662_vm2, %v7340_v37, %v7344_v18  ;;  %vm8338_vm2 = vcmask 1046534  }
 0x83d   : > { %7346 = vrot.lane.b32.xlu0 %v7345_v27, %s10088_s27 }
 0x841   : > { %7222 = vmatmul.mubr.bf16.gmra.mrb[132].mxu0 %v13007_v54 }
 0x842   : > { %8863 = vmatprep.mubr.msk.bf16.mxu0 %vm1127_vm4, %v13000_v33 }
 0x845   : > { %v13402_v24 = vpop.f32.mrb[60].mxu0 }
 0x846   : > { %v6992_v14 = vpop.f32.mrb[61].mxu0 }
 0x847   : > { %v13404_v7 = vpop.f32.mrb[62].mxu0 }
 0x848   : > { %v6995_v45 = vpop.f32.mrb[63].mxu0 }
 0x849   : > { %7230 = vmatmul.mubr.bf16.gmra.mrb[136].mxu0 %v13050_v44 }
 0x84a   : > { %8864 = vmatprep.mubr.msk.bf16.mxu0 %vm1127_vm4, %v13041_v47 }
 0x84d   : > { %v13409_v43 = vpop.f32.mrb[64].mxu0  ;;  %v13411_v25 = vpop.f32.mrb[76].mxu1 }
 0x84e   : > { %v7000_v16 = vpop.f32.mrb[65].mxu0  ;;  %v7471_v54 = vpop.f32.mrb[77].mxu1 }
 0x84f   : > { %v13413_v22 = vpop.f32.mrb[66].mxu0  ;;  %v13415_v33 = vpop.f32.mrb[78].mxu1 }
 0x850   : > { %v7003_v55 = vpop.f32.mrb[67].mxu0  ;;  %v7474_v63 = vpop.f32.mrb[79].mxu1 }
 0x851   : > { %7238 = vmatmul.mubr.bf16.gmra.mrb[140].mxu0 %v13093_v31 }
 0x852   : > { %8865 = vmatprep.mubr.msk.bf16.mxu0 %vm1127_vm4, %v13084_v11 }
 0x855   : > { %v13420_v44 = vpop.f32.mrb[68].mxu0  ;;  %v13422_v47 = vpop.f32.mrb[80].mxu1 }
 0x856   : > { %v7008_v0 = vpop.f32.mrb[69].mxu0  ;;  %v7479_v21 = vpop.f32.mrb[81].mxu1 }
 0x857   : > { %v13424_v57 = vpop.f32.mrb[70].mxu0  ;;  %v13426_v51 = vpop.f32.mrb[82].mxu1 }
 0x858   : > { %v7011_v38 = vpop.f32.mrb[71].mxu0  ;;  %v7482_v15 = vpop.f32.mrb[83].mxu1 }
 0x859   : > { %7246 = vmatmul.mubr.bf16.gmra.mrb[144].mxu0 %v13133_v35 }
 0x85a   : > { %8866 = vmatprep.mubr.msk.bf16.mxu0 %vm1127_vm4, %v13121_v60 }
 0x85d   : > { %v13431_v31 = vpop.f32.mrb[72].mxu0  ;;  %v13433_v11 = vpop.f32.mrb[84].mxu1 }
 0x85e   : > { %v7016_v37 = vpop.f32.mrb[73].mxu0  ;;  %v7487_v18 = vpop.f32.mrb[85].mxu1 }
 0x85f   : > { %v13435_v27 = vpop.f32.mrb[74].mxu0  ;;  %v13437_v14 = vpop.f32.mrb[86].mxu1 }
 0x860   : > { %v7019_v45 = vpop.f32.mrb[75].mxu0  ;;  %v7490_v16 = vpop.f32.mrb[87].mxu1 }
 0x861   : > { %7254 = vmatmul.mubr.bf16.gmra.mrb[148].mxu0 %v13170_v48 }
 0x862   : > { %8867 = vmatprep.mubr.msk.bf16.mxu0 %vm1127_vm4, %v13161_v9 }
 0x865   : > { %v13442_v35 = vpop.f32.mrb[76].mxu0  ;;  %v13444_v60 = vpop.f32.mrb[88].mxu1 }
 0x866   : > { %v7024_v54 = vpop.f32.mrb[77].mxu0  ;;  %v7495_v55 = vpop.f32.mrb[89].mxu1 }
 0x867   : > { %v13446_v63 = vpop.f32.mrb[78].mxu0  ;;  %v13448_v0 = vpop.f32.mrb[90].mxu1 }
 0x868   : > { %v7027_v21 = vpop.f32.mrb[79].mxu0  ;;  %v7498_v38 = vpop.f32.mrb[91].mxu1 }
 0x869   : > { %7262 = vmatmul.mubr.bf16.gmra.mrb[152].mxu0 %v13207_v6 }
 0x86a   : > { %8868 = vmatprep.mubr.msk.bf16.mxu0 %vm1127_vm4, %v13254_v40 }
 0x86d   : > { %v13453_v48 = vpop.f32.mrb[80].mxu0 }
 0x86e   : > { %v13455_v9 = vpop.f32.mrb[92].mxu1  ;;  %v7032_v15 = vpop.f32.mrb[81].mxu0 }
 0x86f   : > { %v7503_v37 = vpop.f32.mrb[93].mxu1  ;;  %v13457_v18 = vpop.f32.mrb[82].mxu0 }
 0x870   : > { %v13459_v45 = vpop.f32.mrb[94].mxu1  ;;  %v7035_v16 = vpop.f32.mrb[83].mxu0 }
 0x871   : > { %7270 = vmatmul.mubr.bf16.gmra.mrb[156].mxu0 %v13261_v46  ;;  %v7506_v54 = vpop.f32.mrb[95].mxu1 }
 0x872   : > { %8869 = vmatprep.mubr.msk.bf16.mxu0 %vm1127_vm4, %v13267_v26 }
 0x875   : > { %v13464_v6 = vpop.f32.mrb[84].mxu0 }
 0x876   : > { %v13466_v40 = vpop.f32.mrb[96].mxu1  ;;  %v7040_v55 = vpop.f32.mrb[85].mxu0 }
 0x877   : > { %v7511_v21 = vpop.f32.mrb[97].mxu1  ;;  %v13468_v38 = vpop.f32.mrb[86].mxu0 }
 0x878   : > { %v13470_v15 = vpop.f32.mrb[98].mxu1  ;;  %v7043_v37 = vpop.f32.mrb[87].mxu0 }
 0x879   : > { %7278 = vmatmul.mubr.bf16.gmra.mrb[160].mxu0 %v13281_v2  ;;  %v7514_v16 = vpop.f32.mrb[99].mxu1 }
 0x87a   : > { %8870 = vmatprep.mubr.msk.bf16.mxu0 %vm1127_vm4, %v13285_v62 }
 0x881   : > { %7286 = vmatmul.mubr.bf16.gmra.mrb[164].mxu0 %v13295_v59 }
 0x882   : > { %8871 = vmatprep.mubr.msk.bf16.mxu0 %vm1127_vm4, %v13299_v58 }
 0x889   : > { %7294 = vmatmul.mubr.bf16.gmra.mrb[168].mxu0 %v13309_v28 }
 0x88a   : > { %8872 = vmatprep.mubr.msk.bf16.mxu0 %vm1127_vm4, %v13313_v10 }
 0x88d   : > { %v13481_v46 = vpop.f32.mrb[88].mxu0  ;;  %v13483_v26 = vpop.f32.mrb[100].mxu1 }
 0x88e   : > { %v7048_v54 = vpop.f32.mrb[89].mxu0  ;;  %v7519_v2 = vpop.f32.mrb[101].mxu1 }
 0x88f   : > { %v13485_v55 = vpop.f32.mrb[90].mxu0  ;;  %v13487_v21 = vpop.f32.mrb[102].mxu1 }
 0x890   : > { %v7051_v62 = vpop.f32.mrb[91].mxu0  ;;  %v7522_v59 = vpop.f32.mrb[103].mxu1 }
 0x891   : > { %7302 = vmatmul.mubr.bf16.gmra.mrb[172].mxu0 %v13323_v34 }
 0x892   : > { %8873 = vmatprep.mubr.msk.bf16.mxu0 %vm1127_vm4, %v13327_v49 }
 0x895   : > { %v13492_v58 = vpop.f32.mrb[92].mxu0  ;;  %v13494_v28 = vpop.f32.mrb[104].mxu1 }
 0x896   : > { %v7056_v10 = vpop.f32.mrb[93].mxu0  ;;  %v7527_v37 = vpop.f32.mrb[105].mxu1 }
 0x897   : > { %v13496_v16 = vpop.f32.mrb[94].mxu0  ;;  %v13498_v54 = vpop.f32.mrb[106].mxu1 }
 0x898   : > { %v7059_v2 = vpop.f32.mrb[95].mxu0  ;;  %v7530_v61 = vpop.f32.mrb[107].mxu1 }
 0x899   : > { %7310 = vmatmul.mubr.bf16.gmra.mrb[176].mxu0 %v13337_v36 }
 0x89a   : > { %8874 = vmatprep.mubr.msk.bf16.mxu0 %vm1127_vm4, %v13341_v13 }
 0x8a1   : > { %7318 = vmatmul.mubr.bf16.gmra.mrb[180].mxu0 %v13351_v1 }
 0x8a2   : > { %8875 = vmatprep.mubr.msk.bf16.mxu0 %vm1127_vm4, %v13353_v5 }
 0x8a9   : > { %7326 = vmatmul.mubr.bf16.gmra.mrb[184].mxu0 %v13365_v12 }
 0x8ab   : > { %v7354_v34 = vpop.permute.xlu1 %7353 }
 0x8ac   : > { %8918 = vmatprep.mubr.msk.bf16.mxu1 %vm1127_vm4, %v7354_v34 }
 0x8af   : > { %v7347_v49 = vpop.permute.xlu0 %7346 }
 0x8b0   : > { %v7356_v62 = vsel %vm3096_vm8, %v13387_v20, %v7347_v49 }
 0x8b1   : > { %v7358_v61 = vsel %vm5053_vm10, %v7356_v62, %v7354_v34 }
 0x8b2   : > { %7588 = vmatmul.mubr.bf16.gmra.mrb[136].mxu1 %v7358_v61 }
 0x8c9   : > { %v13511_v36 = vpop.f32.mrb[96].mxu0  ;;  %v13513_v13 = vpop.f32.mrb[108].mxu1 }
 0x8ca   : > { %v7064_v1 = vpop.f32.mrb[97].mxu0  ;;  %v7535_v59 = vpop.f32.mrb[109].mxu1 }
 0x8cb   : > { %v13515_v10 = vpop.f32.mrb[98].mxu0  ;;  %v13517_v5 = vpop.f32.mrb[110].mxu1 }
 0x8cc   : > { %v7067_v12 = vpop.f32.mrb[99].mxu0  ;;  %v7538_v37 = vpop.f32.mrb[111].mxu1 }
 0x8d1   : > { %v13519_v2 = vpop.f32.mrb[100].mxu0  ;;  %v13521_v32 = vpop.f32.mrb[112].mxu1 }
 0x8d2   : > { %v7072_v20 = vpop.f32.mrb[101].mxu0  ;;  %v7543_v49 = vpop.f32.mrb[113].mxu1 }
 0x8d3   : > { %v13523_v34 = vpop.f32.mrb[102].mxu0  ;;  %v13525_v62 = vpop.f32.mrb[114].mxu1 }
 0x8d4   : > { %v7075_v61 = vpop.f32.mrb[103].mxu0  ;;  %v7546_v50 = vpop.f32.mrb[115].mxu1 }
 0x8d9   : > { %v13527_v1 = vpop.f32.mrb[104].mxu0  ;;  %v13529_v59 = vpop.f32.mrb[116].mxu1 }
 0x8da   : > { %v7080_v4 = vpop.f32.mrb[105].mxu0  ;;  %v7551_v56 = vpop.f32.mrb[117].mxu1 }
 0x8db   : > { %v13531_v12 = vpop.f32.mrb[106].mxu0  ;;  %v13533_v37 = vpop.f32.mrb[118].mxu1 }
 0x8dc   : > { %v7083_v8 = vpop.f32.mrb[107].mxu0  ;;  %v7554_v53 = vpop.f32.mrb[119].mxu1 }
 0x8e2   : > { %v13535_v20 = vpop.f32.mrb[108].mxu0  ;;  %v13537_v49 = vpop.f32.mrb[120].mxu1 }
 0x8e3   : > { %v7088_v52 = vpop.f32.mrb[109].mxu0  ;;  %v7559_v23 = vpop.f32.mrb[121].mxu1 }
 0x8e4   : > { %v13539_v61 = vpop.f32.mrb[110].mxu0  ;;  %v13541_v50 = vpop.f32.mrb[122].mxu1 }
 0x8e5   : > { %14373 = vst [vmem:[#allocation28_spill] sm:$0xff] %v13539_v61  ;;  %v7091_v39 = vpop.f32.mrb[111].mxu0  ;;  %v7562_v41 = vpop.f32.mrb[123].mxu1 }
 0x8ec   : > { %v13543_v4 = vpop.f32.mrb[112].mxu0  ;;  %v13545_v56 = vpop.f32.mrb[124].mxu1 }
 0x8ed   : > { %14374 = vst [vmem:[#allocation23_spill] sm:$0xff] %v13543_v4  ;;  %v7096_v30 = vpop.f32.mrb[113].mxu0  ;;  %v7567_v29 = vpop.f32.mrb[125].mxu1 }
 0x8ee   : > { %v13547_v8 = vpop.f32.mrb[114].mxu0  ;;  %v13549_v53 = vpop.f32.mrb[126].mxu1 }
 0x8ef   : > { %14375 = vst [vmem:[#allocation36_spill] sm:$0xff] %v13547_v8  ;;  %14376 = vst [vmem:[#allocation37_spill] sm:$0xff] %v13549_v53  ;;  %v7099_v42 = vpop.f32.mrb[115].mxu0  ;;  %v7570_v17 = vpop.f32.mrb[127].mxu1 }
 0x8f4   : > { %v13551_v52 = vpop.f32.mrb[116].mxu0  ;;  %v13553_v23 = vpop.f32.mrb[128].mxu1 }
 0x8f5   : > { %14377 = vst [vmem:[#allocation38_spill] sm:$0xff] %v13551_v52  ;;  %14378 = vst [vmem:[#allocation39_spill] sm:$0xff] %v13553_v23  ;;  %v7104_v3 = vpop.f32.mrb[117].mxu0  ;;  %v7575_v19 = vpop.f32.mrb[129].mxu1 }
 0x8f6   : > { %v13555_v39 = vpop.f32.mrb[118].mxu0  ;;  %v13557_v41 = vpop.f32.mrb[130].mxu1 }
 0x8f7   : > { %14379 = vst [vmem:[#allocation40_spill] sm:$0xff] %v13555_v39  ;;  %14380 = vst [vmem:[#allocation41_spill] sm:$0xff] %v13557_v41  ;;  %v7107_v4 = vpop.f32.mrb[119].mxu0  ;;  %v7578_v61 = vpop.f32.mrb[131].mxu1 }
 0x8f8   : > { %v13571_v61 = vld [vmem:[%s14077_s8] ss:$0 sm:$0xff] }
 0x8fc   : > { %v13559_v30 = vpop.f32.mrb[120].mxu0  ;;  %v13561_v29 = vpop.f32.mrb[132].mxu1 }
 0x8fd   : > { %14381 = vst [vmem:[#allocation42_spill] sm:$0xff] %v13559_v30  ;;  %14382 = vst [vmem:[#allocation43_spill] sm:$0xff] %v13561_v29  ;;  %v7112_v8 = vpop.f32.mrb[121].mxu0  ;;  %v7583_v53 = vpop.f32.mrb[133].mxu1 }
 0x8fe   : > { %v13563_v42 = vpop.f32.mrb[122].mxu0  ;;  %v13565_v17 = vpop.f32.mrb[134].mxu1 }
 0x8ff   : > { %14383 = vst [vmem:[#allocation44_spill] sm:$0xff] %v13563_v42  ;;  %14384 = vst [vmem:[#allocation45_spill] sm:$0xff] %v13565_v17  ;;  %v7115_v52 = vpop.f32.mrb[123].mxu0  ;;  %v7586_v23 = vpop.f32.mrb[135].mxu1 }
 0x904   : > { %v7207_v3 = vpop.f32.mrb[124].mxu0 }
 0x905   : > { %v7208_v19 = vadd.f32 %v7207_v3, %v13402_v24  ;;  %v7209_v39 = vpop.f32.mrb[125].mxu0 }
 0x906   : > { %v7210_v4 = vpop.f32.mrb[126].mxu0 }
 0x907   : > { %v7596_v30 = vadd.f32 %v13411_v25, %v7208_v19  ;;  %v7211_v8 = vadd.f32 %v7210_v4, %v13404_v7  ;;  %v7212_v53 = vpop.f32.mrb[127].mxu0 }
 0x909   : > { %v7635_v42 = vadd.f32 %v13571_v61, %v7596_v30  ;;  %v7597_v52 = vadd.f32 %v13415_v33, %v7211_v8 }
 0x90b   : > { %v7667_v23 = vmax.f32 %v7635_v42, 0.0  ;;  %v7636_v17 = vadd.f32 %v13571_v61, %v7597_v52 }
 0x90c   : > { %v7215_v24 = vpop.f32.mrb[128].mxu0 }
 0x90d   : > { %v7668_v39 = vmax.f32 %v7636_v17, 0.0  ;;  %v7216_v3 = vadd.f32 %v7215_v24, %v13409_v43  ;;  %v7217_v29 = vpop.f32.mrb[129].mxu0  ;;  %7731 = vrot.lane.b32.xlu0 %v7667_v23, %s10088_s27 }
 0x90e   : > { %v7218_v41 = vpop.f32.mrb[130].mxu0 }
 0x90f   : > { %v7598_v25 = vadd.f32 %v13422_v47, %v7216_v3  ;;  %v7219_v7 = vadd.f32 %v7218_v41, %v13413_v22  ;;  %v7220_v19 = vpop.f32.mrb[131].mxu0  ;;  %7733 = vrot.lane.b32.xlu1 %v7668_v39, %s10088_s27 }
 0x911   : > { %v7637_v33 = vadd.f32 %v13571_v61, %v7598_v25  ;;  %v7599_v30 = vadd.f32 %v13426_v51, %v7219_v7 }
 0x913   : > { %v7669_v42 = vmax.f32 %v7637_v33, 0.0  ;;  %v7638_v17 = vadd.f32 %v13571_v61, %v7599_v30 }
 0x914   : > { %v7223_v4 = vpop.f32.mrb[132].mxu0 }
 0x915   : > { %v7670_v43 = vmax.f32 %v7638_v17, 0.0  ;;  %v7224_v29 = vadd.f32 %v7223_v4, %v13420_v44  ;;  %v7225_v8 = vpop.f32.mrb[133].mxu0  ;;  %7735 = vrot.lane.b32.xlu0 %v7669_v42, %s10088_s27 }
 0x916   : > { %v7226_v47 = vpop.f32.mrb[134].mxu0 }
 0x917   : > { %v7600_v22 = vadd.f32 %v13433_v11, %v7224_v29  ;;  %v7227_v41 = vadd.f32 %v7226_v47, %v13424_v57  ;;  %v7228_v53 = vpop.f32.mrb[135].mxu0  ;;  %7737 = vrot.lane.b32.xlu1 %v7670_v43, %s10088_s27 }
 0x919   : > { %v7639_v51 = vadd.f32 %v13571_v61, %v7600_v22  ;;  %v7601_v52 = vadd.f32 %v13437_v14, %v7227_v41 }
 0x91b   : > { %v7671_v23 = vmax.f32 %v7639_v51, 0.0  ;;  %v7640_v24 = vadd.f32 %v13571_v61, %v7601_v52 }
 0x91c   : > { %v7231_v39 = vpop.f32.mrb[136].mxu0 }
 0x91d   : > { %v7672_v44 = vmax.f32 %v7640_v24, 0.0  ;;  %v7232_v3 = vadd.f32 %v7231_v39, %v13431_v31  ;;  %v7233_v25 = vpop.f32.mrb[137].mxu0  ;;  %7739 = vrot.lane.b32.xlu0 %v7671_v23, %s10088_s27 }
 0x91e   : > { %v7234_v11 = vpop.f32.mrb[138].mxu0 }
 0x91f   : > { %v7602_v57 = vadd.f32 %v13444_v60, %v7232_v3  ;;  %v7235_v7 = vadd.f32 %v7234_v11, %v13435_v27  ;;  %v7236_v19 = vpop.f32.mrb[139].mxu0  ;;  %7741 = vrot.lane.b32.xlu1 %v7672_v44, %s10088_s27 }
 0x921   : > { %v7641_v14 = vadd.f32 %v13571_v61, %v7602_v57  ;;  %v7603_v33 = vadd.f32 %v13448_v0, %v7235_v7 }
 0x923   : > { %v7673_v30 = vmax.f32 %v7641_v14, 0.0  ;;  %v7642_v42 = vadd.f32 %v13571_v61, %v7603_v33 }
 0x924   : > { %v7239_v17 = vpop.f32.mrb[140].mxu0 }
 0x925   : > { %v7674_v31 = vmax.f32 %v7642_v42, 0.0  ;;  %v7240_v4 = vadd.f32 %v7239_v17, %v13442_v35  ;;  %v7241_v43 = vpop.f32.mrb[141].mxu0  ;;  %7743 = vrot.lane.b32.xlu0 %v7673_v30, %s10088_s27 }
 0x926   : > { %v7242_v60 = vpop.f32.mrb[142].mxu0 }
 0x927   : > { %v7604_v27 = vadd.f32 %v13455_v9, %v7240_v4  ;;  %v7243_v29 = vadd.f32 %v7242_v60, %v13446_v63  ;;  %v7244_v8 = vpop.f32.mrb[143].mxu0  ;;  %7745 = vrot.lane.b32.xlu1 %v7674_v31, %s10088_s27 }
 0x929   : > { %v7643_v0 = vadd.f32 %v13571_v61, %v7604_v27  ;;  %v7605_v47 = vadd.f32 %v13459_v45, %v7243_v29 }
 0x92b   : > { %v7675_v22 = vmax.f32 %v7643_v0, 0.0  ;;  %v7644_v41 = vadd.f32 %v13571_v61, %v7605_v47 }
 0x92c   : > { %v7247_v53 = vpop.f32.mrb[144].mxu0 }
 0x92d   : > { %v7676_v35 = vmax.f32 %v7644_v41, 0.0  ;;  %v7248_v51 = vadd.f32 %v7247_v53, %v13453_v48  ;;  %v7249_v52 = vpop.f32.mrb[145].mxu0  ;;  %7747 = vrot.lane.b32.xlu0 %v7675_v22, %s10088_s27 }
 0x92e   : > { %v7250_v9 = vpop.f32.mrb[146].mxu0 }
 0x92f   : > { %v7606_v63 = vadd.f32 %v13466_v40, %v7248_v51  ;;  %v7251_v23 = vadd.f32 %v7250_v9, %v13457_v18  ;;  %v7252_v24 = vpop.f32.mrb[147].mxu0  ;;  %7749 = vrot.lane.b32.xlu1 %v7676_v35, %s10088_s27 }
 0x931   : > { %v7645_v45 = vadd.f32 %v13571_v61, %v7606_v63  ;;  %v7607_v39 = vadd.f32 %v13470_v15, %v7251_v23 }
 0x933   : > { %v7677_v44 = vmax.f32 %v7645_v45, 0.0  ;;  %v7646_v3 = vadd.f32 %v13571_v61, %v7607_v39 }
 0x934   : > { %v7255_v25 = vpop.f32.mrb[148].mxu0 }
 0x935   : > { %v7678_v48 = vmax.f32 %v7646_v3, 0.0  ;;  %v7256_v11 = vadd.f32 %v7255_v25, %v13464_v6  ;;  %v7257_v57 = vpop.f32.mrb[149].mxu0  ;;  %7751 = vrot.lane.b32.xlu0 %v7677_v44, %s10088_s27 }
 0x936   : > { %v7258_v40 = vpop.f32.mrb[150].mxu0 }
 0x937   : > { %v7608_v18 = vadd.f32 %v13483_v26, %v7256_v11  ;;  %v7259_v7 = vadd.f32 %v7258_v40, %v13468_v38  ;;  %v7260_v19 = vpop.f32.mrb[151].mxu0  ;;  %7753 = vrot.lane.b32.xlu1 %v7678_v48, %s10088_s27 }
 0x939   : > { %v7647_v15 = vadd.f32 %v13571_v61, %v7608_v18  ;;  %v7609_v14 = vadd.f32 %v13487_v21, %v7259_v7 }
 0x93b   : > { %v7679_v33 = vmax.f32 %v7647_v15, 0.0  ;;  %v7648_v30 = vadd.f32 %v13571_v61, %v7609_v14 }
 0x93c   : > { %v7263_v42 = vpop.f32.mrb[152].mxu0 }
 0x93d   : > { %v7680_v6 = vmax.f32 %v7648_v30, 0.0  ;;  %v7264_v17 = vadd.f32 %v7263_v42, %v13481_v46  ;;  %v7265_v31 = vpop.f32.mrb[153].mxu0  ;;  %7755 = vrot.lane.b32.xlu0 %v7679_v33, %s10088_s27 }
 0x93e   : > { %v7266_v26 = vpop.f32.mrb[154].mxu0 }
 0x93f   : > { %v7610_v38 = vadd.f32 %v13494_v28, %v7264_v17  ;;  %v7267_v4 = vadd.f32 %v7266_v26, %v13485_v55  ;;  %v7268_v43 = vpop.f32.mrb[155].mxu0  ;;  %7757 = vrot.lane.b32.xlu1 %v7680_v6, %s10088_s27 }
 0x941   : > { %v7649_v21 = vadd.f32 %v13571_v61, %v7610_v38  ;;  %v7611_v60 = vadd.f32 %v13498_v54, %v7267_v4  ;;  %v14385_v4 = vld [vmem:[#allocation28_spill] sm:$0xff] }
 0x943   : > { %v7681_v27 = vmax.f32 %v7649_v21, 0.0  ;;  %v7650_v29 = vadd.f32 %v13571_v61, %v7611_v60  ;;  %v14386_v60 = vld [vmem:[#allocation37_spill] sm:$0xff] }
 0x944   : > { %v7271_v8 = vpop.f32.mrb[156].mxu0 }
 0x945   : > { %v7682_v46 = vmax.f32 %v7650_v29, 0.0  ;;  %v7272_v0 = vadd.f32 %v7271_v8, %v13492_v58  ;;  %v7273_v47 = vpop.f32.mrb[157].mxu0  ;;  %7759 = vrot.lane.b32.xlu0 %v7681_v27, %s10088_s27 }
 0x946   : > { %v7274_v28 = vpop.f32.mrb[158].mxu0 }
 0x947   : > { %v7612_v55 = vadd.f32 %v13513_v13, %v7272_v0  ;;  %v7275_v22 = vadd.f32 %v7274_v28, %v13496_v16  ;;  %v7276_v41 = vpop.f32.mrb[159].mxu0  ;;  %7761 = vrot.lane.b32.xlu1 %v7682_v46, %s10088_s27  ;;  %v14387_v0 = vld [vmem:[#allocation23_spill] sm:$0xff] }
 0x948   : > { %v14389_v41 = vld [vmem:[#allocation36_spill] sm:$0xff] }
 0x949   : > { %v7651_v54 = vadd.f32 %v13571_v61, %v7612_v55  ;;  %v7613_v53 = vadd.f32 %v13517_v5, %v7275_v22  ;;  %v14388_v55 = vld [vmem:[#allocation39_spill] sm:$0xff] }
 0x94b   : > { %v7683_v35 = vmax.f32 %v7651_v54, 0.0  ;;  %v7652_v51 = vadd.f32 %v13571_v61, %v7613_v53 }
 0x94c   : > { %v7279_v52 = vpop.f32.mrb[160].mxu0 }
 0x94d   : > { %v7684_v58 = vmax.f32 %v7652_v51, 0.0  ;;  %v7280_v9 = vadd.f32 %v7279_v52, %v13511_v36  ;;  %v7281_v63 = vpop.f32.mrb[161].mxu0  ;;  %7763 = vrot.lane.b32.xlu0 %v7683_v35, %s10088_s27  ;;  %v14390_v51 = vld [vmem:[#allocation41_spill] sm:$0xff] }
 0x94e   : > { %v7282_v13 = vpop.f32.mrb[162].mxu0 }
 0x94f   : > { %v7614_v16 = vadd.f32 %v13521_v32, %v7280_v9  ;;  %v7283_v23 = vadd.f32 %v7282_v13, %v13515_v10  ;;  %v7284_v24 = vpop.f32.mrb[163].mxu0  ;;  %7765 = vrot.lane.b32.xlu1 %v7684_v58, %s10088_s27 }
 0x951   : > { %v7653_v5 = vadd.f32 %v13571_v61, %v7614_v16  ;;  %v7615_v45 = vadd.f32 %v13525_v62, %v7283_v23  ;;  %v14391_v16 = vld [vmem:[#allocation38_spill] sm:$0xff] }
 0x953   : > { %v7685_v39 = vmax.f32 %v7653_v5, 0.0  ;;  %v7654_v44 = vadd.f32 %v13571_v61, %v7615_v45  ;;  %v14392_v45 = vld [vmem:[#allocation43_spill] sm:$0xff] }
 0x954   : > { %v7287_v3 = vpop.f32.mrb[164].mxu0 }
 0x955   : > { %v7686_v36 = vmax.f32 %v7654_v44, 0.0  ;;  %v7288_v25 = vadd.f32 %v7287_v3, %v13519_v2  ;;  %v7289_v48 = vpop.f32.mrb[165].mxu0  ;;  %7767 = vrot.lane.b32.xlu0 %v7685_v39, %s10088_s27  ;;  %v14393_v44 = vld [vmem:[#allocation40_spill] sm:$0xff] }
 0x956   : > { %v7290_v32 = vpop.f32.mrb[166].mxu0  ;;  %v14394_v48 = vld [vmem:[#allocation45_spill] sm:$0xff] }
 0x957   : > { %v7616_v10 = vadd.f32 %v13529_v59, %v7288_v25  ;;  %v7291_v11 = vadd.f32 %v7290_v32, %v13523_v34  ;;  %v7292_v57 = vpop.f32.mrb[167].mxu0  ;;  %7769 = vrot.lane.b32.xlu1 %v7686_v36, %s10088_s27 }
 0x959   : > { %v7655_v62 = vadd.f32 %v13571_v61, %v7616_v10  ;;  %v7617_v40 = vadd.f32 %v13533_v37, %v7291_v11 }
 0x95b   : > { %v7687_v18 = vmax.f32 %v7655_v62, 0.0  ;;  %v7656_v7 = vadd.f32 %v13571_v61, %v7617_v40  ;;  %v14395_v40 = vld [vmem:[#allocation42_spill] sm:$0xff] }
 0x95c   : > { %v7295_v19 = vpop.f32.mrb[168].mxu0 }
 0x95d   : > { %v7688_v2 = vmax.f32 %v7656_v7, 0.0  ;;  %v7296_v15 = vadd.f32 %v7295_v19, %v13527_v1  ;;  %v7297_v14 = vpop.f32.mrb[169].mxu0  ;;  %7771 = vrot.lane.b32.xlu0 %v7687_v18, %s10088_s27 }
 0x95e   : > { %v7298_v59 = vpop.f32.mrb[170].mxu0 }
 0x95f   : > { %v7618_v34 = vadd.f32 %v13537_v49, %v7296_v15  ;;  %v7299_v33 = vadd.f32 %v7298_v59, %v13531_v12  ;;  %v7300_v30 = vpop.f32.mrb[171].mxu0  ;;  %7773 = vrot.lane.b32.xlu1 %v7688_v2, %s10088_s27  ;;  %v14396_v2 = vld [vmem:[#allocation44_spill] sm:$0xff] }
 0x961   : > { %v7657_v37 = vadd.f32 %v13571_v61, %v7618_v34  ;;  %v7619_v42 = vadd.f32 %v13541_v50, %v7299_v33  ;;  %v14397_v34 = vld [vmem:[#allocation25_spill] sm:$0xff] }
 0x963   : > { %v7689_v6 = vmax.f32 %v7657_v37, 0.0  ;;  %v7658_v17 = vadd.f32 %v13571_v61, %v7619_v42  ;;  %v14398_v42 = vld [vmem:[#allocation22_spill] sm:$0xff] }
 0x964   : > { %v7303_v31 = vpop.f32.mrb[172].mxu0 }
 0x965   : > { %v7690_v1 = vmax.f32 %v7658_v17, 0.0  ;;  %v7304_v26 = vadd.f32 %v7303_v31, %v13535_v20  ;;  %v7305_v38 = vpop.f32.mrb[173].mxu0  ;;  %7775 = vrot.lane.b32.xlu0 %v7689_v6, %s10088_s27 }
 0x966   : > { %v7306_v49 = vpop.f32.mrb[174].mxu0 }
 0x967   : > { %v7620_v12 = vadd.f32 %v13545_v56, %v7304_v26  ;;  %v7307_v43 = vadd.f32 %v7306_v49, %v14385_v4  ;;  %v7308_v21 = vpop.f32.mrb[175].mxu0  ;;  %7777 = vrot.lane.b32.xlu1 %v7690_v1, %s10088_s27 }
 0x969   : > { %v7659_v50 = vadd.f32 %v13571_v61, %v7620_v12  ;;  %v7621_v27 = vadd.f32 %v14386_v60, %v7307_v43  ;;  %v14399_v43 = vld [vmem:[#allocation24_spill] sm:$0xff] }
 0x96b   : > { %v7691_v29 = vmax.f32 %v7659_v50, 0.0  ;;  %v7660_v8 = vadd.f32 %v13571_v61, %v7621_v27  ;;  %v14400_v27 = vld [vmem:[#allocation3_spill] sm:$0xff] }
 0x96c   : > { %v7311_v46 = vpop.f32.mrb[176].mxu0 }
 0x96d   : > { %v7692_v20 = vmax.f32 %v7660_v8, 0.0  ;;  %v7312_v47 = vadd.f32 %v7311_v46, %v14387_v0  ;;  %v7313_v28 = vpop.f32.mrb[177].mxu0  ;;  %7779 = vrot.lane.b32.xlu0 %v7691_v29, %s10088_s27 }
 0x96e   : > { %v7314_v56 = vpop.f32.mrb[178].mxu0 }
 0x96f   : > { %v7622_v22 = vadd.f32 %v14388_v55, %v7312_v47  ;;  %v7315_v54 = vadd.f32 %v7314_v56, %v14389_v41  ;;  %v7316_v53 = vpop.f32.mrb[179].mxu0  ;;  %7781 = vrot.lane.b32.xlu1 %v7692_v20, %s10088_s27  ;;  %v14401_v20 = vld [vmem:[#allocation2_spill] sm:$0xff] }
 0x970   : > { %v14402_v56 = vld [vmem:[#allocation26_spill] sm:$0xff]  ;;  %v14403_v53 = vld [vmem:[#allocation29_spill] sm:$0xff] }
 0x971   : > { %v7661_v35 = vadd.f32 %v13571_v61, %v7622_v22  ;;  %v7623_v52 = vadd.f32 %v14390_v51, %v7315_v54 }
 0x973   : > { %v7693_v58 = vmax.f32 %v7661_v35, 0.0  ;;  %v7662_v9 = vadd.f32 %v13571_v61, %v7623_v52 }
 0x974   : > { %v7319_v63 = vpop.f32.mrb[180].mxu0 }
 0x975   : > { %v7694_v13 = vmax.f32 %v7662_v9, 0.0  ;;  %v7320_v23 = vadd.f32 %v7319_v63, %v14391_v16  ;;  %v7321_v24 = vpop.f32.mrb[181].mxu0  ;;  %7783 = vrot.lane.b32.xlu0 %v7693_v58, %s10088_s27  ;;  %v14404_v58 = vld [vmem:[#allocation30_spill] sm:$0xff] }
 0x976   : > { %v7322_v5 = vpop.f32.mrb[182].mxu0  ;;  %v14405_v24 = vld [vmem:[#allocation32_spill] sm:$0xff] }
 0x977   : > { %v7624_v39 = vadd.f32 %v14392_v45, %v7320_v23  ;;  %v7323_v3 = vadd.f32 %v7322_v5, %v14393_v44  ;;  %v7324_v36 = vpop.f32.mrb[183].mxu0  ;;  %7785 = vrot.lane.b32.xlu1 %v7694_v13, %s10088_s27  ;;  %v14406_v44 = vld [vmem:[#allocation31_spill] sm:$0xff] }
 0x979   : > { %v7663_v25 = vadd.f32 %v13571_v61, %v7624_v39  ;;  %v7625_v32 = vadd.f32 %v14394_v48, %v7323_v3 }
 0x97b   : > { %v7695_v10 = vmax.f32 %v7663_v25, 0.0  ;;  %v7664_v11 = vadd.f32 %v13571_v61, %v7625_v32  ;;  %v14407_v32 = vld [vmem:[#allocation34_spill] sm:$0xff] }
 0x97c   : > { %v7327_v57 = vpop.f32.mrb[184].mxu0 }
 0x97d   : > { %v7696_v62 = vmax.f32 %v7664_v11, 0.0  ;;  %v7328_v18 = vadd.f32 %v7327_v57, %v14395_v40  ;;  %v7329_v7 = vpop.f32.mrb[185].mxu0  ;;  %7787 = vrot.lane.b32.xlu0 %v7695_v10, %s10088_s27 }
 0x97e   : > { %v7330_v19 = vpop.f32.mrb[186].mxu0 }
 0x97f   : > { %v7331_v15 = vadd.f32 %v7330_v19, %v14396_v2  ;;  %v7332_v14 = vpop.f32.mrb[187].mxu0  ;;  %7789 = vrot.lane.b32.xlu1 %v7696_v62, %s10088_s27  ;;  %v7732_v59 = vpop.permute.xlu0 %7731  ;;  %v14408_v62 = vld [vmem:[#allocation33_spill] sm:$0xff] }
 0x980   : > { %v7827_v33 = vsel %vm3096_vm8, %v14397_v34, %v7732_v59  ;;  %v14409_v14 = vld [vmem:[#allocation4_spill] sm:$0xff] }
 0x981   : > { %v8956_v30 = vpack.c.bf16 %v7827_v33, %v7827_v33  ;;  %v7734_v37 = vpop.permute.xlu1 %7733  ;;  %v8020_v41 = vand.u32 2147483647, %v7827_v33 }
 0x982   : > { %v7828_v6 = vsel %vm3096_vm8, %v14398_v42, %v7734_v37  ;;  %v14410_v37 = vld [vmem:[#allocation5_spill] sm:$0xff] }
 0x983   : > { %7988 = vst.msk [vmem:[%s13698_s22] sm:$0xf] %vm7987_vm11, %v8956_v30  ;;  %v8957_v17 = vpack.c.bf16 %v7828_v6, %v7828_v6  ;;  %v8052_v13 = vsel %vm4930_vm9, %v8020_v41, 0.0  ;;  %v8021_v16 = vand.u32 2147483647, %v7828_v6 }
 0x985   : > { %v7589_v31 = vpop.f32.mrb[136].mxu1  ;;  %7989 = vst.msk [vmem:[%s13698_s22 + $0x4] sm:$0xf] %vm7987_vm11, %v8957_v17  ;;  %v8055_v36 = vsel %vm4930_vm9, %v8021_v16, 0.0  ;;  %v14411_v17 = vld [vmem:[#allocation7_spill] sm:$0xff] }
 0x986   : > { %v7626_v1 = vadd.f32 %v7589_v31, %v7328_v18  ;;  %v7591_v26 = vpop.f32.mrb[137].mxu1 }
 0x987   : > { %v7592_v38 = vpop.f32.mrb[138].mxu1  ;;  %v7736_v49 = vpop.permute.xlu0 %7735 }
 0x988   : > { %v7627_v12 = vadd.f32 %v7592_v38, %v7331_v15  ;;  %v7594_v4 = vpop.f32.mrb[139].mxu1  ;;  %v13710_v21 = vsel %vm3096_vm8, %v14399_v43, %v7736_v49  ;;  %v7665_v7 = vadd.f32 %v13571_v61, %v7626_v1  ;;  %v14412_v38 = vld [vmem:[#allocation9_spill] sm:$0xff]  ;;  %v14413_v43 = vld [vmem:[#allocation6_spill] sm:$0xff] }
 0x989   : > { %v8958_v50 = vpack.c.bf16 %v13710_v21, %v13710_v21  ;;  %v7738_v60 = vpop.permute.xlu1 %7737 }
 0x98a   : > { %v13716_v29 = vsel %vm3096_vm8, %v14400_v27, %v7738_v60  ;;  %v7666_v19 = vadd.f32 %v13571_v61, %v7627_v12  ;;  %v7697_v15 = vmax.f32 %v7665_v7, 0.0 }
 0x98b   : > { %7990 = vst.msk [vmem:[%s13698_s22 + $0x8] sm:$0xf] %vm7987_vm11, %v8958_v50  ;;  %v8959_v8 = vpack.c.bf16 %v13716_v29, %v13716_v29 }
 0x98c   : > { %v7698_v30 = vmax.f32 %v7666_v19, 0.0  ;;  %v14420_v19 = vld [vmem:[#allocation17_spill] sm:$0xff] }
 0x98d   : > { %7991 = vst.msk [vmem:[%s13698_s22 + $0xc] sm:$0xf] %vm7987_vm11, %v8959_v8  ;;  %v14414_v8 = vld [vmem:[#allocation8_spill] sm:$0xff] }
 0x98f   : > { %v7740_v46 = vpop.permute.xlu0 %7739 }
 0x990   : > { %v13726_v0 = vsel %vm3096_vm8, %v14401_v20, %v7740_v46 }
 0x991   : > { %v8960_v47 = vpack.c.bf16 %v13726_v0, %v13726_v0  ;;  %v7742_v28 = vpop.permute.xlu1 %7741 }
 0x992   : > { %v13732_v55 = vsel %vm3096_vm8, %v14402_v56, %v7742_v28  ;;  %v14415_v28 = vld [vmem:[#allocation11_spill] sm:$0xff] }
 0x993   : > { %7992 = vst.msk [vmem:[%s13698_s22 + $0x10] sm:$0xf] %vm7987_vm11, %v8960_v47  ;;  %v8961_v22 = vpack.c.bf16 %v13732_v55, %v13732_v55 }
 0x995   : > { %7993 = vst.msk [vmem:[%s13698_s22 + $0x14] sm:$0xf] %vm7987_vm11, %v8961_v22 }
 0x997   : > { %v7744_v54 = vpop.permute.xlu0 %7743 }
 0x998   : > { %v13742_v35 = vsel %vm3096_vm8, %v14403_v53, %v7744_v54  ;;  %v14416_v54 = vld [vmem:[#allocation13_spill] sm:$0xff] }
 0x999   : > { %v8962_v51 = vpack.c.bf16 %v13742_v35, %v13742_v35  ;;  %v7746_v52 = vpop.permute.xlu1 %7745 }
 0x99a   : > { %v13748_v9 = vsel %vm3096_vm8, %v14404_v58, %v7746_v52  ;;  %v8022_v52 = vand.u32 2147483647, %v13710_v21  ;;  %v8024_v21 = vand.u32 2147483647, %v13726_v0 }
 0x99b   : > { %7994 = vst.msk [vmem:[%s13698_s22 + $0x18] sm:$0xf] %vm7987_vm11, %v8962_v51  ;;  %v8963_v63 = vpack.c.bf16 %v13748_v9, %v13748_v9  ;;  %v8027_v0 = vand.u32 2147483647, %v13748_v9 }
 0x99c   : > { %8053 = vadd.xlane.f32.xlu0 %v8052_v13  ;;  %v14417_v13 = vld [vmem:[#allocation10_spill] sm:$0xff] }
 0x99d   : > { %7995 = vst.msk [vmem:[%s13698_s22 + $0x1c] sm:$0xf] %vm7987_vm11, %v8963_v63  ;;  %v8023_v63 = vand.u32 2147483647, %v13716_v29 }
 0x99f   : > { %v7748_v23 = vpop.permute.xlu0 %7747 }
 0x9a0   : > { %v13759_v5 = vsel %vm3096_vm8, %v14405_v24, %v7748_v23  ;;  %v8058_v23 = vsel %vm4930_vm9, %v8022_v52, 0.0 }
 0x9a1   : > { %v8964_v45 = vpack.c.bf16 %v13759_v5, %v13759_v5  ;;  %v7750_v39 = vpop.permute.xlu1 %7749 }
 0x9a2   : > { %v13765_v3 = vsel %vm3096_vm8, %v14406_v44, %v7750_v39  ;;  %v14418_v39 = vld [vmem:[#allocation12_spill] sm:$0xff] }
 0x9a3   : > { %7996 = vst.msk [vmem:[%s13698_s22 + $0x20] sm:$0xf] %vm7987_vm11, %v8964_v45  ;;  %v8965_v25 = vpack.c.bf16 %v13765_v3, %v13765_v3  ;;  %8056 = vadd.xlane.f32.xlu1 %v8055_v36  ;;  %v8025_v36 = vand.u32 2147483647, %v13732_v55 }
 0x9a5   : > { %7997 = vst.msk [vmem:[%s13698_s22 + $0x24] sm:$0xf] %vm7987_vm11, %v8965_v25  ;;  %v8061_v25 = vsel %vm4930_vm9, %v8023_v63, 0.0  ;;  %v8067_v55 = vsel %vm4930_vm9, %v8025_v36, 0.0 }
 0x9a7   : > { %v7752_v48 = vpop.permute.xlu0 %7751 }
 0x9a8   : > { %v13776_v10 = vsel %vm3096_vm8, %v14407_v32, %v7752_v48  ;;  %v8026_v48 = vand.u32 2147483647, %v13742_v35 }
 0x9a9   : > { %v8966_v11 = vpack.c.bf16 %v13776_v10, %v13776_v10  ;;  %v7754_v57 = vpop.permute.xlu1 %7753 }
 0x9aa   : > { %v13782_v40 = vsel %vm3096_vm8, %v14408_v62, %v7754_v57  ;;  %v14419_v57 = vld [vmem:[#allocation15_spill] sm:$0xff] }
 0x9ab   : > { %7998 = vst.msk [vmem:[%s13698_s22 + $0x28] sm:$0xf] %vm7987_vm11, %v8966_v11  ;;  %v8967_v18 = vpack.c.bf16 %v13782_v40, %v13782_v40  ;;  %v8064_v11 = vsel %vm4930_vm9, %v8024_v21, 0.0 }
 0x9ad   : > { %7999 = vst.msk [vmem:[%s13698_s22 + $0x2c] sm:$0xf] %vm7987_vm11, %v8967_v18 }
 0x9af   : > { %v7756_v2 = vpop.permute.xlu0 %7755 }
 0x9b0   : > { %v13794_v59 = vsel %vm3096_vm8, %v14409_v14, %v7756_v2  ;;  %v8028_v2 = vand.u32 2147483647, %v13759_v5  ;;  %v8029_v14 = vand.u32 2147483647, %v13765_v3 }
 0x9b1   : > { %v8968_v34 = vpack.c.bf16 %v13794_v59, %v13794_v59  ;;  %v7758_v33 = vpop.permute.xlu1 %7757 }
 0x9b2   : > { %v13800_v42 = vsel %vm3096_vm8, %v14410_v37, %v7758_v33  ;;  %7791 = vrot.lane.b32.xlu0 %v7697_v15, %s10088_s27  ;;  %v8070_v15 = vsel %vm4930_vm9, %v8026_v48, 0.0  ;;  %v8030_v33 = vand.u32 2147483647, %v13776_v10  ;;  %v8076_v5 = vsel %vm4930_vm9, %v8028_v2, 0.0 }
 0x9b3   : > { %8000 = vst.msk [vmem:[%s13698_s22 + $0x30] sm:$0xf] %vm7987_vm11, %v8968_v34  ;;  %v8969_v61 = vpack.c.bf16 %v13800_v42, %v13800_v42  ;;  %v8073_v34 = vsel %vm4930_vm9, %v8027_v0, 0.0  ;;  %v8031_v37 = vand.u32 2147483647, %v13782_v40  ;;  %v8079_v3 = vsel %vm4930_vm9, %v8029_v14, 0.0 }
 0x9b4   : > { %7793 = vrot.lane.b32.xlu1 %v7698_v30, %s10088_s27  ;;  %s8955_s27 = sshll.u32 %s14434_s13, 4 }
 0x9b5   : > { %8001 = vst.msk [vmem:[%s13698_s22 + $0x34] sm:$0xf] %vm7987_vm11, %v8969_v61  ;;  %v14421_v61 = vld [vmem:[#allocation14_spill] sm:$0xff]  ;;  %s14020_s25 = scalar_lea.vmem %s14079_s10, %s8955_s27 }
 0x9b7   : > { %v7760_v6 = vpop.permute.xlu0 %7759 }
 0x9b8   : > { %v13812_v31 = vsel %vm3096_vm8, %v14411_v17, %v7760_v6 }
 0x9b9   : > { %v8970_v1 = vpack.c.bf16 %v13812_v31, %v13812_v31  ;;  %v7762_v26 = vpop.permute.xlu1 %7761 }
 0x9ba   : > { %v13818_v49 = vsel %vm3096_vm8, %v14412_v38, %v7762_v26  ;;  %v14422_v26 = vld [vmem:[#allocation16_spill] sm:$0xff]  ;;  %v8032_v38 = vand.u32 2147483647, %v13794_v59 }
 0x9bb   : > { %8002 = vst.msk [vmem:[%s13698_s22 + $0x38] sm:$0xf] %vm7987_vm11, %v8970_v1  ;;  %v8971_v12 = vpack.c.bf16 %v13818_v49, %v13818_v49 }
 0x9bc   : > { %v8088_v59 = vsel %vm4930_vm9, %v8032_v38, 0.0 }
 0x9bd   : > { %8003 = vst.msk [vmem:[%s13698_s22 + $0x3c] sm:$0xf] %vm7987_vm11, %v8971_v12  ;;  %v8082_v12 = vsel %vm4930_vm9, %v8030_v33, 0.0 }
 0x9bf   : > { %v7764_v4 = vpop.permute.xlu0 %7763 }
 0x9c0   : > { %v13828_v50 = vsel %vm3096_vm8, %v14413_v43, %v7764_v4  ;;  %v8033_v4 = vand.u32 2147483647, %v13800_v42  ;;  %v8085_v43 = vsel %vm4930_vm9, %v8031_v37, 0.0 }
 0x9c1   : > { %v8972_v60 = vpack.c.bf16 %v13828_v50, %v13828_v50  ;;  %v7766_v27 = vpop.permute.xlu1 %7765 }
 0x9c2   : > { %v13834_v46 = vsel %vm3096_vm8, %v14414_v8, %v7766_v27  ;;  %v8035_v8 = vand.u32 2147483647, %v13818_v49  ;;  %v8091_v42 = vsel %vm4930_vm9, %v8033_v4, 0.0 }
 0x9c3   : > { %8004 = vst.msk [vmem:[%s13698_s22 + $0x40] sm:$0xf] %vm7987_vm11, %v8972_v60  ;;  %v8973_v20 = vpack.c.bf16 %v13834_v46, %v13834_v46  ;;  %v8034_v60 = vand.u32 2147483647, %v13812_v31  ;;  %v8036_v31 = vand.u32 2147483647, %v13828_v50 }
 0x9c4   : > { %v8037_v49 = vand.u32 2147483647, %v13834_v46 }
 0x9c5   : > { %8005 = vst.msk [vmem:[%s13698_s22 + $0x44] sm:$0xf] %vm7987_vm11, %v8973_v20  ;;  %v14423_v20 = vld [vmem:[#allocation19_spill] sm:$0xff]  ;;  %v8094_v52 = vsel %vm4930_vm9, %v8034_v60, 0.0 }
 0x9c6   : > { %v8103_v46 = vsel %vm4930_vm9, %v8037_v49, 0.0 }
 0x9c7   : > { %v7768_v47 = vpop.permute.xlu0 %7767 }
 0x9c8   : > { %v13844_v56 = vsel %vm3096_vm8, %v14415_v28, %v7768_v47 }
 0x9c9   : > { %v8974_v22 = vpack.c.bf16 %v13844_v56, %v13844_v56  ;;  %v7770_v41 = vpop.permute.xlu1 %7769  ;;  %v8038_v63 = vand.u32 2147483647, %v13844_v56 }
 0x9ca   : > { %v13850_v53 = vsel %vm3096_vm8, %v14416_v54, %v7770_v41  ;;  %v14424_v41 = vld [vmem:[#allocation35_spill] sm:$0xff] }
 0x9cb   : > { %8006 = vst.msk [vmem:[%s13698_s22 + $0x48] sm:$0xf] %vm7987_vm11, %v8974_v22  ;;  %v8975_v51 = vpack.c.bf16 %v13850_v53, %v13850_v53  ;;  %v8039_v50 = vand.u32 2147483647, %v13850_v53  ;;  %v8106_v48 = vsel %vm4930_vm9, %v8038_v63, 0.0 }
 0x9cd   : > { %8007 = vst.msk [vmem:[%s13698_s22 + $0x4c] sm:$0xf] %vm7987_vm11, %v8975_v51 }
 0x9cf   : > { %v7772_v58 = vpop.permute.xlu0 %7771 }
 0x9d0   : > { %v13862_v16 = vsel %vm3096_vm8, %v14417_v13, %v7772_v58  ;;  %v8097_v58 = vsel %vm4930_vm9, %v8035_v8, 0.0 }
 0x9d1   : > { %v8976_v24 = vpack.c.bf16 %v13862_v16, %v13862_v16  ;;  %v7774_v45 = vpop.permute.xlu1 %7773  ;;  %8059 = vadd.xlane.f32.xlu0 %v8058_v23  ;;  %v8100_v23 = vsel %vm4930_vm9, %v8036_v31, 0.0  ;;  %v8040_v56 = vand.u32 2147483647, %v13862_v16 }
 0x9d2   : > { %v13869_v44 = vsel %vm3096_vm8, %v14418_v39, %v7774_v45 }
 0x9d3   : > { %8008 = vst.msk [vmem:[%s13698_s22 + $0x50] sm:$0xf] %vm7987_vm11, %v8976_v24  ;;  %v8977_v29 = vpack.c.bf16 %v13869_v44, %v13869_v44  ;;  %v14425_v24 = vld [vmem:[#allocation21_spill] sm:$0xff]  ;;  %v8041_v53 = vand.u32 2147483647, %v13869_v44  ;;  %v8112_v0 = vsel %vm4930_vm9, %v8040_v56, 0.0 }
 0x9d5   : > { %8009 = vst.msk [vmem:[%s13698_s22 + $0x54] sm:$0xf] %vm7987_vm11, %v8977_v29  ;;  %8062 = vadd.xlane.f32.xlu0 %v8061_v25  ;;  %v14426_v29 = vld [vmem:[#allocation18_spill] sm:$0xff]  ;;  %v8115_v16 = vsel %vm4930_vm9, %v8041_v53, 0.0 }
 0x9d7   : > { %v7776_v32 = vpop.permute.xlu0 %7775 }
 0x9d8   : > { %v13885_v62 = vsel %vm3096_vm8, %v14419_v57, %v7776_v32  ;;  %8065 = vadd.xlane.f32.xlu1 %v8064_v11  ;;  %v8109_v32 = vsel %vm4930_vm9, %v8039_v50, 0.0 }
 0x9d9   : > { %v8978_v18 = vpack.c.bf16 %v13885_v62, %v13885_v62  ;;  %v7778_v7 = vpop.permute.xlu1 %7777  ;;  %8068 = vadd.xlane.f32.xlu0 %v8067_v55  ;;  %v8042_v11 = vand.u32 2147483647, %v13885_v62 }
 0x9da   : > { %v13892_v35 = vsel %vm3096_vm8, %v14420_v19, %v7778_v7 }
 0x9db   : > { %8010 = vst.msk [vmem:[%s13698_s22 + $0x58] sm:$0xf] %vm7987_vm11, %v8978_v18  ;;  %v8979_v9 = vpack.c.bf16 %v13892_v35, %v13892_v35  ;;  %v8043_v57 = vand.u32 2147483647, %v13892_v35  ;;  %v8118_v44 = vsel %vm4930_vm9, %v8042_v11, 0.0 }
 0x9dc   : > { %8071 = vadd.xlane.f32.xlu1 %v8070_v15 }
 0x9dd   : > { %8011 = vst.msk [vmem:[%s13698_s22 + $0x5c] sm:$0xf] %vm7987_vm11, %v8979_v9  ;;  %8074 = vadd.xlane.f32.xlu0 %v8073_v34  ;;  %v8121_v7 = vsel %vm4930_vm9, %v8043_v57, 0.0 }
 0x9df   : > { %v7780_v30 = vpop.permute.xlu0 %7779 }
 0x9e0   : > { %v13909_v6 = vsel %vm3096_vm8, %v14421_v61, %v7780_v30  ;;  %8077 = vadd.xlane.f32.xlu1 %v8076_v5  ;;  %v8180_v5 = vlaneseq }
 0x9e1   : > { %v8980_v17 = vpack.c.bf16 %v13909_v6, %v13909_v6  ;;  %v7782_v1 = vpop.permute.xlu1 %7781  ;;  %8080 = vadd.xlane.f32.xlu0 %v8079_v3  ;;  %v8044_v55 = vand.u32 2147483647, %v13909_v6 }
 0x9e2   : > { %v13916_v10 = vsel %vm3096_vm8, %v14422_v26, %v7782_v1  ;;  %v8181_v37 = vand.u32 127, %v8180_v5  ;;  %v8183_v61 = vshrl.u32 %v8180_v5, 7 }
 0x9e3   : > { %8012 = vst.msk [vmem:[%s13698_s22 + $0x60] sm:$0xf] %vm7987_vm11, %v8980_v17  ;;  %v8981_v40 = vpack.c.bf16 %v13916_v10, %v13916_v10  ;;  %v8045_v18 = vand.u32 2147483647, %v13916_v10  ;;  %v8124_v62 = vsel %vm4930_vm9, %v8044_v55, 0.0  ;;  %v14427_v10 = vld [vmem:[#allocation20_spill] sm:$0xff] }
 0x9e4   : > { %8083 = vadd.xlane.f32.xlu1 %v8082_v12  ;;  %v8186_v3 = vadd.s32 4294967288, %v8181_v37  ;;  %v13974_v17 = vsub.s32 %v8181_v37, %v8183_v61 }
 0x9e5   : > { %8013 = vst.msk [vmem:[%s13698_s22 + $0x64] sm:$0xf] %vm7987_vm11, %v8981_v40  ;;  %8086 = vadd.xlane.f32.xlu0 %v8085_v43  ;;  %v8127_v35 = vsel %vm4930_vm9, %v8045_v18, 0.0 }
 0x9e6   : > { %v13976_v26 = vsub.s32 %v8186_v3, %v8183_v61 }
 0x9e7   : > { %v7784_v27 = vpop.permute.xlu0 %7783 }
 0x9e8   : > { %v7853_v47 = vsel %vm3096_vm8, %v14423_v20, %v7784_v27  ;;  %8089 = vadd.xlane.f32.xlu1 %v8088_v59  ;;  %v14428_v20 = vld [vmem:[#allocation27_spill] sm:$0xff] }
 0x9e9   : > { %v8982_v28 = vpack.c.bf16 %v7853_v47, %v7853_v47  ;;  %v7786_v22 = vpop.permute.xlu1 %7785  ;;  %8092 = vadd.xlane.f32.xlu0 %v8091_v42  ;;  %v8046_v19 = vand.u32 2147483647, %v7853_v47 }
 0x9ea   : > { %v7854_v54 = vsel %vm3096_vm8, %v14424_v41, %v7786_v22 }
 0x9eb   : > { %8014 = vst.msk [vmem:[%s13698_s22 + $0x68] sm:$0xf] %vm7987_vm11, %v8982_v28  ;;  %v8983_v51 = vpack.c.bf16 %v7854_v54, %v7854_v54  ;;  %v8047_v2 = vand.u32 2147483647, %v7854_v54  ;;  %v8130_v15 = vsel %vm4930_vm9, %v8046_v19, 0.0 }
 0x9ec   : > { %8095 = vadd.xlane.f32.xlu1 %v8094_v52 }
 0x9ed   : > { %8015 = vst.msk [vmem:[%s13698_s22 + $0x6c] sm:$0xf] %vm7987_vm11, %v8983_v51  ;;  %8098 = vadd.xlane.f32.xlu0 %v8097_v58  ;;  %v8133_v34 = vsel %vm4930_vm9, %v8047_v2, 0.0 }
 0x9ef   : > { %v7788_v13 = vpop.permute.xlu0 %7787 }
 0x9f0   : > { %v7855_v45 = vsel %vm3096_vm8, %v14425_v24, %v7788_v13  ;;  %8101 = vadd.xlane.f32.xlu1 %v8100_v23 }
 0x9f1   : > { %v8984_v39 = vpack.c.bf16 %v7855_v45, %v7855_v45  ;;  %v7790_v21 = vpop.permute.xlu1 %7789  ;;  %8104 = vadd.xlane.f32.xlu0 %v8103_v46  ;;  %v8048_v9 = vand.u32 2147483647, %v7855_v45 }
 0x9f2   : > { %v7856_v36 = vsel %vm3096_vm8, %v14426_v29, %v7790_v21 }
 0x9f3   : > { %8016 = vst.msk [vmem:[%s13698_s22 + $0x70] sm:$0xf] %vm7987_vm11, %v8984_v39  ;;  %v8985_v25 = vpack.c.bf16 %v7856_v36, %v7856_v36  ;;  %v8049_v14 = vand.u32 2147483647, %v7856_v36  ;;  %v8136_v33 = vsel %vm4930_vm9, %v8048_v9, 0.0 }
 0x9f4   : > { %8107 = vadd.xlane.f32.xlu1 %v8106_v48 }
 0x9f5   : > { %8017 = vst.msk [vmem:[%s13698_s22 + $0x74] sm:$0xf] %vm7987_vm11, %v8985_v25  ;;  %8110 = vadd.xlane.f32.xlu0 %v8109_v32  ;;  %v8139_v30 = vsel %vm4930_vm9, %v8049_v14, 0.0 }
 0x9f8   : > { %8113 = vadd.xlane.f32.xlu1 %v8112_v0 }
 0x9f9   : > { %8116 = vadd.xlane.f32.xlu0 %v8115_v16 }
 0x9fc   : > { %8119 = vadd.xlane.f32.xlu1 %v8118_v44 }
 0x9fd   : > { %8122 = vadd.xlane.f32.xlu0 %v8121_v7 }
 0xa00   : > { %8125 = vadd.xlane.f32.xlu1 %v8124_v62 }
 0xa01   : > { %8128 = vadd.xlane.f32.xlu0 %v8127_v35 }
 0xa04   : > { %8131 = vadd.xlane.f32.xlu1 %v8130_v15 }
 0xa05   : > { %8134 = vadd.xlane.f32.xlu0 %v8133_v34 }
 0xa08   : > { %8137 = vadd.xlane.f32.xlu1 %v8136_v33 }
 0xa09   : > { %8140 = vadd.xlane.f32.xlu0 %v8139_v30 }
 0xa29   : > { %v8054_v6 = vpop.xlane.xlu0 %8053 }
 0xa2a   : > { %v8185_v43 = vrot.slane %v8054_v6, %v13974_v17 }
 0xa2d   : > { %v7792_v1 = vpop.permute.xlu0 %7791 }
 0xa2e   : > { %v7857_v38 = vsel %vm3096_vm8, %v14427_v10, %v7792_v1 }
 0xa2f   : > { %v8986_v40 = vpack.c.bf16 %v7857_v38, %v7857_v38  ;;  %v8050_v12 = vand.u32 2147483647, %v7857_v38 }
 0xa30   : > { %v8057_v4 = vpop.xlane.xlu1 %8056 }
 0xa31   : > { %8018 = vst.msk [vmem:[%s13698_s22 + $0x78] sm:$0xf] %vm7987_vm11, %v8986_v40  ;;  %v8190_v60 = vrot.slane %v8057_v4, %v13976_v26  ;;  %v8142_v27 = vsel %vm4930_vm9, %v8050_v12, 0.0 }
 0xa32   : > { %8143 = vadd.xlane.f32.xlu1 %v8142_v27 }
 0xa33   : > { %v8192_v59 = vsel %vm8191_vm12, %v8190_v60, %v8185_v43 }
 0xa34   : > { %v7794_v8 = vpop.permute.xlu1 %7793 }
 0xa35   : > { %v7858_v47 = vsel %vm3096_vm8, %v14428_v20, %v7794_v8 }
 0xa36   : > { %v8987_v42 = vpack.c.bf16 %v7858_v47, %v7858_v47  ;;  %v8051_v28 = vand.u32 2147483647, %v7858_v47 }
 0xa38   : > { %8019 = vst.msk [vmem:[%s13698_s22 + $0x7c] sm:$0xf] %vm7987_vm11, %v8987_v42  ;;  %v8145_v22 = vsel %vm4930_vm9, %v8051_v28, 0.0 }
 0xa39   : > { %8146 = vadd.xlane.f32.xlu0 %v8145_v22 }
 0xa5e   : > { %v8060_v41 = vpop.xlane.xlu0 %8059 }
 0xa5f   : > { %v8196_v46 = vrot.slane %v8060_v41, %v13974_v17 }
 0xa62   : > { %v8063_v54 = vpop.xlane.xlu0 %8062 }
 0xa63   : > { %v8200_v13 = vrot.slane %v8063_v54, %v13976_v26 }
 0xa65   : > { %v8066_v31 = vpop.xlane.xlu1 %8065  ;;  %v8201_v56 = vsel %vm8191_vm12, %v8200_v13, %v8196_v46 }
 0xa66   : > { %v8069_v51 = vpop.xlane.xlu0 %8068  ;;  %v8205_v50 = vrot.slane %v8066_v31, %v13974_v17  ;;  %v8329_v55 = vsel %vm8328_vm13, %v8201_v56, %v8192_v59 }
 0xa67   : > { %v8209_v24 = vrot.slane %v8069_v51, %v13976_v26 }
 0xa69   : > { %v8072_v52 = vpop.xlane.xlu1 %8071  ;;  %v8210_v32 = vsel %vm8191_vm12, %v8209_v24, %v8205_v50 }
 0xa6a   : > { %v8075_v49 = vpop.xlane.xlu0 %8074  ;;  %v8214_v39 = vrot.slane %v8072_v52, %v13974_v17  ;;  %v8331_v18 = vsel %vm8330_vm14, %v8210_v32, %v8329_v55 }
 0xa6b   : > { %v8218_v21 = vrot.slane %v8075_v49, %v13976_v26 }
 0xa6d   : > { %v8078_v58 = vpop.xlane.xlu1 %8077  ;;  %v8219_v57 = vsel %vm8191_vm12, %v8218_v21, %v8214_v39 }
 0xa6e   : > { %v8081_v63 = vpop.xlane.xlu0 %8080  ;;  %v8223_v29 = vrot.slane %v8078_v58, %v13974_v17  ;;  %v8333_v62 = vsel %vm8332_vm15, %v8219_v57, %v8331_v18 }
 0xa6f   : > { %v8227_v36 = vrot.slane %v8081_v63, %v13976_v26 }
 0xa71   : > { %v8084_v23 = vpop.xlane.xlu1 %8083  ;;  %v8228_v44 = vsel %vm8191_vm12, %v8227_v36, %v8223_v29 }
 0xa72   : > { %v8087_v45 = vpop.xlane.xlu0 %8086  ;;  %v8232_v25 = vrot.slane %v8084_v23, %v13974_v17  ;;  %v8335_v15 = vsel %vm8334_vm0, %v8228_v44, %v8333_v62 }
 0xa73   : > { %v8236_v48 = vrot.slane %v8087_v45, %v13976_v26 }
 0xa75   : > { %v8090_v53 = vpop.xlane.xlu1 %8089  ;;  %v8237_v7 = vsel %vm8191_vm12, %v8236_v48, %v8232_v25 }
 0xa76   : > { %v8241_v11 = vrot.slane %v8090_v53, %v13974_v17  ;;  %v8093_v0 = vpop.xlane.xlu0 %8092  ;;  %v8337_v34 = vsel %vm8336_vm1, %v8237_v7, %v8335_v15 }
 0xa77   : > { %v8245_v16 = vrot.slane %v8093_v0, %v13976_v26 }
 0xa79   : > { %v8096_v19 = vpop.xlane.xlu1 %8095  ;;  %v8246_v2 = vsel %vm8191_vm12, %v8245_v16, %v8241_v11 }
 0xa7a   : > { %v8250_v35 = vrot.slane %v8096_v19, %v13974_v17  ;;  %v8099_v9 = vpop.xlane.xlu0 %8098  ;;  %v8339_v33 = vsel %vm8338_vm2, %v8246_v2, %v8337_v34 }
 0xa7b   : > { %v8254_v14 = vrot.slane %v8099_v9, %v13976_v26 }
 0xa7d   : > { %v8255_v30 = vsel %vm8191_vm12, %v8254_v14, %v8250_v35  ;;  %v8102_v5 = vpop.xlane.xlu1 %8101 }
 0xa7e   : > { %v8341_v37 = vsel %vm8340_vm3, %v8255_v30, %v8339_v33  ;;  %v8105_v61 = vpop.xlane.xlu0 %8104  ;;  %v8259_v38 = vrot.slane %v8102_v5, %v13974_v17 }
 0xa7f   : > { %8351 = vst.msk [vmem:[%s14020_s25] sm:$0xff] %vm1127_vm4, %v8341_v37  ;;  %v8263_v40 = vrot.slane %v8105_v61, %v13976_v26 }
 0xa81   : > { %v8108_v6 = vpop.xlane.xlu1 %8107  ;;  %v8264_v59 = vsel %vm8191_vm12, %v8263_v40, %v8259_v38 }
 0xa82   : > { %v8268_v3 = vrot.slane %v8108_v6, %v13974_v17  ;;  %v8111_v1 = vpop.xlane.xlu0 %8110 }
 0xa83   : > { %v8272_v10 = vrot.slane %v8111_v1, %v13976_v26 }
 0xa85   : > { %v8114_v12 = vpop.xlane.xlu1 %8113  ;;  %v8273_v4 = vsel %vm8191_vm12, %v8272_v10, %v8268_v3 }
 0xa86   : > { %v8277_v43 = vrot.slane %v8114_v12, %v13974_v17  ;;  %v8117_v60 = vpop.xlane.xlu0 %8116  ;;  %v8342_v8 = vsel %vm8328_vm13, %v8273_v4, %v8264_v59 }
 0xa87   : > { %v8281_v27 = vrot.slane %v8117_v60, %v13976_v26 }
 0xa89   : > { %v8282_v20 = vsel %vm8191_vm12, %v8281_v27, %v8277_v43  ;;  %v8120_v47 = vpop.xlane.xlu1 %8119 }
 0xa8a   : > { %v8343_v42 = vsel %vm8330_vm14, %v8282_v20, %v8342_v8  ;;  %v8286_v28 = vrot.slane %v8120_v47, %v13974_v17  ;;  %v8123_v22 = vpop.xlane.xlu0 %8122 }
 0xa8b   : > { %v8290_v41 = vrot.slane %v8123_v22, %v13976_v26 }
 0xa8d   : > { %v8291_v54 = vsel %vm8191_vm12, %v8290_v41, %v8286_v28  ;;  %v8126_v31 = vpop.xlane.xlu1 %8125 }
 0xa8e   : > { %v8344_v51 = vsel %vm8332_vm15, %v8291_v54, %v8343_v42  ;;  %v8295_v52 = vrot.slane %v8126_v31, %v13974_v17  ;;  %v8129_v49 = vpop.xlane.xlu0 %8128 }
 0xa8f   : > { %v8299_v58 = vrot.slane %v8129_v49, %v13976_v26 }
 0xa91   : > { %v8300_v63 = vsel %vm8191_vm12, %v8299_v58, %v8295_v52  ;;  %v8132_v13 = vpop.xlane.xlu1 %8131 }
 0xa92   : > { %v8345_v23 = vsel %vm8334_vm0, %v8300_v63, %v8344_v51  ;;  %v8304_v50 = vrot.slane %v8132_v13, %v13974_v17  ;;  %v8135_v24 = vpop.xlane.xlu0 %8134 }
 0xa93   : > { %v8308_v45 = vrot.slane %v8135_v24, %v13976_v26 }
 0xa95   : > { %v8309_v46 = vsel %vm8191_vm12, %v8308_v45, %v8304_v50  ;;  %v8138_v39 = vpop.xlane.xlu1 %8137 }
 0xa96   : > { %v8346_v21 = vsel %vm8336_vm1, %v8309_v46, %v8345_v23  ;;  %v8313_v29 = vrot.slane %v8138_v39, %v13974_v17  ;;  %v8141_v36 = vpop.xlane.xlu0 %8140 }
 0xa97   : > { %v8317_v56 = vrot.slane %v8141_v36, %v13976_v26 }
 0xa99   : > { %v8318_v25 = vsel %vm8191_vm12, %v8317_v56, %v8313_v29 }
 0xa9a   : > { %v8347_v48 = vsel %vm8338_vm2, %v8318_v25, %v8346_v21 }
 0xabf   : > { %v8144_v53 = vpop.xlane.xlu1 %8143 }
 0xac0   : > { %v8322_v11 = vrot.slane %v8144_v53, %v13974_v17 }
 0xac6   : > { %v8147_v32 = vpop.xlane.xlu0 %8146 }
 0xac7   : > { %v8326_v0 = vrot.slane %v8147_v32, %v13976_v26 }
 0xac9   : > { %v8327_v57 = vsel %vm8191_vm12, %v8326_v0, %v8322_v11 }
 0xaca   : > { %v8348_v16 = vsel %vm8340_vm3, %v8327_v57, %v8347_v48 }
 0xacb   : > { %8352 = vst.msk [vmem:[%s14020_s25 + $0x8] sm:$0xff] %vm1127_vm4, %v8348_v16 }
 0xacc PF: > { %s21_s15 = sadd.s32 1, %s10080_s15   ;;  %s14429_s13 = smov %s10076_s14 }
 0xacd   : > { %p18_p5 = scmp.ge.s32.totalorder %s21_s15, 4   ;;  %s14430_s14 = smov %s14432_s16 }
 0xacf   :  { %20 = sbr.rel (!%p18_p5) target bundleno = 2 (0x2), region = 107 }

</bundles_post_ra>
